<compile_context>
chip_gen: v7x
topology: tpu7x:2x2x1
jax: 0.10.0
libtpu: 0.0.40
codegen_flags: <defaults>
</compile_context>

<pallas_src>
import numpy as np
import jax
import jax.numpy as jnp
from jax.experimental import pallas as pl
from jax.experimental.pallas import tpu as pltpu

IMAGE_SHAPE = (224, 224)
NUM_CLASSES = 10
NUM_CHANNELS = 5
KERNEL_SIZE = 3
HIDDEN_DIM = 200

IH, IW = IMAGE_SHAPE
CONV_HW = IH - KERNEL_SIZE + 1                 # 222
POOL_HW = CONV_HW // 2 // 2                    # 55  (two 2x2/2 pools == one 4x4/4 pool)
FLAT = NUM_CHANNELS * POOL_HW * POOL_HW        # 15125

# ----- kernel-1 layout constants --------------------------------------------
CH_SLAB = 64                                           # per-channel lane slab (>= 55)
PHASE_LANES = ((NUM_CHANNELS * CH_SLAB + 127) // 128) * 128   # 384 (128-aligned)
CONV_LANES = 4 * PHASE_LANES                           # 1536: col-pool phase s is major
ROW_BLK = 64                                           # padded pooled-row block (>= 55)
T_ROWS = (KERNEL_SIZE + 3) * ROW_BLK                   # 384: 6 row selections (m = r + dy)

# ----- kernel-2 (MLP) constants ----------------------------------------------
MLP_TK = 7680                                          # K tile -> 2 grid steps
HIDDEN_PAD = 256                                       # 200 -> 2 x 128 lanes
FLAT_PAD = int(pl.cdiv(FLAT, MLP_TK) * MLP_TK)         # 15360


# ----------------------------------------------------------------------------
# Kernel 1: conv(1->C, 3x3, valid) + bias + ReLU + fused 4x4/stride-4 max pool
# ----------------------------------------------------------------------------
def conv_pool_kernel(a_ref, tsel_ref, bias_ref, x_ref, o_ref):
    # a_ref   : (3, 224, 1536) bf16   banded conv weights:
    #                                 a[dy, k, s*384 + c*64 + q] = w[c, dy, k-(4q+s)]
    # tsel_ref: (384, 224)     bf16   stacked stride-4 row selectors:
    #                                 tsel[m*64 + p, 4p + m] = 1, m in [0,6), p in [0,55)
    # bias_ref: (1, 384)       f32    conv bias broadcast over lane c*64 + q
    # x_ref   : (1, 224, 224)  bf16   one image
    # o_ref   : (1, 5, 55, 55) f32    pooled activations, torch NCHW layout
    xb = x_ref[0]

    # All 6 stride-4 row selections of the image in one MXU matmul (exact: 0/1
    # selectors, accumulate f32, cast back to bf16 loss-free).
    t = jnp.dot(tsel_ref[...], xb,
                preferred_element_type=jnp.float32).astype(jnp.bfloat16)  # (384, 224)

    # Conv for every channel / pooling phase as 3 accumulated MXU matmuls:
    #   cand[r*64 + p, s*384 + c*64 + q] = conv_nobias[c, 4p + r, 4q + s]
    cand = jnp.dot(t[0:4 * ROW_BLK], a_ref[0], preferred_element_type=jnp.float32)
    cand = cand + jnp.dot(t[ROW_BLK:5 * ROW_BLK], a_ref[1],
                          preferred_element_type=jnp.float32)
    cand = cand + jnp.dot(t[2 * ROW_BLK:6 * ROW_BLK], a_ref[2],
                          preferred_element_type=jnp.float32)            # (256, 1536)

    # 4x4 max pool = max over the 4 row phases (aligned 64-row blocks) and the
    # 4 column phases (aligned 384-lane blocks).  No shifted/misaligned copies.
    m = jnp.maximum(jnp.maximum(cand[0:ROW_BLK], cand[ROW_BLK:2 * ROW_BLK]),
                    jnp.maximum(cand[2 * ROW_BLK:3 * ROW_BLK],
                                cand[3 * ROW_BLK:4 * ROW_BLK]))          # (64, 1536)
    cp = jnp.maximum(
        jnp.maximum(m[:, 0:PHASE_LANES], m[:, PHASE_LANES:2 * PHASE_LANES]),
        jnp.maximum(m[:, 2 * PHASE_LANES:3 * PHASE_LANES],
                    m[:, 3 * PHASE_LANES:4 * PHASE_LANES]))              # (64, 384)

    # bias + ReLU commute with max (monotone), so apply them once after pooling.
    pooled = jnp.maximum(cp + bias_ref[...], 0.0)                        # (64, 384) f32

    for c in range(NUM_CHANNELS):
        o_ref[0, c] = pooled[0:POOL_HW, c * CH_SLAB:c * CH_SLAB + POOL_HW]


# ----------------------------------------------------------------------------
# Kernel 2: linear1 + ReLU + dropout(p=0 identity) + linear2 + b2, K-tiled
# ----------------------------------------------------------------------------
def mlp_kernel(flat_ref, w1_ref, b1_ref, w2_ref, b2_ref, out_ref, acc_ref):
    k = pl.program_id(0)

    @pl.when(k == 0)
    def _init():
        acc_ref[...] = jnp.zeros_like(acc_ref)

    acc_ref[...] += jnp.dot(flat_ref[...], w1_ref[...],
                            preferred_element_type=jnp.float32)

    @pl.when(k == pl.num_programs(0) - 1)
    def _finish():
        hidden = jnp.maximum(acc_ref[...] + b1_ref[...], 0.0)   # linear1 + ReLU
        # Dropout(p=0.0) is the identity; nothing to apply.
        out_ref[...] = (jnp.dot(hidden, w2_ref[...],
                                preferred_element_type=jnp.float32)
                        + b2_ref[...])


# ----------------------------------------------------------------------------
# One-time parameter preparation (hoisted out of the forward pass)
# ----------------------------------------------------------------------------
def prepare_params(conv_w, conv_b, w1, b1, w2, b2):
    conv_w = np.asarray(conv_w, np.float32).reshape(NUM_CHANNELS, KERNEL_SIZE,
                                                    KERNEL_SIZE)
    conv_b = np.asarray(conv_b, np.float32)
    w1 = np.asarray(w1, np.float32)
    b1 = np.asarray(b1, np.float32)
    w2 = np.asarray(w2, np.float32)
    b2 = np.asarray(b2, np.float32)

    # Banded conv weights: a[dy, k, s*384 + c*64 + q] = w[c, dy, k - (4q + s)].
    a_band = np.zeros((KERNEL_SIZE, IW, CONV_LANES), np.float32)
    for dy in range(KERNEL_SIZE):
        for c in range(NUM_CHANNELS):
            for s in range(4):
                for q in range(POOL_HW):
                    lane = s * PHASE_LANES + c * CH_SLAB + q
                    for dx in range(KERNEL_SIZE):
                        a_band[dy, 4 * q + s + dx, lane] = conv_w[c, dy, dx]

    # Stacked stride-4 row selectors: tsel[m*64 + p, 4p + m] = 1.
    tsel = np.zeros((T_ROWS, IH), np.float32)
    for m_ in range(KERNEL_SIZE + 3):
        for p in range(POOL_HW):
            tsel[m_ * ROW_BLK + p, 4 * p + m_] = 1.0

    # Conv bias broadcast over the pooled lane layout (c*64 + q).
    bias_slab = np.zeros((1, PHASE_LANES), np.float32)
    for c in range(NUM_CHANNELS):
        bias_slab[0, c * CH_SLAB:(c + 1) * CH_SLAB] = conv_b[c]

    # MLP params: w1 rows are in torch NCHW-flatten order; pad + bf16 cast once.
    w1_p = np.zeros((FLAT_PAD, HIDDEN_PAD), np.float32)
    w1_p[:FLAT, :HIDDEN_DIM] = w1
    b1_p = np.zeros((1, HIDDEN_PAD), np.float32)
    b1_p[0, :HIDDEN_DIM] = b1
    w2_p = np.zeros((HIDDEN_PAD, NUM_CLASSES), np.float32)
    w2_p[:HIDDEN_DIM, :] = w2
    b2_p = b2.reshape(1, -1)

    return (jnp.asarray(a_band, jnp.bfloat16),
            jnp.asarray(tsel, jnp.bfloat16),
            jnp.asarray(bias_slab, jnp.float32),
            jnp.asarray(w1_p, jnp.bfloat16),
            jnp.asarray(b1_p, jnp.float32),
            jnp.asarray(w2_p, jnp.float32),
            jnp.asarray(b2_p, jnp.float32))


# ----------------------------------------------------------------------------
# Forward wrapper
# ----------------------------------------------------------------------------
def convnet_forward(x2d, a_band, tsel, bias_slab, w1_p, b1_p, w2_p, b2_p):
    B = x2d.shape[0]
    x_img = x2d.reshape(B, IH, IW).astype(jnp.bfloat16)

    pooled = pl.pallas_call(
        conv_pool_kernel,
        out_shape=jax.ShapeDtypeStruct((B, NUM_CHANNELS, POOL_HW, POOL_HW),
                                       jnp.float32),
        grid=(B,),
        in_specs=[
            pl.BlockSpec((KERNEL_SIZE, IH, CONV_LANES), lambda b: (0, 0, 0)),
            pl.BlockSpec((T_ROWS, IH), lambda b: (0, 0)),
            pl.BlockSpec((1, PHASE_LANES), lambda b: (0, 0)),
            pl.BlockSpec((1, IH, IW), lambda b: (b, 0, 0)),
        ],
        out_specs=pl.BlockSpec((1, NUM_CHANNELS, POOL_HW, POOL_HW),
                               lambda b: (b, 0, 0, 0)),
        compiler_params=pltpu.CompilerParams(
            dimension_semantics=("parallel",)),
    )(a_band, tsel, bias_slab, x_img)

    # Torch-order flatten (NCHW) + pad to the K tile, cast to bf16 to halve the
    # HBM-bound MLP activation/weight traffic.  (Tiny tensors; single XLA op.)
    flat = pooled.reshape(B, FLAT)
    flat_p = jnp.pad(flat, ((0, 0), (0, FLAT_PAD - FLAT))).astype(jnp.bfloat16)

    nk = FLAT_PAD // MLP_TK
    out = pl.pallas_call(
        mlp_kernel,
        out_shape=jax.ShapeDtypeStruct((B, NUM_CLASSES), jnp.float32),
        grid=(nk,),
        in_specs=[
            pl.BlockSpec((B, MLP_TK), lambda k: (0, k)),                 # activations
            pl.BlockSpec((MLP_TK, HIDDEN_PAD), lambda k: (k, 0)),        # w1 (bf16)
            pl.BlockSpec((1, HIDDEN_PAD), lambda k: (0, 0)),             # b1
            pl.BlockSpec((HIDDEN_PAD, NUM_CLASSES), lambda k: (0, 0)),   # w2
            pl.BlockSpec((1, NUM_CLASSES), lambda k: (0, 0)),            # b2
        ],
        out_specs=pl.BlockSpec((B, NUM_CLASSES), lambda k: (0, 0)),
        scratch_shapes=[pltpu.VMEM((B, HIDDEN_PAD), jnp.float32)],
        compiler_params=pltpu.CompilerParams(
            dimension_semantics=("arbitrary",)),
    )(flat_p, w1_p, b1_p, w2_p, b2_p)
    return out


# ----------------------------------------------------------------------------
# Pure-JAX reference (sanity check)
# ----------------------------------------------------------------------------
def reference_forward(x2d, conv_w, conv_b, w1, b1, w2, b2):
    B = x2d.shape[0]
    x = x2d.reshape(B, 1, IH, IW)
    conv = jax.lax.conv_general_dilated(
        x, conv_w, window_strides=(1, 1), padding="VALID",
        dimension_numbers=("NCHW", "OIHW", "NCHW"))
    conv = jnp.maximum(conv + conv_b.reshape(1, -1, 1, 1), 0.0)
    p1 = jax.lax.reduce_window(conv, -jnp.inf, jax.lax.max,
                               (1, 1, 2, 2), (1, 1, 2, 2), "VALID")
    p2 = jax.lax.reduce_window(p1, -jnp.inf, jax.lax.max,
                               (1, 1, 2, 2), (1, 1, 2, 2), "VALID")
    flat = p2.reshape(B, -1)
    hidden = jnp.maximum(flat @ w1 + b1, 0.0)
    return hidden @ w2 + b2


if __name__ == "__main__":
    B = 2

    key = jax.random.PRNGKey(0)
    kx, kcw, kcb, k1w, k1b, k2w, k2b = jax.random.split(key, 7)

    def unif(k, shape, fan_in):
        s = 1.0 / np.sqrt(fan_in)
        return jax.random.uniform(k, shape, jnp.float32, -s, s)

    x = jax.random.normal(kx, (B, IH * IW), jnp.float32)
    conv_w = unif(kcw, (NUM_CHANNELS, 1, KERNEL_SIZE, KERNEL_SIZE),
                  KERNEL_SIZE * KERNEL_SIZE)
    conv_b = unif(kcb, (NUM_CHANNELS,), KERNEL_SIZE * KERNEL_SIZE)
    w1 = unif(k1w, (FLAT, HIDDEN_DIM), FLAT)               # == torch linear1.weight.T
    b1 = unif(k1b, (HIDDEN_DIM,), FLAT)
    w2 = unif(k2w, (HIDDEN_DIM, NUM_CLASSES), HIDDEN_DIM)  # == torch linear2.weight.T
    b2 = unif(k2b, (NUM_CLASSES,), HIDDEN_DIM)

    prepped = prepare_params(conv_w, conv_b, w1, b1, w2, b2)  # one-time setup

    fwd = jax.jit(convnet_forward)
    out = jax.block_until_ready(fwd(x, *prepped))

    ref = reference_forward(x, conv_w, conv_b, w1, b1, w2, b2)
    # bf16 image/conv/w1 path: ~0.1-0.4% relative error -> relaxed tolerance.
    np.testing.assert_allclose(np.asarray(out), np.asarray(ref),
                               rtol=1e-2, atol=1e-2)
    assert out.shape == (B, NUM_CLASSES)
    print("KERNEL_OK")
</pallas_src>

<mosaic_0001>
module attributes {stable_mosaic.version = 11 : i64} {
  func.func @conv_pool_kernel(%arg0: i32, %arg1: memref<3x224x1536xbf16, #tpu.memory_space<vmem>>, %arg2: memref<384x224xbf16, #tpu.memory_space<vmem>>, %arg3: memref<1x384xf32, #tpu.memory_space<vmem>>, %arg4: memref<1x224x224xbf16, #tpu.memory_space<vmem>>, %arg5: memref<1x5x55x55xf32, #tpu.memory_space<vmem>>) attributes {dimension_semantics = [#tpu.dimension_semantics<parallel>], iteration_bounds = array<i64: 2>, scalar_prefetch = 0 : i64, scratch_operands = 0 : i64, tpu.core_type = #tpu.core_type<tc>, window_params = [{pipeline_mode = #tpu.pipeline_mode<synchronous>, transform_indices = @transform_0, window_bounds = array<i64: 3, 224, 1536>}, {pipeline_mode = #tpu.pipeline_mode<synchronous>, transform_indices = @transform_1, window_bounds = array<i64: 384, 224>}, {pipeline_mode = #tpu.pipeline_mode<synchronous>, transform_indices = @transform_2, window_bounds = array<i64: 1, 384>}, {transform_indices = @transform_3, window_bounds = array<i64: 1, 224, 224>}, {transform_indices = @transform_4, window_bounds = array<i64: 1, 5, 55, 55>}]} {
    %c0 = arith.constant 0 : index
    %c0_0 = arith.constant 0 : index
    %c0_1 = arith.constant 0 : index
    %0 = vector.load %arg4[%c0, %c0_0, %c0_1] : memref<1x224x224xbf16, #tpu.memory_space<vmem>>, vector<1x224x224xbf16>
    %1 = vector.shape_cast %0 : vector<1x224x224xbf16> to vector<224x224xbf16>
    %c0_2 = arith.constant 0 : index
    %c0_3 = arith.constant 0 : index
    %2 = vector.load %arg2[%c0_2, %c0_3] : memref<384x224xbf16, #tpu.memory_space<vmem>>, vector<384x224xbf16>
    %cst = arith.constant dense<0.000000e+00> : vector<384x224xf32>
    %3 = tpu.matmul %2, %1, %cst {dimension_numbers = #tpu.dot_dimension_numbers<[1], [0], [0], [1], [0, 0, 1, 1], [], []>} : vector<384x224xbf16>, vector<224x224xbf16>, vector<384x224xf32> -> vector<384x224xf32>
    %4 = arith.truncf %3 : vector<384x224xf32> to vector<384x224xbf16>
    %5 = vector.extract_strided_slice %4 {offsets = [0, 0], sizes = [256, 224], strides = [1, 1]} : vector<384x224xbf16> to vector<256x224xbf16>
    %c0_4 = arith.constant 0 : index
    %c0_5 = arith.constant 0 : index
    %c0_6 = arith.constant 0 : index
    %6 = vector.load %arg1[%c0_4, %c0_5, %c0_6] : memref<3x224x1536xbf16, #tpu.memory_space<vmem>>, vector<1x224x1536xbf16>
    %7 = vector.shape_cast %6 : vector<1x224x1536xbf16> to vector<224x1536xbf16>
    %cst_7 = arith.constant dense<0.000000e+00> : vector<256x1536xf32>
    %8 = tpu.matmul %5, %7, %cst_7 {dimension_numbers = #tpu.dot_dimension_numbers<[1], [0], [0], [1], [0, 0, 1, 1], [], []>} : vector<256x224xbf16>, vector<224x1536xbf16>, vector<256x1536xf32> -> vector<256x1536xf32>
    %9 = vector.extract_strided_slice %4 {offsets = [64, 0], sizes = [256, 224], strides = [1, 1]} : vector<384x224xbf16> to vector<256x224xbf16>
    %c1 = arith.constant 1 : index
    %c0_8 = arith.constant 0 : index
    %c0_9 = arith.constant 0 : index
    %10 = vector.load %arg1[%c1, %c0_8, %c0_9] : memref<3x224x1536xbf16, #tpu.memory_space<vmem>>, vector<1x224x1536xbf16>
    %11 = vector.shape_cast %10 : vector<1x224x1536xbf16> to vector<224x1536xbf16>
    %cst_10 = arith.constant dense<0.000000e+00> : vector<256x1536xf32>
    %12 = tpu.matmul %9, %11, %cst_10 {dimension_numbers = #tpu.dot_dimension_numbers<[1], [0], [0], [1], [0, 0, 1, 1], [], []>} : vector<256x224xbf16>, vector<224x1536xbf16>, vector<256x1536xf32> -> vector<256x1536xf32>
    %13 = arith.addf %8, %12 : vector<256x1536xf32>
    %14 = vector.extract_strided_slice %4 {offsets = [128, 0], sizes = [256, 224], strides = [1, 1]} : vector<384x224xbf16> to vector<256x224xbf16>
    %c2 = arith.constant 2 : index
    %c0_11 = arith.constant 0 : index
    %c0_12 = arith.constant 0 : index
    %15 = vector.load %arg1[%c2, %c0_11, %c0_12] : memref<3x224x1536xbf16, #tpu.memory_space<vmem>>, vector<1x224x1536xbf16>
    %16 = vector.shape_cast %15 : vector<1x224x1536xbf16> to vector<224x1536xbf16>
    %cst_13 = arith.constant dense<0.000000e+00> : vector<256x1536xf32>
    %17 = tpu.matmul %14, %16, %cst_13 {dimension_numbers = #tpu.dot_dimension_numbers<[1], [0], [0], [1], [0, 0, 1, 1], [], []>} : vector<256x224xbf16>, vector<224x1536xbf16>, vector<256x1536xf32> -> vector<256x1536xf32>
    %18 = arith.addf %13, %17 : vector<256x1536xf32>
    %19 = vector.extract_strided_slice %18 {offsets = [0, 0], sizes = [64, 1536], strides = [1, 1]} : vector<256x1536xf32> to vector<64x1536xf32>
    %20 = vector.extract_strided_slice %18 {offsets = [64, 0], sizes = [64, 1536], strides = [1, 1]} : vector<256x1536xf32> to vector<64x1536xf32>
    %21 = arith.maximumf %19, %20 : vector<64x1536xf32>
    %22 = vector.extract_strided_slice %18 {offsets = [128, 0], sizes = [64, 1536], strides = [1, 1]} : vector<256x1536xf32> to vector<64x1536xf32>
    %23 = vector.extract_strided_slice %18 {offsets = [192, 0], sizes = [64, 1536], strides = [1, 1]} : vector<256x1536xf32> to vector<64x1536xf32>
    %24 = arith.maximumf %22, %23 : vector<64x1536xf32>
    %25 = arith.maximumf %21, %24 : vector<64x1536xf32>
    %26 = vector.extract_strided_slice %25 {offsets = [0, 0], sizes = [64, 384], strides = [1, 1]} : vector<64x1536xf32> to vector<64x384xf32>
    %27 = vector.extract_strided_slice %25 {offsets = [0, 384], sizes = [64, 384], strides = [1, 1]} : vector<64x1536xf32> to vector<64x384xf32>
    %28 = arith.maximumf %26, %27 : vector<64x384xf32>
    %29 = vector.extract_strided_slice %25 {offsets = [0, 768], sizes = [64, 384], strides = [1, 1]} : vector<64x1536xf32> to vector<64x384xf32>
    %30 = vector.extract_strided_slice %25 {offsets = [0, 1152], sizes = [64, 384], strides = [1, 1]} : vector<64x1536xf32> to vector<64x384xf32>
    %31 = arith.maximumf %29, %30 : vector<64x384xf32>
    %32 = arith.maximumf %28, %31 : vector<64x384xf32>
    %c0_14 = arith.constant 0 : index
    %c0_15 = arith.constant 0 : index
    %33 = vector.load %arg3[%c0_14, %c0_15] : memref<1x384xf32, #tpu.memory_space<vmem>>, vector<1x384xf32>
    %34 = vector.broadcast %33 : vector<1x384xf32> to vector<64x384xf32>
    %35 = arith.addf %32, %34 : vector<64x384xf32>
    %cst_16 = arith.constant 0.000000e+00 : f32
    %36 = vector.broadcast %cst_16 : f32 to vector<64x384xf32>
    %37 = arith.maximumf %35, %36 : vector<64x384xf32>
    %38 = vector.extract_strided_slice %37 {offsets = [0, 0], sizes = [55, 55], strides = [1, 1]} : vector<64x384xf32> to vector<55x55xf32>
    %c0_17 = arith.constant 0 : index
    %c0_18 = arith.constant 0 : index
    %c0_19 = arith.constant 0 : index
    %c0_20 = arith.constant 0 : index
    %39 = vector.load %arg5[%c0_17, %c0_18, %c0_19, %c0_20] : memref<1x5x55x55xf32, #tpu.memory_space<vmem>>, vector<1x1x55x55xf32>
    %40 = vector.shape_cast %39 : vector<1x1x55x55xf32> to vector<55x55xf32>
    %41 = vector.shape_cast %38 : vector<55x55xf32> to vector<1x1x55x55xf32>
    tpu.vector_store %arg5[%c0_17, %c0_18, %c0_19, %c0_20], %41 {strides = array<i32>} : memref<1x5x55x55xf32, #tpu.memory_space<vmem>>, vector<1x1x55x55xf32>,
    %42 = vector.extract_strided_slice %37 {offsets = [0, 64], sizes = [55, 55], strides = [1, 1]} : vector<64x384xf32> to vector<55x55xf32>
    %c0_21 = arith.constant 0 : index
    %c1_22 = arith.constant 1 : index
    %c0_23 = arith.constant 0 : index
    %c0_24 = arith.constant 0 : index
    %43 = vector.load %arg5[%c0_21, %c1_22, %c0_23, %c0_24] : memref<1x5x55x55xf32, #tpu.memory_space<vmem>>, vector<1x1x55x55xf32>
    %44 = vector.shape_cast %43 : vector<1x1x55x55xf32> to vector<55x55xf32>
    %45 = vector.shape_cast %42 : vector<55x55xf32> to vector<1x1x55x55xf32>
    tpu.vector_store %arg5[%c0_21, %c1_22, %c0_23, %c0_24], %45 {strides = array<i32>} : memref<1x5x55x55xf32, #tpu.memory_space<vmem>>, vector<1x1x55x55xf32>,
    %46 = vector.extract_strided_slice %37 {offsets = [0, 128], sizes = [55, 55], strides = [1, 1]} : vector<64x384xf32> to vector<55x55xf32>
    %c0_25 = arith.constant 0 : index
    %c2_26 = arith.constant 2 : index
    %c0_27 = arith.constant 0 : index
    %c0_28 = arith.constant 0 : index
    %47 = vector.load %arg5[%c0_25, %c2_26, %c0_27, %c0_28] : memref<1x5x55x55xf32, #tpu.memory_space<vmem>>, vector<1x1x55x55xf32>
    %48 = vector.shape_cast %47 : vector<1x1x55x55xf32> to vector<55x55xf32>
    %49 = vector.shape_cast %46 : vector<55x55xf32> to vector<1x1x55x55xf32>
    tpu.vector_store %arg5[%c0_25, %c2_26, %c0_27, %c0_28], %49 {strides = array<i32>} : memref<1x5x55x55xf32, #tpu.memory_space<vmem>>, vector<1x1x55x55xf32>,
    %50 = vector.extract_strided_slice %37 {offsets = [0, 192], sizes = [55, 55], strides = [1, 1]} : vector<64x384xf32> to vector<55x55xf32>
    %c0_29 = arith.constant 0 : index
    %c3 = arith.constant 3 : index
    %c0_30 = arith.constant 0 : index
    %c0_31 = arith.constant 0 : index
    %51 = vector.load %arg5[%c0_29, %c3, %c0_30, %c0_31] : memref<1x5x55x55xf32, #tpu.memory_space<vmem>>, vector<1x1x55x55xf32>
    %52 = vector.shape_cast %51 : vector<1x1x55x55xf32> to vector<55x55xf32>
    %53 = vector.shape_cast %50 : vector<55x55xf32> to vector<1x1x55x55xf32>
    tpu.vector_store %arg5[%c0_29, %c3, %c0_30, %c0_31], %53 {strides = array<i32>} : memref<1x5x55x55xf32, #tpu.memory_space<vmem>>, vector<1x1x55x55xf32>,
    %54 = vector.extract_strided_slice %37 {offsets = [0, 256], sizes = [55, 55], strides = [1, 1]} : vector<64x384xf32> to vector<55x55xf32>
    %c0_32 = arith.constant 0 : index
    %c4 = arith.constant 4 : index
    %c0_33 = arith.constant 0 : index
    %c0_34 = arith.constant 0 : index
    %55 = vector.load %arg5[%c0_32, %c4, %c0_33, %c0_34] : memref<1x5x55x55xf32, #tpu.memory_space<vmem>>, vector<1x1x55x55xf32>
    %56 = vector.shape_cast %55 : vector<1x1x55x55xf32> to vector<55x55xf32>
    %57 = vector.shape_cast %54 : vector<55x55xf32> to vector<1x1x55x55xf32>
    tpu.vector_store %arg5[%c0_32, %c4, %c0_33, %c0_34], %57 {strides = array<i32>} : memref<1x5x55x55xf32, #tpu.memory_space<vmem>>, vector<1x1x55x55xf32>,
    return
  }
  func.func @transform_0(%arg0: i32) -> (i32, i32, i32) {
    %c0_i32 = arith.constant 0 : i32
    %c0_i32_0 = arith.constant 0 : i32
    %c0_i32_1 = arith.constant 0 : i32
    %c0_i32_2 = arith.constant 0 : i32
    return %c0_i32, %c0_i32_0, %c0_i32_1 : i32, i32, i32
  }
  func.func @transform_1(%arg0: i32) -> (i32, i32) {
    %c0_i32 = arith.constant 0 : i32
    %c0_i32_0 = arith.constant 0 : i32
    %c0_i32_1 = arith.constant 0 : i32
    return %c0_i32, %c0_i32_0 : i32, i32
  }
  func.func @transform_2(%arg0: i32) -> (i32, i32) {
    %c0_i32 = arith.constant 0 : i32
    %c0_i32_0 = arith.constant 0 : i32
    %c0_i32_1 = arith.constant 0 : i32
    return %c0_i32, %c0_i32_0 : i32, i32
  }
  func.func @transform_3(%arg0: i32) -> (i32, i32, i32) {
    %c0_i32 = arith.constant 0 : i32
    %c0_i32_0 = arith.constant 0 : i32
    %c0_i32_1 = arith.constant 0 : i32
    return %arg0, %c0_i32, %c0_i32_0 : i32, i32, i32
  }
  func.func @transform_4(%arg0: i32) -> (i32, i32, i32, i32) {
    %c0_i32 = arith.constant 0 : i32
    %c0_i32_0 = arith.constant 0 : i32
    %c0_i32_1 = arith.constant 0 : i32
    %c0_i32_2 = arith.constant 0 : i32
    return %arg0, %c0_i32, %c0_i32_0, %c0_i32_1 : i32, i32, i32, i32
  }
}

module attributes {stable_mosaic.version = 11 : i64} {
  func.func @mlp_kernel(%arg0: i32, %arg1: memref<2x7680xbf16, #tpu.memory_space<vmem>>, %arg2: memref<7680x256xbf16, #tpu.memory_space<vmem>>, %arg3: memref<1x256xf32, #tpu.memory_space<vmem>>, %arg4: memref<256x10xf32, #tpu.memory_space<vmem>>, %arg5: memref<1x10xf32, #tpu.memory_space<vmem>>, %arg6: memref<2x10xf32, #tpu.memory_space<vmem>>, %arg7: memref<2x256xf32, #tpu.memory_space<vmem>>) attributes {dimension_semantics = [#tpu.dimension_semantics<arbitrary>], iteration_bounds = array<i64: 2>, scalar_prefetch = 0 : i64, scratch_operands = 1 : i64, tpu.core_type = #tpu.core_type<tc>, window_params = [{transform_indices = @transform_0, window_bounds = array<i64: 2, 7680>}, {transform_indices = @transform_1, window_bounds = array<i64: 7680, 256>}, {pipeline_mode = #tpu.pipeline_mode<synchronous>, transform_indices = @transform_2, window_bounds = array<i64: 1, 256>}, {pipeline_mode = #tpu.pipeline_mode<synchronous>, transform_indices = @transform_3, window_bounds = array<i64: 256, 10>}, {pipeline_mode = #tpu.pipeline_mode<synchronous>, transform_indices = @transform_4, window_bounds = array<i64: 1, 10>}, {pipeline_mode = #tpu.pipeline_mode<synchronous>, transform_indices = @transform_5, window_bounds = array<i64: 2, 10>}]} {
    %c0_i32 = arith.constant 0 : i32
    %0 = arith.cmpi eq, %arg0, %c0_i32 : i32
    %1 = arith.extui %0 : i1 to i32
    %c0_i32_0 = arith.constant 0 : i32
    %2 = arith.cmpi ne, %1, %c0_i32_0 : i32
    scf.if %2 {
      %cst_9 = arith.constant 0.000000e+00 : f32
      %12 = vector.broadcast %cst_9 : f32 to vector<2x256xf32>
      %c0_10 = arith.constant 0 : index
      %c0_11 = arith.constant 0 : index
      %13 = vector.load %arg7[%c0_10, %c0_11] : memref<2x256xf32, #tpu.memory_space<vmem>>, vector<2x256xf32>
      tpu.vector_store %arg7[%c0_10, %c0_11], %12 {strides = array<i32>} : memref<2x256xf32, #tpu.memory_space<vmem>>, vector<2x256xf32>,
    } else {
    }
    %c0 = arith.constant 0 : index
    %c0_1 = arith.constant 0 : index
    %3 = vector.load %arg7[%c0, %c0_1] : memref<2x256xf32, #tpu.memory_space<vmem>>, vector<2x256xf32>
    %c0_2 = arith.constant 0 : index
    %c0_3 = arith.constant 0 : index
    %4 = vector.load %arg1[%c0_2, %c0_3] : memref<2x7680xbf16, #tpu.memory_space<vmem>>, vector<2x7680xbf16>
    %c0_4 = arith.constant 0 : index
    %c0_5 = arith.constant 0 : index
    %5 = vector.load %arg2[%c0_4, %c0_5] : memref<7680x256xbf16, #tpu.memory_space<vmem>>, vector<7680x256xbf16>
    %cst = arith.constant dense<0.000000e+00> : vector<2x256xf32>
    %6 = tpu.matmul %4, %5, %cst {dimension_numbers = #tpu.dot_dimension_numbers<[1], [0], [0], [1], [0, 0, 1, 1], [], []>} : vector<2x7680xbf16>, vector<7680x256xbf16>, vector<2x256xf32> -> vector<2x256xf32>
    %7 = arith.addf %3, %6 : vector<2x256xf32>
    %c0_6 = arith.constant 0 : index
    %c0_7 = arith.constant 0 : index
    %8 = vector.load %arg7[%c0_6, %c0_7] : memref<2x256xf32, #tpu.memory_space<vmem>>, vector<2x256xf32>
    tpu.vector_store %arg7[%c0_6, %c0_7], %7 {strides = array<i32>} : memref<2x256xf32, #tpu.memory_space<vmem>>, vector<2x256xf32>,
    %c1_i32 = arith.constant 1 : i32
    %9 = arith.cmpi eq, %arg0, %c1_i32 : i32
    %10 = arith.extui %9 : i1 to i32
    %c0_i32_8 = arith.constant 0 : i32
    %11 = arith.cmpi ne, %10, %c0_i32_8 : i32
    scf.if %11 {
      %c0_9 = arith.constant 0 : index
      %c0_10 = arith.constant 0 : index
      %12 = vector.load %arg7[%c0_9, %c0_10] : memref<2x256xf32, #tpu.memory_space<vmem>>, vector<2x256xf32>
      %c0_11 = arith.constant 0 : index
      %c0_12 = arith.constant 0 : index
      %13 = vector.load %arg3[%c0_11, %c0_12] : memref<1x256xf32, #tpu.memory_space<vmem>>, vector<1x256xf32>
      %14 = vector.broadcast %13 : vector<1x256xf32> to vector<2x256xf32>
      %15 = arith.addf %12, %14 : vector<2x256xf32>
      %cst_13 = arith.constant 0.000000e+00 : f32
      %16 = vector.broadcast %cst_13 : f32 to vector<2x256xf32>
      %17 = arith.maximumf %15, %16 : vector<2x256xf32>
      %c0_14 = arith.constant 0 : index
      %c0_15 = arith.constant 0 : index
      %18 = vector.load %arg4[%c0_14, %c0_15] : memref<256x10xf32, #tpu.memory_space<vmem>>, vector<256x10xf32>
      %cst_16 = arith.constant dense<0.000000e+00> : vector<2x10xf32>
      %19 = tpu.matmul %17, %18, %cst_16 {dimension_numbers = #tpu.dot_dimension_numbers<[1], [0], [0], [1], [0, 0, 1, 1], [], []>} : vector<2x256xf32>, vector<256x10xf32>, vector<2x10xf32> -> vector<2x10xf32>
      %c0_17 = arith.constant 0 : index
      %c0_18 = arith.constant 0 : index
      %20 = vector.load %arg5[%c0_17, %c0_18] : memref<1x10xf32, #tpu.memory_space<vmem>>, vector<1x10xf32>
      %21 = vector.broadcast %20 : vector<1x10xf32> to vector<2x10xf32>
      %22 = arith.addf %19, %21 : vector<2x10xf32>
      %c0_19 = arith.constant 0 : index
      %c0_20 = arith.constant 0 : index
      %23 = vector.load %arg6[%c0_19, %c0_20] : memref<2x10xf32, #tpu.memory_space<vmem>>, vector<2x10xf32>
      tpu.vector_store %arg6[%c0_19, %c0_20], %22 {strides = array<i32>} : memref<2x10xf32, #tpu.memory_space<vmem>>, vector<2x10xf32>,
    } else {
    }
    return
  }
  func.func @transform_0(%arg0: i32) -> (i32, i32) {
    %c0_i32 = arith.constant 0 : i32
    %c0_i32_0 = arith.constant 0 : i32
    return %c0_i32, %arg0 : i32, i32
  }
  func.func @transform_1(%arg0: i32) -> (i32, i32) {
    %c0_i32 = arith.constant 0 : i32
    %c0_i32_0 = arith.constant 0 : i32
    return %arg0, %c0_i32 : i32, i32
  }
  func.func @transform_2(%arg0: i32) -> (i32, i32) {
    %c0_i32 = arith.constant 0 : i32
    %c0_i32_0 = arith.constant 0 : i32
    %c0_i32_1 = arith.constant 0 : i32
    return %c0_i32, %c0_i32_0 : i32, i32
  }
  func.func @transform_3(%arg0: i32) -> (i32, i32) {
    %c0_i32 = arith.constant 0 : i32
    %c0_i32_0 = arith.constant 0 : i32
    %c0_i32_1 = arith.constant 0 : i32
    return %c0_i32, %c0_i32_0 : i32, i32
  }
  func.func @transform_4(%arg0: i32) -> (i32, i32) {
    %c0_i32 = arith.constant 0 : i32
    %c0_i32_0 = arith.constant 0 : i32
    %c0_i32_1 = arith.constant 0 : i32
    return %c0_i32, %c0_i32_0 : i32, i32
  }
  func.func @transform_5(%arg0: i32) -> (i32, i32) {
    %c0_i32 = arith.constant 0 : i32
    %c0_i32_0 = arith.constant 0 : i32
    %c0_i32_1 = arith.constant 0 : i32
    return %c0_i32, %c0_i32_0 : i32, i32
  }
}

</mosaic_0001>

<bundles_post_ra>
// kernel: convnet_forward.2
= control target key start
LH: loop header
LB: loop body
LE: loop exit
PB: predicated region body
PF: predicated region fallthrough
CT: control target
= control target key end

     0   :  { %9 = vsyncpa [#allocation3], 0  ;;  %s14127_s0 = inlined_call_operand.hbm [shape: bf16[3,224,1536], index: 0, kind: input, shape index: {}]   ;;  %s14128_s1 = inlined_call_operand.vmem [shape: bf16[384,224], index: 1, kind: input, shape index: {}]   ;;  %s14129_s2 = inlined_call_operand.hbm [shape: f32[1,384], index: 2, kind: input, shape index: {}]   ;;  %s14130_s3 = inlined_call_operand.vmem [shape: bf16[2,224,224], index: 3, kind: input, shape index: {}]   ;;  %s14131_s4 = inlined_call_operand.vmem [shape: f32[2,5,55,55], index: 4, kind: output, shape index: {}]  }
   0x1   :  { %10 = vsyncpa [#allocation5], 0  ;;  %s11082_s15 = smov 0  }
   0x2 LB: > { %s11088_s16 = sadd.s32 4294967295, %s11050_s15   ;;  %p8367_p0 = scmp.ge.s32.totalorder %s11050_s15, 1  ;;  %s11050_s15 = sphi %s11082_s15, %s16_s15  }
   0x3   : > { %p136_p1 = scmp.lt.s32.totalorder %s11050_s15, 3  ;;  %s11052_s17 = smov [#allocation2]  }
   0x4   : > { %s148_s18 = sshll.u32 %s11052_s17, 4  ;;  %p14132_p3 = scmp.eq.s32.totalorder %s11088_s16, 0  ;;  %s149_s18 = int_to_ptr.vmem [resolvable:$true] %s148_s18 }
   0x5   : > { %p11092_p2 = pnand %p8367_p0, %p136_p1  ;;  %s11053_s20 = smov [#allocation4]  }
   0x6   : > { %s165_s21 = sshll.u32 %s11053_s20, 4  ;;  %s10980_s25 = scalar_lea.hbm %s14127_s0, 64512  ;;  %s11105_s21 = int_to_ptr.vmem [resolvable:$true] %s165_s21 }
   0x7   : > { %s14215_s19 = scalar_select %p11092_p2, 1, 0 }
   0x8   : > { %p10086_p4 = pneg %p11092_p2  ;;  %p10981_p6 = scmp.ne.s32.totalorder %s14127_s0, %s10980_s25 }
   0x9   : > { %p10987_p10 = scmp.lt.u32.totalorder %s10980_s25, %s14127_s0 }
   0xa   : > { %p11101_p5 = pnand %p14132_p3, %p10086_p4 }
   0xc   : > { %p10982_p7 = pneg %p11101_p5 }
   0xe   : > { %p10983_p8 = pnand %p10982_p7, %p10981_p6 }
  0x10   : > { %p10984_p9 = pneg %p10983_p8 }
  0x12   : > { %p10989_p11 = pnand %p10987_p10, %p10984_p9 }
  0x14   : > { %10992 = shalt.err (!%p10989_p11)
}
  0x15   : > { %s10993_s30 = scalar_lea.vmem %s149_s18, 64512  ;;  %p11001_p1 = scmp.lt.s32.totalorder %s149_s18, %s149_s18 }
  0x16   : > { %p10994_p12 = scmp.ne.s32.totalorder %s149_s18, %s10993_s30  ;;  %p11002_p4 = scmp.lt.s32.totalorder %s10993_s30, %s10993_s30 }
  0x18   : > { %p10996_p13 = pnand %p10994_p12, %p10982_p7  ;;  %p11003_p3 = por %p11002_p4, %p11001_p1 }
  0x1a   : > { %p10997_p0 = pneg %p10996_p13 }
  0x1c   : > { %p11004_p2 = pnand %p11003_p3, %p10997_p0 }
  0x1e   : > { %11007 = shalt.err (!%p11004_p2)
}
  0x1f   : > { %s11054_s5 = smov 768   ;;  %s11055_s6 = smov 48  }
  0x20   : > { %10089 = dma.hbm_to_vmem [thread:$0]  (!%p11101_p5), %s14127_s0, 64512, %s149_s18, [#allocation3], %s11054_s5, %s11054_s5, %s11055_s6  }
  0x21   : > { %s11008_s11 = scalar_lea.hbm %s14129_s2, 48 }
  0x22   : > { %p11009_p6 = scmp.ne.s32.totalorder %s14129_s2, %s11008_s11  ;;  %p11015_p8 = scmp.lt.u32.totalorder %s11008_s11, %s14129_s2 }
  0x24   : > { %p11011_p2 = pnand %p11009_p6, %p10982_p7 }
  0x26   : > { %p11012_p3 = pneg %p11011_p2 }
  0x28   : > { %p11017_p9 = pnand %p11015_p8, %p11012_p3 }
  0x2a   : > { %11020 = shalt.err (!%p11017_p9)
}
  0x2b   : > { %s11021_s18 = scalar_lea.vmem %s11105_s21, 48  ;;  %s11028_s20 = scalar_lea.vmem %s11105_s21, 64 }
  0x2c   : > { %p11022_p10 = scmp.ne.s32.totalorder %s11105_s21, %s11021_s18  ;;  %p11029_p13 = scmp.lt.s32.totalorder %s11105_s21, %s11105_s21 }
  0x2d   : > { %p11030_p0 = scmp.lt.s32.totalorder %s11028_s20, %s11021_s18 }
  0x2e   : > { %p11024_p11 = pnand %p11022_p10, %p10982_p7 }
  0x2f   : > { %p11031_p1 = por %p11030_p0, %p11029_p13 }
  0x30   : > { %p11025_p12 = pneg %p11024_p11 }
  0x32   : > { %p11032_p4 = pnand %p11031_p1, %p11025_p12 }
  0x34   : > { %11035 = shalt.err (!%p11032_p4)
}
  0x35   : > { %10092 = dma.hbm_to_vmem [thread:$0]  (!%p11101_p5), %s14129_s2, 48, %s11105_s21, [#allocation5]  }
  0x36   : > { %p14217_p6 = scmp.ne.s32.totalorder %s14215_s19, 0 }
  0x38   : > { %186 = sbr.rel (%p14217_p6) target bundleno = 1957 (0x7a5), region = 36 }
  0x3f   : > { %p14218_p7 = scmp.eq.s32.totalorder %s11088_s16, 0 }
  0x41   : > { %11041 = dma.done.wait (%p14218_p7), [#allocation3], 64512   ;;  %p14219_p2 = pmov %p14218_p7 }
  0x43   : > { %11043 = vsyncadd (%p14219_p2), [#allocation3], 4294902784  ;;  %p14220_p3 = pmov %p14219_p2 }
  0x44   : > { %p14221_p8 = pmov %p14219_p2 }
  0x45   : > { %11045 = dma.done.wait (%p14220_p3), [#allocation5], 48  }
  0x46   : > { %11047 = vsyncadd (%p14221_p8), [#allocation5], 4294967248  ;;  %p216_p9 = scmp.lt.s32.totalorder %s11088_s16, 1  ;;  %vm659_vm0 = vcmask 785408   ;;  %v10154_v12 = vld [vmem:[%s14128_s1 + $0x4] ss:$8 sps:$4 sm:$0xff]  }
  0x47   : > { %8452 = vmatprep.mubr.msk.bf16.mxu0 %vm659_vm0, %v10154_v12  ;;  %v10152_v29 = vld [vmem:[%s14128_s1] ss:$8 sps:$4 sm:$0xff]   ;;  %v10155_v30 = vld [vmem:[%s14128_s1 + $0x14] ss:$8 sps:$4 sm:$0xff]   ;;  %v10157_v31 = vld [vmem:[%s14128_s1 + $0x10] ss:$8 sps:$4 sm:$0xff]  }
  0x48   : > { %s14681_s16 = smov (!%p216_p9, %s11088_s16), 1  ;;  %v10158_v32 = vld [vmem:[%s14128_s1 + $0x24] ss:$8 sps:$4 sm:$0xff]   ;;  %v10160_v33 = vld [vmem:[%s14128_s1 + $0x20] ss:$8 sps:$4 sm:$0xff]   ;;  %vm8191_vm1 = vcmask 449536  }
  0x49   : > { %s10076_s19 = smul.u32 224, %s14681_s16  ;;  %v10161_v34 = vld [vmem:[%s14128_s1 + $0x34] ss:$8 sps:$4 sm:$0xff]   ;;  %v10163_v35 = vld [vmem:[%s14128_s1 + $0x30] ss:$8 sps:$4 sm:$0xff]   ;;  %s11056_s29 = smov 64  }
  0x4a   : > { %v10164_v36 = vld [vmem:[%s14128_s1 + $0x44] ss:$8 sps:$4 sm:$0xff]   ;;  %v10214_v38 = vld [vmem:[#allocation2 + $0x540] ss:$48 sps:$4 sm:$0xff]   ;;  %v10217_v40 = vld [vmem:[#allocation2 + $0x558] ss:$48 sps:$4 sm:$0xff]  }
  0x4b   : > { %s11173_s25 = scalar_lea.vmem %s14130_s3, %s10076_s19  ;;  %v10212_v37 = vld [vmem:[#allocation2 + $0x55c] ss:$48 sps:$4 sm:$0xff]   ;;  %v10216_v39 = vld [vmem:[#allocation2 + $0x544] ss:$48 sps:$4 sm:$0xff]   ;;  %v10220_v43 = vld [vmem:[#allocation2 + $0x5a0] ss:$48 sps:$4 sm:$0xff]  }
  0x4c   : > { %v10110_v0 = vld [vmem:[%s11173_s25 + $0x4] ss:$8 sps:$4 sm:$0xff]   ;;  %v10112_v1 = vld [vmem:[%s11173_s25] ss:$8 sps:$4 sm:$0xff]   ;;  %v10113_v2 = vld [vmem:[%s11173_s25 + $0x14] ss:$8 sps:$4 sm:$0xff]   ;;  %2833 = vmatprep.subr.bf16.mxu1 %v10212_v37 }
  0x4d   : > { %732 = vmatprep.subr.bf16.mxu0 %v10110_v0  ;;  %v10115_v3 = vld [vmem:[%s11173_s25 + $0x10] ss:$8 sps:$4 sm:$0xff]   ;;  %v10116_v4 = vld [vmem:[%s11173_s25 + $0x24] ss:$8 sps:$4 sm:$0xff]   ;;  %v10118_v5 = vld [vmem:[%s11173_s25 + $0x20] ss:$8 sps:$4 sm:$0xff]   ;;  %2834 = vmatpush1.bf16.msra.mxu1 %v10217_v40 }
  0x4e   : > { %733 = vmatpush1.bf16.msra.mxu0 %v10112_v1  ;;  %v10119_v6 = vld [vmem:[%s11173_s25 + $0x34] ss:$8 sps:$4 sm:$0xff]   ;;  %v10121_v7 = vld [vmem:[%s11173_s25 + $0x30] ss:$8 sps:$4 sm:$0xff]   ;;  %v10122_v8 = vld [vmem:[%s11173_s25 + $0x44] ss:$8 sps:$4 sm:$0xff]  }
  0x4f   : > { %734 = vmatprep.subr.bf16.mxu0 %v10113_v2  ;;  %v10124_v9 = vld [vmem:[%s11173_s25 + $0x40] ss:$8 sps:$4 sm:$0xff]   ;;  %v10125_v10 = vld [vmem:[%s11173_s25 + $0x54] ss:$8 sps:$4 sm:$0xff]   ;;  %v10127_v11 = vld [vmem:[%s11173_s25 + $0x50] ss:$8 sps:$4 sm:$0xff]  }
  0x50   : > { %v10128_v13 = vld [vmem:[%s11173_s25 + $0x64] ss:$8 sps:$4 sm:$0xff]   ;;  %v10130_v14 = vld [vmem:[%s11173_s25 + $0x60] ss:$8 sps:$4 sm:$0xff]   ;;  %v10131_v15 = vld [vmem:[%s11173_s25 + $0x74] ss:$8 sps:$4 sm:$0xff]  }
  0x51   : > { %v10133_v16 = vld [vmem:[%s11173_s25 + $0x70] ss:$8 sps:$4 sm:$0xff]   ;;  %v10134_v17 = vld [vmem:[%s11173_s25 + $0x84] ss:$8 sps:$4 sm:$0xff]   ;;  %v10136_v18 = vld [vmem:[%s11173_s25 + $0x80] ss:$8 sps:$4 sm:$0xff]  }
  0x52   : > { %735 = vmatpush1.bf16.msra.mxu0 %v10115_v3  ;;  %v10137_v19 = vld [vmem:[%s11173_s25 + $0x94] ss:$8 sps:$4 sm:$0xff]   ;;  %v10139_v20 = vld [vmem:[%s11173_s25 + $0x90] ss:$8 sps:$4 sm:$0xff]   ;;  %v10140_v21 = vld [vmem:[%s11173_s25 + $0xa4] ss:$8 sps:$4 sm:$0xff]  }
  0x53   : > { %736 = vmatprep.subr.bf16.mxu0 %v10116_v4  ;;  %v10142_v22 = vld [vmem:[%s11173_s25 + $0xa0] ss:$8 sps:$4 sm:$0xff]   ;;  %v10143_v23 = vld [vmem:[%s11173_s25 + $0xb4] ss:$8 sps:$4 sm:$0xff]   ;;  %v10145_v24 = vld [vmem:[%s11173_s25 + $0xb0] ss:$8 sps:$4 sm:$0xff]  }
  0x54   : > { %v10146_v25 = vld [vmem:[%s11173_s25 + $0xc4] ss:$8 sps:$4 sm:$0xff]   ;;  %v10148_v26 = vld [vmem:[%s11173_s25 + $0xc0] ss:$8 sps:$4 sm:$0xff]   ;;  %v10149_v27 = vld [vmem:[%s11173_s25 + $0xd4] ss:$8 sps:$4 sm:$0xff]  }
  0x55   : > { %v10151_v28 = vld [vmem:[%s11173_s25 + $0xd0] ss:$8 sps:$4 sm:$0xff]   ;;  %v10218_v41 = vld [vmem:[#allocation2 + $0x5bc] ss:$48 sps:$4 sm:$0xff]   ;;  %v10222_v42 = vld [vmem:[#allocation2 + $0x5a4] ss:$48 sps:$4 sm:$0xff]  }
  0x56   : > { %737 = vmatpush1.bf16.msra.mxu0 %v10118_v5  ;;  %v10223_v44 = vld [vmem:[#allocation2 + $0x5b8] ss:$48 sps:$4 sm:$0xff]   ;;  %v10167_v46 = vld [vmem:[%s14128_s1 + $0x54] ss:$8 sps:$4 sm:$0xff]   ;;  %2835 = vmatprep.subr.bf16.mxu1 %v10218_v41  ;;  %v10226_v48 = vld [vmem:[#allocation2 + $0x600] ss:$48 sps:$4 sm:$0xff]  }
  0x57   : > { %738 = vmatprep.subr.bf16.mxu0 %v10119_v6  ;;  %v10166_v45 = vld [vmem:[%s14128_s1 + $0x40] ss:$8 sps:$4 sm:$0xff]   ;;  %v10224_v47 = vld [vmem:[#allocation2 + $0x61c] ss:$48 sps:$4 sm:$0xff]   ;;  %v10228_v49 = vld [vmem:[#allocation2 + $0x604] ss:$48 sps:$4 sm:$0xff]   ;;  %2836 = vmatpush1.bf16.msra.mxu1 %v10223_v44 }
  0x58   : > { %v10229_v50 = vld [vmem:[#allocation2 + $0x618] ss:$48 sps:$4 sm:$0xff]   ;;  %v10230_v51 = vld [vmem:[#allocation2 + $0x67c] ss:$48 sps:$4 sm:$0xff]   ;;  %v10234_v52 = vld [vmem:[#allocation2 + $0x664] ss:$48 sps:$4 sm:$0xff]   ;;  %2837 = vmatprep.subr.bf16.mxu1 %v10224_v47 }
  0x59   : > { %v10232_v53 = vld [vmem:[#allocation2 + $0x660] ss:$48 sps:$4 sm:$0xff]   ;;  %v10235_v54 = vld [vmem:[#allocation2 + $0x678] ss:$48 sps:$4 sm:$0xff]   ;;  %v10236_v56 = vld [vmem:[#allocation2 + $0x6dc] ss:$48 sps:$4 sm:$0xff]  }
  0x5a   : > { %739 = vmatpush1.bf16.msra.mxu0 %v10121_v7  ;;  %v10169_v55 = vld [vmem:[%s14128_s1 + $0x50] ss:$8 sps:$4 sm:$0xff]   ;;  %v10170_v57 = vld [vmem:[%s14128_s1 + $0x64] ss:$8 sps:$4 sm:$0xff]   ;;  %v10172_v61 = vld [vmem:[%s14128_s1 + $0x60] ss:$8 sps:$4 sm:$0xff]  }
  0x5b   : > { %740 = vmatprep.subr.bf16.mxu0 %v10122_v8  ;;  %2838 = vmatpush1.bf16.msra.mxu1 %v10229_v50  ;;  %v10240_v58 = vld [vmem:[#allocation2 + $0x6c4] ss:$48 sps:$4 sm:$0xff]   ;;  %v10238_v59 = vld [vmem:[#allocation2 + $0x6c0] ss:$48 sps:$4 sm:$0xff]   ;;  %v10241_v60 = vld [vmem:[#allocation2 + $0x6d8] ss:$48 sps:$4 sm:$0xff]  }
  0x5c   : > { %2839 = vmatprep.subr.bf16.mxu1 %v10230_v51  ;;  %v10173_v62 = vld [vmem:[%s14128_s1 + $0x74] ss:$8 sps:$4 sm:$0xff]   ;;  %v10175_v63 = vld [vmem:[%s14128_s1 + $0x70] ss:$8 sps:$4 sm:$0xff]   ;;  %v10176_v0 = vld [vmem:[%s14128_s1 + $0x84] ss:$8 sps:$4 sm:$0xff]  }
  0x5d   : > { %v10178_v1 = vld [vmem:[%s14128_s1 + $0x80] ss:$8 sps:$4 sm:$0xff]   ;;  %v10179_v2 = vld [vmem:[%s14128_s1 + $0x94] ss:$8 sps:$4 sm:$0xff]   ;;  %v10181_v3 = vld [vmem:[%s14128_s1 + $0x90] ss:$8 sps:$4 sm:$0xff]  }
  0x5e   : > { %741 = vmatpush1.bf16.msra.mxu0 %v10124_v9  ;;  %v10182_v4 = vld [vmem:[%s14128_s1 + $0xa4] ss:$8 sps:$4 sm:$0xff]   ;;  %v10184_v5 = vld [vmem:[%s14128_s1 + $0xa0] ss:$8 sps:$4 sm:$0xff]   ;;  %v10185_v6 = vld [vmem:[%s14128_s1 + $0xb4] ss:$8 sps:$4 sm:$0xff]  }
  0x5f   : > { %742 = vmatprep.subr.bf16.mxu0 %v10125_v10  ;;  %2840 = vmatpush1.bf16.msra.mxu1 %v10235_v54  ;;  %v10187_v7 = vld [vmem:[%s14128_s1 + $0xb0] ss:$8 sps:$4 sm:$0xff]   ;;  %v10188_v8 = vld [vmem:[%s14128_s1 + $0xc4] ss:$8 sps:$4 sm:$0xff]   ;;  %v10196_v37 = vld [vmem:[%s14128_s1 + $0xe0] ss:$8 sps:$4 sm:$0xff]  }
  0x60   : > { %2841 = vmatprep.subr.bf16.mxu1 %v10236_v56  ;;  %v10242_v9 = vld [vmem:[#allocation2 + $0x73c] ss:$48 sps:$4 sm:$0xff]   ;;  %v10246_v10 = vld [vmem:[#allocation2 + $0x724] ss:$48 sps:$4 sm:$0xff]   ;;  %v10247_v12 = vld [vmem:[#allocation2 + $0x738] ss:$48 sps:$4 sm:$0xff]  }
  0x61   : > { %v10291_v40 = vld [vmem:[#allocation2 + $0x964] ss:$48 sps:$4 sm:$0xff]   ;;  %v10289_v41 = vld [vmem:[#allocation2 + $0x960] ss:$48 sps:$4 sm:$0xff]   ;;  %s10077_s26 = smul.u32 280, %s14681_s16  ;;  %vm8198_vm2 = vcmask 448512  }
  0x62   : > { %743 = vmatpush1.bf16.msra.mxu0 %v10127_v11  ;;  %v10244_v11 = vld [vmem:[#allocation2 + $0x720] ss:$48 sps:$4 sm:$0xff]   ;;  %v10306_v50 = vld [vmem:[#allocation2 + $0xa24] ss:$48 sps:$4 sm:$0xff]  }
  0x63   : > { %744 = vmatprep.subr.bf16.mxu0 %v10128_v13  ;;  %2842 = vmatpush1.bf16.msra.mxu1 %v10241_v60  ;;  %v10250_v13 = vld [vmem:[#allocation2 + $0x79c] ss:$48 sps:$4 sm:$0xff]   ;;  %v10298_v44 = vld [vmem:[#allocation2 + $0x9c0] ss:$48 sps:$4 sm:$0xff]   ;;  %s13917_s28 = scalar_lea.vmem %s14131_s4, %s10077_s26 }
  0x64   : > { %2843 = vmatprep.subr.bf16.mxu1 %v10242_v9  ;;  %v10199_v47 = vld [vmem:[%s14128_s1 + $0xf0] ss:$8 sps:$4 sm:$0xff]   ;;  %v10202_v54 = vld [vmem:[%s14128_s1 + $0x100] ss:$8 sps:$4 sm:$0xff]  }
  0x65   : > { %v10304_v51 = vld [vmem:[#allocation2 + $0xa20] ss:$48 sps:$4 sm:$0xff]  }
  0x66   : > { %745 = vmatpush1.bf16.msra.mxu0 %v10130_v14  ;;  %v10253_v14 = vld [vmem:[#allocation2 + $0x780] ss:$48 sps:$4 sm:$0xff]  }
  0x67   : > { %746 = vmatprep.subr.bf16.mxu0 %v10131_v15  ;;  %2844 = vmatpush1.bf16.msra.mxu1 %v10247_v12  ;;  %v10255_v15 = vld [vmem:[#allocation2 + $0x784] ss:$48 sps:$4 sm:$0xff]   ;;  %v10205_v56 = vld [vmem:[%s14128_s1 + $0x110] ss:$8 sps:$4 sm:$0xff]  }
  0x68   : > { %2845 = vmatprep.subr.bf16.mxu1 %v10250_v13  ;;  %v10211_v60 = vld [vmem:[%s14128_s1 + $0x130] ss:$8 sps:$4 sm:$0xff]  }
  0x6a   : > { %747 = vmatpush1.bf16.msra.mxu0 %v10133_v16  ;;  %v10256_v16 = vld [vmem:[#allocation2 + $0x798] ss:$48 sps:$4 sm:$0xff]  }
  0x6b   : > { %748 = vmatprep.subr.bf16.mxu0 %v10134_v17  ;;  %v10190_v17 = vld [vmem:[%s14128_s1 + $0xc0] ss:$8 sps:$4 sm:$0xff]   ;;  %2846 = vmatpush1.bf16.msra.mxu1 %v10256_v16 }
  0x6e   : > { %749 = vmatpush1.bf16.msra.mxu0 %v10136_v18  ;;  %v10191_v18 = vld [vmem:[%s14128_s1 + $0xd4] ss:$8 sps:$4 sm:$0xff]  }
  0x6f   : > { %750 = vmatprep.subr.bf16.mxu0 %v10137_v19  ;;  %v10257_v19 = vld [vmem:[#allocation2 + $0x7fc] ss:$48 sps:$4 sm:$0xff]  }
  0x70   : > { %2847 = vmatprep.subr.bf16.mxu1 %v10257_v19 }
  0x72   : > { %751 = vmatpush1.bf16.msra.mxu0 %v10139_v20  ;;  %v10261_v20 = vld [vmem:[#allocation2 + $0x7e4] ss:$48 sps:$4 sm:$0xff]  }
  0x73   : > { %752 = vmatprep.subr.bf16.mxu0 %v10140_v21  ;;  %v10259_v21 = vld [vmem:[#allocation2 + $0x7e0] ss:$48 sps:$4 sm:$0xff]  }
  0x76   : > { %753 = vmatpush1.bf16.msra.mxu0 %v10142_v22  ;;  %v10262_v22 = vld [vmem:[#allocation2 + $0x7f8] ss:$48 sps:$4 sm:$0xff]  }
  0x77   : > { %754 = vmatprep.subr.bf16.mxu0 %v10143_v23  ;;  %2848 = vmatpush1.bf16.msra.mxu1 %v10262_v22  ;;  %v10265_v23 = vld [vmem:[#allocation2 + $0x85c] ss:$48 sps:$4 sm:$0xff]  }
  0x78   : > { %2849 = vmatprep.subr.bf16.mxu1 %v10265_v23 }
  0x7a   : > { %755 = vmatpush1.bf16.msra.mxu0 %v10145_v24  ;;  %v10268_v24 = vld [vmem:[#allocation2 + $0x840] ss:$48 sps:$4 sm:$0xff]  }
  0x7b   : > { %756 = vmatprep.subr.bf16.mxu0 %v10146_v25  ;;  %v10270_v25 = vld [vmem:[#allocation2 + $0x844] ss:$48 sps:$4 sm:$0xff]  }
  0x7e   : > { %757 = vmatpush1.bf16.msra.mxu0 %v10148_v26  ;;  %v10271_v26 = vld [vmem:[#allocation2 + $0x858] ss:$48 sps:$4 sm:$0xff]  }
  0x7f   : > { %758 = vmatprep.subr.bf16.mxu0 %v10149_v27  ;;  %v10193_v27 = vld [vmem:[%s14128_s1 + $0xd0] ss:$8 sps:$4 sm:$0xff]   ;;  %2850 = vmatpush1.bf16.msra.mxu1 %v10271_v26 }
  0x82   : > { %759 = vmatpush1.bf16.msra.mxu0 %v10151_v28  ;;  %v10194_v28 = vld [vmem:[%s14128_s1 + $0xe4] ss:$8 sps:$4 sm:$0xff]  }
  0x83   : > { %2278 = vmatprep.subr.bf16.mxu0 %v10216_v39  ;;  %v10287_v39 = vld [vmem:[#allocation2 + $0x97c] ss:$48 sps:$4 sm:$0xff]  }
  0x85   : > { %765 = vmatmul.mubr.bf16.vlgmr.msra.gmra.mrb[0].mxu0 %v10152_v29  ;;  %v10272_v29 = vld [vmem:[#allocation2 + $0x8bc] ss:$48 sps:$4 sm:$0xff]  }
  0x86   : > { %8453 = vmatprep.mubr.msk.bf16.mxu0 %vm659_vm0, %v10155_v30  ;;  %2279 = vmatpush1.bf16.msra.mxu0 %v10214_v38  ;;  %v10276_v30 = vld [vmem:[#allocation2 + $0x8a4] ss:$48 sps:$4 sm:$0xff]  }
  0x87   : > { %2280 = vmatprep.subr.bf16.mxu0 %v10222_v42  ;;  %2851 = vmatprep.subr.bf16.mxu1 %v10272_v29  ;;  %v10197_v38 = vld [vmem:[%s14128_s1 + $0xf4] ss:$8 sps:$4 sm:$0xff]   ;;  %v10292_v42 = vld [vmem:[#allocation2 + $0x978] ss:$48 sps:$4 sm:$0xff]  }
  0x8a   : > { %2281 = vmatpush1.bf16.msra.mxu0 %v10220_v43  ;;  %v10295_v43 = vld [vmem:[#allocation2 + $0x9dc] ss:$48 sps:$4 sm:$0xff]  }
  0x8b   : > { %2282 = vmatprep.subr.bf16.mxu0 %v10228_v49  ;;  %v10302_v49 = vld [vmem:[#allocation2 + $0xa3c] ss:$48 sps:$4 sm:$0xff]  }
  0x8d   : > { %775 = vmatmul.mubr.bf16.gmra.mrb[4].mxu0 %v10157_v31  ;;  %v10274_v31 = vld [vmem:[#allocation2 + $0x8a0] ss:$48 sps:$4 sm:$0xff]  }
  0x8e   : > { %8454 = vmatprep.mubr.msk.bf16.mxu0 %vm659_vm0, %v10158_v32  ;;  %2283 = vmatpush1.bf16.msra.mxu0 %v10226_v48  ;;  %v10277_v32 = vld [vmem:[#allocation2 + $0x8b8] ss:$48 sps:$4 sm:$0xff]   ;;  %v10200_v48 = vld [vmem:[%s14128_s1 + $0x104] ss:$8 sps:$4 sm:$0xff]  }
  0x8f   : > { %2284 = vmatprep.subr.bf16.mxu0 %v10234_v52  ;;  %2852 = vmatpush1.bf16.msra.mxu1 %v10277_v32  ;;  %v10307_v52 = vld [vmem:[#allocation2 + $0xa38] ss:$48 sps:$4 sm:$0xff]  }
  0x92   : > { %2285 = vmatpush1.bf16.msra.mxu0 %v10232_v53  ;;  %v10310_v53 = vld [vmem:[#allocation2 + $0x56c] ss:$48 sps:$4 sm:$0xff]  }
  0x93   : > { %2286 = vmatprep.subr.bf16.mxu0 %v10240_v58  ;;  %v10208_v58 = vld [vmem:[%s14128_s1 + $0x120] ss:$8 sps:$4 sm:$0xff]  }
  0x95   : > { %785 = vmatmul.mubr.bf16.gmra.mrb[8].mxu0 %v10160_v33  ;;  %v10280_v33 = vld [vmem:[#allocation2 + $0x91c] ss:$48 sps:$4 sm:$0xff]  }
  0x96   : > { %8455 = vmatprep.mubr.msk.bf16.mxu0 %vm659_vm0, %v10161_v34  ;;  %2287 = vmatpush1.bf16.msra.mxu0 %v10238_v59  ;;  %v10283_v34 = vld [vmem:[#allocation2 + $0x900] ss:$48 sps:$4 sm:$0xff]   ;;  %v10209_v59 = vld [vmem:[%s14128_s1 + $0x134] ss:$8 sps:$4 sm:$0xff]  }
  0x97   : > { %2288 = vmatprep.subr.bf16.mxu0 %v10246_v10  ;;  %2853 = vmatprep.subr.bf16.mxu1 %v10280_v33 }
  0x9a   : > { %2289 = vmatpush1.bf16.msra.mxu0 %v10244_v11 }
  0x9b   : > { %2290 = vmatprep.subr.bf16.mxu0 %v10255_v15 }
  0x9d   : > { %795 = vmatmul.mubr.bf16.gmra.mrb[12].mxu0 %v10163_v35  ;;  %v10285_v35 = vld [vmem:[#allocation2 + $0x904] ss:$48 sps:$4 sm:$0xff]  }
  0x9e   : > { %8456 = vmatprep.mubr.msk.bf16.mxu0 %vm659_vm0, %v10164_v36  ;;  %2291 = vmatpush1.bf16.msra.mxu0 %v10253_v14  ;;  %v10286_v36 = vld [vmem:[#allocation2 + $0x918] ss:$48 sps:$4 sm:$0xff]  }
  0x9f   : > { %2292 = vmatprep.subr.bf16.mxu0 %v10261_v20  ;;  %2854 = vmatpush1.bf16.msra.mxu1 %v10286_v36  ;;  %v10308_v36 = vld [vmem:[#allocation2 + $0x568] ss:$48 sps:$4 sm:$0xff]  }
  0xa0   : > { %2855 = vmatprep.subr.bf16.mxu1 %v10287_v39  ;;  %v10340_v39 = vld [vmem:[#allocation2 + $0x5ac] ss:$48 sps:$4 sm:$0xff]  }
  0xa2   : > { %2293 = vmatpush1.bf16.msra.mxu0 %v10259_v21 }
  0xa3   : > { %2294 = vmatprep.subr.bf16.mxu0 %v10270_v25  ;;  %2856 = vmatpush1.bf16.msra.mxu1 %v10292_v42  ;;  %v10338_v42 = vld [vmem:[#allocation2 + $0x5a8] ss:$48 sps:$4 sm:$0xff]  }
  0xa4   : > { %2857 = vmatprep.subr.bf16.mxu1 %v10295_v43 }
  0xa5   : > { %805 = vmatmul.mubr.bf16.gmra.mrb[16].mxu0 %v10166_v45  ;;  %v10300_v45 = vld [vmem:[#allocation2 + $0x9c4] ss:$48 sps:$4 sm:$0xff]  }
  0xa6   : > { %8457 = vmatprep.mubr.msk.bf16.mxu0 %vm659_vm0, %v10167_v46  ;;  %2295 = vmatpush1.bf16.msra.mxu0 %v10268_v24  ;;  %v10301_v46 = vld [vmem:[#allocation2 + $0x9d8] ss:$48 sps:$4 sm:$0xff]  }
  0xa7   : > { %2296 = vmatprep.subr.bf16.mxu0 %v10276_v30  ;;  %2858 = vmatpush1.bf16.msra.mxu1 %v10301_v46 }
  0xa8   : > { %2859 = vmatprep.subr.bf16.mxu1 %v10302_v49 }
  0xaa   : > { %2297 = vmatpush1.bf16.msra.mxu0 %v10274_v31 }
  0xab   : > { %2298 = vmatprep.subr.bf16.mxu0 %v10285_v35  ;;  %2860 = vmatpush1.bf16.msra.mxu1 %v10307_v52  ;;  %v10319_v52 = vld [vmem:[#allocation2 + $0x68c] ss:$48 sps:$4 sm:$0xff]  }
  0xac   : > { %3203 = vmatprep.subr.bf16.mxu1 %v10310_v53  ;;  %v10349_v53 = vld [vmem:[#allocation2 + $0x66c] ss:$48 sps:$4 sm:$0xff]  }
  0xad   : > { %815 = vmatmul.mubr.bf16.gmra.mrb[20].mxu0 %v10169_v55  ;;  %v10203_v55 = vld [vmem:[%s14128_s1 + $0x114] ss:$8 sps:$4 sm:$0xff]  }
  0xae   : > { %8458 = vmatprep.mubr.msk.bf16.mxu0 %vm659_vm0, %v10170_v57  ;;  %2299 = vmatpush1.bf16.msra.mxu0 %v10283_v34  ;;  %v10206_v57 = vld [vmem:[%s14128_s1 + $0x124] ss:$8 sps:$4 sm:$0xff]  }
  0xaf   : > { %2300 = vmatprep.subr.bf16.mxu0 %v10291_v40 }
  0xb2   : > { %2301 = vmatpush1.bf16.msra.mxu0 %v10289_v41  ;;  %v10311_v41 = vld [vmem:[#allocation2 + $0x5c8] ss:$48 sps:$4 sm:$0xff]  }
  0xb3   : > { %2302 = vmatprep.subr.bf16.mxu0 %v10300_v45  ;;  %v10343_v45 = vld [vmem:[#allocation2 + $0x60c] ss:$48 sps:$4 sm:$0xff]  }
  0xb5   : > { %825 = vmatmul.mubr.bf16.gmra.mrb[24].mxu0 %v10172_v61  ;;  %v10248_v61 = vld [vmem:[%s14128_s1 + $0x144] ss:$8 sps:$4 sm:$0xff]  }
  0xb6   : > { %8459 = vmatprep.mubr.msk.bf16.mxu0 %vm659_vm0, %v10173_v62  ;;  %2303 = vmatpush1.bf16.msra.mxu0 %v10298_v44  ;;  %v10252_v62 = vld [vmem:[%s14128_s1 + $0x140] ss:$8 sps:$4 sm:$0xff]   ;;  %v10316_v44 = vld [vmem:[#allocation2 + $0x62c] ss:$48 sps:$4 sm:$0xff]  }
  0xb7   : > { %2304 = vmatprep.subr.bf16.mxu0 %v10306_v50  ;;  %v10314_v50 = vld [vmem:[#allocation2 + $0x628] ss:$48 sps:$4 sm:$0xff]  }
  0xba   : > { %2305 = vmatpush1.bf16.msra.mxu0 %v10304_v51  ;;  %v10341_v51 = vld [vmem:[#allocation2 + $0x608] ss:$48 sps:$4 sm:$0xff]  }
  0xbd   : > { %835 = vmatmul.mubr.bf16.gmra.mrb[28].mxu0 %v10175_v63  ;;  %v10263_v63 = vld [vmem:[%s14128_s1 + $0x154] ss:$8 sps:$4 sm:$0xff]  }
  0xbe   : > { %8460 = vmatprep.mubr.msk.bf16.mxu0 %vm659_vm0, %v10176_v0  ;;  %v10267_v0 = vld [vmem:[%s14128_s1 + $0x150] ss:$8 sps:$4 sm:$0xff]  }
  0xc5   : > { %845 = vmatmul.mubr.bf16.gmra.mrb[32].mxu0 %v10178_v1  ;;  %v10278_v1 = vld [vmem:[%s14128_s1 + $0x164] ss:$8 sps:$4 sm:$0xff]  }
  0xc6   : > { %8461 = vmatprep.mubr.msk.bf16.mxu0 %vm659_vm0, %v10179_v2  ;;  %v10282_v2 = vld [vmem:[%s14128_s1 + $0x160] ss:$8 sps:$4 sm:$0xff]  }
  0xcd   : > { %855 = vmatmul.mubr.bf16.gmra.mrb[36].mxu0 %v10181_v3  ;;  %v10293_v3 = vld [vmem:[%s14128_s1 + $0x174] ss:$8 sps:$4 sm:$0xff]  }
  0xce   : > { %8462 = vmatprep.mubr.msk.bf16.mxu0 %vm659_vm0, %v10182_v4  ;;  %v10297_v4 = vld [vmem:[%s14128_s1 + $0x170] ss:$8 sps:$4 sm:$0xff]  }
  0xd5   : > { %865 = vmatmul.mubr.bf16.gmra.mrb[40].mxu0 %v10184_v5  ;;  %v10334_v5 = vld [vmem:[#allocation2 + $0x54c] ss:$48 sps:$4 sm:$0xff]  }
  0xd6   : > { %8463 = vmatprep.mubr.msk.bf16.mxu0 %vm659_vm0, %v10185_v6  ;;  %2463 = vmatprep.subr.bf16.mxu0 %v10334_v5  ;;  %v10323_v5 = vld [vmem:[#allocation2 + $0x748] ss:$48 sps:$4 sm:$0xff]  }
  0xdd   : > { %875 = vmatmul.mubr.bf16.gmra.mrb[44].mxu0 %v10187_v7 }
  0xde   : > { %8464 = vmatprep.mubr.msk.bf16.mxu0 %vm659_vm0, %v10188_v8 }
  0xe5   : > { %885 = vmatmul.mubr.bf16.gmra.mrb[48].mxu0 %v10190_v17 }
  0xe6   : > { %8465 = vmatprep.mubr.msk.bf16.mxu0 %vm659_vm0, %v10191_v18 }
  0xed   : > { %895 = vmatmul.mubr.bf16.gmra.mrb[52].mxu0 %v10193_v27 }
  0xee   : > { %8466 = vmatprep.mubr.msk.bf16.mxu0 %vm659_vm0, %v10194_v28 }
  0xf5   : > { %905 = vmatmul.mubr.bf16.gmra.mrb[56].mxu0 %v10196_v37  ;;  %v10332_v37 = vld [vmem:[#allocation2 + $0x548] ss:$48 sps:$4 sm:$0xff]  }
  0xf6   : > { %8467 = vmatprep.mubr.msk.bf16.mxu0 %vm659_vm0, %v10197_v38  ;;  %v10313_v38 = vld [vmem:[#allocation2 + $0x5cc] ss:$48 sps:$4 sm:$0xff]  }
  0xfd   : > { %915 = vmatmul.mubr.bf16.gmra.mrb[60].mxu0 %v10199_v47 }
  0xfe   : > { %8468 = vmatprep.mubr.msk.bf16.mxu0 %vm659_vm0, %v10200_v48 }
 0x105   : > { %925 = vmatmul.mubr.bf16.gmra.mrb[64].mxu0 %v10202_v54 }
 0x106   : > { %8469 = vmatprep.mubr.msk.bf16.mxu0 %vm659_vm0, %v10203_v55  ;;  %v10317_v55 = vld [vmem:[#allocation2 + $0x688] ss:$48 sps:$4 sm:$0xff]  }
 0x10d   : > { %935 = vmatmul.mubr.bf16.gmra.mrb[68].mxu0 %v10205_v56  ;;  %v10347_v56 = vld [vmem:[#allocation2 + $0x668] ss:$48 sps:$4 sm:$0xff]  }
 0x10e   : > { %8470 = vmatprep.mubr.msk.bf16.mxu0 %vm659_vm0, %v10206_v57 }
 0x115   : > { %945 = vmatmul.mubr.bf16.gmra.mrb[72].mxu0 %v10208_v58  ;;  %v10322_v58 = vld [vmem:[#allocation2 + $0x6ec] ss:$48 sps:$4 sm:$0xff]  }
 0x116   : > { %8471 = vmatprep.mubr.msk.bf16.mxu0 %vm659_vm0, %v10209_v59  ;;  %v10352_v59 = vld [vmem:[#allocation2 + $0x6cc] ss:$48 sps:$4 sm:$0xff]  }
 0x11d   : > { %955 = vmatmul.mubr.bf16.gmra.mrb[76].mxu0 %v10211_v60 }
 0x11e   : > { %8472 = vmatprep.mubr.msk.bf16.mxu0 %vm659_vm0, %v10248_v61 }
 0x125   : > { %965 = vmatmul.mubr.bf16.gmra.mrb[80].mxu0 %v10252_v62 }
 0x126   : > { %8473 = vmatprep.mubr.msk.bf16.mxu0 %vm659_vm0, %v10263_v63 }
 0x12d   : > { %975 = vmatmul.mubr.bf16.gmra.mrb[84].mxu0 %v10267_v0  ;;  %v10320_v0 = vld [vmem:[#allocation2 + $0x6e8] ss:$48 sps:$4 sm:$0xff]  }
 0x12e   : > { %8474 = vmatprep.mubr.msk.bf16.mxu0 %vm659_vm0, %v10278_v1  ;;  %v10350_v1 = vld [vmem:[#allocation2 + $0x6c8] ss:$48 sps:$4 sm:$0xff]  }
 0x135   : > { %985 = vmatmul.mubr.bf16.gmra.mrb[88].mxu0 %v10282_v2  ;;  %v10325_v2 = vld [vmem:[#allocation2 + $0x74c] ss:$48 sps:$4 sm:$0xff]  }
 0x136   : > { %8475 = vmatprep.mubr.msk.bf16.mxu0 %vm659_vm0, %v10293_v3  ;;  %v10358_v3 = vld [vmem:[#allocation2 + $0x72c] ss:$48 sps:$4 sm:$0xff]  }
 0x13d   : > { %995 = vmatmul.mubr.bf16.gmra.mrb[92].mxu0 %v10297_v4 }
 0x158   : > { %v766_v6 = vpop.f32.mrb[0].mxu0 }
 0x159   : > { %v768_v7 = vpop.f32.mrb[1].mxu0 }
 0x15a   : > { %v770_v8 = vpop.f32.mrb[2].mxu0 }
 0x15b   : > { %v11371_v9 = vpack.c.bf16 %v770_v8, %v766_v6  ;;  %v772_v10 = vpop.f32.mrb[3].mxu0  ;;  %v10356_v6 = vld [vmem:[#allocation2 + $0x728] ss:$48 sps:$4 sm:$0xff]   ;;  %v10328_v8 = vld [vmem:[#allocation2 + $0x7ac] ss:$48 sps:$4 sm:$0xff]  }
 0x15c   : > { %v11373_v11 = vpack.c.bf16 %v772_v10, %v768_v7  ;;  %v10361_v10 = vld [vmem:[#allocation2 + $0x78c] ss:$48 sps:$4 sm:$0xff]  }
 0x160   : > { %v776_v12 = vpop.f32.mrb[4].mxu0 }
 0x161   : > { %v778_v13 = vpop.f32.mrb[5].mxu0 }
 0x162   : > { %v780_v14 = vpop.f32.mrb[6].mxu0 }
 0x163   : > { %v11375_v15 = vpack.c.bf16 %v780_v14, %v776_v12  ;;  %v782_v16 = vpop.f32.mrb[7].mxu0 }
 0x164   : > { %v11377_v17 = vpack.c.bf16 %v782_v16, %v778_v13 }
 0x168   : > { %v786_v18 = vpop.f32.mrb[8].mxu0 }
 0x169   : > { %v788_v19 = vpop.f32.mrb[9].mxu0 }
 0x16a   : > { %v790_v20 = vpop.f32.mrb[10].mxu0 }
 0x16b   : > { %v11379_v21 = vpack.c.bf16 %v790_v20, %v786_v18  ;;  %v792_v22 = vpop.f32.mrb[11].mxu0  ;;  %v10326_v18 = vld [vmem:[#allocation2 + $0x7a8] ss:$48 sps:$4 sm:$0xff]   ;;  %v10331_v20 = vld [vmem:[#allocation2 + $0x80c] ss:$48 sps:$4 sm:$0xff]  }
 0x16c   : > { %v11381_v23 = vpack.c.bf16 %v792_v22, %v788_v19  ;;  %v10359_v19 = vld [vmem:[#allocation2 + $0x788] ss:$48 sps:$4 sm:$0xff]   ;;  %v10364_v22 = vld [vmem:[#allocation2 + $0x7ec] ss:$48 sps:$4 sm:$0xff]  }
 0x170   : > { %v796_v24 = vpop.f32.mrb[12].mxu0 }
 0x171   : > { %v798_v25 = vpop.f32.mrb[13].mxu0 }
 0x172   : > { %v800_v26 = vpop.f32.mrb[14].mxu0 }
 0x173   : > { %v11383_v27 = vpack.c.bf16 %v800_v26, %v796_v24  ;;  %v802_v28 = vpop.f32.mrb[15].mxu0  ;;  %v10362_v26 = vld [vmem:[#allocation2 + $0x7e8] ss:$48 sps:$4 sm:$0xff]  }
 0x174   : > { %v11385_v29 = vpack.c.bf16 %v802_v28, %v798_v25  ;;  %v10329_v25 = vld [vmem:[#allocation2 + $0x808] ss:$48 sps:$4 sm:$0xff]  }
 0x178   : > { %v806_v30 = vpop.f32.mrb[16].mxu0 }
 0x179   : > { %v808_v31 = vpop.f32.mrb[17].mxu0 }
 0x17a   : > { %v810_v32 = vpop.f32.mrb[18].mxu0 }
 0x17b   : > { %v11387_v33 = vpack.c.bf16 %v810_v32, %v806_v30  ;;  %v812_v34 = vpop.f32.mrb[19].mxu0  ;;  %v10337_v30 = vld [vmem:[#allocation2 + $0x86c] ss:$48 sps:$4 sm:$0xff]  }
 0x17c   : > { %v11389_v35 = vpack.c.bf16 %v812_v34, %v808_v31  ;;  %v10370_v31 = vld [vmem:[#allocation2 + $0x84c] ss:$48 sps:$4 sm:$0xff]  }
 0x17e   : > { %8644 = vmatprep.mubr.msk.bf16.mxu0 %vm659_vm0, %v11389_v35  ;;  %8692 = vmatprep.mubr.msk.bf16.mxu1 %vm659_vm0, %v11389_v35 }
 0x17f   : > { %2311 = vmatmul.mubr.bf16.vlgmr.msra.gmra.mrb[96].mxu0 %v11387_v33  ;;  %2866 = vmatmul.mubr.bf16.vlgmr.msra.gmra.mrb[0].mxu1 %v11387_v33 }
 0x180   : > { %3204 = vmatpush1.bf16.msra.mxu1 %v10308_v36  ;;  %v816_v40 = vpop.f32.mrb[20].mxu0  ;;  %2464 = vmatpush1.bf16.msra.mxu0 %v10332_v37 }
 0x181   : > { %v818_v43 = vpop.f32.mrb[21].mxu0  ;;  %3205 = vmatprep.subr.bf16.mxu1 %v10313_v38  ;;  %2465 = vmatprep.subr.bf16.mxu0 %v10340_v39  ;;  %v10335_v38 = vld [vmem:[#allocation2 + $0x868] ss:$48 sps:$4 sm:$0xff]  }
 0x182   : > { %v820_v46 = vpop.f32.mrb[22].mxu0  ;;  %v10368_v39 = vld [vmem:[#allocation2 + $0x848] ss:$48 sps:$4 sm:$0xff]  }
 0x183   : > { %v11397_v47 = vpack.c.bf16 %v820_v46, %v816_v40  ;;  %v822_v48 = vpop.f32.mrb[23].mxu0  ;;  %v10346_v40 = vld [vmem:[#allocation2 + $0x8cc] ss:$48 sps:$4 sm:$0xff]  }
 0x184   : > { %v11399_v49 = vpack.c.bf16 %v822_v48, %v818_v43  ;;  %3206 = vmatpush1.bf16.msra.mxu1 %v10311_v41  ;;  %2466 = vmatpush1.bf16.msra.mxu0 %v10338_v42  ;;  %v10373_v41 = vld [vmem:[#allocation2 + $0x8ac] ss:$48 sps:$4 sm:$0xff]   ;;  %v10344_v43 = vld [vmem:[#allocation2 + $0x8c8] ss:$48 sps:$4 sm:$0xff]  }
 0x185   : > { %3207 = vmatprep.subr.bf16.mxu1 %v10316_v44  ;;  %2467 = vmatprep.subr.bf16.mxu0 %v10343_v45  ;;  %v10371_v44 = vld [vmem:[#allocation2 + $0x8a8] ss:$48 sps:$4 sm:$0xff]   ;;  %v10355_v46 = vld [vmem:[#allocation2 + $0x92c] ss:$48 sps:$4 sm:$0xff]  }
 0x186   : > { %8645 = vmatprep.mubr.msk.bf16.mxu0 %vm659_vm0, %v11399_v49  ;;  %8693 = vmatprep.mubr.msk.bf16.mxu1 %vm659_vm0, %v11399_v49  ;;  %v10379_v48 = vld [vmem:[#allocation2 + $0x90c] ss:$48 sps:$4 sm:$0xff]  }
 0x187   : > { %2321 = vmatmul.mubr.bf16.gmra.mrb[100].mxu0 %v11397_v47  ;;  %2876 = vmatmul.mubr.bf16.gmra.mrb[4].mxu1 %v11397_v47 }
 0x188   : > { %v826_v54 = vpop.f32.mrb[24].mxu0  ;;  %3208 = vmatpush1.bf16.msra.mxu1 %v10314_v50  ;;  %2468 = vmatpush1.bf16.msra.mxu0 %v10341_v51 }
 0x189   : > { %v828_v57 = vpop.f32.mrb[25].mxu0  ;;  %3209 = vmatprep.subr.bf16.mxu1 %v10319_v52  ;;  %2469 = vmatprep.subr.bf16.mxu0 %v10349_v53 }
 0x18a   : > { %v830_v60 = vpop.f32.mrb[26].mxu0 }
 0x18b   : > { %v11407_v61 = vpack.c.bf16 %v830_v60, %v826_v54  ;;  %v832_v62 = vpop.f32.mrb[27].mxu0  ;;  %v10353_v54 = vld [vmem:[#allocation2 + $0x928] ss:$48 sps:$4 sm:$0xff]  }
 0x18c   : > { %v11409_v63 = vpack.c.bf16 %v832_v62, %v828_v57  ;;  %3210 = vmatpush1.bf16.msra.mxu1 %v10317_v55  ;;  %2470 = vmatpush1.bf16.msra.mxu0 %v10347_v56  ;;  %v10377_v55 = vld [vmem:[#allocation2 + $0x908] ss:$48 sps:$4 sm:$0xff]   ;;  %v10367_v56 = vld [vmem:[#allocation2 + $0x98c] ss:$48 sps:$4 sm:$0xff]  }
 0x18d   : > { %3211 = vmatprep.subr.bf16.mxu1 %v10322_v58  ;;  %2471 = vmatprep.subr.bf16.mxu0 %v10352_v59  ;;  %v10382_v57 = vld [vmem:[#allocation2 + $0x96c] ss:$48 sps:$4 sm:$0xff]   ;;  %v10365_v59 = vld [vmem:[#allocation2 + $0x988] ss:$48 sps:$4 sm:$0xff]  }
 0x18e   : > { %8646 = vmatprep.mubr.msk.bf16.mxu0 %vm659_vm0, %v11409_v63  ;;  %8694 = vmatprep.mubr.msk.bf16.mxu1 %vm659_vm0, %v11409_v63  ;;  %v10380_v60 = vld [vmem:[#allocation2 + $0x968] ss:$48 sps:$4 sm:$0xff]  }
 0x18f   : > { %2331 = vmatmul.mubr.bf16.gmra.mrb[104].mxu0 %v11407_v61  ;;  %2886 = vmatmul.mubr.bf16.gmra.mrb[8].mxu1 %v11407_v61 }
 0x190   : > { %v836_v4 = vpop.f32.mrb[28].mxu0  ;;  %3212 = vmatpush1.bf16.msra.mxu1 %v10320_v0  ;;  %2472 = vmatpush1.bf16.msra.mxu0 %v10350_v1  ;;  %v10376_v0 = vld [vmem:[#allocation2 + $0x9ec] ss:$48 sps:$4 sm:$0xff]  }
 0x191   : > { %v838_v7 = vpop.f32.mrb[29].mxu0  ;;  %3213 = vmatprep.subr.bf16.mxu1 %v10325_v2  ;;  %2473 = vmatprep.subr.bf16.mxu0 %v10358_v3  ;;  %v10388_v1 = vld [vmem:[#allocation2 + $0x9cc] ss:$48 sps:$4 sm:$0xff]  }
 0x192   : > { %v840_v12 = vpop.f32.mrb[30].mxu0 }
 0x193   : > { %v11417_v13 = vpack.c.bf16 %v840_v12, %v836_v4  ;;  %v842_v14 = vpop.f32.mrb[31].mxu0 }
 0x194   : > { %v11419_v16 = vpack.c.bf16 %v842_v14, %v838_v7  ;;  %3214 = vmatpush1.bf16.msra.mxu1 %v10323_v5  ;;  %2474 = vmatpush1.bf16.msra.mxu0 %v10356_v6  ;;  %v10374_v6 = vld [vmem:[#allocation2 + $0x9e8] ss:$48 sps:$4 sm:$0xff]  }
 0x195   : > { %3215 = vmatprep.subr.bf16.mxu1 %v10328_v8  ;;  %2475 = vmatprep.subr.bf16.mxu0 %v10361_v10  ;;  %v10386_v7 = vld [vmem:[#allocation2 + $0x9c8] ss:$48 sps:$4 sm:$0xff]   ;;  %v10385_v8 = vld [vmem:[#allocation2 + $0xa4c] ss:$48 sps:$4 sm:$0xff]  }
 0x196   : > { %8647 = vmatprep.mubr.msk.bf16.mxu0 %vm659_vm0, %v11419_v16  ;;  %8695 = vmatprep.mubr.msk.bf16.mxu1 %vm659_vm0, %v11419_v16  ;;  %v10391_v10 = vld [vmem:[#allocation2 + $0xa2c] ss:$48 sps:$4 sm:$0xff]   ;;  %v10383_v14 = vld [vmem:[#allocation2 + $0xa48] ss:$48 sps:$4 sm:$0xff]  }
 0x197   : > { %2341 = vmatmul.mubr.bf16.gmra.mrb[108].mxu0 %v11417_v13  ;;  %2896 = vmatmul.mubr.bf16.gmra.mrb[12].mxu1 %v11417_v13 }
 0x198   : > { %v846_v24 = vpop.f32.mrb[32].mxu0  ;;  %3216 = vmatpush1.bf16.msra.mxu1 %v10326_v18  ;;  %2476 = vmatpush1.bf16.msra.mxu0 %v10359_v19  ;;  %v10389_v18 = vld [vmem:[#allocation2 + $0xa28] ss:$48 sps:$4 sm:$0xff]  }
 0x199   : > { %v848_v28 = vpop.f32.mrb[33].mxu0  ;;  %3217 = vmatprep.subr.bf16.mxu1 %v10331_v20  ;;  %2477 = vmatprep.subr.bf16.mxu0 %v10364_v22  ;;  %v10394_v20 = vld [vmem:[#allocation2 + $0x4] ss:$48 sps:$4 sm:$0xff]  }
 0x19a   : > { %v850_v32 = vpop.f32.mrb[34].mxu0 }
 0x19b   : > { %v11427_v34 = vpack.c.bf16 %v850_v32, %v846_v24  ;;  %v852_v36 = vpop.f32.mrb[35].mxu0 }
 0x19c   : > { %v11429_v37 = vpack.c.bf16 %v852_v36, %v848_v28  ;;  %3218 = vmatpush1.bf16.msra.mxu1 %v10329_v25  ;;  %2478 = vmatpush1.bf16.msra.mxu0 %v10362_v26 }
 0x19d   : > { %3219 = vmatprep.subr.bf16.mxu1 %v10337_v30  ;;  %2479 = vmatprep.subr.bf16.mxu0 %v10370_v31 }
 0x19e   : > { %8648 = vmatprep.mubr.msk.bf16.mxu0 %vm659_vm0, %v11429_v37  ;;  %8696 = vmatprep.mubr.msk.bf16.mxu1 %vm659_vm0, %v11429_v37 }
 0x19f   : > { %2349 = vmatmul.mubr.bf16.gmra.mrb[112].mxu0 %v11427_v34  ;;  %2904 = vmatmul.mubr.bf16.gmra.mrb[16].mxu1 %v11427_v34 }
 0x1a0   : > { %v856_v42 = vpop.f32.mrb[36].mxu0  ;;  %3220 = vmatpush1.bf16.msra.mxu1 %v10335_v38  ;;  %2480 = vmatpush1.bf16.msra.mxu0 %v10368_v39 }
 0x1a1   : > { %v858_v45 = vpop.f32.mrb[37].mxu0  ;;  %3221 = vmatprep.subr.bf16.mxu1 %v10346_v40  ;;  %2481 = vmatprep.subr.bf16.mxu0 %v10373_v41 }
 0x1a2   : > { %v860_v50 = vpop.f32.mrb[38].mxu0 }
 0x1a3   : > { %v11437_v51 = vpack.c.bf16 %v860_v50, %v856_v42  ;;  %v862_v52 = vpop.f32.mrb[39].mxu0 }
 0x1a4   : > { %v11439_v53 = vpack.c.bf16 %v862_v52, %v858_v45  ;;  %3222 = vmatpush1.bf16.msra.mxu1 %v10344_v43  ;;  %2482 = vmatpush1.bf16.msra.mxu0 %v10371_v44  ;;  %v10418_v45 = vld [vmem:[#allocation2 + $0x554] ss:$48 sps:$4 sm:$0xff]  }
 0x1a5   : > { %3223 = vmatprep.subr.bf16.mxu1 %v10355_v46  ;;  %2483 = vmatprep.subr.bf16.mxu0 %v10379_v48 }
 0x1a6   : > { %8649 = vmatprep.mubr.msk.bf16.mxu0 %vm659_vm0, %v11439_v53  ;;  %8697 = vmatprep.mubr.msk.bf16.mxu1 %vm659_vm0, %v11439_v53 }
 0x1a7   : > { %2359 = vmatmul.mubr.bf16.gmra.mrb[116].mxu0 %v11437_v51  ;;  %2914 = vmatmul.mubr.bf16.gmra.mrb[20].mxu1 %v11437_v51 }
 0x1a8   : > { %v866_v58 = vpop.f32.mrb[40].mxu0  ;;  %3224 = vmatpush1.bf16.msra.mxu1 %v10353_v54  ;;  %2484 = vmatpush1.bf16.msra.mxu0 %v10377_v55 }
 0x1a9   : > { %v868_v62 = vpop.f32.mrb[41].mxu0  ;;  %3225 = vmatprep.subr.bf16.mxu1 %v10367_v56  ;;  %2485 = vmatprep.subr.bf16.mxu0 %v10382_v57 }
 0x1aa   : > { %v870_v2 = vpop.f32.mrb[42].mxu0 }
 0x1ab   : > { %v11447_v3 = vpack.c.bf16 %v870_v2, %v866_v58  ;;  %v872_v4 = vpop.f32.mrb[43].mxu0 }
 0x1ac   : > { %v11449_v5 = vpack.c.bf16 %v872_v4, %v868_v62  ;;  %3226 = vmatpush1.bf16.msra.mxu1 %v10365_v59  ;;  %2486 = vmatpush1.bf16.msra.mxu0 %v10380_v60 }
 0x1ad   : > { %3227 = vmatprep.subr.bf16.mxu1 %v10376_v0  ;;  %2487 = vmatprep.subr.bf16.mxu0 %v10388_v1 }
 0x1ae   : > { %8650 = vmatprep.mubr.msk.bf16.mxu0 %vm659_vm0, %v11449_v5  ;;  %8698 = vmatprep.mubr.msk.bf16.mxu1 %vm659_vm0, %v11449_v5 }
 0x1af   : > { %2369 = vmatmul.mubr.bf16.gmra.mrb[120].mxu0 %v11447_v3  ;;  %2924 = vmatmul.mubr.bf16.gmra.mrb[24].mxu1 %v11447_v3 }
 0x1b0   : > { %v876_v12 = vpop.f32.mrb[44].mxu0  ;;  %3228 = vmatpush1.bf16.msra.mxu1 %v10374_v6  ;;  %2488 = vmatpush1.bf16.msra.mxu0 %v10386_v7 }
 0x1b1   : > { %v878_v19 = vpop.f32.mrb[45].mxu0  ;;  %3229 = vmatprep.subr.bf16.mxu1 %v10385_v8  ;;  %2489 = vmatprep.subr.bf16.mxu0 %v10391_v10 }
 0x1b2   : > { %v880_v22 = vpop.f32.mrb[46].mxu0 }
 0x1b3   : > { %v11457_v24 = vpack.c.bf16 %v880_v22, %v876_v12  ;;  %v882_v25 = vpop.f32.mrb[47].mxu0 }
 0x1b4   : > { %v11459_v26 = vpack.c.bf16 %v882_v25, %v878_v19  ;;  %3230 = vmatpush1.bf16.msra.mxu1 %v10383_v14  ;;  %2490 = vmatpush1.bf16.msra.mxu0 %v10389_v18 }
 0x1b5   : > { %4240 = vmatprep.subr.bf16.mxu1 %v10394_v20  ;;  %2648 = vmatprep.subr.bf16.mxu0 %v10418_v45 }
 0x1b6   : > { %8651 = vmatprep.mubr.msk.bf16.mxu0 %vm659_vm0, %v11459_v26  ;;  %8699 = vmatprep.mubr.msk.bf16.mxu1 %vm659_vm0, %v11459_v26 }
 0x1b7   : > { %2379 = vmatmul.mubr.bf16.gmra.mrb[124].mxu0 %v11457_v24  ;;  %2934 = vmatmul.mubr.bf16.gmra.mrb[28].mxu1 %v11457_v24 }
 0x1b8   : > { %v886_v28 = vpop.f32.mrb[48].mxu0 }
 0x1b9   : > { %v888_v30 = vpop.f32.mrb[49].mxu0 }
 0x1ba   : > { %v890_v31 = vpop.f32.mrb[50].mxu0 }
 0x1bb   : > { %v11467_v32 = vpack.c.bf16 %v890_v31, %v886_v28  ;;  %v892_v36 = vpop.f32.mrb[51].mxu0 }
 0x1bc   : > { %v11469_v38 = vpack.c.bf16 %v892_v36, %v888_v30 }
 0x1bd   : > { %14222 = vst [vmem:[#allocation8_spill] sm:$0xff] %v11467_v32 }
 0x1be   : > { %8652 = vmatprep.mubr.msk.bf16.mxu0 %vm659_vm0, %v11469_v38  ;;  %8700 = vmatprep.mubr.msk.bf16.mxu1 %vm659_vm0, %v11469_v38 }
 0x1bf   : > { %2387 = vmatmul.mubr.bf16.gmra.mrb[128].mxu0 %v11467_v32  ;;  %2942 = vmatmul.mubr.bf16.gmra.mrb[32].mxu1 %v11467_v32 }
 0x1c0   : > { %v896_v39 = vpop.f32.mrb[52].mxu0 }
 0x1c1   : > { %v898_v40 = vpop.f32.mrb[53].mxu0 }
 0x1c2   : > { %v900_v41 = vpop.f32.mrb[54].mxu0 }
 0x1c3   : > { %v11477_v42 = vpack.c.bf16 %v900_v41, %v896_v39  ;;  %v902_v43 = vpop.f32.mrb[55].mxu0 }
 0x1c4   : > { %v11479_v44 = vpack.c.bf16 %v902_v43, %v898_v40 }
 0x1c5   : > { %14223 = vst [vmem:[#allocation9_spill] sm:$0xff] %v11477_v42 }
 0x1c6   : > { %14224 = vst [vmem:[#allocation10_spill] sm:$0xff] %v11479_v44  ;;  %8653 = vmatprep.mubr.msk.bf16.mxu0 %vm659_vm0, %v11479_v44  ;;  %8701 = vmatprep.mubr.msk.bf16.mxu1 %vm659_vm0, %v11479_v44 }
 0x1c7   : > { %2397 = vmatmul.mubr.bf16.gmra.mrb[132].mxu0 %v11477_v42  ;;  %2952 = vmatmul.mubr.bf16.gmra.mrb[36].mxu1 %v11477_v42 }
 0x1c8   : > { %v906_v46 = vpop.f32.mrb[56].mxu0 }
 0x1c9   : > { %v908_v48 = vpop.f32.mrb[57].mxu0 }
 0x1ca   : > { %v910_v50 = vpop.f32.mrb[58].mxu0 }
 0x1cb   : > { %v11487_v52 = vpack.c.bf16 %v910_v50, %v906_v46  ;;  %v912_v54 = vpop.f32.mrb[59].mxu0 }
 0x1cc   : > { %v11489_v55 = vpack.c.bf16 %v912_v54, %v908_v48 }
 0x1cd   : > { %14225 = vst [vmem:[#allocation11_spill] sm:$0xff] %v11487_v52 }
 0x1ce   : > { %14226 = vst [vmem:[#allocation12_spill] sm:$0xff] %v11489_v55  ;;  %8654 = vmatprep.mubr.msk.bf16.mxu0 %vm659_vm0, %v11489_v55  ;;  %8702 = vmatprep.mubr.msk.bf16.mxu1 %vm659_vm0, %v11489_v55 }
 0x1cf   : > { %2407 = vmatmul.mubr.bf16.gmra.mrb[136].mxu0 %v11487_v52  ;;  %2962 = vmatmul.mubr.bf16.gmra.mrb[40].mxu1 %v11487_v52 }
 0x1d0   : > { %v916_v56 = vpop.f32.mrb[60].mxu0 }
 0x1d1   : > { %v918_v57 = vpop.f32.mrb[61].mxu0 }
 0x1d2   : > { %v920_v58 = vpop.f32.mrb[62].mxu0 }
 0x1d3   : > { %v11497_v59 = vpack.c.bf16 %v920_v58, %v916_v56  ;;  %v922_v60 = vpop.f32.mrb[63].mxu0 }
 0x1d4   : > { %v11499_v62 = vpack.c.bf16 %v922_v60, %v918_v57  ;;  %v10392_v57 = vld [vmem:[#allocation2] ss:$48 sps:$4 sm:$0xff]   ;;  %v10397_v60 = vld [vmem:[#allocation2 + $0x64] ss:$48 sps:$4 sm:$0xff]  }
 0x1d5   : > { %14227 = vst [vmem:[#allocation13_spill] sm:$0xff] %v11497_v59 }
 0x1d6   : > { %14228 = vst [vmem:[#allocation14_spill] sm:$0xff] %v11499_v62  ;;  %8655 = vmatprep.mubr.msk.bf16.mxu0 %vm659_vm0, %v11499_v62  ;;  %8703 = vmatprep.mubr.msk.bf16.mxu1 %vm659_vm0, %v11499_v62 }
 0x1d7   : > { %2417 = vmatmul.mubr.bf16.gmra.mrb[140].mxu0 %v11497_v59  ;;  %2972 = vmatmul.mubr.bf16.gmra.mrb[44].mxu1 %v11497_v59 }
 0x1d8   : > { %v926_v0 = vpop.f32.mrb[64].mxu0 }
 0x1d9   : > { %v928_v1 = vpop.f32.mrb[65].mxu0 }
 0x1da   : > { %v930_v2 = vpop.f32.mrb[66].mxu0 }
 0x1db   : > { %v11507_v4 = vpack.c.bf16 %v930_v2, %v926_v0  ;;  %v932_v6 = vpop.f32.mrb[67].mxu0  ;;  %v10416_v0 = vld [vmem:[#allocation2 + $0x550] ss:$48 sps:$4 sm:$0xff]  }
 0x1dc   : > { %v11509_v7 = vpack.c.bf16 %v932_v6, %v928_v1  ;;  %v10424_v1 = vld [vmem:[#allocation2 + $0x5b4] ss:$48 sps:$4 sm:$0xff]   ;;  %v10395_v2 = vld [vmem:[#allocation2 + $0x60] ss:$48 sps:$4 sm:$0xff]  }
 0x1dd   : > { %14229 = vst [vmem:[#allocation15_spill] sm:$0xff] %v11507_v4 }
 0x1de   : > { %14230 = vst [vmem:[#allocation16_spill] sm:$0xff] %v11509_v7  ;;  %8656 = vmatprep.mubr.msk.bf16.mxu0 %vm659_vm0, %v11509_v7  ;;  %8704 = vmatprep.mubr.msk.bf16.mxu1 %vm659_vm0, %v11509_v7 }
 0x1df   : > { %2425 = vmatmul.mubr.bf16.gmra.mrb[144].mxu0 %v11507_v4  ;;  %2980 = vmatmul.mubr.bf16.gmra.mrb[48].mxu1 %v11507_v4 }
 0x1e0   : > { %v936_v8 = vpop.f32.mrb[68].mxu0 }
 0x1e1   : > { %v938_v10 = vpop.f32.mrb[69].mxu0 }
 0x1e2   : > { %v940_v12 = vpop.f32.mrb[70].mxu0 }
 0x1e3   : > { %v11517_v14 = vpack.c.bf16 %v940_v12, %v936_v8  ;;  %v942_v18 = vpop.f32.mrb[71].mxu0  ;;  %v10400_v8 = vld [vmem:[#allocation2 + $0xc4] ss:$48 sps:$4 sm:$0xff]  }
 0x1e4   : > { %v11519_v19 = vpack.c.bf16 %v942_v18, %v938_v10  ;;  %v10422_v18 = vld [vmem:[#allocation2 + $0x5b0] ss:$48 sps:$4 sm:$0xff]  }
 0x1e5   : > { %14231 = vst [vmem:[#allocation17_spill] sm:$0xff] %v11517_v14 }
 0x1e6   : > { %14232 = vst [vmem:[#allocation18_spill] sm:$0xff] %v11519_v19  ;;  %8657 = vmatprep.mubr.msk.bf16.mxu0 %vm659_vm0, %v11519_v19  ;;  %8705 = vmatprep.mubr.msk.bf16.mxu1 %vm659_vm0, %v11519_v19 }
 0x1e7   : > { %2435 = vmatmul.mubr.bf16.gmra.mrb[148].mxu0 %v11517_v14  ;;  %2990 = vmatmul.mubr.bf16.gmra.mrb[52].mxu1 %v11517_v14 }
 0x1e8   : > { %v946_v20 = vpop.f32.mrb[72].mxu0 }
 0x1e9   : > { %v948_v22 = vpop.f32.mrb[73].mxu0 }
 0x1ea   : > { %v950_v25 = vpop.f32.mrb[74].mxu0 }
 0x1eb   : > { %v11527_v28 = vpack.c.bf16 %v950_v25, %v946_v20  ;;  %v952_v30 = vpop.f32.mrb[75].mxu0 }
 0x1ec   : > { %v11529_v31 = vpack.c.bf16 %v952_v30, %v948_v22  ;;  %v10398_v30 = vld [vmem:[#allocation2 + $0xc0] ss:$48 sps:$4 sm:$0xff]  }
 0x1ed   : > { %14233 = vst [vmem:[#allocation19_spill] sm:$0xff] %v11527_v28 }
 0x1ee   : > { %14234 = vst [vmem:[#allocation20_spill] sm:$0xff] %v11529_v31  ;;  %8658 = vmatprep.mubr.msk.bf16.mxu0 %vm659_vm0, %v11529_v31  ;;  %8706 = vmatprep.mubr.msk.bf16.mxu1 %vm659_vm0, %v11529_v31 }
 0x1ef   : > { %2445 = vmatmul.mubr.bf16.gmra.mrb[152].mxu0 %v11527_v28  ;;  %3000 = vmatmul.mubr.bf16.gmra.mrb[56].mxu1 %v11527_v28 }
 0x1f0   : > { %v956_v36 = vpop.f32.mrb[76].mxu0 }
 0x1f1   : > { %v958_v39 = vpop.f32.mrb[77].mxu0 }
 0x1f2   : > { %v960_v40 = vpop.f32.mrb[78].mxu0 }
 0x1f3   : > { %v11537_v41 = vpack.c.bf16 %v960_v40, %v956_v36  ;;  %v962_v43 = vpop.f32.mrb[79].mxu0  ;;  %v10427_v36 = vld [vmem:[#allocation2 + $0x614] ss:$48 sps:$4 sm:$0xff]   ;;  %v10425_v40 = vld [vmem:[#allocation2 + $0x610] ss:$48 sps:$4 sm:$0xff]  }
 0x1f4   : > { %v11539_v45 = vpack.c.bf16 %v962_v43, %v958_v39  ;;  %v10403_v39 = vld [vmem:[#allocation2 + $0x124] ss:$48 sps:$4 sm:$0xff]  }
 0x1f5   : > { %14235 = vst [vmem:[#allocation21_spill] sm:$0xff] %v11537_v41  ;;  %v10433_v43 = vld [vmem:[#allocation2 + $0x674] ss:$48 sps:$4 sm:$0xff]  }
 0x1f6   : > { %14236 = vst [vmem:[#allocation22_spill] sm:$0xff] %v11539_v45  ;;  %8659 = vmatprep.mubr.msk.bf16.mxu0 %vm659_vm0, %v11539_v45  ;;  %8707 = vmatprep.mubr.msk.bf16.mxu1 %vm659_vm0, %v11539_v45 }
 0x1f7   : > { %2455 = vmatmul.mubr.bf16.gmra.mrb[156].mxu0 %v11537_v41  ;;  %3010 = vmatmul.mubr.bf16.gmra.mrb[60].mxu1 %v11537_v41 }
 0x1f8   : > { %8660 = vmatprep.mubr.msk.bf16.mxu0 %vm659_vm0, %v11389_v35  ;;  %8724 = vmatprep.mubr.msk.bf16.mxu1 %vm659_vm0, %v11389_v35  ;;  %v966_v46 = vpop.f32.mrb[80].mxu0 }
 0x1f9   : > { %v968_v48 = vpop.f32.mrb[81].mxu0 }
 0x1fa   : > { %v970_v50 = vpop.f32.mrb[82].mxu0 }
 0x1fb   : > { %v11551_v54 = vpack.c.bf16 %v970_v50, %v966_v46  ;;  %v972_v56 = vpop.f32.mrb[83].mxu0 }
 0x1fc   : > { %v11553_v58 = vpack.c.bf16 %v972_v56, %v968_v48  ;;  %v10401_v48 = vld [vmem:[#allocation2 + $0x120] ss:$48 sps:$4 sm:$0xff]   ;;  %v10406_v56 = vld [vmem:[#allocation2 + $0x184] ss:$48 sps:$4 sm:$0xff]  }
 0x1fd   : > { %14237 = vst [vmem:[#allocation23_spill] sm:$0xff] %v11551_v54 }
 0x1fe   : > { %14238 = vst [vmem:[#allocation24_spill] sm:$0xff] %v11553_v58 }
 0x1ff   : > { %2496 = vmatmul.mubr.bf16.vlgmr.msra.gmra.mrb[160].mxu0 %v11387_v33  ;;  %3236 = vmatmul.mubr.bf16.vlgmr.msra.gmra.mrb[64].mxu1 %v11387_v33 }
 0x200   : > { %4241 = vmatpush1.bf16.msra.mxu1 %v10392_v57  ;;  %8661 = vmatprep.mubr.msk.bf16.mxu0 %vm659_vm0, %v11399_v49  ;;  %v976_v6 = vpop.f32.mrb[84].mxu0 }
 0x201   : > { %8725 = vmatprep.mubr.msk.bf16.mxu1 %vm659_vm0, %v11399_v49  ;;  %4242 = vmatprep.subr.bf16.mxu1 %v10397_v60  ;;  %v978_v10 = vpop.f32.mrb[85].mxu0  ;;  %v10431_v60 = vld [vmem:[#allocation2 + $0x670] ss:$48 sps:$4 sm:$0xff]  }
 0x202   : > { %v980_v12 = vpop.f32.mrb[86].mxu0  ;;  %2649 = vmatpush1.bf16.msra.mxu0 %v10416_v0 }
 0x203   : > { %v11561_v20 = vpack.c.bf16 %v980_v12, %v976_v6  ;;  %v982_v22 = vpop.f32.mrb[87].mxu0  ;;  %2650 = vmatprep.subr.bf16.mxu0 %v10424_v1  ;;  %v10404_v6 = vld [vmem:[#allocation2 + $0x180] ss:$48 sps:$4 sm:$0xff]  }
 0x204   : > { %4243 = vmatpush1.bf16.msra.mxu1 %v10395_v2  ;;  %v11563_v25 = vpack.c.bf16 %v982_v22, %v978_v10  ;;  %v10409_v10 = vld [vmem:[#allocation2 + $0x1e4] ss:$48 sps:$4 sm:$0xff]   ;;  %v10434_v12 = vld [vmem:[#allocation2 + $0x6d0] ss:$48 sps:$4 sm:$0xff]  }
 0x205   : > { %14239 = vst [vmem:[#allocation25_spill] sm:$0xff] %v11561_v20  ;;  %4244 = vmatprep.subr.bf16.mxu1 %v10400_v8  ;;  %v10436_v8 = vld [vmem:[#allocation2 + $0x6d4] ss:$48 sps:$4 sm:$0xff]  }
 0x206   : > { %14240 = vst [vmem:[#allocation26_spill] sm:$0xff] %v11563_v25  ;;  %2651 = vmatpush1.bf16.msra.mxu0 %v10422_v18  ;;  %v10442_v18 = vld [vmem:[#allocation2 + $0x734] ss:$48 sps:$4 sm:$0xff]  }
 0x207   : > { %2506 = vmatmul.mubr.bf16.gmra.mrb[164].mxu0 %v11397_v47  ;;  %3246 = vmatmul.mubr.bf16.gmra.mrb[68].mxu1 %v11397_v47 }
 0x208   : > { %8662 = vmatprep.mubr.msk.bf16.mxu0 %vm659_vm0, %v11409_v63  ;;  %8726 = vmatprep.mubr.msk.bf16.mxu1 %vm659_vm0, %v11409_v63  ;;  %v986_v46 = vpop.f32.mrb[88].mxu0 }
 0x209   : > { %4245 = vmatpush1.bf16.msra.mxu1 %v10398_v30  ;;  %v988_v50 = vpop.f32.mrb[89].mxu0  ;;  %2652 = vmatprep.subr.bf16.mxu0 %v10427_v36  ;;  %v10407_v30 = vld [vmem:[#allocation2 + $0x1e0] ss:$48 sps:$4 sm:$0xff]  }
 0x20a   : > { %4246 = vmatprep.subr.bf16.mxu1 %v10403_v39  ;;  %v990_v57 = vpop.f32.mrb[90].mxu0  ;;  %2653 = vmatpush1.bf16.msra.mxu0 %v10425_v40  ;;  %v10412_v39 = vld [vmem:[#allocation2 + $0x244] ss:$48 sps:$4 sm:$0xff]  }
 0x20b   : > { %v11571_v0 = vpack.c.bf16 %v990_v57, %v986_v46  ;;  %v992_v1 = vpop.f32.mrb[91].mxu0  ;;  %2654 = vmatprep.subr.bf16.mxu0 %v10433_v43  ;;  %v10440_v43 = vld [vmem:[#allocation2 + $0x730] ss:$48 sps:$4 sm:$0xff]   ;;  %v10445_v57 = vld [vmem:[#allocation2 + $0x794] ss:$48 sps:$4 sm:$0xff]  }
 0x20c   : > { %v11573_v2 = vpack.c.bf16 %v992_v1, %v988_v50  ;;  %v10443_v1 = vld [vmem:[#allocation2 + $0x790] ss:$48 sps:$4 sm:$0xff]  }
 0x20d   : > { %14241 = vst [vmem:[#allocation27_spill] sm:$0xff] %v11571_v0  ;;  %4247 = vmatpush1.bf16.msra.mxu1 %v10401_v48 }
 0x20e   : > { %14242 = vst [vmem:[#allocation28_spill] sm:$0xff] %v11573_v2  ;;  %4248 = vmatprep.subr.bf16.mxu1 %v10406_v56  ;;  %2655 = vmatpush1.bf16.msra.mxu0 %v10431_v60  ;;  %v10410_v56 = vld [vmem:[#allocation2 + $0x240] ss:$48 sps:$4 sm:$0xff]   ;;  %v10415_v60 = vld [vmem:[#allocation2 + $0x2a4] ss:$48 sps:$4 sm:$0xff]  }
 0x20f   : > { %2516 = vmatmul.mubr.bf16.gmra.mrb[168].mxu0 %v11407_v61  ;;  %3256 = vmatmul.mubr.bf16.gmra.mrb[72].mxu1 %v11407_v61 }
 0x210   : > { %8663 = vmatprep.mubr.msk.bf16.mxu0 %vm659_vm0, %v11419_v16  ;;  %8727 = vmatprep.mubr.msk.bf16.mxu1 %vm659_vm0, %v11419_v16  ;;  %v996_v22 = vpop.f32.mrb[92].mxu0 }
 0x211   : > { %4249 = vmatpush1.bf16.msra.mxu1 %v10404_v6  ;;  %v998_v36 = vpop.f32.mrb[93].mxu0  ;;  %2656 = vmatprep.subr.bf16.mxu0 %v10436_v8  ;;  %v10448_v6 = vld [vmem:[#allocation2 + $0x7f4] ss:$48 sps:$4 sm:$0xff]   ;;  %v10413_v8 = vld [vmem:[#allocation2 + $0x2a0] ss:$48 sps:$4 sm:$0xff]  }
 0x212   : > { %4250 = vmatprep.subr.bf16.mxu1 %v10409_v10  ;;  %v1000_v40 = vpop.f32.mrb[94].mxu0  ;;  %2657 = vmatpush1.bf16.msra.mxu0 %v10434_v12  ;;  %v10421_v10 = vld [vmem:[#allocation2 + $0x304] ss:$48 sps:$4 sm:$0xff]   ;;  %v10446_v12 = vld [vmem:[#allocation2 + $0x7f0] ss:$48 sps:$4 sm:$0xff]  }
 0x213   : > { %v11581_v46 = vpack.c.bf16 %v1000_v40, %v996_v22  ;;  %v1002_v48 = vpop.f32.mrb[95].mxu0  ;;  %2658 = vmatprep.subr.bf16.mxu0 %v10442_v18  ;;  %v10419_v18 = vld [vmem:[#allocation2 + $0x300] ss:$48 sps:$4 sm:$0xff]   ;;  %v10454_v22 = vld [vmem:[#allocation2 + $0x854] ss:$48 sps:$4 sm:$0xff]  }
 0x214   : > { %v11583_v50 = vpack.c.bf16 %v1002_v48, %v998_v36  ;;  %v10452_v36 = vld [vmem:[#allocation2 + $0x850] ss:$48 sps:$4 sm:$0xff]  }
 0x215   : > { %14243 = vst [vmem:[#allocation29_spill] sm:$0xff] %v11581_v46  ;;  %4251 = vmatpush1.bf16.msra.mxu1 %v10407_v30  ;;  %v10430_v30 = vld [vmem:[#allocation2 + $0x364] ss:$48 sps:$4 sm:$0xff]   ;;  %v10428_v40 = vld [vmem:[#allocation2 + $0x360] ss:$48 sps:$4 sm:$0xff]  }
 0x216   : > { %14244 = vst [vmem:[#allocation30_spill] sm:$0xff] %v11583_v50  ;;  %4252 = vmatprep.subr.bf16.mxu1 %v10412_v39  ;;  %2659 = vmatpush1.bf16.msra.mxu0 %v10440_v43  ;;  %v10457_v39 = vld [vmem:[#allocation2 + $0x8b4] ss:$48 sps:$4 sm:$0xff]   ;;  %v10455_v48 = vld [vmem:[#allocation2 + $0x8b0] ss:$48 sps:$4 sm:$0xff]  }
 0x217   : > { %2526 = vmatmul.mubr.bf16.gmra.mrb[172].mxu0 %v11417_v13  ;;  %3266 = vmatmul.mubr.bf16.gmra.mrb[76].mxu1 %v11417_v13  ;;  %v10439_v43 = vld [vmem:[#allocation2 + $0x3c4] ss:$48 sps:$4 sm:$0xff]  }
 0x218   : > { %8664 = vmatprep.mubr.msk.bf16.mxu0 %vm659_vm0, %v11429_v37  ;;  %8728 = vmatprep.mubr.msk.bf16.mxu1 %vm659_vm0, %v11429_v37 }
 0x219   : > { %4253 = vmatpush1.bf16.msra.mxu1 %v10410_v56  ;;  %2660 = vmatprep.subr.bf16.mxu0 %v10445_v57  ;;  %v10437_v56 = vld [vmem:[#allocation2 + $0x3c0] ss:$48 sps:$4 sm:$0xff]   ;;  %v10463_v57 = vld [vmem:[#allocation2 + $0x914] ss:$48 sps:$4 sm:$0xff]  }
 0x21a   : > { %4254 = vmatprep.subr.bf16.mxu1 %v10415_v60  ;;  %2661 = vmatpush1.bf16.msra.mxu0 %v10443_v1  ;;  %v10451_v60 = vld [vmem:[#allocation2 + $0x424] ss:$48 sps:$4 sm:$0xff]   ;;  %v10461_v1 = vld [vmem:[#allocation2 + $0x910] ss:$48 sps:$4 sm:$0xff]  }
 0x21b   : > { %2662 = vmatprep.subr.bf16.mxu0 %v10448_v6  ;;  %v10466_v6 = vld [vmem:[#allocation2 + $0x974] ss:$48 sps:$4 sm:$0xff]  }
 0x21d   : > { %4255 = vmatpush1.bf16.msra.mxu1 %v10413_v8  ;;  %v10449_v8 = vld [vmem:[#allocation2 + $0x420] ss:$48 sps:$4 sm:$0xff]  }
 0x21e   : > { %4256 = vmatprep.subr.bf16.mxu1 %v10421_v10  ;;  %2663 = vmatpush1.bf16.msra.mxu0 %v10446_v12  ;;  %v10460_v10 = vld [vmem:[#allocation2 + $0x484] ss:$48 sps:$4 sm:$0xff]   ;;  %v10464_v12 = vld [vmem:[#allocation2 + $0x970] ss:$48 sps:$4 sm:$0xff]  }
 0x21f   : > { %2534 = vmatmul.mubr.bf16.gmra.mrb[176].mxu0 %v11427_v34  ;;  %3274 = vmatmul.mubr.bf16.gmra.mrb[80].mxu1 %v11427_v34 }
 0x220   : > { %8665 = vmatprep.mubr.msk.bf16.mxu0 %vm659_vm0, %v11439_v53  ;;  %8729 = vmatprep.mubr.msk.bf16.mxu1 %vm659_vm0, %v11439_v53 }
 0x221   : > { %4257 = vmatpush1.bf16.msra.mxu1 %v10419_v18  ;;  %2664 = vmatprep.subr.bf16.mxu0 %v10454_v22  ;;  %v10458_v18 = vld [vmem:[#allocation2 + $0x480] ss:$48 sps:$4 sm:$0xff]   ;;  %v10472_v22 = vld [vmem:[#allocation2 + $0x9d4] ss:$48 sps:$4 sm:$0xff]  }
 0x222   : > { %4258 = vmatprep.subr.bf16.mxu1 %v10430_v30  ;;  %2665 = vmatpush1.bf16.msra.mxu0 %v10452_v36  ;;  %v10469_v30 = vld [vmem:[#allocation2 + $0x4e4] ss:$48 sps:$4 sm:$0xff]   ;;  %v10470_v36 = vld [vmem:[#allocation2 + $0x9d0] ss:$48 sps:$4 sm:$0xff]  }
 0x223   : > { %2666 = vmatprep.subr.bf16.mxu0 %v10457_v39  ;;  %v10475_v39 = vld [vmem:[#allocation2 + $0xa34] ss:$48 sps:$4 sm:$0xff]  }
 0x225   : > { %4259 = vmatpush1.bf16.msra.mxu1 %v10428_v40  ;;  %v10467_v40 = vld [vmem:[#allocation2 + $0x4e0] ss:$48 sps:$4 sm:$0xff]  }
 0x226   : > { %4260 = vmatprep.subr.bf16.mxu1 %v10439_v43  ;;  %2667 = vmatpush1.bf16.msra.mxu0 %v10455_v48  ;;  %v10473_v43 = vld [vmem:[#allocation2 + $0xa30] ss:$48 sps:$4 sm:$0xff]   ;;  %v10478_v48 = vld [vmem:[#allocation2 + $0xc] ss:$48 sps:$4 sm:$0xff]  }
 0x227   : > { %2544 = vmatmul.mubr.bf16.gmra.mrb[180].mxu0 %v11437_v51  ;;  %3284 = vmatmul.mubr.bf16.gmra.mrb[84].mxu1 %v11437_v51 }
 0x228   : > { %8666 = vmatprep.mubr.msk.bf16.mxu0 %vm659_vm0, %v11449_v5  ;;  %8730 = vmatprep.mubr.msk.bf16.mxu1 %vm659_vm0, %v11449_v5 }
 0x229   : > { %4261 = vmatpush1.bf16.msra.mxu1 %v10437_v56  ;;  %2668 = vmatprep.subr.bf16.mxu0 %v10463_v57  ;;  %v10502_v56 = vld [vmem:[#allocation2 + $0x564] ss:$48 sps:$4 sm:$0xff]  }
 0x22a   : > { %4262 = vmatprep.subr.bf16.mxu1 %v10451_v60  ;;  %2669 = vmatpush1.bf16.msra.mxu0 %v10461_v1 }
 0x22b   : > { %2670 = vmatprep.subr.bf16.mxu0 %v10466_v6 }
 0x22d   : > { %4263 = vmatpush1.bf16.msra.mxu1 %v10449_v8 }
 0x22e   : > { %4264 = vmatprep.subr.bf16.mxu1 %v10460_v10  ;;  %2671 = vmatpush1.bf16.msra.mxu0 %v10464_v12 }
 0x22f   : > { %2554 = vmatmul.mubr.bf16.gmra.mrb[184].mxu0 %v11447_v3  ;;  %3294 = vmatmul.mubr.bf16.gmra.mrb[88].mxu1 %v11447_v3 }
 0x230   : > { %8667 = vmatprep.mubr.msk.bf16.mxu0 %vm659_vm0, %v11459_v26  ;;  %8731 = vmatprep.mubr.msk.bf16.mxu1 %vm659_vm0, %v11459_v26 }
 0x231   : > { %4265 = vmatpush1.bf16.msra.mxu1 %v10458_v18  ;;  %2672 = vmatprep.subr.bf16.mxu0 %v10472_v22 }
 0x232   : > { %4266 = vmatprep.subr.bf16.mxu1 %v10469_v30  ;;  %2673 = vmatpush1.bf16.msra.mxu0 %v10470_v36 }
 0x233   : > { %2674 = vmatprep.subr.bf16.mxu0 %v10475_v39 }
 0x235   : > { %4267 = vmatpush1.bf16.msra.mxu1 %v10467_v40 }
 0x236   : > { %2675 = vmatpush1.bf16.msra.mxu0 %v10473_v43  ;;  %4425 = vmatprep.subr.bf16.mxu1 %v10478_v48 }
 0x237   : > { %2564 = vmatmul.mubr.bf16.gmra.mrb[188].mxu0 %v11457_v24  ;;  %3304 = vmatmul.mubr.bf16.gmra.mrb[92].mxu1 %v11457_v24 }
 0x238   : > { %8668 = vmatprep.mubr.msk.bf16.mxu0 %vm659_vm0, %v11469_v38  ;;  %8732 = vmatprep.mubr.msk.bf16.mxu1 %vm659_vm0, %v11469_v38 }
 0x239   : > { %3018 = vmatprep.subr.bf16.mxu0 %v10502_v56 }
 0x23f   : > { %2572 = vmatmul.mubr.bf16.gmra.mrb[192].mxu0 %v11467_v32  ;;  %3312 = vmatmul.mubr.bf16.gmra.mrb[96].mxu1 %v11467_v32 }
 0x240   : > { %8669 = vmatprep.mubr.msk.bf16.mxu0 %vm659_vm0, %v11479_v44  ;;  %8733 = vmatprep.mubr.msk.bf16.mxu1 %vm659_vm0, %v11479_v44 }
 0x247   : > { %2582 = vmatmul.mubr.bf16.gmra.mrb[196].mxu0 %v11477_v42  ;;  %3322 = vmatmul.mubr.bf16.gmra.mrb[100].mxu1 %v11477_v42 }
 0x248   : > { %8670 = vmatprep.mubr.msk.bf16.mxu0 %vm659_vm0, %v11489_v55  ;;  %8734 = vmatprep.mubr.msk.bf16.mxu1 %vm659_vm0, %v11489_v55 }
 0x24f   : > { %2592 = vmatmul.mubr.bf16.gmra.mrb[200].mxu0 %v11487_v52  ;;  %3332 = vmatmul.mubr.bf16.gmra.mrb[104].mxu1 %v11487_v52 }
 0x250   : > { %8671 = vmatprep.mubr.msk.bf16.mxu0 %vm659_vm0, %v11499_v62  ;;  %8735 = vmatprep.mubr.msk.bf16.mxu1 %vm659_vm0, %v11499_v62 }
 0x252   : > { %v11633_v57 = vpop.f32.mrb[96].mxu0 }
 0x253   : > { %v11635_v60 = vpop.f32.mrb[97].mxu0 }
 0x254   : > { %14245 = vst [vmem:[#allocation31_spill] sm:$0xff] %v11635_v60  ;;  %v11637_v1 = vpop.f32.mrb[98].mxu0  ;;  %v10493_v60 = vld [vmem:[#allocation2 + $0x1ec] ss:$48 sps:$4 sm:$0xff]  }
 0x255   : > { %14246 = vst [vmem:[#allocation32_spill] sm:$0xff] %v11637_v1  ;;  %v11639_v6 = vpop.f32.mrb[99].mxu0  ;;  %v10509_v1 = vld [vmem:[#allocation2 + $0x620] ss:$48 sps:$4 sm:$0xff]  }
 0x256   : > { %14247 = vst [vmem:[#allocation33_spill] sm:$0xff] %v11639_v6  ;;  %v10487_v6 = vld [vmem:[#allocation2 + $0x12c] ss:$48 sps:$4 sm:$0xff]  }
 0x257   : > { %2602 = vmatmul.mubr.bf16.gmra.mrb[204].mxu0 %v11497_v59  ;;  %3342 = vmatmul.mubr.bf16.gmra.mrb[108].mxu1 %v11497_v59 }
 0x258   : > { %8672 = vmatprep.mubr.msk.bf16.mxu0 %vm659_vm0, %v11509_v7  ;;  %8736 = vmatprep.mubr.msk.bf16.mxu1 %vm659_vm0, %v11509_v7 }
 0x25a   : > { %v11647_v8 = vpop.f32.mrb[100].mxu0 }
 0x25b   : > { %14248 = vst [vmem:[#allocation34_spill] sm:$0xff] %v11647_v8  ;;  %v11649_v10 = vpop.f32.mrb[101].mxu0  ;;  %v10511_v8 = vld [vmem:[#allocation2 + $0x624] ss:$48 sps:$4 sm:$0xff]  }
 0x25c   : > { %14249 = vst [vmem:[#allocation35_spill] sm:$0xff] %v11649_v10  ;;  %v11651_v12 = vpop.f32.mrb[102].mxu0  ;;  %v10482_v10 = vld [vmem:[#allocation2 + $0xc8] ss:$48 sps:$4 sm:$0xff]  }
 0x25d   : > { %14250 = vst [vmem:[#allocation36_spill] sm:$0xff] %v11651_v12  ;;  %v11653_v18 = vpop.f32.mrb[103].mxu0 }
 0x25e   : > { %14251 = vst [vmem:[#allocation37_spill] sm:$0xff] %v11653_v18  ;;  %v10479_v18 = vld [vmem:[#allocation2 + $0x68] ss:$48 sps:$4 sm:$0xff]  }
 0x25f   : > { %2610 = vmatmul.mubr.bf16.gmra.mrb[208].mxu0 %v11507_v4  ;;  %3350 = vmatmul.mubr.bf16.gmra.mrb[112].mxu1 %v11507_v4 }
 0x260   : > { %8673 = vmatprep.mubr.msk.bf16.mxu0 %vm659_vm0, %v11519_v19  ;;  %8737 = vmatprep.mubr.msk.bf16.mxu1 %vm659_vm0, %v11519_v19 }
 0x262   : > { %v11661_v22 = vpop.f32.mrb[104].mxu0 }
 0x263   : > { %14252 = vst [vmem:[#allocation38_spill] sm:$0xff] %v11661_v22  ;;  %v11663_v30 = vpop.f32.mrb[105].mxu0  ;;  %v10508_v22 = vld [vmem:[#allocation2 + $0x5c4] ss:$48 sps:$4 sm:$0xff]  }
 0x264   : > { %14253 = vst [vmem:[#allocation39_spill] sm:$0xff] %v11663_v30  ;;  %v11665_v36 = vpop.f32.mrb[106].mxu0 }
 0x265   : > { %14254 = vst [vmem:[#allocation40_spill] sm:$0xff] %v11665_v36  ;;  %v11667_v39 = vpop.f32.mrb[107].mxu0 }
 0x266   : > { %14255 = vst [vmem:[#allocation41_spill] sm:$0xff] %v11667_v39 }
 0x267   : > { %2620 = vmatmul.mubr.bf16.gmra.mrb[212].mxu0 %v11517_v14  ;;  %3360 = vmatmul.mubr.bf16.gmra.mrb[116].mxu1 %v11517_v14 }
 0x268   : > { %8674 = vmatprep.mubr.msk.bf16.mxu0 %vm659_vm0, %v11529_v31  ;;  %8738 = vmatprep.mubr.msk.bf16.mxu1 %vm659_vm0, %v11529_v31 }
 0x26a   : > { %v11675_v40 = vpop.f32.mrb[108].mxu0 }
 0x26b   : > { %14256 = vst [vmem:[#allocation42_spill] sm:$0xff] %v11675_v40  ;;  %v11677_v43 = vpop.f32.mrb[109].mxu0 }
 0x26c   : > { %14257 = vst [vmem:[#allocation43_spill] sm:$0xff] %v11677_v43  ;;  %v2346_v48 = vpop.f32.mrb[110].mxu0  ;;  %v10500_v43 = vld [vmem:[#allocation2 + $0x560] ss:$48 sps:$4 sm:$0xff]  }
 0x26d   : > { %v2347_v56 = vpop.f32.mrb[111].mxu0 }
 0x26f   : > { %2630 = vmatmul.mubr.bf16.gmra.mrb[216].mxu0 %v11527_v28  ;;  %3370 = vmatmul.mubr.bf16.gmra.mrb[120].mxu1 %v11527_v28 }
 0x270   : > { %8675 = vmatprep.mubr.msk.bf16.mxu0 %vm659_vm0, %v11539_v45  ;;  %8739 = vmatprep.mubr.msk.bf16.mxu1 %vm659_vm0, %v11539_v45 }
 0x272   : > { %v11685_v39 = vpop.f32.mrb[112].mxu0 }
 0x273   : > { %14258 = vst [vmem:[#allocation44_spill] sm:$0xff] %v11685_v39  ;;  %v11687_v36 = vpop.f32.mrb[113].mxu0 }
 0x274   : > { %14259 = vst [vmem:[#allocation45_spill] sm:$0xff] %v11687_v36  ;;  %v11689_v30 = vpop.f32.mrb[114].mxu0  ;;  %v10476_v36 = vld [vmem:[#allocation2 + $0x8] ss:$48 sps:$4 sm:$0xff]  }
 0x275   : > { %14260 = vst [vmem:[#allocation46_spill] sm:$0xff] %v11689_v30  ;;  %v11691_v40 = vpop.f32.mrb[115].mxu0 }
 0x276   : > { %14261 = vst [vmem:[#allocation47_spill] sm:$0xff] %v11691_v40  ;;  %v10481_v40 = vld [vmem:[#allocation2 + $0x6c] ss:$48 sps:$4 sm:$0xff]  }
 0x277   : > { %2640 = vmatmul.mubr.bf16.gmra.mrb[220].mxu0 %v11537_v41  ;;  %3380 = vmatmul.mubr.bf16.gmra.mrb[124].mxu1 %v11537_v41 }
 0x278   : > { %8676 = vmatprep.mubr.msk.bf16.mxu0 %vm659_vm0, %v11389_v35  ;;  %8908 = vmatprep.mubr.msk.bf16.mxu1 %vm659_vm0, %v11373_v11 }
 0x27a   : > { %v11699_v48 = vpop.f32.mrb[116].mxu0 }
 0x27b   : > { %14262 = vst [vmem:[#allocation48_spill] sm:$0xff] %v11699_v48  ;;  %v11701_v56 = vpop.f32.mrb[117].mxu0 }
 0x27c   : > { %14263 = vst [vmem:[#allocation49_spill] sm:$0xff] %v11701_v56  ;;  %v11703_v39 = vpop.f32.mrb[118].mxu0 }
 0x27d   : > { %14264 = vst [vmem:[#allocation50_spill] sm:$0xff] %v11703_v39  ;;  %v11705_v30 = vpop.f32.mrb[119].mxu0  ;;  %v10484_v39 = vld [vmem:[#allocation2 + $0xcc] ss:$48 sps:$4 sm:$0xff]  }
 0x27e   : > { %14265 = vst [vmem:[#allocation51_spill] sm:$0xff] %v11705_v30  ;;  %v10506_v30 = vld [vmem:[#allocation2 + $0x5c0] ss:$48 sps:$4 sm:$0xff]  }
 0x27f   : > { %2681 = vmatmul.mubr.bf16.vlgmr.msra.gmra.mrb[224].mxu0 %v11387_v33  ;;  %4273 = vmatmul.mubr.bf16.vlgmr.msra.gmra.mrb[128].mxu1 %v11371_v9 }
 0x280   : > { %4426 = vmatpush1.bf16.msra.mxu1 %v10476_v36  ;;  %8677 = vmatprep.mubr.msk.bf16.mxu0 %vm659_vm0, %v11399_v49 }
 0x281   : > { %8909 = vmatprep.mubr.msk.bf16.mxu1 %vm659_vm0, %v11377_v17  ;;  %4427 = vmatprep.subr.bf16.mxu1 %v10481_v40  ;;  %v10517_v40 = vld [vmem:[#allocation2 + $0x684] ss:$48 sps:$4 sm:$0xff]  }
 0x282   : > { %v11713_v56 = vpop.f32.mrb[120].mxu0  ;;  %3019 = vmatpush1.bf16.msra.mxu0 %v10500_v43 }
 0x283   : > { %14266 = vst [vmem:[#allocation52_spill] sm:$0xff] %v11713_v56  ;;  %v11715_v48 = vpop.f32.mrb[121].mxu0  ;;  %3020 = vmatprep.subr.bf16.mxu0 %v10508_v22  ;;  %v10520_v56 = vld [vmem:[#allocation2 + $0x6e4] ss:$48 sps:$4 sm:$0xff]  }
 0x284   : > { %14267 = vst [vmem:[#allocation53_spill] sm:$0xff] %v11715_v48  ;;  %v11717_v12 = vpop.f32.mrb[122].mxu0  ;;  %4428 = vmatpush1.bf16.msra.mxu1 %v10479_v18  ;;  %v10485_v18 = vld [vmem:[#allocation2 + $0x128] ss:$48 sps:$4 sm:$0xff]  }
 0x285   : > { %14268 = vst [vmem:[#allocation54_spill] sm:$0xff] %v11717_v12  ;;  %v11719_v36 = vpop.f32.mrb[123].mxu0  ;;  %4429 = vmatprep.subr.bf16.mxu1 %v10484_v39  ;;  %v10490_v39 = vld [vmem:[#allocation2 + $0x18c] ss:$48 sps:$4 sm:$0xff]   ;;  %v10488_v48 = vld [vmem:[#allocation2 + $0x188] ss:$48 sps:$4 sm:$0xff]  }
 0x286   : > { %14269 = vst [vmem:[#allocation55_spill] sm:$0xff] %v11719_v36  ;;  %3021 = vmatpush1.bf16.msra.mxu0 %v10506_v30  ;;  %v10515_v30 = vld [vmem:[#allocation2 + $0x680] ss:$48 sps:$4 sm:$0xff]  }
 0x287   : > { %2691 = vmatmul.mubr.bf16.gmra.mrb[228].mxu0 %v11397_v47  ;;  %4283 = vmatmul.mubr.bf16.gmra.mrb[132].mxu1 %v11375_v15 }
 0x288   : > { %8678 = vmatprep.mubr.msk.bf16.mxu0 %vm659_vm0, %v11409_v63  ;;  %8910 = vmatprep.mubr.msk.bf16.mxu1 %vm659_vm0, %v11381_v23 }
 0x289   : > { %4430 = vmatpush1.bf16.msra.mxu1 %v10482_v10  ;;  %3022 = vmatprep.subr.bf16.mxu0 %v10511_v8  ;;  %v10518_v10 = vld [vmem:[#allocation2 + $0x6e0] ss:$48 sps:$4 sm:$0xff]  }
 0x28a   : > { %v11727_v22 = vpop.f32.mrb[124].mxu0  ;;  %4431 = vmatprep.subr.bf16.mxu1 %v10487_v6  ;;  %3023 = vmatpush1.bf16.msra.mxu0 %v10509_v1  ;;  %v10526_v6 = vld [vmem:[#allocation2 + $0x744] ss:$48 sps:$4 sm:$0xff]   ;;  %v10491_v1 = vld [vmem:[#allocation2 + $0x1e8] ss:$48 sps:$4 sm:$0xff]  }
 0x28b   : > { %14270 = vst [vmem:[#allocation56_spill] sm:$0xff] %v11727_v22  ;;  %v11729_v43 = vpop.f32.mrb[125].mxu0  ;;  %3024 = vmatprep.subr.bf16.mxu0 %v10517_v40  ;;  %v10553_v22 = vld [vmem:[#allocation2 + $0x4ec] ss:$48 sps:$4 sm:$0xff]  }
 0x28c   : > { %14271 = vst [vmem:[#allocation57_spill] sm:$0xff] %v11729_v43  ;;  %v2384_v36 = vpop.f32.mrb[126].mxu0  ;;  %v10529_v43 = vld [vmem:[#allocation2 + $0x7a4] ss:$48 sps:$4 sm:$0xff]  }
 0x28d   : > { %v2385_v12 = vpop.f32.mrb[127].mxu0  ;;  %4432 = vmatpush1.bf16.msra.mxu1 %v10485_v18  ;;  %v10524_v36 = vld [vmem:[#allocation2 + $0x740] ss:$48 sps:$4 sm:$0xff]  }
 0x28e   : > { %4433 = vmatprep.subr.bf16.mxu1 %v10490_v39  ;;  %3025 = vmatpush1.bf16.msra.mxu0 %v10515_v30  ;;  %v10496_v12 = vld [vmem:[#allocation2 + $0x24c] ss:$48 sps:$4 sm:$0xff]   ;;  %v10494_v30 = vld [vmem:[#allocation2 + $0x248] ss:$48 sps:$4 sm:$0xff]  }
 0x28f   : > { %2701 = vmatmul.mubr.bf16.gmra.mrb[232].mxu0 %v11407_v61  ;;  %4293 = vmatmul.mubr.bf16.gmra.mrb[136].mxu1 %v11379_v21 }
 0x290   : > { %8679 = vmatprep.mubr.msk.bf16.mxu0 %vm659_vm0, %v11419_v16  ;;  %8911 = vmatprep.mubr.msk.bf16.mxu1 %vm659_vm0, %v11385_v29 }
 0x291   : > { %4434 = vmatpush1.bf16.msra.mxu1 %v10488_v48  ;;  %3026 = vmatprep.subr.bf16.mxu0 %v10520_v56  ;;  %v10499_v48 = vld [vmem:[#allocation2 + $0x2ac] ss:$48 sps:$4 sm:$0xff]   ;;  %v10527_v56 = vld [vmem:[#allocation2 + $0x7a0] ss:$48 sps:$4 sm:$0xff]  }
 0x292   : > { %v11737_v8 = vpop.f32.mrb[128].mxu0  ;;  %4435 = vmatprep.subr.bf16.mxu1 %v10493_v60  ;;  %3027 = vmatpush1.bf16.msra.mxu0 %v10518_v10  ;;  %v10532_v60 = vld [vmem:[#allocation2 + $0x804] ss:$48 sps:$4 sm:$0xff]   ;;  %v10497_v10 = vld [vmem:[#allocation2 + $0x2a8] ss:$48 sps:$4 sm:$0xff]  }
 0x293   : > { %14272 = vst [vmem:[#allocation58_spill] sm:$0xff] %v11737_v8  ;;  %v11739_v40 = vpop.f32.mrb[129].mxu0  ;;  %3028 = vmatprep.subr.bf16.mxu0 %v10526_v6  ;;  %v10538_v8 = vld [vmem:[#allocation2 + $0x864] ss:$48 sps:$4 sm:$0xff]  }
 0x294   : > { %14273 = vst [vmem:[#allocation59_spill] sm:$0xff] %v11739_v40  ;;  %v11741_v18 = vpop.f32.mrb[130].mxu0  ;;  %v10503_v40 = vld [vmem:[#allocation2 + $0x308] ss:$48 sps:$4 sm:$0xff]  }
 0x295   : > { %14274 = vst [vmem:[#allocation60_spill] sm:$0xff] %v11741_v18  ;;  %v11743_v39 = vpop.f32.mrb[131].mxu0  ;;  %4436 = vmatpush1.bf16.msra.mxu1 %v10491_v1  ;;  %v10505_v1 = vld [vmem:[#allocation2 + $0x30c] ss:$48 sps:$4 sm:$0xff]  }
 0x296   : > { %14275 = vst [vmem:[#allocation61_spill] sm:$0xff] %v11743_v39  ;;  %4437 = vmatprep.subr.bf16.mxu1 %v10496_v12  ;;  %3029 = vmatpush1.bf16.msra.mxu0 %v10524_v36  ;;  %v10530_v12 = vld [vmem:[#allocation2 + $0x800] ss:$48 sps:$4 sm:$0xff]  }
 0x297   : > { %2711 = vmatmul.mubr.bf16.gmra.mrb[236].mxu0 %v11417_v13  ;;  %4303 = vmatmul.mubr.bf16.gmra.mrb[140].mxu1 %v11383_v27 }
 0x298   : > { %8680 = vmatprep.mubr.msk.bf16.mxu0 %vm659_vm0, %v11429_v37  ;;  %8912 = vmatprep.mubr.msk.bf16.mxu1 %vm659_vm0, %v11389_v35 }
 0x299   : > { %4438 = vmatpush1.bf16.msra.mxu1 %v10494_v30  ;;  %3030 = vmatprep.subr.bf16.mxu0 %v10529_v43  ;;  %v10514_v30 = vld [vmem:[#allocation2 + $0x36c] ss:$48 sps:$4 sm:$0xff]   ;;  %v10536_v43 = vld [vmem:[#allocation2 + $0x860] ss:$48 sps:$4 sm:$0xff]  }
 0x29a   : > { %v11751_v6 = vpop.f32.mrb[132].mxu0  ;;  %4439 = vmatprep.subr.bf16.mxu1 %v10499_v48  ;;  %3031 = vmatpush1.bf16.msra.mxu0 %v10527_v56  ;;  %v10541_v48 = vld [vmem:[#allocation2 + $0x8c4] ss:$48 sps:$4 sm:$0xff]   ;;  %v10512_v56 = vld [vmem:[#allocation2 + $0x368] ss:$48 sps:$4 sm:$0xff]  }
 0x29b   : > { %14276 = vst [vmem:[#allocation62_spill] sm:$0xff] %v11751_v6  ;;  %v11753_v36 = vpop.f32.mrb[133].mxu0  ;;  %3032 = vmatprep.subr.bf16.mxu0 %v10532_v60  ;;  %v10547_v6 = vld [vmem:[#allocation2 + $0x924] ss:$48 sps:$4 sm:$0xff]  }
 0x29c   : > { %14277 = vst [vmem:[#allocation63_spill] sm:$0xff] %v11753_v36  ;;  %v11755_v39 = vpop.f32.mrb[134].mxu0  ;;  %v10521_v36 = vld [vmem:[#allocation2 + $0x3c8] ss:$48 sps:$4 sm:$0xff]  }
 0x29d   : > { %14278 = vst [vmem:[#allocation64_spill] sm:$0xff] %v11755_v39  ;;  %v11757_v18 = vpop.f32.mrb[135].mxu0  ;;  %4440 = vmatpush1.bf16.msra.mxu1 %v10497_v10  ;;  %v10523_v10 = vld [vmem:[#allocation2 + $0x3cc] ss:$48 sps:$4 sm:$0xff]  }
 0x29e   : > { %14279 = vst [vmem:[#allocation65_spill] sm:$0xff] %v11757_v18  ;;  %4441 = vmatprep.subr.bf16.mxu1 %v10505_v1  ;;  %3033 = vmatpush1.bf16.msra.mxu0 %v10530_v12  ;;  %v10539_v1 = vld [vmem:[#allocation2 + $0x8c0] ss:$48 sps:$4 sm:$0xff]  }
 0x29f   : > { %2719 = vmatmul.mubr.bf16.gmra.mrb[240].mxu0 %v11427_v34  ;;  %4311 = vmatmul.mubr.bf16.gmra.mrb[144].mxu1 %v11387_v33 }
 0x2a0   : > { %8681 = vmatprep.mubr.msk.bf16.mxu0 %vm659_vm0, %v11439_v53  ;;  %8913 = vmatprep.mubr.msk.bf16.mxu1 %vm659_vm0, %v11399_v49 }
 0x2a1   : > { %4442 = vmatpush1.bf16.msra.mxu1 %v10503_v40  ;;  %3034 = vmatprep.subr.bf16.mxu0 %v10538_v8  ;;  %v10535_v40 = vld [vmem:[#allocation2 + $0x42c] ss:$48 sps:$4 sm:$0xff]   ;;  %v10545_v8 = vld [vmem:[#allocation2 + $0x920] ss:$48 sps:$4 sm:$0xff]  }
 0x2a2   : > { %v11765_v60 = vpop.f32.mrb[136].mxu0  ;;  %4443 = vmatprep.subr.bf16.mxu1 %v10514_v30  ;;  %3035 = vmatpush1.bf16.msra.mxu0 %v10536_v43  ;;  %v10550_v30 = vld [vmem:[#allocation2 + $0x984] ss:$48 sps:$4 sm:$0xff]   ;;  %v10533_v43 = vld [vmem:[#allocation2 + $0x428] ss:$48 sps:$4 sm:$0xff]  }
 0x2a3   : > { %14280 = vst [vmem:[#allocation66_spill] sm:$0xff] %v11765_v60  ;;  %v11767_v12 = vpop.f32.mrb[137].mxu0  ;;  %3036 = vmatprep.subr.bf16.mxu0 %v10541_v48  ;;  %v10556_v60 = vld [vmem:[#allocation2 + $0x9e4] ss:$48 sps:$4 sm:$0xff]  }
 0x2a4   : > { %14281 = vst [vmem:[#allocation67_spill] sm:$0xff] %v11767_v12  ;;  %v11769_v18 = vpop.f32.mrb[138].mxu0  ;;  %v10542_v12 = vld [vmem:[#allocation2 + $0x488] ss:$48 sps:$4 sm:$0xff]  }
 0x2a5   : > { %14282 = vst [vmem:[#allocation68_spill] sm:$0xff] %v11769_v18  ;;  %v11771_v39 = vpop.f32.mrb[139].mxu0  ;;  %4444 = vmatpush1.bf16.msra.mxu1 %v10512_v56  ;;  %v10544_v56 = vld [vmem:[#allocation2 + $0x48c] ss:$48 sps:$4 sm:$0xff]  }
 0x2a6   : > { %14283 = vst [vmem:[#allocation69_spill] sm:$0xff] %v11771_v39  ;;  %4445 = vmatprep.subr.bf16.mxu1 %v10523_v10  ;;  %3037 = vmatpush1.bf16.msra.mxu0 %v10539_v1  ;;  %v10548_v10 = vld [vmem:[#allocation2 + $0x980] ss:$48 sps:$4 sm:$0xff]  }
 0x2a7   : > { %2729 = vmatmul.mubr.bf16.gmra.mrb[244].mxu0 %v11437_v51  ;;  %4321 = vmatmul.mubr.bf16.gmra.mrb[148].mxu1 %v11397_v47 }
 0x2a8   : > { %8682 = vmatprep.mubr.msk.bf16.mxu0 %vm659_vm0, %v11449_v5  ;;  %8914 = vmatprep.mubr.msk.bf16.mxu1 %vm659_vm0, %v11409_v63 }
 0x2a9   : > { %4446 = vmatpush1.bf16.msra.mxu1 %v10521_v36  ;;  %3038 = vmatprep.subr.bf16.mxu0 %v10547_v6  ;;  %v10554_v36 = vld [vmem:[#allocation2 + $0x9e0] ss:$48 sps:$4 sm:$0xff]   ;;  %v10559_v6 = vld [vmem:[#allocation2 + $0xa44] ss:$48 sps:$4 sm:$0xff]  }
 0x2aa   : > { %v11779_v48 = vpop.f32.mrb[140].mxu0  ;;  %4447 = vmatprep.subr.bf16.mxu1 %v10535_v40  ;;  %3039 = vmatpush1.bf16.msra.mxu0 %v10545_v8  ;;  %v10557_v40 = vld [vmem:[#allocation2 + $0xa40] ss:$48 sps:$4 sm:$0xff]   ;;  %v10562_v8 = vld [vmem:[#allocation2 + $0x1c] ss:$48 sps:$4 sm:$0xff]  }
 0x2ab   : > { %14284 = vst [vmem:[#allocation70_spill] sm:$0xff] %v11779_v48  ;;  %v11781_v1 = vpop.f32.mrb[141].mxu0  ;;  %3040 = vmatprep.subr.bf16.mxu0 %v10550_v30  ;;  %v10577_v48 = vld [vmem:[#allocation2 + $0x1fc] ss:$48 sps:$4 sm:$0xff]  }
 0x2ac   : > { %14285 = vst [vmem:[#allocation71_spill] sm:$0xff] %v11781_v1  ;;  %v2422_v39 = vpop.f32.mrb[142].mxu0  ;;  %v10593_v1 = vld [vmem:[#allocation2 + $0xd0] ss:$48 sps:$4 sm:$0xff]  }
 0x2ad   : > { %v2423_v18 = vpop.f32.mrb[143].mxu0  ;;  %4448 = vmatpush1.bf16.msra.mxu1 %v10533_v43 }
 0x2ae   : > { %4449 = vmatprep.subr.bf16.mxu1 %v10544_v56  ;;  %3041 = vmatpush1.bf16.msra.mxu0 %v10548_v10  ;;  %v10551_v18 = vld [vmem:[#allocation2 + $0x4e8] ss:$48 sps:$4 sm:$0xff]  }
 0x2af   : > { %2739 = vmatmul.mubr.bf16.gmra.mrb[248].mxu0 %v11447_v3  ;;  %4331 = vmatmul.mubr.bf16.gmra.mrb[152].mxu1 %v11407_v61 }
 0x2b0   : > { %8683 = vmatprep.mubr.msk.bf16.mxu0 %vm659_vm0, %v11459_v26  ;;  %8915 = vmatprep.mubr.msk.bf16.mxu1 %vm659_vm0, %v11419_v16 }
 0x2b1   : > { %4450 = vmatpush1.bf16.msra.mxu1 %v10542_v12  ;;  %3042 = vmatprep.subr.bf16.mxu0 %v10556_v60 }
 0x2b2   : > { %v11789_v39 = vpop.f32.mrb[144].mxu0  ;;  %4451 = vmatprep.subr.bf16.mxu1 %v10553_v22  ;;  %3043 = vmatpush1.bf16.msra.mxu0 %v10554_v36 }
 0x2b3   : > { %14286 = vst [vmem:[#allocation72_spill] sm:$0xff] %v11789_v39  ;;  %v11791_v30 = vpop.f32.mrb[145].mxu0  ;;  %3044 = vmatprep.subr.bf16.mxu0 %v10559_v6  ;;  %v10571_v39 = vld [vmem:[#allocation2 + $0x13c] ss:$48 sps:$4 sm:$0xff]  }
 0x2b4   : > { %14287 = vst [vmem:[#allocation73_spill] sm:$0xff] %v11791_v30  ;;  %v11793_v43 = vpop.f32.mrb[146].mxu0  ;;  %v10595_v30 = vld [vmem:[#allocation2 + $0xd4] ss:$48 sps:$4 sm:$0xff]  }
 0x2b5   : > { %14288 = vst [vmem:[#allocation74_spill] sm:$0xff] %v11793_v43  ;;  %v11795_v56 = vpop.f32.mrb[147].mxu0  ;;  %4452 = vmatpush1.bf16.msra.mxu1 %v10551_v18  ;;  %v10566_v43 = vld [vmem:[#allocation2 + $0xd8] ss:$48 sps:$4 sm:$0xff]  }
 0x2b6   : > { %14289 = vst [vmem:[#allocation75_spill] sm:$0xff] %v11795_v56  ;;  %3045 = vmatpush1.bf16.msra.mxu0 %v10557_v40  ;;  %4795 = vmatprep.subr.bf16.mxu1 %v10562_v8  ;;  %v10586_v8 = vld [vmem:[#allocation2 + $0x14] ss:$48 sps:$4 sm:$0xff]  }
 0x2b7   : > { %2749 = vmatmul.mubr.bf16.gmra.mrb[252].mxu0 %v11457_v24  ;;  %4341 = vmatmul.mubr.bf16.gmra.mrb[156].mxu1 %v11417_v13 }
 0x2b8   : > { %8684 = vmatprep.mubr.msk.bf16.mxu0 %vm659_vm0, %v11469_v38  ;;  %8916 = vmatprep.mubr.msk.bf16.mxu1 %vm659_vm0, %v11429_v37 }
 0x2b9   : > { %4610 = vmatprep.subr.bf16.mxu0 %v10586_v8 }
 0x2ba   : > { %v11803_v22 = vpop.f32.mrb[148].mxu0 }
 0x2bb   : > { %14290 = vst [vmem:[#allocation76_spill] sm:$0xff] %v11803_v22  ;;  %v11805_v60 = vpop.f32.mrb[149].mxu0  ;;  %v10563_v22 = vld [vmem:[#allocation2 + $0x78] ss:$48 sps:$4 sm:$0xff]  }
 0x2bc   : > { %14291 = vst [vmem:[#allocation77_spill] sm:$0xff] %v11805_v60  ;;  %v11807_v12 = vpop.f32.mrb[150].mxu0  ;;  %v10592_v60 = vld [vmem:[#allocation2 + $0x74] ss:$48 sps:$4 sm:$0xff]  }
 0x2bd   : > { %14292 = vst [vmem:[#allocation78_spill] sm:$0xff] %v11807_v12  ;;  %v11809_v10 = vpop.f32.mrb[151].mxu0 }
 0x2be   : > { %14293 = vst [vmem:[#allocation79_spill] sm:$0xff] %v11809_v10 }
 0x2bf   : > { %2757 = vmatmul.mubr.bf16.gmra.mrb[0].mxu0 %v11467_v32  ;;  %4349 = vmatmul.mubr.bf16.gmra.mrb[160].mxu1 %v11427_v34 }
 0x2c0   : > { %8685 = vmatprep.mubr.msk.bf16.mxu0 %vm659_vm0, %v11479_v44  ;;  %8917 = vmatprep.mubr.msk.bf16.mxu1 %vm659_vm0, %v11439_v53 }
 0x2c2   : > { %v11817_v36 = vpop.f32.mrb[152].mxu0 }
 0x2c3   : > { %14294 = vst [vmem:[#allocation80_spill] sm:$0xff] %v11817_v36  ;;  %v11819_v6 = vpop.f32.mrb[153].mxu0 }
 0x2c4   : > { %14295 = vst [vmem:[#allocation81_spill] sm:$0xff] %v11819_v6  ;;  %v11821_v18 = vpop.f32.mrb[154].mxu0 }
 0x2c5   : > { %14296 = vst [vmem:[#allocation82_spill] sm:$0xff] %v11821_v18  ;;  %v11823_v40 = vpop.f32.mrb[155].mxu0 }
 0x2c6   : > { %14297 = vst [vmem:[#allocation83_spill] sm:$0xff] %v11823_v40 }
 0x2c7   : > { %2767 = vmatmul.mubr.bf16.gmra.mrb[4].mxu0 %v11477_v42  ;;  %4359 = vmatmul.mubr.bf16.gmra.mrb[164].mxu1 %v11437_v51 }
 0x2c8   : > { %8686 = vmatprep.mubr.msk.bf16.mxu0 %vm659_vm0, %v11489_v55  ;;  %8918 = vmatprep.mubr.msk.bf16.mxu1 %vm659_vm0, %v11449_v5 }
 0x2ca   : > { %v11831_v10 = vpop.f32.mrb[156].mxu0 }
 0x2cb   : > { %14298 = vst [vmem:[#allocation84_spill] sm:$0xff] %v11831_v10  ;;  %v11833_v36 = vpop.f32.mrb[157].mxu0 }
 0x2cc   : > { %14299 = vst [vmem:[#allocation85_spill] sm:$0xff] %v11833_v36  ;;  %v2460_v6 = vpop.f32.mrb[158].mxu0 }
 0x2cd   : > { %v2461_v18 = vpop.f32.mrb[159].mxu0 }
 0x2cf   : > { %2777 = vmatmul.mubr.bf16.gmra.mrb[8].mxu0 %v11487_v52  ;;  %4369 = vmatmul.mubr.bf16.gmra.mrb[168].mxu1 %v11447_v3 }
 0x2d0   : > { %8687 = vmatprep.mubr.msk.bf16.mxu0 %vm659_vm0, %v11499_v62  ;;  %8919 = vmatprep.mubr.msk.bf16.mxu1 %vm659_vm0, %v11459_v26 }
 0x2d2   : > { %v11841_v40 = vpop.f32.mrb[160].mxu0 }
 0x2d3   : > { %14300 = vst [vmem:[#allocation86_spill] sm:$0xff] %v11841_v40  ;;  %v11843_v12 = vpop.f32.mrb[161].mxu0 }
 0x2d4   : > { %14301 = vst [vmem:[#allocation87_spill] sm:$0xff] %v11843_v12  ;;  %v11845_v8 = vpop.f32.mrb[162].mxu0 }
 0x2d5   : > { %14302 = vst [vmem:[#allocation88_spill] sm:$0xff] %v11845_v8  ;;  %v11847_v10 = vpop.f32.mrb[163].mxu0 }
 0x2d6   : > { %14303 = vst [vmem:[#allocation89_spill] sm:$0xff] %v11847_v10 }
 0x2d7   : > { %2787 = vmatmul.mubr.bf16.gmra.mrb[12].mxu0 %v11497_v59  ;;  %4379 = vmatmul.mubr.bf16.gmra.mrb[172].mxu1 %v11457_v24 }
 0x2d8   : > { %8688 = vmatprep.mubr.msk.bf16.mxu0 %vm659_vm0, %v11509_v7  ;;  %8920 = vmatprep.mubr.msk.bf16.mxu1 %vm659_vm0, %v11469_v38 }
 0x2da   : > { %v11855_v6 = vpop.f32.mrb[164].mxu0 }
 0x2db   : > { %14304 = vst [vmem:[#allocation90_spill] sm:$0xff] %v11855_v6  ;;  %v11857_v18 = vpop.f32.mrb[165].mxu0 }
 0x2dc   : > { %14305 = vst [vmem:[#allocation91_spill] sm:$0xff] %v11857_v18  ;;  %v11859_v40 = vpop.f32.mrb[166].mxu0 }
 0x2dd   : > { %14306 = vst [vmem:[#allocation92_spill] sm:$0xff] %v11859_v40  ;;  %v11861_v12 = vpop.f32.mrb[167].mxu0 }
 0x2de   : > { %14307 = vst [vmem:[#allocation93_spill] sm:$0xff] %v11861_v12 }
 0x2df   : > { %2795 = vmatmul.mubr.bf16.gmra.mrb[16].mxu0 %v11507_v4  ;;  %4387 = vmatmul.mubr.bf16.gmra.mrb[176].mxu1 %v11467_v32 }
 0x2e0   : > { %8689 = vmatprep.mubr.msk.bf16.mxu0 %vm659_vm0, %v11519_v19  ;;  %8921 = vmatprep.mubr.msk.bf16.mxu1 %vm659_vm0, %v11479_v44 }
 0x2e2   : > { %v11869_v10 = vpop.f32.mrb[168].mxu0 }
 0x2e3   : > { %14308 = vst [vmem:[#allocation94_spill] sm:$0xff] %v11869_v10  ;;  %v11871_v8 = vpop.f32.mrb[169].mxu0 }
 0x2e4   : > { %14309 = vst [vmem:[#allocation95_spill] sm:$0xff] %v11871_v8  ;;  %v11873_v6 = vpop.f32.mrb[170].mxu0 }
 0x2e5   : > { %14310 = vst [vmem:[#allocation96_spill] sm:$0xff] %v11873_v6  ;;  %v11875_v18 = vpop.f32.mrb[171].mxu0 }
 0x2e6   : > { %14311 = vst [vmem:[#allocation97_spill] sm:$0xff] %v11875_v18 }
 0x2e7   : > { %2805 = vmatmul.mubr.bf16.gmra.mrb[20].mxu0 %v11517_v14  ;;  %4397 = vmatmul.mubr.bf16.gmra.mrb[180].mxu1 %v11477_v42 }
 0x2e8   : > { %8690 = vmatprep.mubr.msk.bf16.mxu0 %vm659_vm0, %v11529_v31  ;;  %8922 = vmatprep.mubr.msk.bf16.mxu1 %vm659_vm0, %v11489_v55 }
 0x2ea   : > { %v11883_v12 = vpop.f32.mrb[172].mxu0 }
 0x2eb   : > { %14312 = vst [vmem:[#allocation98_spill] sm:$0xff] %v11883_v12  ;;  %v11885_v40 = vpop.f32.mrb[173].mxu0 }
 0x2ec   : > { %14313 = vst [vmem:[#allocation99_spill] sm:$0xff] %v11885_v40  ;;  %v2531_v10 = vpop.f32.mrb[174].mxu0  ;;  %v10584_v40 = vld [vmem:[#allocation2 + $0x10] ss:$48 sps:$4 sm:$0xff]  }
 0x2ed   : > { %v2532_v8 = vpop.f32.mrb[175].mxu0 }
 0x2ef   : > { %2815 = vmatmul.mubr.bf16.gmra.mrb[24].mxu0 %v11527_v28  ;;  %4407 = vmatmul.mubr.bf16.gmra.mrb[184].mxu1 %v11487_v52 }
 0x2f0   : > { %8691 = vmatprep.mubr.msk.bf16.mxu0 %vm659_vm0, %v11539_v45  ;;  %8923 = vmatprep.mubr.msk.bf16.mxu1 %vm659_vm0, %v11499_v62 }
 0x2f2   : > { %v11893_v18 = vpop.f32.mrb[176].mxu0 }
 0x2f3   : > { %14314 = vst [vmem:[#allocation100_spill] sm:$0xff] %v11893_v18  ;;  %v11895_v6 = vpop.f32.mrb[177].mxu0 }
 0x2f4   : > { %14315 = vst [vmem:[#allocation101_spill] sm:$0xff] %v11895_v6  ;;  %v11897_v36 = vpop.f32.mrb[178].mxu0  ;;  %v10560_v6 = vld [vmem:[#allocation2 + $0x18] ss:$48 sps:$4 sm:$0xff]  }
 0x2f5   : > { %14316 = vst [vmem:[#allocation102_spill] sm:$0xff] %v11897_v36  ;;  %v11899_v12 = vpop.f32.mrb[179].mxu0 }
 0x2f6   : > { %14317 = vst [vmem:[#allocation103_spill] sm:$0xff] %v11899_v12  ;;  %v10565_v12 = vld [vmem:[#allocation2 + $0x7c] ss:$48 sps:$4 sm:$0xff]  }
 0x2f7   : > { %2825 = vmatmul.mubr.bf16.gmra.mrb[28].mxu0 %v11537_v41  ;;  %4417 = vmatmul.mubr.bf16.gmra.mrb[188].mxu1 %v11497_v59 }
 0x2f8   : > { %8708 = vmatprep.mubr.msk.bf16.mxu0 %vm659_vm0, %v11389_v35  ;;  %8924 = vmatprep.mubr.msk.bf16.mxu1 %vm659_vm0, %v11373_v11 }
 0x2fa   : > { %v11907_v10 = vpop.f32.mrb[180].mxu0 }
 0x2fb   : > { %14318 = vst [vmem:[#allocation104_spill] sm:$0xff] %v11907_v10  ;;  %v11909_v8 = vpop.f32.mrb[181].mxu0 }
 0x2fc   : > { %14319 = vst [vmem:[#allocation105_spill] sm:$0xff] %v11909_v8  ;;  %v11911_v18 = vpop.f32.mrb[182].mxu0 }
 0x2fd   : > { %14320 = vst [vmem:[#allocation106_spill] sm:$0xff] %v11911_v18  ;;  %v11913_v36 = vpop.f32.mrb[183].mxu0  ;;  %v10568_v18 = vld [vmem:[#allocation2 + $0xdc] ss:$48 sps:$4 sm:$0xff]  }
 0x2fe   : > { %14321 = vst [vmem:[#allocation107_spill] sm:$0xff] %v11913_v36  ;;  %v10590_v36 = vld [vmem:[#allocation2 + $0x70] ss:$48 sps:$4 sm:$0xff]  }
 0x2ff   : > { %3051 = vmatmul.mubr.bf16.vlgmr.msra.gmra.mrb[32].mxu0 %v11387_v33  ;;  %4458 = vmatmul.mubr.bf16.vlgmr.msra.gmra.mrb[192].mxu1 %v11371_v9 }
 0x300   : > { %4796 = vmatpush1.bf16.msra.mxu1 %v10560_v6  ;;  %8709 = vmatprep.mubr.msk.bf16.mxu0 %vm659_vm0, %v11399_v49 }
 0x301   : > { %8925 = vmatprep.mubr.msk.bf16.mxu1 %vm659_vm0, %v11377_v17  ;;  %4797 = vmatprep.subr.bf16.mxu1 %v10565_v12  ;;  %v10601_v12 = vld [vmem:[#allocation2 + $0x134] ss:$48 sps:$4 sm:$0xff]  }
 0x302   : > { %v11921_v8 = vpop.f32.mrb[184].mxu0  ;;  %4611 = vmatpush1.bf16.msra.mxu0 %v10584_v40  ;;  %v10574_v40 = vld [vmem:[#allocation2 + $0x19c] ss:$48 sps:$4 sm:$0xff]  }
 0x303   : > { %14322 = vst [vmem:[#allocation108_spill] sm:$0xff] %v11921_v8  ;;  %v11923_v10 = vpop.f32.mrb[185].mxu0  ;;  %4612 = vmatprep.subr.bf16.mxu0 %v10592_v60  ;;  %v10604_v8 = vld [vmem:[#allocation2 + $0x194] ss:$48 sps:$4 sm:$0xff]  }
 0x304   : > { %14323 = vst [vmem:[#allocation109_spill] sm:$0xff] %v11923_v10  ;;  %v11925_v56 = vpop.f32.mrb[186].mxu0  ;;  %4798 = vmatpush1.bf16.msra.mxu1 %v10563_v22  ;;  %v10569_v22 = vld [vmem:[#allocation2 + $0x138] ss:$48 sps:$4 sm:$0xff]  }
 0x305   : > { %14324 = vst [vmem:[#allocation110_spill] sm:$0xff] %v11925_v56  ;;  %v11927_v6 = vpop.f32.mrb[187].mxu0  ;;  %4799 = vmatprep.subr.bf16.mxu1 %v10568_v18  ;;  %v10572_v10 = vld [vmem:[#allocation2 + $0x198] ss:$48 sps:$4 sm:$0xff]  }
 0x306   : > { %14325 = vst [vmem:[#allocation111_spill] sm:$0xff] %v11927_v6  ;;  %4613 = vmatpush1.bf16.msra.mxu0 %v10590_v36  ;;  %v10599_v36 = vld [vmem:[#allocation2 + $0x130] ss:$48 sps:$4 sm:$0xff]  }
 0x307   : > { %3061 = vmatmul.mubr.bf16.gmra.mrb[36].mxu0 %v11397_v47  ;;  %4468 = vmatmul.mubr.bf16.gmra.mrb[196].mxu1 %v11375_v15 }
 0x308   : > { %8710 = vmatprep.mubr.msk.bf16.mxu0 %vm659_vm0, %v11409_v63  ;;  %8926 = vmatprep.mubr.msk.bf16.mxu1 %vm659_vm0, %v11381_v23 }
 0x309   : > { %4800 = vmatpush1.bf16.msra.mxu1 %v10566_v43  ;;  %4614 = vmatprep.subr.bf16.mxu0 %v10595_v30  ;;  %v10602_v43 = vld [vmem:[#allocation2 + $0x190] ss:$48 sps:$4 sm:$0xff]  }
 0x30a   : > { %v11935_v60 = vpop.f32.mrb[188].mxu0  ;;  %4801 = vmatprep.subr.bf16.mxu1 %v10571_v39  ;;  %4615 = vmatpush1.bf16.msra.mxu0 %v10593_v1  ;;  %v10610_v39 = vld [vmem:[#allocation2 + $0x1f4] ss:$48 sps:$4 sm:$0xff]   ;;  %v10575_v1 = vld [vmem:[#allocation2 + $0x1f8] ss:$48 sps:$4 sm:$0xff]  }
 0x30b   : > { %14326 = vst [vmem:[#allocation112_spill] sm:$0xff] %v11935_v60  ;;  %v11937_v18 = vpop.f32.mrb[189].mxu0  ;;  %4616 = vmatprep.subr.bf16.mxu0 %v10601_v12  ;;  %v10637_v60 = vld [vmem:[#allocation2 + $0x4fc] ss:$48 sps:$4 sm:$0xff]  }
 0x30c   : > { %14327 = vst [vmem:[#allocation113_spill] sm:$0xff] %v11937_v18  ;;  %v2569_v6 = vpop.f32.mrb[190].mxu0  ;;  %v10613_v18 = vld [vmem:[#allocation2 + $0x254] ss:$48 sps:$4 sm:$0xff]  }
 0x30d   : > { %v2570_v56 = vpop.f32.mrb[191].mxu0  ;;  %4802 = vmatpush1.bf16.msra.mxu1 %v10569_v22  ;;  %v10608_v6 = vld [vmem:[#allocation2 + $0x1f0] ss:$48 sps:$4 sm:$0xff]  }
 0x30e   : > { %4803 = vmatprep.subr.bf16.mxu1 %v10574_v40  ;;  %4617 = vmatpush1.bf16.msra.mxu0 %v10599_v36  ;;  %v10580_v56 = vld [vmem:[#allocation2 + $0x25c] ss:$48 sps:$4 sm:$0xff]   ;;  %v10578_v36 = vld [vmem:[#allocation2 + $0x258] ss:$48 sps:$4 sm:$0xff]  }
 0x30f   : > { %3071 = vmatmul.mubr.bf16.gmra.mrb[40].mxu0 %v11407_v61  ;;  %4478 = vmatmul.mubr.bf16.gmra.mrb[200].mxu1 %v11379_v21 }
 0x310   : > { %8711 = vmatprep.mubr.msk.bf16.mxu0 %vm659_vm0, %v11419_v16  ;;  %8927 = vmatprep.mubr.msk.bf16.mxu1 %vm659_vm0, %v11385_v29 }
 0x311   : > { %4804 = vmatpush1.bf16.msra.mxu1 %v10572_v10  ;;  %4618 = vmatprep.subr.bf16.mxu0 %v10604_v8  ;;  %v10583_v10 = vld [vmem:[#allocation2 + $0x2bc] ss:$48 sps:$4 sm:$0xff]   ;;  %v10611_v8 = vld [vmem:[#allocation2 + $0x250] ss:$48 sps:$4 sm:$0xff]  }
 0x312   : > { %v11945_v30 = vpop.f32.mrb[192].mxu0  ;;  %4805 = vmatprep.subr.bf16.mxu1 %v10577_v48  ;;  %4619 = vmatpush1.bf16.msra.mxu0 %v10602_v43  ;;  %v10616_v48 = vld [vmem:[#allocation2 + $0x2b4] ss:$48 sps:$4 sm:$0xff]   ;;  %v10581_v43 = vld [vmem:[#allocation2 + $0x2b8] ss:$48 sps:$4 sm:$0xff]  }
 0x313   : > { %14328 = vst [vmem:[#allocation114_spill] sm:$0xff] %v11945_v30  ;;  %v11947_v12 = vpop.f32.mrb[193].mxu0  ;;  %4620 = vmatprep.subr.bf16.mxu0 %v10610_v39  ;;  %v10622_v30 = vld [vmem:[#allocation2 + $0x314] ss:$48 sps:$4 sm:$0xff]  }
 0x314   : > { %14329 = vst [vmem:[#allocation115_spill] sm:$0xff] %v11947_v12  ;;  %v11949_v22 = vpop.f32.mrb[194].mxu0  ;;  %v10587_v12 = vld [vmem:[#allocation2 + $0x318] ss:$48 sps:$4 sm:$0xff]  }
 0x315   : > { %14330 = vst [vmem:[#allocation116_spill] sm:$0xff] %v11949_v22  ;;  %v11951_v40 = vpop.f32.mrb[195].mxu0  ;;  %4806 = vmatpush1.bf16.msra.mxu1 %v10575_v1  ;;  %v10589_v1 = vld [vmem:[#allocation2 + $0x31c] ss:$48 sps:$4 sm:$0xff]  }
 0x316   : > { %14331 = vst [vmem:[#allocation117_spill] sm:$0xff] %v11951_v40  ;;  %4807 = vmatprep.subr.bf16.mxu1 %v10580_v56  ;;  %4621 = vmatpush1.bf16.msra.mxu0 %v10608_v6  ;;  %v10614_v56 = vld [vmem:[#allocation2 + $0x2b0] ss:$48 sps:$4 sm:$0xff]  }
 0x317   : > { %3081 = vmatmul.mubr.bf16.gmra.mrb[44].mxu0 %v11417_v13  ;;  %4488 = vmatmul.mubr.bf16.gmra.mrb[204].mxu1 %v11383_v27 }
 0x318   : > { %8712 = vmatprep.mubr.msk.bf16.mxu0 %vm659_vm0, %v11429_v37  ;;  %8928 = vmatprep.mubr.msk.bf16.mxu1 %vm659_vm0, %v11389_v35 }
 0x319   : > { %4808 = vmatpush1.bf16.msra.mxu1 %v10578_v36  ;;  %4622 = vmatprep.subr.bf16.mxu0 %v10613_v18  ;;  %v10598_v36 = vld [vmem:[#allocation2 + $0x37c] ss:$48 sps:$4 sm:$0xff]   ;;  %v10620_v18 = vld [vmem:[#allocation2 + $0x310] ss:$48 sps:$4 sm:$0xff]  }
 0x31a   : > { %v11959_v39 = vpop.f32.mrb[196].mxu0  ;;  %4809 = vmatprep.subr.bf16.mxu1 %v10583_v10  ;;  %4623 = vmatpush1.bf16.msra.mxu0 %v10611_v8  ;;  %v10625_v10 = vld [vmem:[#allocation2 + $0x374] ss:$48 sps:$4 sm:$0xff]   ;;  %v10596_v8 = vld [vmem:[#allocation2 + $0x378] ss:$48 sps:$4 sm:$0xff]  }
 0x31b   : > { %14332 = vst [vmem:[#allocation118_spill] sm:$0xff] %v11959_v39  ;;  %v11961_v6 = vpop.f32.mrb[197].mxu0  ;;  %4624 = vmatprep.subr.bf16.mxu0 %v10616_v48  ;;  %v10631_v39 = vld [vmem:[#allocation2 + $0x3d4] ss:$48 sps:$4 sm:$0xff]  }
 0x31c   : > { %14333 = vst [vmem:[#allocation119_spill] sm:$0xff] %v11961_v6  ;;  %v11963_v40 = vpop.f32.mrb[198].mxu0  ;;  %v10605_v6 = vld [vmem:[#allocation2 + $0x3d8] ss:$48 sps:$4 sm:$0xff]  }
 0x31d   : > { %14334 = vst [vmem:[#allocation120_spill] sm:$0xff] %v11963_v40  ;;  %v11965_v22 = vpop.f32.mrb[199].mxu0  ;;  %4810 = vmatpush1.bf16.msra.mxu1 %v10581_v43  ;;  %v10607_v43 = vld [vmem:[#allocation2 + $0x3dc] ss:$48 sps:$4 sm:$0xff]  }
 0x31e   : > { %14335 = vst [vmem:[#allocation121_spill] sm:$0xff] %v11965_v22  ;;  %4811 = vmatprep.subr.bf16.mxu1 %v10589_v1  ;;  %4625 = vmatpush1.bf16.msra.mxu0 %v10614_v56  ;;  %v10623_v1 = vld [vmem:[#allocation2 + $0x370] ss:$48 sps:$4 sm:$0xff]  }
 0x31f   : > { %3089 = vmatmul.mubr.bf16.gmra.mrb[48].mxu0 %v11427_v34  ;;  %4496 = vmatmul.mubr.bf16.gmra.mrb[208].mxu1 %v11387_v33 }
 0x320   : > { %8713 = vmatprep.mubr.msk.bf16.mxu0 %vm659_vm0, %v11439_v53  ;;  %8929 = vmatprep.mubr.msk.bf16.mxu1 %vm659_vm0, %v11399_v49 }
 0x321   : > { %4812 = vmatpush1.bf16.msra.mxu1 %v10587_v12  ;;  %4626 = vmatprep.subr.bf16.mxu0 %v10622_v30  ;;  %v10619_v12 = vld [vmem:[#allocation2 + $0x43c] ss:$48 sps:$4 sm:$0xff]   ;;  %v10629_v30 = vld [vmem:[#allocation2 + $0x3d0] ss:$48 sps:$4 sm:$0xff]  }
 0x322   : > { %v11973_v48 = vpop.f32.mrb[200].mxu0  ;;  %4813 = vmatprep.subr.bf16.mxu1 %v10598_v36  ;;  %4627 = vmatpush1.bf16.msra.mxu0 %v10620_v18  ;;  %v10634_v36 = vld [vmem:[#allocation2 + $0x434] ss:$48 sps:$4 sm:$0xff]   ;;  %v10617_v18 = vld [vmem:[#allocation2 + $0x438] ss:$48 sps:$4 sm:$0xff]  }
 0x323   : > { %14336 = vst [vmem:[#allocation122_spill] sm:$0xff] %v11973_v48  ;;  %v11975_v56 = vpop.f32.mrb[201].mxu0  ;;  %4628 = vmatprep.subr.bf16.mxu0 %v10625_v10  ;;  %v10640_v48 = vld [vmem:[#allocation2 + $0x494] ss:$48 sps:$4 sm:$0xff]  }
 0x324   : > { %14337 = vst [vmem:[#allocation123_spill] sm:$0xff] %v11975_v56  ;;  %v11977_v22 = vpop.f32.mrb[202].mxu0  ;;  %v10626_v56 = vld [vmem:[#allocation2 + $0x498] ss:$48 sps:$4 sm:$0xff]  }
 0x325   : > { %14338 = vst [vmem:[#allocation124_spill] sm:$0xff] %v11977_v22  ;;  %v11979_v40 = vpop.f32.mrb[203].mxu0  ;;  %4814 = vmatpush1.bf16.msra.mxu1 %v10596_v8  ;;  %v10628_v8 = vld [vmem:[#allocation2 + $0x49c] ss:$48 sps:$4 sm:$0xff]  }
 0x326   : > { %14339 = vst [vmem:[#allocation125_spill] sm:$0xff] %v11979_v40  ;;  %4815 = vmatprep.subr.bf16.mxu1 %v10607_v43  ;;  %4629 = vmatpush1.bf16.msra.mxu0 %v10623_v1  ;;  %v10632_v43 = vld [vmem:[#allocation2 + $0x430] ss:$48 sps:$4 sm:$0xff]  }
 0x327   : > { %3099 = vmatmul.mubr.bf16.gmra.mrb[52].mxu0 %v11437_v51  ;;  %4506 = vmatmul.mubr.bf16.gmra.mrb[212].mxu1 %v11397_v47 }
 0x328   : > { %8714 = vmatprep.mubr.msk.bf16.mxu0 %vm659_vm0, %v11449_v5  ;;  %8930 = vmatprep.mubr.msk.bf16.mxu1 %vm659_vm0, %v11409_v63 }
 0x329   : > { %4816 = vmatpush1.bf16.msra.mxu1 %v10605_v6  ;;  %4630 = vmatprep.subr.bf16.mxu0 %v10631_v39  ;;  %v10638_v6 = vld [vmem:[#allocation2 + $0x490] ss:$48 sps:$4 sm:$0xff]   ;;  %v10643_v39 = vld [vmem:[#allocation2 + $0x4f4] ss:$48 sps:$4 sm:$0xff]  }
 0x32a   : > { %v11987_v10 = vpop.f32.mrb[204].mxu0  ;;  %4817 = vmatprep.subr.bf16.mxu1 %v10619_v12  ;;  %4631 = vmatpush1.bf16.msra.mxu0 %v10629_v30  ;;  %v10641_v12 = vld [vmem:[#allocation2 + $0x4f0] ss:$48 sps:$4 sm:$0xff]   ;;  %v10646_v30 = vld [vmem:[#allocation2 + $0x2c] ss:$48 sps:$4 sm:$0xff]  }
 0x32b   : > { %14340 = vst [vmem:[#allocation126_spill] sm:$0xff] %v11987_v10  ;;  %v11989_v1 = vpop.f32.mrb[205].mxu0  ;;  %4632 = vmatprep.subr.bf16.mxu0 %v10634_v36  ;;  %v10973_v10 = vld [vmem:[#allocation2 + $0xf7c] ss:$48 sps:$4 sm:$0xff]  }
 0x32c   : > { %14341 = vst [vmem:[#allocation127_spill] sm:$0xff] %v11989_v1  ;;  %v2607_v40 = vpop.f32.mrb[206].mxu0  ;;  %v12502_v1 = vld [vmem:[#allocation2 + $0xf2c] ss:$48 sps:$4 sm:$0xff]  }
 0x32d   : > { %v2608_v22 = vpop.f32.mrb[207].mxu0  ;;  %4818 = vmatpush1.bf16.msra.mxu1 %v10617_v18  ;;  %14381 = vst [vmem:[#allocation167_spill] sm:$0xff] %v12502_v1 }
 0x32e   : > { %4819 = vmatprep.subr.bf16.mxu1 %v10628_v8  ;;  %4633 = vmatpush1.bf16.msra.mxu0 %v10632_v43  ;;  %v10635_v22 = vld [vmem:[#allocation2 + $0x4f8] ss:$48 sps:$4 sm:$0xff]  }
 0x32f   : > { %3109 = vmatmul.mubr.bf16.gmra.mrb[56].mxu0 %v11447_v3  ;;  %4516 = vmatmul.mubr.bf16.gmra.mrb[216].mxu1 %v11407_v61 }
 0x330   : > { %8715 = vmatprep.mubr.msk.bf16.mxu0 %vm659_vm0, %v11459_v26  ;;  %8931 = vmatprep.mubr.msk.bf16.mxu1 %vm659_vm0, %v11419_v16 }
 0x331   : > { %4820 = vmatpush1.bf16.msra.mxu1 %v10626_v56  ;;  %4634 = vmatprep.subr.bf16.mxu0 %v10640_v48 }
 0x332   : > { %v11997_v40 = vpop.f32.mrb[208].mxu0  ;;  %4821 = vmatprep.subr.bf16.mxu1 %v10637_v60  ;;  %4635 = vmatpush1.bf16.msra.mxu0 %v10638_v6 }
 0x333   : > { %14342 = vst [vmem:[#allocation128_spill] sm:$0xff] %v11997_v40  ;;  %v11999_v36 = vpop.f32.mrb[209].mxu0  ;;  %4636 = vmatprep.subr.bf16.mxu0 %v10643_v39  ;;  %v10694_v40 = vld [vmem:[#allocation2 + $0x204] ss:$48 sps:$4 sm:$0xff]  }
 0x334   : > { %14343 = vst [vmem:[#allocation129_spill] sm:$0xff] %v11999_v36  ;;  %v12001_v18 = vpop.f32.mrb[210].mxu0  ;;  %v10686_v36 = vld [vmem:[#allocation2 + $0x1a0] ss:$48 sps:$4 sm:$0xff]  }
 0x335   : > { %14344 = vst [vmem:[#allocation130_spill] sm:$0xff] %v12001_v18  ;;  %v12003_v8 = vpop.f32.mrb[211].mxu0  ;;  %4822 = vmatpush1.bf16.msra.mxu1 %v10635_v22  ;;  %v10677_v18 = vld [vmem:[#allocation2 + $0xe0] ss:$48 sps:$4 sm:$0xff]  }
 0x336   : > { %14345 = vst [vmem:[#allocation131_spill] sm:$0xff] %v12003_v8  ;;  %4637 = vmatpush1.bf16.msra.mxu0 %v10641_v12  ;;  %5165 = vmatprep.subr.bf16.mxu1 %v10646_v30  ;;  %v10670_v30 = vld [vmem:[#allocation2 + $0x24] ss:$48 sps:$4 sm:$0xff]   ;;  %v10655_v8 = vld [vmem:[#allocation2 + $0x14c] ss:$48 sps:$4 sm:$0xff]  }
 0x337   : > { %3119 = vmatmul.mubr.bf16.gmra.mrb[60].mxu0 %v11457_v24  ;;  %4526 = vmatmul.mubr.bf16.gmra.mrb[220].mxu1 %v11417_v13 }
 0x338   : > { %8716 = vmatprep.mubr.msk.bf16.mxu0 %vm659_vm0, %v11469_v38  ;;  %8932 = vmatprep.mubr.msk.bf16.mxu1 %vm659_vm0, %v11429_v37 }
 0x339   : > { %4980 = vmatprep.subr.bf16.mxu0 %v10670_v30  ;;  %v10668_v30 = vld [vmem:[#allocation2 + $0x20] ss:$48 sps:$4 sm:$0xff]  }
 0x33a   : > { %v12011_v60 = vpop.f32.mrb[212].mxu0 }
 0x33b   : > { %14346 = vst [vmem:[#allocation132_spill] sm:$0xff] %v12011_v60  ;;  %v12013_v48 = vpop.f32.mrb[213].mxu0  ;;  %v10679_v60 = vld [vmem:[#allocation2 + $0xe4] ss:$48 sps:$4 sm:$0xff]  }
 0x33c   : > { %14347 = vst [vmem:[#allocation133_spill] sm:$0xff] %v12013_v48  ;;  %v12015_v56 = vpop.f32.mrb[214].mxu0  ;;  %v10650_v48 = vld [vmem:[#allocation2 + $0xe8] ss:$48 sps:$4 sm:$0xff]  }
 0x33d   : > { %14348 = vst [vmem:[#allocation134_spill] sm:$0xff] %v12015_v56  ;;  %v12017_v43 = vpop.f32.mrb[215].mxu0  ;;  %v10674_v56 = vld [vmem:[#allocation2 + $0x80] ss:$48 sps:$4 sm:$0xff]  }
 0x33e   : > { %14349 = vst [vmem:[#allocation135_spill] sm:$0xff] %v12017_v43 }
 0x33f   : > { %3127 = vmatmul.mubr.bf16.gmra.mrb[64].mxu0 %v11467_v32  ;;  %4534 = vmatmul.mubr.bf16.gmra.mrb[224].mxu1 %v11427_v34 }
 0x340   : > { %8717 = vmatprep.mubr.msk.bf16.mxu0 %vm659_vm0, %v11479_v44  ;;  %8933 = vmatprep.mubr.msk.bf16.mxu1 %vm659_vm0, %v11439_v53 }
 0x342   : > { %v12025_v6 = vpop.f32.mrb[216].mxu0 }
 0x343   : > { %14350 = vst [vmem:[#allocation136_spill] sm:$0xff] %v12025_v6  ;;  %v12027_v39 = vpop.f32.mrb[217].mxu0 }
 0x344   : > { %14351 = vst [vmem:[#allocation137_spill] sm:$0xff] %v12027_v39  ;;  %v12029_v22 = vpop.f32.mrb[218].mxu0 }
 0x345   : > { %14352 = vst [vmem:[#allocation138_spill] sm:$0xff] %v12029_v22  ;;  %v12031_v12 = vpop.f32.mrb[219].mxu0 }
 0x346   : > { %14353 = vst [vmem:[#allocation139_spill] sm:$0xff] %v12031_v12  ;;  %v10652_v12 = vld [vmem:[#allocation2 + $0xec] ss:$48 sps:$4 sm:$0xff]  }
 0x347   : > { %3137 = vmatmul.mubr.bf16.gmra.mrb[68].mxu0 %v11477_v42  ;;  %4544 = vmatmul.mubr.bf16.gmra.mrb[228].mxu1 %v11437_v51 }
 0x348   : > { %8718 = vmatprep.mubr.msk.bf16.mxu0 %vm659_vm0, %v11489_v55  ;;  %8934 = vmatprep.mubr.msk.bf16.mxu1 %vm659_vm0, %v11449_v5 }
 0x34a   : > { %v12039_v43 = vpop.f32.mrb[220].mxu0 }
 0x34b   : > { %14354 = vst [vmem:[#allocation140_spill] sm:$0xff] %v12039_v43  ;;  %v12041_v6 = vpop.f32.mrb[221].mxu0  ;;  %v10647_v43 = vld [vmem:[#allocation2 + $0x88] ss:$48 sps:$4 sm:$0xff]  }
 0x34c   : > { %14355 = vst [vmem:[#allocation141_spill] sm:$0xff] %v12041_v6  ;;  %v2645_v39 = vpop.f32.mrb[222].mxu0  ;;  %v10676_v6 = vld [vmem:[#allocation2 + $0x84] ss:$48 sps:$4 sm:$0xff]  }
 0x34d   : > { %v2646_v22 = vpop.f32.mrb[223].mxu0  ;;  %v10644_v39 = vld [vmem:[#allocation2 + $0x28] ss:$48 sps:$4 sm:$0xff]  }
 0x34e   : > { %v10649_v22 = vld [vmem:[#allocation2 + $0x8c] ss:$48 sps:$4 sm:$0xff]  }
 0x34f   : > { %3147 = vmatmul.mubr.bf16.gmra.mrb[72].mxu0 %v11487_v52  ;;  %4554 = vmatmul.mubr.bf16.gmra.mrb[232].mxu1 %v11447_v3 }
 0x350   : > { %8719 = vmatprep.mubr.msk.bf16.mxu0 %vm659_vm0, %v11499_v62  ;;  %8935 = vmatprep.mubr.msk.bf16.mxu1 %vm659_vm0, %v11459_v26 }
 0x357   : > { %3157 = vmatmul.mubr.bf16.gmra.mrb[76].mxu0 %v11497_v59  ;;  %4564 = vmatmul.mubr.bf16.gmra.mrb[236].mxu1 %v11457_v24 }
 0x358   : > { %8720 = vmatprep.mubr.msk.bf16.mxu0 %vm659_vm0, %v11509_v7  ;;  %8936 = vmatprep.mubr.msk.bf16.mxu1 %vm659_vm0, %v11469_v38 }
 0x35f   : > { %3165 = vmatmul.mubr.bf16.gmra.mrb[80].mxu0 %v11507_v4  ;;  %4572 = vmatmul.mubr.bf16.gmra.mrb[240].mxu1 %v11467_v32 }
 0x360   : > { %8721 = vmatprep.mubr.msk.bf16.mxu0 %vm659_vm0, %v11519_v19  ;;  %8937 = vmatprep.mubr.msk.bf16.mxu1 %vm659_vm0, %v11479_v44 }
 0x367   : > { %3175 = vmatmul.mubr.bf16.gmra.mrb[84].mxu0 %v11517_v14  ;;  %4582 = vmatmul.mubr.bf16.gmra.mrb[244].mxu1 %v11477_v42 }
 0x368   : > { %8722 = vmatprep.mubr.msk.bf16.mxu0 %vm659_vm0, %v11529_v31  ;;  %8938 = vmatprep.mubr.msk.bf16.mxu1 %vm659_vm0, %v11489_v55 }
 0x36f   : > { %3185 = vmatmul.mubr.bf16.gmra.mrb[88].mxu0 %v11527_v28  ;;  %4592 = vmatmul.mubr.bf16.gmra.mrb[248].mxu1 %v11487_v52 }
 0x370   : > { %8723 = vmatprep.mubr.msk.bf16.mxu0 %vm659_vm0, %v11539_v45  ;;  %8939 = vmatprep.mubr.msk.bf16.mxu1 %vm659_vm0, %v11499_v62 }
 0x377   : > { %3195 = vmatmul.mubr.bf16.gmra.mrb[92].mxu0 %v11537_v41  ;;  %4602 = vmatmul.mubr.bf16.gmra.mrb[252].mxu1 %v11497_v59 }
 0x378   : > { %8940 = vmatprep.mubr.msk.bf16.mxu0 %vm659_vm0, %v11373_v11  ;;  %8956 = vmatprep.mubr.msk.bf16.mxu1 %vm659_vm0, %v11373_v11 }
 0x37f   : > { %4643 = vmatmul.mubr.bf16.vlgmr.msra.gmra.mrb[224].mxu0 %v11371_v9  ;;  %4828 = vmatmul.mubr.bf16.vlgmr.msra.gmra.mrb[0].mxu1 %v11371_v9 }
 0x380   : > { %5166 = vmatpush1.bf16.msra.mxu1 %v10644_v39  ;;  %8941 = vmatprep.mubr.msk.bf16.mxu0 %vm659_vm0, %v11377_v17  ;;  %v10685_v39 = vld [vmem:[#allocation2 + $0x144] ss:$48 sps:$4 sm:$0xff]  }
 0x381   : > { %8957 = vmatprep.mubr.msk.bf16.mxu1 %vm659_vm0, %v11377_v17  ;;  %5167 = vmatprep.subr.bf16.mxu1 %v10649_v22  ;;  %v10688_v22 = vld [vmem:[#allocation2 + $0x1a4] ss:$48 sps:$4 sm:$0xff]  }
 0x382   : > { %4981 = vmatpush1.bf16.msra.mxu0 %v10668_v30  ;;  %v10661_v30 = vld [vmem:[#allocation2 + $0x20c] ss:$48 sps:$4 sm:$0xff]  }
 0x383   : > { %4982 = vmatprep.subr.bf16.mxu0 %v10676_v6  ;;  %v10653_v6 = vld [vmem:[#allocation2 + $0x148] ss:$48 sps:$4 sm:$0xff]  }
 0x384   : > { %5168 = vmatpush1.bf16.msra.mxu1 %v10647_v43  ;;  %v10658_v43 = vld [vmem:[#allocation2 + $0x1ac] ss:$48 sps:$4 sm:$0xff]  }
 0x385   : > { %5169 = vmatprep.subr.bf16.mxu1 %v10652_v12  ;;  %v10683_v12 = vld [vmem:[#allocation2 + $0x140] ss:$48 sps:$4 sm:$0xff]  }
 0x386   : > { %4983 = vmatpush1.bf16.msra.mxu0 %v10674_v56  ;;  %v10656_v56 = vld [vmem:[#allocation2 + $0x1a8] ss:$48 sps:$4 sm:$0xff]  }
 0x387   : > { %4653 = vmatmul.mubr.bf16.gmra.mrb[228].mxu0 %v11375_v15  ;;  %4838 = vmatmul.mubr.bf16.gmra.mrb[4].mxu1 %v11375_v15 }
 0x388   : > { %8942 = vmatprep.mubr.msk.bf16.mxu0 %vm659_vm0, %v11381_v23  ;;  %8958 = vmatprep.mubr.msk.bf16.mxu1 %vm659_vm0, %v11381_v23 }
 0x389   : > { %5170 = vmatpush1.bf16.msra.mxu1 %v10650_v48  ;;  %4984 = vmatprep.subr.bf16.mxu0 %v10679_v60  ;;  %v10692_v60 = vld [vmem:[#allocation2 + $0x200] ss:$48 sps:$4 sm:$0xff]   ;;  %v10662_v48 = vld [vmem:[#allocation2 + $0x268] ss:$48 sps:$4 sm:$0xff]  }
 0x38a   : > { %5171 = vmatprep.subr.bf16.mxu1 %v10655_v8  ;;  %4985 = vmatpush1.bf16.msra.mxu0 %v10677_v18  ;;  %v10659_v18 = vld [vmem:[#allocation2 + $0x208] ss:$48 sps:$4 sm:$0xff]   ;;  %v10664_v8 = vld [vmem:[#allocation2 + $0x26c] ss:$48 sps:$4 sm:$0xff]  }
 0x38b   : > { %4986 = vmatprep.subr.bf16.mxu0 %v10685_v39  ;;  %v10697_v39 = vld [vmem:[#allocation2 + $0x264] ss:$48 sps:$4 sm:$0xff]  }
 0x38d   : > { %5172 = vmatpush1.bf16.msra.mxu1 %v10653_v6  ;;  %v10667_v6 = vld [vmem:[#allocation2 + $0x2cc] ss:$48 sps:$4 sm:$0xff]  }
 0x38e   : > { %5173 = vmatprep.subr.bf16.mxu1 %v10658_v43  ;;  %4987 = vmatpush1.bf16.msra.mxu0 %v10683_v12  ;;  %v10695_v43 = vld [vmem:[#allocation2 + $0x260] ss:$48 sps:$4 sm:$0xff]   ;;  %v10700_v12 = vld [vmem:[#allocation2 + $0x2c4] ss:$48 sps:$4 sm:$0xff]  }
 0x38f   : > { %4663 = vmatmul.mubr.bf16.gmra.mrb[232].mxu0 %v11379_v21  ;;  %4848 = vmatmul.mubr.bf16.gmra.mrb[8].mxu1 %v11379_v21 }
 0x390   : > { %8943 = vmatprep.mubr.msk.bf16.mxu0 %vm659_vm0, %v11385_v29  ;;  %8959 = vmatprep.mubr.msk.bf16.mxu1 %vm659_vm0, %v11385_v29 }
 0x391   : > { %5174 = vmatpush1.bf16.msra.mxu1 %v10656_v56  ;;  %4988 = vmatprep.subr.bf16.mxu0 %v10688_v22  ;;  %v10698_v56 = vld [vmem:[#allocation2 + $0x2c0] ss:$48 sps:$4 sm:$0xff]   ;;  %v10671_v22 = vld [vmem:[#allocation2 + $0x328] ss:$48 sps:$4 sm:$0xff]  }
 0x392   : > { %5175 = vmatprep.subr.bf16.mxu1 %v10661_v30  ;;  %4989 = vmatpush1.bf16.msra.mxu0 %v10686_v36  ;;  %v10673_v36 = vld [vmem:[#allocation2 + $0x32c] ss:$48 sps:$4 sm:$0xff]   ;;  %v10706_v30 = vld [vmem:[#allocation2 + $0x324] ss:$48 sps:$4 sm:$0xff]  }
 0x393   : > { %4990 = vmatprep.subr.bf16.mxu0 %v10694_v40  ;;  %v10665_v40 = vld [vmem:[#allocation2 + $0x2c8] ss:$48 sps:$4 sm:$0xff]  }
 0x395   : > { %5176 = vmatpush1.bf16.msra.mxu1 %v10659_v18  ;;  %v10682_v18 = vld [vmem:[#allocation2 + $0x38c] ss:$48 sps:$4 sm:$0xff]  }
 0x396   : > { %5177 = vmatprep.subr.bf16.mxu1 %v10664_v8  ;;  %4991 = vmatpush1.bf16.msra.mxu0 %v10692_v60  ;;  %v10704_v8 = vld [vmem:[#allocation2 + $0x320] ss:$48 sps:$4 sm:$0xff]   ;;  %v10709_v60 = vld [vmem:[#allocation2 + $0x384] ss:$48 sps:$4 sm:$0xff]  }
 0x397   : > { %4673 = vmatmul.mubr.bf16.gmra.mrb[236].mxu0 %v11383_v27  ;;  %4858 = vmatmul.mubr.bf16.gmra.mrb[12].mxu1 %v11383_v27 }
 0x398   : > { %8944 = vmatprep.mubr.msk.bf16.mxu0 %vm659_vm0, %v11389_v35  ;;  %8960 = vmatprep.mubr.msk.bf16.mxu1 %vm659_vm0, %v11389_v35 }
 0x399   : > { %5178 = vmatpush1.bf16.msra.mxu1 %v10662_v48  ;;  %4992 = vmatprep.subr.bf16.mxu0 %v10697_v39  ;;  %v10680_v48 = vld [vmem:[#allocation2 + $0x388] ss:$48 sps:$4 sm:$0xff]   ;;  %v10691_v39 = vld [vmem:[#allocation2 + $0x3ec] ss:$48 sps:$4 sm:$0xff]  }
 0x39a   : > { %5179 = vmatprep.subr.bf16.mxu1 %v10667_v6  ;;  %4993 = vmatpush1.bf16.msra.mxu0 %v10695_v43  ;;  %v10707_v6 = vld [vmem:[#allocation2 + $0x380] ss:$48 sps:$4 sm:$0xff]   ;;  %v10689_v43 = vld [vmem:[#allocation2 + $0x3e8] ss:$48 sps:$4 sm:$0xff]  }
 0x39b   : > { %4994 = vmatprep.subr.bf16.mxu0 %v10700_v12  ;;  %v10715_v12 = vld [vmem:[#allocation2 + $0x3e4] ss:$48 sps:$4 sm:$0xff]  }
 0x39d   : > { %5180 = vmatpush1.bf16.msra.mxu1 %v10665_v40  ;;  %v10703_v40 = vld [vmem:[#allocation2 + $0x44c] ss:$48 sps:$4 sm:$0xff]  }
 0x39e   : > { %5181 = vmatprep.subr.bf16.mxu1 %v10673_v36  ;;  %4995 = vmatpush1.bf16.msra.mxu0 %v10698_v56  ;;  %v10713_v36 = vld [vmem:[#allocation2 + $0x3e0] ss:$48 sps:$4 sm:$0xff]   ;;  %v10718_v56 = vld [vmem:[#allocation2 + $0x444] ss:$48 sps:$4 sm:$0xff]  }
 0x39f   : > { %4681 = vmatmul.mubr.bf16.gmra.mrb[240].mxu0 %v11387_v33  ;;  %4866 = vmatmul.mubr.bf16.gmra.mrb[16].mxu1 %v11387_v33 }
 0x3a0   : > { %8945 = vmatprep.mubr.msk.bf16.mxu0 %vm659_vm0, %v11399_v49  ;;  %8961 = vmatprep.mubr.msk.bf16.mxu1 %vm659_vm0, %v11399_v49 }
 0x3a1   : > { %5182 = vmatpush1.bf16.msra.mxu1 %v10671_v22  ;;  %4996 = vmatprep.subr.bf16.mxu0 %v10706_v30  ;;  %v10701_v22 = vld [vmem:[#allocation2 + $0x448] ss:$48 sps:$4 sm:$0xff]   ;;  %v10712_v30 = vld [vmem:[#allocation2 + $0x4ac] ss:$48 sps:$4 sm:$0xff]  }
 0x3a2   : > { %5183 = vmatprep.subr.bf16.mxu1 %v10682_v18  ;;  %4997 = vmatpush1.bf16.msra.mxu0 %v10704_v8  ;;  %v10716_v18 = vld [vmem:[#allocation2 + $0x440] ss:$48 sps:$4 sm:$0xff]   ;;  %v10710_v8 = vld [vmem:[#allocation2 + $0x4a8] ss:$48 sps:$4 sm:$0xff]  }
 0x3a3   : > { %4998 = vmatprep.subr.bf16.mxu0 %v10709_v60  ;;  %v10724_v60 = vld [vmem:[#allocation2 + $0x4a4] ss:$48 sps:$4 sm:$0xff]  }
 0x3a5   : > { %5184 = vmatpush1.bf16.msra.mxu1 %v10680_v48  ;;  %v10721_v48 = vld [vmem:[#allocation2 + $0x50c] ss:$48 sps:$4 sm:$0xff]  }
 0x3a6   : > { %5185 = vmatprep.subr.bf16.mxu1 %v10691_v39  ;;  %4999 = vmatpush1.bf16.msra.mxu0 %v10707_v6  ;;  %v10722_v39 = vld [vmem:[#allocation2 + $0x4a0] ss:$48 sps:$4 sm:$0xff]   ;;  %v10727_v6 = vld [vmem:[#allocation2 + $0x504] ss:$48 sps:$4 sm:$0xff]  }
 0x3a7   : > { %4691 = vmatmul.mubr.bf16.gmra.mrb[244].mxu0 %v11397_v47  ;;  %4876 = vmatmul.mubr.bf16.gmra.mrb[20].mxu1 %v11397_v47 }
 0x3a8   : > { %8946 = vmatprep.mubr.msk.bf16.mxu0 %vm659_vm0, %v11409_v63  ;;  %8962 = vmatprep.mubr.msk.bf16.mxu1 %vm659_vm0, %v11409_v63 }
 0x3a9   : > { %5186 = vmatpush1.bf16.msra.mxu1 %v10689_v43  ;;  %5000 = vmatprep.subr.bf16.mxu0 %v10715_v12  ;;  %v10719_v43 = vld [vmem:[#allocation2 + $0x508] ss:$48 sps:$4 sm:$0xff]   ;;  %v10725_v12 = vld [vmem:[#allocation2 + $0x500] ss:$48 sps:$4 sm:$0xff]  }
 0x3aa   : > { %5187 = vmatprep.subr.bf16.mxu1 %v10703_v40  ;;  %5001 = vmatpush1.bf16.msra.mxu0 %v10713_v36  ;;  %v10730_v40 = vld [vmem:[#allocation2 + $0xa84] ss:$48 sps:$4 sm:$0xff]  }
 0x3ab   : > { %5002 = vmatprep.subr.bf16.mxu0 %v10718_v56  ;;  %v10754_v36 = vld [vmem:[#allocation2 + $0xa94] ss:$48 sps:$4 sm:$0xff]   ;;  %v10728_v56 = vld [vmem:[#allocation2 + $0xa80] ss:$48 sps:$4 sm:$0xff]  }
 0x3ad   : > { %5188 = vmatpush1.bf16.msra.mxu1 %v10701_v22  ;;  %v10733_v22 = vld [vmem:[#allocation2 + $0xae4] ss:$48 sps:$4 sm:$0xff]  }
 0x3ae   : > { %5189 = vmatprep.subr.bf16.mxu1 %v10712_v30  ;;  %5003 = vmatpush1.bf16.msra.mxu0 %v10716_v18  ;;  %v10752_v30 = vld [vmem:[#allocation2 + $0xa90] ss:$48 sps:$4 sm:$0xff]   ;;  %v10760_v18 = vld [vmem:[#allocation2 + $0xaf4] ss:$48 sps:$4 sm:$0xff]  }
 0x3af   : > { %4701 = vmatmul.mubr.bf16.gmra.mrb[248].mxu0 %v11407_v61  ;;  %4886 = vmatmul.mubr.bf16.gmra.mrb[24].mxu1 %v11407_v61 }
 0x3b0   : > { %8947 = vmatprep.mubr.msk.bf16.mxu0 %vm659_vm0, %v11419_v16  ;;  %8963 = vmatprep.mubr.msk.bf16.mxu1 %vm659_vm0, %v11419_v16 }
 0x3b1   : > { %5190 = vmatpush1.bf16.msra.mxu1 %v10710_v8  ;;  %5004 = vmatprep.subr.bf16.mxu0 %v10724_v60  ;;  %v10731_v8 = vld [vmem:[#allocation2 + $0xae0] ss:$48 sps:$4 sm:$0xff]   ;;  %v10736_v60 = vld [vmem:[#allocation2 + $0xb44] ss:$48 sps:$4 sm:$0xff]  }
 0x3b2   : > { %5191 = vmatprep.subr.bf16.mxu1 %v10721_v48  ;;  %5005 = vmatpush1.bf16.msra.mxu0 %v10722_v39  ;;  %v10734_v48 = vld [vmem:[#allocation2 + $0xb40] ss:$48 sps:$4 sm:$0xff]   ;;  %v10763_v39 = vld [vmem:[#allocation2 + $0xb54] ss:$48 sps:$4 sm:$0xff]  }
 0x3b3   : > { %5006 = vmatprep.subr.bf16.mxu0 %v10727_v6  ;;  %v10739_v6 = vld [vmem:[#allocation2 + $0xba4] ss:$48 sps:$4 sm:$0xff]  }
 0x3b5   : > { %5192 = vmatpush1.bf16.msra.mxu1 %v10719_v43  ;;  %v10769_v43 = vld [vmem:[#allocation2 + $0xbb4] ss:$48 sps:$4 sm:$0xff]  }
 0x3b6   : > { %5007 = vmatpush1.bf16.msra.mxu0 %v10725_v12  ;;  %6371 = vmatprep.subr.bf16.mxu1 %v10730_v40  ;;  %v10742_v12 = vld [vmem:[#allocation2 + $0xc04] ss:$48 sps:$4 sm:$0xff]   ;;  %v10767_v40 = vld [vmem:[#allocation2 + $0xbb0] ss:$48 sps:$4 sm:$0xff]  }
 0x3b7   : > { %4711 = vmatmul.mubr.bf16.gmra.mrb[252].mxu0 %v11417_v13  ;;  %4896 = vmatmul.mubr.bf16.gmra.mrb[28].mxu1 %v11417_v13 }
 0x3b8   : > { %8948 = vmatprep.mubr.msk.bf16.mxu0 %vm659_vm0, %v11429_v37  ;;  %8964 = vmatprep.mubr.msk.bf16.mxu1 %vm659_vm0, %v11429_v37 }
 0x3b9   : > { %6741 = vmatprep.subr.bf16.mxu0 %v10754_v36  ;;  %v10740_v36 = vld [vmem:[#allocation2 + $0xc00] ss:$48 sps:$4 sm:$0xff]  }
 0x3bf   : > { %4719 = vmatmul.mubr.bf16.gmra.mrb[0].mxu0 %v11427_v34  ;;  %4904 = vmatmul.mubr.bf16.gmra.mrb[32].mxu1 %v11427_v34 }
 0x3c0   : > { %8949 = vmatprep.mubr.msk.bf16.mxu0 %vm659_vm0, %v11439_v53  ;;  %8965 = vmatprep.mubr.msk.bf16.mxu1 %vm659_vm0, %v11439_v53 }
 0x3c7   : > { %4729 = vmatmul.mubr.bf16.gmra.mrb[4].mxu0 %v11437_v51  ;;  %4914 = vmatmul.mubr.bf16.gmra.mrb[36].mxu1 %v11437_v51 }
 0x3c8   : > { %8950 = vmatprep.mubr.msk.bf16.mxu0 %vm659_vm0, %v11449_v5  ;;  %8966 = vmatprep.mubr.msk.bf16.mxu1 %vm659_vm0, %v11449_v5 }
 0x3cf   : > { %4739 = vmatmul.mubr.bf16.gmra.mrb[8].mxu0 %v11447_v3  ;;  %4924 = vmatmul.mubr.bf16.gmra.mrb[40].mxu1 %v11447_v3 }
 0x3d0   : > { %8951 = vmatprep.mubr.msk.bf16.mxu0 %vm659_vm0, %v11459_v26  ;;  %8967 = vmatprep.mubr.msk.bf16.mxu1 %vm659_vm0, %v11459_v26 }
 0x3d7   : > { %4749 = vmatmul.mubr.bf16.gmra.mrb[12].mxu0 %v11457_v24  ;;  %4934 = vmatmul.mubr.bf16.gmra.mrb[44].mxu1 %v11457_v24 }
 0x3d8   : > { %8952 = vmatprep.mubr.msk.bf16.mxu0 %vm659_vm0, %v11469_v38  ;;  %8968 = vmatprep.mubr.msk.bf16.mxu1 %vm659_vm0, %v11469_v38 }
 0x3df   : > { %4757 = vmatmul.mubr.bf16.gmra.mrb[16].mxu0 %v11467_v32  ;;  %4942 = vmatmul.mubr.bf16.gmra.mrb[48].mxu1 %v11467_v32 }
 0x3e0   : > { %8953 = vmatprep.mubr.msk.bf16.mxu0 %vm659_vm0, %v11479_v44  ;;  %8969 = vmatprep.mubr.msk.bf16.mxu1 %vm659_vm0, %v11479_v44 }
 0x3e7   : > { %4767 = vmatmul.mubr.bf16.gmra.mrb[20].mxu0 %v11477_v42  ;;  %4952 = vmatmul.mubr.bf16.gmra.mrb[52].mxu1 %v11477_v42 }
 0x3e8   : > { %8954 = vmatprep.mubr.msk.bf16.mxu0 %vm659_vm0, %v11489_v55  ;;  %8970 = vmatprep.mubr.msk.bf16.mxu1 %vm659_vm0, %v11489_v55 }
 0x3ef   : > { %4777 = vmatmul.mubr.bf16.gmra.mrb[24].mxu0 %v11487_v52  ;;  %4962 = vmatmul.mubr.bf16.gmra.mrb[56].mxu1 %v11487_v52 }
 0x3f0   : > { %8955 = vmatprep.mubr.msk.bf16.mxu0 %vm659_vm0, %v11499_v62  ;;  %8971 = vmatprep.mubr.msk.bf16.mxu1 %vm659_vm0, %v11499_v62 }
 0x3f7   : > { %4787 = vmatmul.mubr.bf16.gmra.mrb[28].mxu0 %v11497_v59  ;;  %4972 = vmatmul.mubr.bf16.gmra.mrb[60].mxu1 %v11497_v59 }
 0x3f8   : > { %8972 = vmatprep.mubr.msk.bf16.mxu0 %vm659_vm0, %v11373_v11  ;;  %8988 = vmatprep.mubr.msk.bf16.mxu1 %vm659_vm0, %v11373_v11  ;;  %v10758_v11 = vld [vmem:[#allocation2 + $0xaf0] ss:$48 sps:$4 sm:$0xff]  }
 0x3ff   : > { %5013 = vmatmul.mubr.bf16.vlgmr.msra.gmra.mrb[32].mxu0 %v11371_v9  ;;  %5198 = vmatmul.mubr.bf16.vlgmr.msra.gmra.mrb[64].mxu1 %v11371_v9  ;;  %v10761_v9 = vld [vmem:[#allocation2 + $0xb50] ss:$48 sps:$4 sm:$0xff]  }
 0x400   : > { %6372 = vmatpush1.bf16.msra.mxu1 %v10728_v56  ;;  %8973 = vmatprep.mubr.msk.bf16.mxu0 %vm659_vm0, %v11377_v17  ;;  %v10772_v56 = vld [vmem:[#allocation2 + $0xc14] ss:$48 sps:$4 sm:$0xff]  }
 0x401   : > { %8989 = vmatprep.mubr.msk.bf16.mxu1 %vm659_vm0, %v11377_v17  ;;  %6373 = vmatprep.subr.bf16.mxu1 %v10733_v22  ;;  %v10737_v17 = vld [vmem:[#allocation2 + $0xba0] ss:$48 sps:$4 sm:$0xff]  }
 0x402   : > { %6742 = vmatpush1.bf16.msra.mxu0 %v10752_v30  ;;  %v10770_v22 = vld [vmem:[#allocation2 + $0xc10] ss:$48 sps:$4 sm:$0xff]  }
 0x403   : > { %6743 = vmatprep.subr.bf16.mxu0 %v10760_v18  ;;  %v10743_v30 = vld [vmem:[#allocation2 + $0xc60] ss:$48 sps:$4 sm:$0xff]   ;;  %v10748_v18 = vld [vmem:[#allocation2 + $0xcc4] ss:$48 sps:$4 sm:$0xff]  }
 0x404   : > { %6374 = vmatpush1.bf16.msra.mxu1 %v10731_v8  ;;  %v10776_v8 = vld [vmem:[#allocation2 + $0xc70] ss:$48 sps:$4 sm:$0xff]  }
 0x405   : > { %6375 = vmatprep.subr.bf16.mxu1 %v10736_v60  ;;  %v10746_v60 = vld [vmem:[#allocation2 + $0xcc0] ss:$48 sps:$4 sm:$0xff]  }
 0x406   : > { %6744 = vmatpush1.bf16.msra.mxu0 %v10758_v11  ;;  %v10781_v11 = vld [vmem:[#allocation2 + $0xcd4] ss:$48 sps:$4 sm:$0xff]  }
 0x407   : > { %5023 = vmatmul.mubr.bf16.gmra.mrb[36].mxu0 %v11375_v15  ;;  %5208 = vmatmul.mubr.bf16.gmra.mrb[68].mxu1 %v11375_v15  ;;  %v10745_v15 = vld [vmem:[#allocation2 + $0xc64] ss:$48 sps:$4 sm:$0xff]  }
 0x408   : > { %8974 = vmatprep.mubr.msk.bf16.mxu0 %vm659_vm0, %v11381_v23  ;;  %8990 = vmatprep.mubr.msk.bf16.mxu1 %vm659_vm0, %v11381_v23  ;;  %v10778_v23 = vld [vmem:[#allocation2 + $0xc74] ss:$48 sps:$4 sm:$0xff]  }
 0x409   : > { %6376 = vmatpush1.bf16.msra.mxu1 %v10734_v48  ;;  %6745 = vmatprep.subr.bf16.mxu0 %v10763_v39  ;;  %v10779_v48 = vld [vmem:[#allocation2 + $0xcd0] ss:$48 sps:$4 sm:$0xff]  }
 0x40a   : > { %6377 = vmatprep.subr.bf16.mxu1 %v10739_v6  ;;  %6746 = vmatpush1.bf16.msra.mxu0 %v10761_v9  ;;  %v10749_v39 = vld [vmem:[#allocation2 + $0xd20] ss:$48 sps:$4 sm:$0xff]   ;;  %v10757_v6 = vld [vmem:[#allocation2 + $0xd84] ss:$48 sps:$4 sm:$0xff]  }
 0x40b   : > { %6747 = vmatprep.subr.bf16.mxu0 %v10769_v43  ;;  %v10785_v9 = vld [vmem:[#allocation2 + $0xd30] ss:$48 sps:$4 sm:$0xff]  }
 0x40c   : > { %v10755_v43 = vld [vmem:[#allocation2 + $0xd80] ss:$48 sps:$4 sm:$0xff]  }
 0x40d   : > { %6378 = vmatpush1.bf16.msra.mxu1 %v10737_v17  ;;  %v10790_v17 = vld [vmem:[#allocation2 + $0xd94] ss:$48 sps:$4 sm:$0xff]  }
 0x40e   : > { %6379 = vmatprep.subr.bf16.mxu1 %v10742_v12  ;;  %6748 = vmatpush1.bf16.msra.mxu0 %v10767_v40  ;;  %v10788_v12 = vld [vmem:[#allocation2 + $0xd90] ss:$48 sps:$4 sm:$0xff]  }
 0x40f   : > { %5033 = vmatmul.mubr.bf16.gmra.mrb[40].mxu0 %v11379_v21  ;;  %5218 = vmatmul.mubr.bf16.gmra.mrb[72].mxu1 %v11379_v21  ;;  %v10751_v21 = vld [vmem:[#allocation2 + $0xd24] ss:$48 sps:$4 sm:$0xff]   ;;  %v10764_v40 = vld [vmem:[#allocation2 + $0xde0] ss:$48 sps:$4 sm:$0xff]  }
 0x410   : > { %8975 = vmatprep.mubr.msk.bf16.mxu0 %vm659_vm0, %v11385_v29  ;;  %8991 = vmatprep.mubr.msk.bf16.mxu1 %vm659_vm0, %v11385_v29  ;;  %v10787_v29 = vld [vmem:[#allocation2 + $0xd34] ss:$48 sps:$4 sm:$0xff]  }
 0x411   : > { %6380 = vmatpush1.bf16.msra.mxu1 %v10740_v36  ;;  %6749 = vmatprep.subr.bf16.mxu0 %v10772_v56  ;;  %v10775_v36 = vld [vmem:[#allocation2 + $0xe44] ss:$48 sps:$4 sm:$0xff]   ;;  %v10791_v56 = vld [vmem:[#allocation2 + $0xdf0] ss:$48 sps:$4 sm:$0xff]  }
 0x412   : > { %6381 = vmatprep.subr.bf16.mxu1 %v10745_v15  ;;  %6750 = vmatpush1.bf16.msra.mxu0 %v10770_v22  ;;  %v10773_v15 = vld [vmem:[#allocation2 + $0xe40] ss:$48 sps:$4 sm:$0xff]   ;;  %v10799_v22 = vld [vmem:[#allocation2 + $0xe54] ss:$48 sps:$4 sm:$0xff]  }
 0x413   : > { %6751 = vmatprep.subr.bf16.mxu0 %v10778_v23  ;;  %v10797_v23 = vld [vmem:[#allocation2 + $0xe50] ss:$48 sps:$4 sm:$0xff]  }
 0x415   : > { %6382 = vmatpush1.bf16.msra.mxu1 %v10743_v30  ;;  %v10782_v30 = vld [vmem:[#allocation2 + $0xea0] ss:$48 sps:$4 sm:$0xff]  }
 0x416   : > { %6383 = vmatprep.subr.bf16.mxu1 %v10748_v18  ;;  %6752 = vmatpush1.bf16.msra.mxu0 %v10776_v8  ;;  %v10796_v18 = vld [vmem:[#allocation2 + $0xf04] ss:$48 sps:$4 sm:$0xff]   ;;  %v10800_v8 = vld [vmem:[#allocation2 + $0xeb0] ss:$48 sps:$4 sm:$0xff]  }
 0x417   : > { %5043 = vmatmul.mubr.bf16.gmra.mrb[44].mxu0 %v11383_v27  ;;  %5228 = vmatmul.mubr.bf16.gmra.mrb[76].mxu1 %v11383_v27  ;;  %v10766_v27 = vld [vmem:[#allocation2 + $0xde4] ss:$48 sps:$4 sm:$0xff]  }
 0x418   : > { %8976 = vmatprep.mubr.msk.bf16.mxu0 %vm659_vm0, %v11389_v35  ;;  %8992 = vmatprep.mubr.msk.bf16.mxu1 %vm659_vm0, %v11389_v35  ;;  %v10793_v35 = vld [vmem:[#allocation2 + $0xdf4] ss:$48 sps:$4 sm:$0xff]  }
 0x419   : > { %6384 = vmatpush1.bf16.msra.mxu1 %v10746_v60  ;;  %6753 = vmatprep.subr.bf16.mxu0 %v10781_v11  ;;  %v10794_v60 = vld [vmem:[#allocation2 + $0xf00] ss:$48 sps:$4 sm:$0xff]   ;;  %v10808_v11 = vld [vmem:[#allocation2 + $0xf14] ss:$48 sps:$4 sm:$0xff]  }
 0x41a   : > { %6385 = vmatprep.subr.bf16.mxu1 %v10751_v21  ;;  %6754 = vmatpush1.bf16.msra.mxu0 %v10779_v48  ;;  %v10806_v21 = vld [vmem:[#allocation2 + $0xf10] ss:$48 sps:$4 sm:$0xff]  }
 0x41b   : > { %6755 = vmatprep.subr.bf16.mxu0 %v10787_v29  ;;  %v10803_v48 = vld [vmem:[#allocation2 + $0xf60] ss:$48 sps:$4 sm:$0xff]  }
 0x41c   : > { %v10809_v29 = vld [vmem:[#allocation2 + $0xf70] ss:$48 sps:$4 sm:$0xff]  }
 0x41d   : > { %6386 = vmatpush1.bf16.msra.mxu1 %v10749_v39  ;;  %v10814_v39 = vld [vmem:[#allocation2 + $0xa8c] ss:$48 sps:$4 sm:$0xff]  }
 0x41e   : > { %6387 = vmatprep.subr.bf16.mxu1 %v10757_v6  ;;  %6756 = vmatpush1.bf16.msra.mxu0 %v10785_v9  ;;  %v10836_v6 = vld [vmem:[#allocation2 + $0xaa0] ss:$48 sps:$4 sm:$0xff]   ;;  %v10844_v9 = vld [vmem:[#allocation2 + $0xb04] ss:$48 sps:$4 sm:$0xff]  }
 0x41f   : > { %5051 = vmatmul.mubr.bf16.gmra.mrb[48].mxu0 %v11387_v33  ;;  %5236 = vmatmul.mubr.bf16.gmra.mrb[80].mxu1 %v11387_v33  ;;  %v10784_v33 = vld [vmem:[#allocation2 + $0xea4] ss:$48 sps:$4 sm:$0xff]  }
 0x420   : > { %8977 = vmatprep.mubr.msk.bf16.mxu0 %vm659_vm0, %v11399_v49  ;;  %8993 = vmatprep.mubr.msk.bf16.mxu1 %vm659_vm0, %v11399_v49  ;;  %v10802_v49 = vld [vmem:[#allocation2 + $0xeb4] ss:$48 sps:$4 sm:$0xff]  }
 0x421   : > { %6388 = vmatpush1.bf16.msra.mxu1 %v10755_v43  ;;  %6757 = vmatprep.subr.bf16.mxu0 %v10790_v17  ;;  %v10815_v43 = vld [vmem:[#allocation2 + $0xae8] ss:$48 sps:$4 sm:$0xff]   ;;  %v10820_v17 = vld [vmem:[#allocation2 + $0xb4c] ss:$48 sps:$4 sm:$0xff]  }
 0x422   : > { %6389 = vmatprep.subr.bf16.mxu1 %v10766_v27  ;;  %6758 = vmatpush1.bf16.msra.mxu0 %v10788_v12  ;;  %v10842_v27 = vld [vmem:[#allocation2 + $0xb00] ss:$48 sps:$4 sm:$0xff]   ;;  %v10818_v12 = vld [vmem:[#allocation2 + $0xb48] ss:$48 sps:$4 sm:$0xff]  }
 0x423   : > { %6759 = vmatprep.subr.bf16.mxu0 %v10793_v35  ;;  %v10847_v35 = vld [vmem:[#allocation2 + $0xb64] ss:$48 sps:$4 sm:$0xff]  }
 0x425   : > { %6390 = vmatpush1.bf16.msra.mxu1 %v10764_v40  ;;  %v10823_v40 = vld [vmem:[#allocation2 + $0xbac] ss:$48 sps:$4 sm:$0xff]  }
 0x426   : > { %6391 = vmatprep.subr.bf16.mxu1 %v10775_v36  ;;  %6760 = vmatpush1.bf16.msra.mxu0 %v10791_v56  ;;  %v10845_v36 = vld [vmem:[#allocation2 + $0xb60] ss:$48 sps:$4 sm:$0xff]   ;;  %v10853_v56 = vld [vmem:[#allocation2 + $0xbc4] ss:$48 sps:$4 sm:$0xff]  }
 0x427   : > { %5061 = vmatmul.mubr.bf16.gmra.mrb[52].mxu0 %v11397_v47  ;;  %5246 = vmatmul.mubr.bf16.gmra.mrb[84].mxu1 %v11397_v47  ;;  %v10805_v47 = vld [vmem:[#allocation2 + $0xf64] ss:$48 sps:$4 sm:$0xff]  }
 0x428   : > { %8978 = vmatprep.mubr.msk.bf16.mxu0 %vm659_vm0, %v11409_v63  ;;  %8994 = vmatprep.mubr.msk.bf16.mxu1 %vm659_vm0, %v11409_v63  ;;  %v10811_v63 = vld [vmem:[#allocation2 + $0xf74] ss:$48 sps:$4 sm:$0xff]  }
 0x429   : > { %6392 = vmatpush1.bf16.msra.mxu1 %v10773_v15  ;;  %6761 = vmatprep.subr.bf16.mxu0 %v10799_v22  ;;  %v10821_v15 = vld [vmem:[#allocation2 + $0xba8] ss:$48 sps:$4 sm:$0xff]   ;;  %v10826_v22 = vld [vmem:[#allocation2 + $0xc0c] ss:$48 sps:$4 sm:$0xff]  }
 0x42a   : > { %6393 = vmatprep.subr.bf16.mxu1 %v10784_v33  ;;  %6762 = vmatpush1.bf16.msra.mxu0 %v10797_v23  ;;  %v10851_v33 = vld [vmem:[#allocation2 + $0xbc0] ss:$48 sps:$4 sm:$0xff]   ;;  %v10824_v23 = vld [vmem:[#allocation2 + $0xc08] ss:$48 sps:$4 sm:$0xff]  }
 0x42b   : > { %6763 = vmatprep.subr.bf16.mxu0 %v10802_v49  ;;  %v10856_v49 = vld [vmem:[#allocation2 + $0xc24] ss:$48 sps:$4 sm:$0xff]  }
 0x42d   : > { %6394 = vmatpush1.bf16.msra.mxu1 %v10782_v30  ;;  %v10829_v30 = vld [vmem:[#allocation2 + $0xc6c] ss:$48 sps:$4 sm:$0xff]  }
 0x42e   : > { %6395 = vmatprep.subr.bf16.mxu1 %v10796_v18  ;;  %6764 = vmatpush1.bf16.msra.mxu0 %v10800_v8  ;;  %v10854_v18 = vld [vmem:[#allocation2 + $0xc20] ss:$48 sps:$4 sm:$0xff]   ;;  %v10862_v8 = vld [vmem:[#allocation2 + $0xc84] ss:$48 sps:$4 sm:$0xff]  }
 0x42f   : > { %5071 = vmatmul.mubr.bf16.gmra.mrb[56].mxu0 %v11407_v61  ;;  %5256 = vmatmul.mubr.bf16.gmra.mrb[88].mxu1 %v11407_v61  ;;  %v10838_v61 = vld [vmem:[#allocation2 + $0xaa4] ss:$48 sps:$4 sm:$0xff]  }
 0x430   : > { %8979 = vmatprep.mubr.msk.bf16.mxu0 %vm659_vm0, %v11419_v16  ;;  %8995 = vmatprep.mubr.msk.bf16.mxu1 %vm659_vm0, %v11419_v16  ;;  %v10817_v16 = vld [vmem:[#allocation2 + $0xaec] ss:$48 sps:$4 sm:$0xff]  }
 0x431   : > { %6396 = vmatpush1.bf16.msra.mxu1 %v10794_v60  ;;  %6765 = vmatprep.subr.bf16.mxu0 %v10808_v11  ;;  %v10827_v60 = vld [vmem:[#allocation2 + $0xc68] ss:$48 sps:$4 sm:$0xff]   ;;  %v10832_v11 = vld [vmem:[#allocation2 + $0xccc] ss:$48 sps:$4 sm:$0xff]  }
 0x432   : > { %6397 = vmatprep.subr.bf16.mxu1 %v10805_v47  ;;  %6766 = vmatpush1.bf16.msra.mxu0 %v10806_v21  ;;  %v10860_v47 = vld [vmem:[#allocation2 + $0xc80] ss:$48 sps:$4 sm:$0xff]   ;;  %v10830_v21 = vld [vmem:[#allocation2 + $0xcc8] ss:$48 sps:$4 sm:$0xff]  }
 0x433   : > { %6767 = vmatprep.subr.bf16.mxu0 %v10811_v63  ;;  %v10865_v63 = vld [vmem:[#allocation2 + $0xce4] ss:$48 sps:$4 sm:$0xff]  }
 0x435   : > { %6398 = vmatpush1.bf16.msra.mxu1 %v10803_v48  ;;  %v10835_v48 = vld [vmem:[#allocation2 + $0xd2c] ss:$48 sps:$4 sm:$0xff]  }
 0x436   : > { %6768 = vmatpush1.bf16.msra.mxu0 %v10809_v29  ;;  %6556 = vmatprep.subr.bf16.mxu1 %v10814_v39  ;;  %v10863_v29 = vld [vmem:[#allocation2 + $0xce0] ss:$48 sps:$4 sm:$0xff]   ;;  %v10871_v39 = vld [vmem:[#allocation2 + $0xd44] ss:$48 sps:$4 sm:$0xff]  }
 0x437   : > { %5081 = vmatmul.mubr.bf16.gmra.mrb[60].mxu0 %v11417_v13  ;;  %5266 = vmatmul.mubr.bf16.gmra.mrb[92].mxu1 %v11417_v13  ;;  %v10812_v13 = vld [vmem:[#allocation2 + $0xa88] ss:$48 sps:$4 sm:$0xff]  }
 0x438   : > { %8980 = vmatprep.mubr.msk.bf16.mxu0 %vm659_vm0, %v11429_v37  ;;  %8996 = vmatprep.mubr.msk.bf16.mxu1 %vm659_vm0, %v11429_v37 }
 0x439   : > { %7111 = vmatprep.subr.bf16.mxu0 %v10838_v61  ;;  %v10833_v61 = vld [vmem:[#allocation2 + $0xd28] ss:$48 sps:$4 sm:$0xff]  }
 0x43f   : > { %5089 = vmatmul.mubr.bf16.gmra.mrb[64].mxu0 %v11427_v34  ;;  %5274 = vmatmul.mubr.bf16.gmra.mrb[96].mxu1 %v11427_v34 }
 0x440   : > { %8981 = vmatprep.mubr.msk.bf16.mxu0 %vm659_vm0, %v11439_v53  ;;  %8997 = vmatprep.mubr.msk.bf16.mxu1 %vm659_vm0, %v11439_v53 }
 0x447   : > { %5099 = vmatmul.mubr.bf16.gmra.mrb[68].mxu0 %v11437_v51  ;;  %5284 = vmatmul.mubr.bf16.gmra.mrb[100].mxu1 %v11437_v51 }
 0x448   : > { %8982 = vmatprep.mubr.msk.bf16.mxu0 %vm659_vm0, %v11449_v5  ;;  %8998 = vmatprep.mubr.msk.bf16.mxu1 %vm659_vm0, %v11449_v5 }
 0x44f   : > { %5109 = vmatmul.mubr.bf16.gmra.mrb[72].mxu0 %v11447_v3  ;;  %5294 = vmatmul.mubr.bf16.gmra.mrb[104].mxu1 %v11447_v3 }
 0x450   : > { %8983 = vmatprep.mubr.msk.bf16.mxu0 %vm659_vm0, %v11459_v26  ;;  %8999 = vmatprep.mubr.msk.bf16.mxu1 %vm659_vm0, %v11459_v26 }
 0x457   : > { %5119 = vmatmul.mubr.bf16.gmra.mrb[76].mxu0 %v11457_v24  ;;  %5304 = vmatmul.mubr.bf16.gmra.mrb[108].mxu1 %v11457_v24 }
 0x458   : > { %8984 = vmatprep.mubr.msk.bf16.mxu0 %vm659_vm0, %v11469_v38  ;;  %9000 = vmatprep.mubr.msk.bf16.mxu1 %vm659_vm0, %v11469_v38 }
 0x45f   : > { %5127 = vmatmul.mubr.bf16.gmra.mrb[80].mxu0 %v11467_v32  ;;  %5312 = vmatmul.mubr.bf16.gmra.mrb[112].mxu1 %v11467_v32 }
 0x460   : > { %8985 = vmatprep.mubr.msk.bf16.mxu0 %vm659_vm0, %v11479_v44  ;;  %9001 = vmatprep.mubr.msk.bf16.mxu1 %vm659_vm0, %v11479_v44 }
 0x467   : > { %5137 = vmatmul.mubr.bf16.gmra.mrb[84].mxu0 %v11477_v42  ;;  %5322 = vmatmul.mubr.bf16.gmra.mrb[116].mxu1 %v11477_v42 }
 0x468   : > { %8986 = vmatprep.mubr.msk.bf16.mxu0 %vm659_vm0, %v11489_v55  ;;  %9002 = vmatprep.mubr.msk.bf16.mxu1 %vm659_vm0, %v11489_v55 }
 0x46f   : > { %5147 = vmatmul.mubr.bf16.gmra.mrb[88].mxu0 %v11487_v52  ;;  %5332 = vmatmul.mubr.bf16.gmra.mrb[120].mxu1 %v11487_v52 }
 0x470   : > { %8987 = vmatprep.mubr.msk.bf16.mxu0 %vm659_vm0, %v11499_v62  ;;  %9003 = vmatprep.mubr.msk.bf16.mxu1 %vm659_vm0, %v11499_v62 }
 0x477   : > { %5157 = vmatmul.mubr.bf16.gmra.mrb[92].mxu0 %v11497_v59  ;;  %5342 = vmatmul.mubr.bf16.gmra.mrb[124].mxu1 %v11497_v59 }
 0x478   : > { %9172 = vmatprep.mubr.msk.bf16.mxu1 %vm659_vm0, %v11429_v37  ;;  %9204 = vmatprep.mubr.msk.bf16.mxu0 %vm659_vm0, %v11429_v37 }
 0x47f   : > { %6404 = vmatmul.mubr.bf16.vlgmr.msra.gmra.mrb[128].mxu1 %v11427_v34  ;;  %6774 = vmatmul.mubr.bf16.vlgmr.msra.gmra.mrb[224].mxu0 %v11427_v34 }
 0x480   : > { %6557 = vmatpush1.bf16.msra.mxu1 %v10812_v13  ;;  %9173 = vmatprep.mubr.msk.bf16.mxu1 %vm659_vm0, %v11439_v53  ;;  %v10841_v13 = vld [vmem:[#allocation2 + $0xd8c] ss:$48 sps:$4 sm:$0xff]  }
 0x481   : > { %9205 = vmatprep.mubr.msk.bf16.mxu0 %vm659_vm0, %v11439_v53  ;;  %6558 = vmatprep.subr.bf16.mxu1 %v10817_v16  ;;  %v10869_v16 = vld [vmem:[#allocation2 + $0xd40] ss:$48 sps:$4 sm:$0xff]  }
 0x482   : > { %7112 = vmatpush1.bf16.msra.mxu0 %v10836_v6  ;;  %v10839_v6 = vld [vmem:[#allocation2 + $0xd88] ss:$48 sps:$4 sm:$0xff]  }
 0x483   : > { %7113 = vmatprep.subr.bf16.mxu0 %v10844_v9  ;;  %v10874_v9 = vld [vmem:[#allocation2 + $0xda4] ss:$48 sps:$4 sm:$0xff]  }
 0x484   : > { %6559 = vmatpush1.bf16.msra.mxu1 %v10815_v43  ;;  %v10850_v43 = vld [vmem:[#allocation2 + $0xdec] ss:$48 sps:$4 sm:$0xff]  }
 0x485   : > { %6560 = vmatprep.subr.bf16.mxu1 %v10820_v17  ;;  %v10872_v17 = vld [vmem:[#allocation2 + $0xda0] ss:$48 sps:$4 sm:$0xff]  }
 0x486   : > { %7114 = vmatpush1.bf16.msra.mxu0 %v10842_v27  ;;  %v10877_v27 = vld [vmem:[#allocation2 + $0xe04] ss:$48 sps:$4 sm:$0xff]  }
 0x487   : > { %6414 = vmatmul.mubr.bf16.gmra.mrb[132].mxu1 %v11437_v51  ;;  %6784 = vmatmul.mubr.bf16.gmra.mrb[228].mxu0 %v11437_v51 }
 0x488   : > { %9174 = vmatprep.mubr.msk.bf16.mxu1 %vm659_vm0, %v11449_v5  ;;  %9206 = vmatprep.mubr.msk.bf16.mxu0 %vm659_vm0, %v11449_v5 }
 0x489   : > { %6561 = vmatpush1.bf16.msra.mxu1 %v10818_v12  ;;  %7115 = vmatprep.subr.bf16.mxu0 %v10847_v35  ;;  %v10848_v12 = vld [vmem:[#allocation2 + $0xde8] ss:$48 sps:$4 sm:$0xff]   ;;  %v10859_v35 = vld [vmem:[#allocation2 + $0xe4c] ss:$48 sps:$4 sm:$0xff]  }
 0x48a   : > { %6562 = vmatprep.subr.bf16.mxu1 %v10823_v40  ;;  %7116 = vmatpush1.bf16.msra.mxu0 %v10845_v36  ;;  %v10875_v40 = vld [vmem:[#allocation2 + $0xe00] ss:$48 sps:$4 sm:$0xff]   ;;  %v10857_v36 = vld [vmem:[#allocation2 + $0xe48] ss:$48 sps:$4 sm:$0xff]  }
 0x48b   : > { %7117 = vmatprep.subr.bf16.mxu0 %v10853_v56  ;;  %v10883_v56 = vld [vmem:[#allocation2 + $0xe64] ss:$48 sps:$4 sm:$0xff]  }
 0x48d   : > { %6563 = vmatpush1.bf16.msra.mxu1 %v10821_v15  ;;  %v10868_v15 = vld [vmem:[#allocation2 + $0xeac] ss:$48 sps:$4 sm:$0xff]  }
 0x48e   : > { %6564 = vmatprep.subr.bf16.mxu1 %v10826_v22  ;;  %7118 = vmatpush1.bf16.msra.mxu0 %v10851_v33  ;;  %v10881_v22 = vld [vmem:[#allocation2 + $0xe60] ss:$48 sps:$4 sm:$0xff]   ;;  %v10886_v33 = vld [vmem:[#allocation2 + $0xec4] ss:$48 sps:$4 sm:$0xff]  }
 0x48f   : > { %6424 = vmatmul.mubr.bf16.gmra.mrb[136].mxu1 %v11447_v3  ;;  %6794 = vmatmul.mubr.bf16.gmra.mrb[232].mxu0 %v11447_v3 }
 0x490   : > { %9175 = vmatprep.mubr.msk.bf16.mxu1 %vm659_vm0, %v11459_v26  ;;  %9207 = vmatprep.mubr.msk.bf16.mxu0 %vm659_vm0, %v11459_v26 }
 0x491   : > { %6565 = vmatpush1.bf16.msra.mxu1 %v10824_v23  ;;  %7119 = vmatprep.subr.bf16.mxu0 %v10856_v49  ;;  %v10866_v23 = vld [vmem:[#allocation2 + $0xea8] ss:$48 sps:$4 sm:$0xff]   ;;  %v10880_v49 = vld [vmem:[#allocation2 + $0xf0c] ss:$48 sps:$4 sm:$0xff]  }
 0x492   : > { %6566 = vmatprep.subr.bf16.mxu1 %v10829_v30  ;;  %7120 = vmatpush1.bf16.msra.mxu0 %v10854_v18  ;;  %v10884_v30 = vld [vmem:[#allocation2 + $0xec0] ss:$48 sps:$4 sm:$0xff]   ;;  %v10878_v18 = vld [vmem:[#allocation2 + $0xf08] ss:$48 sps:$4 sm:$0xff]  }
 0x493   : > { %7121 = vmatprep.subr.bf16.mxu0 %v10862_v8  ;;  %v10892_v8 = vld [vmem:[#allocation2 + $0xf24] ss:$48 sps:$4 sm:$0xff]  }
 0x495   : > { %6567 = vmatpush1.bf16.msra.mxu1 %v10827_v60  ;;  %v10889_v60 = vld [vmem:[#allocation2 + $0xf6c] ss:$48 sps:$4 sm:$0xff]  }
 0x496   : > { %6568 = vmatprep.subr.bf16.mxu1 %v10832_v11  ;;  %7122 = vmatpush1.bf16.msra.mxu0 %v10860_v47  ;;  %v10890_v11 = vld [vmem:[#allocation2 + $0xf20] ss:$48 sps:$4 sm:$0xff]   ;;  %v10895_v47 = vld [vmem:[#allocation2 + $0xf84] ss:$48 sps:$4 sm:$0xff]  }
 0x497   : > { %6434 = vmatmul.mubr.bf16.gmra.mrb[140].mxu1 %v11457_v24  ;;  %6804 = vmatmul.mubr.bf16.gmra.mrb[236].mxu0 %v11457_v24 }
 0x498   : > { %9176 = vmatprep.mubr.msk.bf16.mxu1 %vm659_vm0, %v11469_v38  ;;  %9208 = vmatprep.mubr.msk.bf16.mxu0 %vm659_vm0, %v11469_v38 }
 0x499   : > { %6569 = vmatpush1.bf16.msra.mxu1 %v10830_v21  ;;  %7123 = vmatprep.subr.bf16.mxu0 %v10865_v63  ;;  %v10887_v21 = vld [vmem:[#allocation2 + $0xf68] ss:$48 sps:$4 sm:$0xff]   ;;  %v10893_v63 = vld [vmem:[#allocation2 + $0xf80] ss:$48 sps:$4 sm:$0xff]  }
 0x49a   : > { %6570 = vmatprep.subr.bf16.mxu1 %v10835_v48  ;;  %7124 = vmatpush1.bf16.msra.mxu0 %v10863_v29  ;;  %v10898_v48 = vld [vmem:[#allocation2 + $0xa9c] ss:$48 sps:$4 sm:$0xff]  }
 0x49b   : > { %7125 = vmatprep.subr.bf16.mxu0 %v10871_v39  ;;  %v12325_v29 = vld [vmem:[#allocation2 + $0xaac] ss:$48 sps:$4 sm:$0xff]  }
 0x49d   : > { %6571 = vmatpush1.bf16.msra.mxu1 %v10833_v61 }
 0x49e   : > { %6572 = vmatprep.subr.bf16.mxu1 %v10841_v13  ;;  %7126 = vmatpush1.bf16.msra.mxu0 %v10869_v16 }
 0x49f   : > { %6442 = vmatmul.mubr.bf16.gmra.mrb[144].mxu1 %v11467_v32  ;;  %6812 = vmatmul.mubr.bf16.gmra.mrb[240].mxu0 %v11467_v32 }
 0x4a0   : > { %9177 = vmatprep.mubr.msk.bf16.mxu1 %vm659_vm0, %v11479_v44  ;;  %9209 = vmatprep.mubr.msk.bf16.mxu0 %vm659_vm0, %v11479_v44 }
 0x4a1   : > { %6573 = vmatpush1.bf16.msra.mxu1 %v10839_v6  ;;  %7127 = vmatprep.subr.bf16.mxu0 %v10874_v9 }
 0x4a2   : > { %6574 = vmatprep.subr.bf16.mxu1 %v10850_v43  ;;  %7128 = vmatpush1.bf16.msra.mxu0 %v10872_v17 }
 0x4a3   : > { %7129 = vmatprep.subr.bf16.mxu0 %v10877_v27 }
 0x4a5   : > { %6575 = vmatpush1.bf16.msra.mxu1 %v10848_v12 }
 0x4a6   : > { %6576 = vmatprep.subr.bf16.mxu1 %v10859_v35  ;;  %7130 = vmatpush1.bf16.msra.mxu0 %v10875_v40 }
 0x4a7   : > { %6452 = vmatmul.mubr.bf16.gmra.mrb[148].mxu1 %v11477_v42  ;;  %6822 = vmatmul.mubr.bf16.gmra.mrb[244].mxu0 %v11477_v42 }
 0x4a8   : > { %9178 = vmatprep.mubr.msk.bf16.mxu1 %vm659_vm0, %v11489_v55  ;;  %9210 = vmatprep.mubr.msk.bf16.mxu0 %vm659_vm0, %v11489_v55 }
 0x4a9   : > { %6577 = vmatpush1.bf16.msra.mxu1 %v10857_v36  ;;  %7131 = vmatprep.subr.bf16.mxu0 %v10883_v56 }
 0x4aa   : > { %6578 = vmatprep.subr.bf16.mxu1 %v10868_v15  ;;  %7132 = vmatpush1.bf16.msra.mxu0 %v10881_v22 }
 0x4ab   : > { %7133 = vmatprep.subr.bf16.mxu0 %v10886_v33  ;;  %v10896_v33 = vld [vmem:[#allocation2 + $0xa98] ss:$48 sps:$4 sm:$0xff]  }
 0x4ad   : > { %6579 = vmatpush1.bf16.msra.mxu1 %v10866_v23  ;;  %v10901_v23 = vld [vmem:[#allocation2 + $0xafc] ss:$48 sps:$4 sm:$0xff]  }
 0x4ae   : > { %6580 = vmatprep.subr.bf16.mxu1 %v10880_v49  ;;  %7134 = vmatpush1.bf16.msra.mxu0 %v10884_v30  ;;  %v12398_v49 = vld [vmem:[#allocation2 + $0xaa8] ss:$48 sps:$4 sm:$0xff]   ;;  %v12402_v30 = vld [vmem:[#allocation2 + $0xb0c] ss:$48 sps:$4 sm:$0xff]  }
 0x4af   : > { %6462 = vmatmul.mubr.bf16.gmra.mrb[152].mxu1 %v11487_v52  ;;  %6832 = vmatmul.mubr.bf16.gmra.mrb[248].mxu0 %v11487_v52 }
 0x4b0   : > { %9179 = vmatprep.mubr.msk.bf16.mxu1 %vm659_vm0, %v11499_v62  ;;  %9211 = vmatprep.mubr.msk.bf16.mxu0 %vm659_vm0, %v11499_v62 }
 0x4b1   : > { %6581 = vmatpush1.bf16.msra.mxu1 %v10878_v18  ;;  %7135 = vmatprep.subr.bf16.mxu0 %v10892_v8  ;;  %v10899_v18 = vld [vmem:[#allocation2 + $0xaf8] ss:$48 sps:$4 sm:$0xff]   ;;  %v10904_v8 = vld [vmem:[#allocation2 + $0xb5c] ss:$48 sps:$4 sm:$0xff]  }
 0x4b2   : > { %6582 = vmatprep.subr.bf16.mxu1 %v10889_v60  ;;  %7136 = vmatpush1.bf16.msra.mxu0 %v10890_v11  ;;  %v12409_v60 = vld [vmem:[#allocation2 + $0xb08] ss:$48 sps:$4 sm:$0xff]  }
 0x4b3   : > { %7137 = vmatprep.subr.bf16.mxu0 %v10895_v47  ;;  %v10902_v11 = vld [vmem:[#allocation2 + $0xb58] ss:$48 sps:$4 sm:$0xff]   ;;  %v12412_v47 = vld [vmem:[#allocation2 + $0xb6c] ss:$48 sps:$4 sm:$0xff]  }
 0x4b5   : > { %6583 = vmatpush1.bf16.msra.mxu1 %v10887_v21  ;;  %v10907_v21 = vld [vmem:[#allocation2 + $0xbbc] ss:$48 sps:$4 sm:$0xff]  }
 0x4b6   : > { %7138 = vmatpush1.bf16.msra.mxu0 %v10893_v63  ;;  %6926 = vmatprep.subr.bf16.mxu1 %v10898_v48  ;;  %v12415_v63 = vld [vmem:[#allocation2 + $0xb68] ss:$48 sps:$4 sm:$0xff]   ;;  %v12419_v48 = vld [vmem:[#allocation2 + $0xbcc] ss:$48 sps:$4 sm:$0xff]  }
 0x4b7   : > { %6472 = vmatmul.mubr.bf16.gmra.mrb[156].mxu1 %v11497_v59  ;;  %6842 = vmatmul.mubr.bf16.gmra.mrb[252].mxu0 %v11497_v59 }
 0x4b8   : > { %9180 = vmatprep.mubr.msk.bf16.mxu1 %vm659_vm0, %v11509_v7  ;;  %9212 = vmatprep.mubr.msk.bf16.mxu0 %vm659_vm0, %v11509_v7 }
 0x4b9   : > { %7296 = vmatprep.subr.bf16.mxu0 %v12325_v29 }
 0x4bf   : > { %6480 = vmatmul.mubr.bf16.gmra.mrb[160].mxu1 %v11507_v4  ;;  %6850 = vmatmul.mubr.bf16.gmra.mrb[0].mxu0 %v11507_v4 }
 0x4c0   : > { %9181 = vmatprep.mubr.msk.bf16.mxu1 %vm659_vm0, %v11519_v19  ;;  %9213 = vmatprep.mubr.msk.bf16.mxu0 %vm659_vm0, %v11519_v19 }
 0x4c7   : > { %6490 = vmatmul.mubr.bf16.gmra.mrb[164].mxu1 %v11517_v14  ;;  %6860 = vmatmul.mubr.bf16.gmra.mrb[4].mxu0 %v11517_v14 }
 0x4c8   : > { %9182 = vmatprep.mubr.msk.bf16.mxu1 %vm659_vm0, %v11529_v31  ;;  %9214 = vmatprep.mubr.msk.bf16.mxu0 %vm659_vm0, %v11529_v31 }
 0x4cf   : > { %6500 = vmatmul.mubr.bf16.gmra.mrb[168].mxu1 %v11527_v28  ;;  %6870 = vmatmul.mubr.bf16.gmra.mrb[8].mxu0 %v11527_v28 }
 0x4d0   : > { %9183 = vmatprep.mubr.msk.bf16.mxu1 %vm659_vm0, %v11539_v45  ;;  %9215 = vmatprep.mubr.msk.bf16.mxu0 %vm659_vm0, %v11539_v45 }
 0x4d2   : > { %v12340_v39 = vpop.f32.mrb[64].mxu1 }
 0x4d3   : > { %14356 = vst [vmem:[#allocation142_spill] sm:$0xff] %v12340_v39  ;;  %v12342_v61 = vpop.f32.mrb[65].mxu1  ;;  %v10962_v39 = vld [vmem:[#allocation2 + $0xf18] ss:$48 sps:$4 sm:$0xff]  }
 0x4d4   : > { %14357 = vst [vmem:[#allocation143_spill] sm:$0xff] %v12342_v61  ;;  %v12344_v13 = vpop.f32.mrb[66].mxu1  ;;  %v12499_v61 = vld [vmem:[#allocation2 + $0xec8] ss:$48 sps:$4 sm:$0xff]  }
 0x4d5   : > { %14358 = vst [vmem:[#allocation144_spill] sm:$0xff] %v12344_v13  ;;  %v12346_v16 = vpop.f32.mrb[67].mxu1  ;;  %v10952_v13 = vld [vmem:[#allocation2 + $0xebc] ss:$48 sps:$4 sm:$0xff]   ;;  %14380 = vst [vmem:[#allocation166_spill] sm:$0xff] %v12499_v61 }
 0x4d6   : > { %14359 = vst [vmem:[#allocation145_spill] sm:$0xff] %v12346_v16  ;;  %v12484_v16 = vld [vmem:[#allocation2 + $0xe6c] ss:$48 sps:$4 sm:$0xff]  }
 0x4d7   : > { %6510 = vmatmul.mubr.bf16.gmra.mrb[172].mxu1 %v11537_v41  ;;  %6880 = vmatmul.mubr.bf16.gmra.mrb[12].mxu0 %v11537_v41  ;;  %14377 = vst [vmem:[#allocation163_spill] sm:$0xff] %v12484_v16 }
 0x4d8   : > { %9184 = vmatprep.mubr.msk.bf16.mxu1 %vm659_vm0, %v11553_v58  ;;  %9216 = vmatprep.mubr.msk.bf16.mxu0 %vm659_vm0, %v11553_v58 }
 0x4da   : > { %v12354_v6 = vpop.f32.mrb[68].mxu1 }
 0x4db   : > { %14360 = vst [vmem:[#allocation146_spill] sm:$0xff] %v12354_v6  ;;  %v12356_v9 = vpop.f32.mrb[69].mxu1  ;;  %v10941_v6 = vld [vmem:[#allocation2 + $0xe58] ss:$48 sps:$4 sm:$0xff]  }
 0x4dc   : > { %14361 = vst [vmem:[#allocation147_spill] sm:$0xff] %v12356_v9  ;;  %v12358_v43 = vpop.f32.mrb[70].mxu1  ;;  %v12481_v9 = vld [vmem:[#allocation2 + $0xe08] ss:$48 sps:$4 sm:$0xff]  }
 0x4dd   : > { %14362 = vst [vmem:[#allocation148_spill] sm:$0xff] %v12358_v43  ;;  %v12360_v17 = vpop.f32.mrb[71].mxu1  ;;  %v10934_v43 = vld [vmem:[#allocation2 + $0xdfc] ss:$48 sps:$4 sm:$0xff]   ;;  %14376 = vst [vmem:[#allocation162_spill] sm:$0xff] %v12481_v9 }
 0x4de   : > { %14363 = vst [vmem:[#allocation149_spill] sm:$0xff] %v12360_v17  ;;  %v12466_v17 = vld [vmem:[#allocation2 + $0xdac] ss:$48 sps:$4 sm:$0xff]  }
 0x4df   : > { %6518 = vmatmul.mubr.bf16.gmra.mrb[176].mxu1 %v11551_v54  ;;  %6888 = vmatmul.mubr.bf16.gmra.mrb[16].mxu0 %v11551_v54  ;;  %14373 = vst [vmem:[#allocation159_spill] sm:$0xff] %v12466_v17 }
 0x4e0   : > { %9185 = vmatprep.mubr.msk.bf16.mxu1 %vm659_vm0, %v11563_v25  ;;  %9217 = vmatprep.mubr.msk.bf16.mxu0 %vm659_vm0, %v11563_v25 }
 0x4e2   : > { %v12368_v27 = vpop.f32.mrb[72].mxu1 }
 0x4e3   : > { %14364 = vst [vmem:[#allocation150_spill] sm:$0xff] %v12368_v27  ;;  %v12370_v12 = vpop.f32.mrb[73].mxu1  ;;  %v10923_v27 = vld [vmem:[#allocation2 + $0xd98] ss:$48 sps:$4 sm:$0xff]  }
 0x4e4   : > { %14365 = vst [vmem:[#allocation151_spill] sm:$0xff] %v12370_v12  ;;  %v12372_v35 = vpop.f32.mrb[74].mxu1  ;;  %v12463_v12 = vld [vmem:[#allocation2 + $0xd48] ss:$48 sps:$4 sm:$0xff]  }
 0x4e5   : > { %14366 = vst [vmem:[#allocation152_spill] sm:$0xff] %v12372_v35  ;;  %v12374_v40 = vpop.f32.mrb[75].mxu1  ;;  %v10919_v35 = vld [vmem:[#allocation2 + $0xd3c] ss:$48 sps:$4 sm:$0xff]   ;;  %14372 = vst [vmem:[#allocation158_spill] sm:$0xff] %v12463_v12 }
 0x4e6   : > { %14367 = vst [vmem:[#allocation153_spill] sm:$0xff] %v12374_v40  ;;  %v12448_v40 = vld [vmem:[#allocation2 + $0xcec] ss:$48 sps:$4 sm:$0xff]  }
 0x4e7   : > { %6528 = vmatmul.mubr.bf16.gmra.mrb[180].mxu1 %v11561_v20  ;;  %6898 = vmatmul.mubr.bf16.gmra.mrb[20].mxu0 %v11561_v20 }
 0x4e8   : > { %9186 = vmatprep.mubr.msk.bf16.mxu1 %vm659_vm0, %v11573_v2  ;;  %9218 = vmatprep.mubr.msk.bf16.mxu0 %vm659_vm0, %v11573_v2 }
 0x4ea   : > { %v12382_v36 = vpop.f32.mrb[76].mxu1 }
 0x4eb   : > { %14368 = vst [vmem:[#allocation154_spill] sm:$0xff] %v12382_v36  ;;  %v12384_v56 = vpop.f32.mrb[77].mxu1  ;;  %v10914_v36 = vld [vmem:[#allocation2 + $0xcd8] ss:$48 sps:$4 sm:$0xff]  }
 0x4ec   : > { %14369 = vst [vmem:[#allocation155_spill] sm:$0xff] %v12384_v56  ;;  %v5233_v15 = vpop.f32.mrb[78].mxu1  ;;  %v12445_v56 = vld [vmem:[#allocation2 + $0xc88] ss:$48 sps:$4 sm:$0xff]  }
 0x4ed   : > { %v5234_v22 = vpop.f32.mrb[79].mxu1  ;;  %v10905_v15 = vld [vmem:[#allocation2 + $0xbb8] ss:$48 sps:$4 sm:$0xff]  }
 0x4ee   : > { %v10910_v22 = vld [vmem:[#allocation2 + $0xc1c] ss:$48 sps:$4 sm:$0xff]  }
 0x4ef   : > { %6538 = vmatmul.mubr.bf16.gmra.mrb[184].mxu1 %v11571_v0  ;;  %6908 = vmatmul.mubr.bf16.gmra.mrb[24].mxu0 %v11571_v0 }
 0x4f0   : > { %9187 = vmatprep.mubr.msk.bf16.mxu1 %vm659_vm0, %v11583_v50  ;;  %9219 = vmatprep.mubr.msk.bf16.mxu0 %vm659_vm0, %v11583_v50 }
 0x4f7   : > { %6548 = vmatmul.mubr.bf16.gmra.mrb[188].mxu1 %v11581_v46  ;;  %6918 = vmatmul.mubr.bf16.gmra.mrb[28].mxu0 %v11581_v46 }
 0x4f8   : > { %9188 = vmatprep.mubr.msk.bf16.mxu1 %vm659_vm0, %v11429_v37  ;;  %9236 = vmatprep.mubr.msk.bf16.mxu0 %vm659_vm0, %v11429_v37 }
 0x4ff   : > { %6589 = vmatmul.mubr.bf16.vlgmr.msra.gmra.mrb[192].mxu1 %v11427_v34  ;;  %7144 = vmatmul.mubr.bf16.vlgmr.msra.gmra.mrb[32].mxu0 %v11427_v34 }
 0x500   : > { %6927 = vmatpush1.bf16.msra.mxu1 %v10896_v33  ;;  %9189 = vmatprep.mubr.msk.bf16.mxu1 %vm659_vm0, %v11439_v53  ;;  %v12427_v33 = vld [vmem:[#allocation2 + $0xbc8] ss:$48 sps:$4 sm:$0xff]  }
 0x501   : > { %9237 = vmatprep.mubr.msk.bf16.mxu0 %vm659_vm0, %v11439_v53  ;;  %6928 = vmatprep.subr.bf16.mxu1 %v10901_v23  ;;  %v10908_v23 = vld [vmem:[#allocation2 + $0xc18] ss:$48 sps:$4 sm:$0xff]  }
 0x502   : > { %7297 = vmatpush1.bf16.msra.mxu0 %v12398_v49 }
 0x503   : > { %7298 = vmatprep.subr.bf16.mxu0 %v12402_v30 }
 0x504   : > { %6929 = vmatpush1.bf16.msra.mxu1 %v10899_v18  ;;  %v12430_v18 = vld [vmem:[#allocation2 + $0xc2c] ss:$48 sps:$4 sm:$0xff]  }
 0x505   : > { %6930 = vmatprep.subr.bf16.mxu1 %v10904_v8  ;;  %v10913_v8 = vld [vmem:[#allocation2 + $0xc7c] ss:$48 sps:$4 sm:$0xff]  }
 0x506   : > { %7299 = vmatpush1.bf16.msra.mxu0 %v12409_v60 }
 0x507   : > { %6599 = vmatmul.mubr.bf16.gmra.mrb[196].mxu1 %v11437_v51  ;;  %7154 = vmatmul.mubr.bf16.gmra.mrb[36].mxu0 %v11437_v51 }
 0x508   : > { %9190 = vmatprep.mubr.msk.bf16.mxu1 %vm659_vm0, %v11449_v5  ;;  %9238 = vmatprep.mubr.msk.bf16.mxu0 %vm659_vm0, %v11449_v5 }
 0x509   : > { %6931 = vmatpush1.bf16.msra.mxu1 %v10902_v11  ;;  %7300 = vmatprep.subr.bf16.mxu0 %v12412_v47  ;;  %v12433_v11 = vld [vmem:[#allocation2 + $0xc28] ss:$48 sps:$4 sm:$0xff]  }
 0x50a   : > { %6932 = vmatprep.subr.bf16.mxu1 %v10907_v21  ;;  %7301 = vmatpush1.bf16.msra.mxu0 %v12415_v63  ;;  %v12437_v21 = vld [vmem:[#allocation2 + $0xc8c] ss:$48 sps:$4 sm:$0xff]  }
 0x50b   : > { %7302 = vmatprep.subr.bf16.mxu0 %v12419_v48 }
 0x50d   : > { %6933 = vmatpush1.bf16.msra.mxu1 %v10905_v15  ;;  %v10911_v15 = vld [vmem:[#allocation2 + $0xc78] ss:$48 sps:$4 sm:$0xff]  }
 0x50e   : > { %6934 = vmatprep.subr.bf16.mxu1 %v10910_v22  ;;  %7303 = vmatpush1.bf16.msra.mxu0 %v12427_v33  ;;  %v10916_v22 = vld [vmem:[#allocation2 + $0xcdc] ss:$48 sps:$4 sm:$0xff]  }
 0x50f   : > { %6609 = vmatmul.mubr.bf16.gmra.mrb[200].mxu1 %v11447_v3  ;;  %7164 = vmatmul.mubr.bf16.gmra.mrb[40].mxu0 %v11447_v3 }
 0x510   : > { %9191 = vmatprep.mubr.msk.bf16.mxu1 %vm659_vm0, %v11459_v26  ;;  %9239 = vmatprep.mubr.msk.bf16.mxu0 %vm659_vm0, %v11459_v26 }
 0x511   : > { %6935 = vmatpush1.bf16.msra.mxu1 %v10908_v23  ;;  %7304 = vmatprep.subr.bf16.mxu0 %v12430_v18  ;;  %v12451_v23 = vld [vmem:[#allocation2 + $0xce8] ss:$48 sps:$4 sm:$0xff]  }
 0x512   : > { %6936 = vmatprep.subr.bf16.mxu1 %v10913_v8  ;;  %7305 = vmatpush1.bf16.msra.mxu0 %v12433_v11  ;;  %14370 = vst [vmem:[#allocation156_spill] sm:$0xff] %v12451_v23  ;;  %v12455_v8 = vld [vmem:[#allocation2 + $0xd4c] ss:$48 sps:$4 sm:$0xff]  }
 0x513   : > { %7306 = vmatprep.subr.bf16.mxu0 %v12437_v21  ;;  %14371 = vst [vmem:[#allocation157_spill] sm:$0xff] %v12455_v8 }
 0x515   : > { %6937 = vmatpush1.bf16.msra.mxu1 %v10911_v15  ;;  %v10917_v15 = vld [vmem:[#allocation2 + $0xd38] ss:$48 sps:$4 sm:$0xff]  }
 0x516   : > { %6938 = vmatprep.subr.bf16.mxu1 %v10916_v22  ;;  %7307 = vmatpush1.bf16.msra.mxu0 %v12445_v56  ;;  %v10925_v22 = vld [vmem:[#allocation2 + $0xd9c] ss:$48 sps:$4 sm:$0xff]  }
 0x517   : > { %6619 = vmatmul.mubr.bf16.gmra.mrb[204].mxu1 %v11457_v24  ;;  %7174 = vmatmul.mubr.bf16.gmra.mrb[44].mxu0 %v11457_v24 }
 0x518   : > { %9192 = vmatprep.mubr.msk.bf16.mxu1 %vm659_vm0, %v11469_v38  ;;  %9240 = vmatprep.mubr.msk.bf16.mxu0 %vm659_vm0, %v11469_v38 }
 0x519   : > { %6939 = vmatpush1.bf16.msra.mxu1 %v10914_v36  ;;  %7308 = vmatprep.subr.bf16.mxu0 %v12448_v40  ;;  %v12469_v36 = vld [vmem:[#allocation2 + $0xda8] ss:$48 sps:$4 sm:$0xff]  }
 0x51a   : > { %6940 = vmatprep.subr.bf16.mxu1 %v10919_v35  ;;  %7309 = vmatpush1.bf16.msra.mxu0 %v12451_v23  ;;  %14374 = vst [vmem:[#allocation160_spill] sm:$0xff] %v12469_v36  ;;  %v12473_v35 = vld [vmem:[#allocation2 + $0xe0c] ss:$48 sps:$4 sm:$0xff]  }
 0x51b   : > { %7310 = vmatprep.subr.bf16.mxu0 %v12455_v8  ;;  %14375 = vst [vmem:[#allocation161_spill] sm:$0xff] %v12473_v35  ;;  %v14402_v8 = vld [vmem:[#allocation46_spill] sm:$0xff] }
 0x51d   : > { %6941 = vmatpush1.bf16.msra.mxu1 %v10917_v15  ;;  %v10932_v15 = vld [vmem:[#allocation2 + $0xdf8] ss:$48 sps:$4 sm:$0xff]  }
 0x51e   : > { %6942 = vmatprep.subr.bf16.mxu1 %v10925_v22  ;;  %7311 = vmatpush1.bf16.msra.mxu0 %v12463_v12  ;;  %v10943_v22 = vld [vmem:[#allocation2 + $0xe5c] ss:$48 sps:$4 sm:$0xff]  }
 0x51f   : > { %6627 = vmatmul.mubr.bf16.gmra.mrb[208].mxu1 %v11467_v32  ;;  %7182 = vmatmul.mubr.bf16.gmra.mrb[48].mxu0 %v11467_v32 }
 0x520   : > { %9193 = vmatprep.mubr.msk.bf16.mxu1 %vm659_vm0, %v11479_v44  ;;  %9241 = vmatprep.mubr.msk.bf16.mxu0 %vm659_vm0, %v11479_v44 }
 0x521   : > { %6943 = vmatpush1.bf16.msra.mxu1 %v10923_v27  ;;  %7312 = vmatprep.subr.bf16.mxu0 %v12466_v17  ;;  %v12487_v27 = vld [vmem:[#allocation2 + $0xe68] ss:$48 sps:$4 sm:$0xff]  }
 0x522   : > { %6944 = vmatprep.subr.bf16.mxu1 %v10934_v43  ;;  %7313 = vmatpush1.bf16.msra.mxu0 %v12469_v36  ;;  %14378 = vst [vmem:[#allocation164_spill] sm:$0xff] %v12487_v27  ;;  %v12491_v43 = vld [vmem:[#allocation2 + $0xecc] ss:$48 sps:$4 sm:$0xff]  }
 0x523   : > { %7314 = vmatprep.subr.bf16.mxu0 %v12473_v35  ;;  %14379 = vst [vmem:[#allocation165_spill] sm:$0xff] %v12491_v43  ;;  %v14398_v35 = vld [vmem:[#allocation43_spill] sm:$0xff] }
 0x525   : > { %6945 = vmatpush1.bf16.msra.mxu1 %v10932_v15  ;;  %v10950_v15 = vld [vmem:[#allocation2 + $0xeb8] ss:$48 sps:$4 sm:$0xff]  }
 0x526   : > { %6946 = vmatprep.subr.bf16.mxu1 %v10943_v22  ;;  %7315 = vmatpush1.bf16.msra.mxu0 %v12481_v9  ;;  %v10964_v22 = vld [vmem:[#allocation2 + $0xf1c] ss:$48 sps:$4 sm:$0xff]  }
 0x527   : > { %6637 = vmatmul.mubr.bf16.gmra.mrb[212].mxu1 %v11477_v42  ;;  %7192 = vmatmul.mubr.bf16.gmra.mrb[52].mxu0 %v11477_v42 }
 0x528   : > { %9194 = vmatprep.mubr.msk.bf16.mxu1 %vm659_vm0, %v11489_v55  ;;  %9242 = vmatprep.mubr.msk.bf16.mxu0 %vm659_vm0, %v11489_v55  ;;  %v14395_v55 = vld [vmem:[#allocation40_spill] sm:$0xff] }
 0x529   : > { %6947 = vmatpush1.bf16.msra.mxu1 %v10941_v6  ;;  %7316 = vmatprep.subr.bf16.mxu0 %v12484_v16  ;;  %v12505_v6 = vld [vmem:[#allocation2 + $0xf28] ss:$48 sps:$4 sm:$0xff]  }
 0x52a   : > { %6948 = vmatprep.subr.bf16.mxu1 %v10952_v13  ;;  %7317 = vmatpush1.bf16.msra.mxu0 %v12487_v27  ;;  %14382 = vst [vmem:[#allocation168_spill] sm:$0xff] %v12505_v6  ;;  %v12509_v13 = vld [vmem:[#allocation2 + $0xf8c] ss:$48 sps:$4 sm:$0xff]  }
 0x52b   : > { %7318 = vmatprep.subr.bf16.mxu0 %v12491_v43  ;;  %14383 = vst [vmem:[#allocation169_spill] sm:$0xff] %v12509_v13  ;;  %v14394_v43 = vld [vmem:[#allocation39_spill] sm:$0xff] }
 0x52d   : > { %6949 = vmatpush1.bf16.msra.mxu1 %v10950_v15  ;;  %v10971_v15 = vld [vmem:[#allocation2 + $0xf78] ss:$48 sps:$4 sm:$0xff]  }
 0x52e   : > { %6950 = vmatprep.subr.bf16.mxu1 %v10964_v22  ;;  %7319 = vmatpush1.bf16.msra.mxu0 %v12499_v61  ;;  %v12517_v22 = vld [vmem:[#allocation2 + $0xf88] ss:$48 sps:$4 sm:$0xff]  }
 0x52f   : > { %6647 = vmatmul.mubr.bf16.gmra.mrb[216].mxu1 %v11487_v52  ;;  %7202 = vmatmul.mubr.bf16.gmra.mrb[56].mxu0 %v11487_v52  ;;  %14384 = vst [vmem:[#allocation170_spill] sm:$0xff] %v12517_v22 }
 0x530   : > { %9195 = vmatprep.mubr.msk.bf16.mxu1 %vm659_vm0, %v11499_v62  ;;  %9243 = vmatprep.mubr.msk.bf16.mxu0 %vm659_vm0, %v11499_v62  ;;  %v14391_v62 = vld [vmem:[#allocation36_spill] sm:$0xff] }
 0x531   : > { %6951 = vmatpush1.bf16.msra.mxu1 %v10962_v39  ;;  %7320 = vmatprep.subr.bf16.mxu0 %v12502_v1 }
 0x532   : > { %6952 = vmatprep.subr.bf16.mxu1 %v10973_v10  ;;  %7321 = vmatpush1.bf16.msra.mxu0 %v12505_v6 }
 0x533   : > { %7322 = vmatprep.subr.bf16.mxu0 %v12509_v13 }
 0x535   : > { %6953 = vmatpush1.bf16.msra.mxu1 %v10971_v15 }
 0x536   : > { %7323 = vmatpush1.bf16.msra.mxu0 %v12517_v22  ;;  %9298 = vmatprep.subr.bf16.mxu1 %v12325_v29 }
 0x537   : > { %6657 = vmatmul.mubr.bf16.gmra.mrb[220].mxu1 %v11497_v59  ;;  %7212 = vmatmul.mubr.bf16.gmra.mrb[60].mxu0 %v11497_v59 }
 0x538   : > { %9196 = vmatprep.mubr.msk.bf16.mxu1 %vm659_vm0, %v11509_v7  ;;  %9244 = vmatprep.mubr.msk.bf16.mxu0 %vm659_vm0, %v11509_v7  ;;  %v14387_v7 = vld [vmem:[#allocation32_spill] sm:$0xff] }
 0x53f   : > { %6665 = vmatmul.mubr.bf16.gmra.mrb[224].mxu1 %v11507_v4  ;;  %7220 = vmatmul.mubr.bf16.gmra.mrb[64].mxu0 %v11507_v4 }
 0x540   : > { %9197 = vmatprep.mubr.msk.bf16.mxu1 %vm659_vm0, %v11519_v19  ;;  %9245 = vmatprep.mubr.msk.bf16.mxu0 %vm659_vm0, %v11519_v19 }
 0x547   : > { %6675 = vmatmul.mubr.bf16.gmra.mrb[228].mxu1 %v11517_v14  ;;  %7230 = vmatmul.mubr.bf16.gmra.mrb[68].mxu0 %v11517_v14 }
 0x548   : > { %9198 = vmatprep.mubr.msk.bf16.mxu1 %vm659_vm0, %v11529_v31  ;;  %9246 = vmatprep.mubr.msk.bf16.mxu0 %vm659_vm0, %v11529_v31  ;;  %v14386_v31 = vld [vmem:[#allocation31_spill] sm:$0xff] }
 0x54f   : > { %6685 = vmatmul.mubr.bf16.gmra.mrb[232].mxu1 %v11527_v28  ;;  %7240 = vmatmul.mubr.bf16.gmra.mrb[72].mxu0 %v11527_v28 }
 0x550   : > { %9199 = vmatprep.mubr.msk.bf16.mxu1 %vm659_vm0, %v11539_v45  ;;  %9247 = vmatprep.mubr.msk.bf16.mxu0 %vm659_vm0, %v11539_v45 }
 0x552   : > { %v6405_v10 = vpop.f32.mrb[128].mxu1  ;;  %v12546_v29 = vpop.f32.mrb[224].mxu0 }
 0x553   : > { %v12549_v39 = vadd.f32 %v6405_v10, %v11633_v57  ;;  %v6407_v15 = vpop.f32.mrb[129].mxu1  ;;  %v12551_v14 = vpop.f32.mrb[225].mxu0  ;;  %v14388_v57 = vld [vmem:[#allocation33_spill] sm:$0xff] }
 0x554   : > { %v12554_v19 = vadd.f32 %v6407_v15, %v14386_v31  ;;  %v6409_v4 = vpop.f32.mrb[130].mxu1  ;;  %v12556_v28 = vpop.f32.mrb[226].mxu0 }
 0x555   : > { %14385 = vst [vmem:[#allocation171_spill] sm:$0xff] %v12549_v39  ;;  %v12559_v59 = vadd.f32 %v6409_v4, %v14387_v7  ;;  %v6411_v22 = vpop.f32.mrb[131].mxu1  ;;  %v12561_v45 = vpop.f32.mrb[227].mxu0 }
 0x556   : > { %v7821_v13 = vmax.f32 %v12546_v29, %v12554_v19  ;;  %v12566_v10 = vadd.f32 %v6411_v22, %v14388_v57  ;;  %v14389_v19 = vld [vmem:[#allocation34_spill] sm:$0xff]  ;;  %v14390_v57 = vld [vmem:[#allocation35_spill] sm:$0xff] }
 0x557   : > { %6695 = vmatmul.mubr.bf16.gmra.mrb[236].mxu1 %v11537_v41  ;;  %7250 = vmatmul.mubr.bf16.gmra.mrb[76].mxu0 %v11537_v41 }
 0x558   : > { %9200 = vmatprep.mubr.msk.bf16.mxu1 %vm659_vm0, %v11553_v58  ;;  %9248 = vmatprep.mubr.msk.bf16.mxu0 %vm659_vm0, %v11553_v58 }
 0x55a   : > { %v6415_v4 = vpop.f32.mrb[132].mxu1  ;;  %v12576_v7 = vpop.f32.mrb[228].mxu0 }
 0x55b   : > { %v12579_v29 = vadd.f32 %v6415_v4, %v14389_v19  ;;  %v6417_v22 = vpop.f32.mrb[133].mxu1  ;;  %v12581_v15 = vpop.f32.mrb[229].mxu0  ;;  %v14392_v4 = vld [vmem:[#allocation37_spill] sm:$0xff] }
 0x55c   : > { %v12584_v41 = vadd.f32 %v6417_v22, %v14390_v57  ;;  %v6419_v6 = vpop.f32.mrb[134].mxu1  ;;  %v12586_v31 = vpop.f32.mrb[230].mxu0  ;;  %v14393_v57 = vld [vmem:[#allocation38_spill] sm:$0xff] }
 0x55d   : > { %v12589_v52 = vadd.f32 %v6419_v6, %v14391_v62  ;;  %v6421_v1 = vpop.f32.mrb[135].mxu1  ;;  %v12591_v58 = vpop.f32.mrb[231].mxu0 }
 0x55e   : > { %v12596_v19 = vadd.f32 %v6421_v1, %v14392_v4 }
 0x55f   : > { %6703 = vmatmul.mubr.bf16.gmra.mrb[240].mxu1 %v11551_v54  ;;  %7258 = vmatmul.mubr.bf16.gmra.mrb[80].mxu0 %v11551_v54 }
 0x560   : > { %9201 = vmatprep.mubr.msk.bf16.mxu1 %vm659_vm0, %v11563_v25  ;;  %9249 = vmatprep.mubr.msk.bf16.mxu0 %vm659_vm0, %v11563_v25 }
 0x562   : > { %v6425_v62 = vpop.f32.mrb[136].mxu1  ;;  %v12606_v6 = vpop.f32.mrb[232].mxu0 }
 0x563   : > { %v12609_v61 = vadd.f32 %v6425_v62, %v14393_v57  ;;  %v6427_v1 = vpop.f32.mrb[137].mxu1  ;;  %v12611_v4 = vpop.f32.mrb[233].mxu0  ;;  %v14396_v62 = vld [vmem:[#allocation41_spill] sm:$0xff] }
 0x564   : > { %v12614_v54 = vadd.f32 %v6427_v1, %v14394_v43  ;;  %v6429_v27 = vpop.f32.mrb[138].mxu1  ;;  %v12616_v22 = vpop.f32.mrb[234].mxu0  ;;  %v14397_v1 = vld [vmem:[#allocation42_spill] sm:$0xff] }
 0x565   : > { %v12619_v42 = vadd.f32 %v6429_v27, %v14395_v55  ;;  %v6431_v16 = vpop.f32.mrb[139].mxu1  ;;  %v12621_v25 = vpop.f32.mrb[235].mxu0 }
 0x566   : > { %v12626_v57 = vadd.f32 %v6431_v16, %v14396_v62 }
 0x567   : > { %6713 = vmatmul.mubr.bf16.gmra.mrb[244].mxu1 %v11561_v20  ;;  %7268 = vmatmul.mubr.bf16.gmra.mrb[84].mxu0 %v11561_v20 }
 0x568   : > { %9202 = vmatprep.mubr.msk.bf16.mxu1 %vm659_vm0, %v11573_v2  ;;  %9250 = vmatprep.mubr.msk.bf16.mxu0 %vm659_vm0, %v11573_v2 }
 0x56a   : > { %v6435_v55 = vpop.f32.mrb[140].mxu1  ;;  %v12636_v27 = vpop.f32.mrb[236].mxu0 }
 0x56b   : > { %v12639_v9 = vadd.f32 %v6435_v55, %v14397_v1  ;;  %v6437_v16 = vpop.f32.mrb[141].mxu1  ;;  %v12641_v62 = vpop.f32.mrb[237].mxu0  ;;  %v14399_v1 = vld [vmem:[#allocation44_spill] sm:$0xff] }
 0x56c   : > { %v12644_v20 = vadd.f32 %v6437_v16, %v14398_v35  ;;  %v6439_v36 = vpop.f32.mrb[142].mxu1  ;;  %v6809_v43 = vpop.f32.mrb[238].mxu0  ;;  %v14401_v16 = vld [vmem:[#allocation45_spill] sm:$0xff] }
 0x56d   : > { %v6440_v44 = vpop.f32.mrb[143].mxu1  ;;  %v6810_v32 = vpop.f32.mrb[239].mxu0 }
 0x56f   : > { %6723 = vmatmul.mubr.bf16.gmra.mrb[248].mxu1 %v11571_v0  ;;  %7278 = vmatmul.mubr.bf16.gmra.mrb[88].mxu0 %v11571_v0 }
 0x570   : > { %9203 = vmatprep.mubr.msk.bf16.mxu1 %vm659_vm0, %v11583_v50  ;;  %9251 = vmatprep.mubr.msk.bf16.mxu0 %vm659_vm0, %v11583_v50 }
 0x572   : > { %v6443_v55 = vpop.f32.mrb[144].mxu1  ;;  %v6813_v35 = vpop.f32.mrb[240].mxu0 }
 0x573   : > { %v12655_v36 = vadd.f32 %v6443_v55, %v14399_v1  ;;  %v12657_v44 = vmax.f32 %v6813_v35, %v7821_v13  ;;  %v6445_v32 = vpop.f32.mrb[145].mxu1  ;;  %v12659_v43 = vpop.f32.mrb[241].mxu0  ;;  %v14403_v13 = vmax.f32 %v12556_v28, %v12566_v10  ;;  %v14405_v10 = vld [vmem:[#allocation48_spill] sm:$0xff] }
 0x574   : > { %v12662_v17 = vadd.f32 %v6445_v32, %v14401_v16  ;;  %v6447_v2 = vpop.f32.mrb[146].mxu1  ;;  %v6817_v12 = vpop.f32.mrb[242].mxu0  ;;  %v14404_v16 = vld [vmem:[#allocation47_spill] sm:$0xff]  ;;  %v14407_v32 = vld [vmem:[#allocation49_spill] sm:$0xff] }
 0x575   : > { %14400 = vst [vmem:[#allocation31_spill] sm:$0xff] %v12655_v36  ;;  %v12669_v23 = vadd.f32 %v6447_v2, %v14402_v8  ;;  %v12674_v55 = vmax.f32 %v6817_v12, %v14403_v13  ;;  %v6449_v35 = vpop.f32.mrb[147].mxu1  ;;  %v12676_v1 = vpop.f32.mrb[243].mxu0 }
 0x576   : > { %v12681_v0 = vadd.f32 %v6449_v35, %v14404_v16  ;;  %v14406_v35 = vmax.f32 %v12576_v7, %v12584_v41  ;;  %v14409_v41 = vmax.f32 %v12586_v31, %v12596_v19 }
 0x577   : > { %6733 = vmatmul.mubr.bf16.gmra.mrb[252].mxu1 %v11581_v46  ;;  %7288 = vmatmul.mubr.bf16.gmra.mrb[92].mxu0 %v11581_v46 }
 0x578   : > { %9220 = vmatprep.mubr.msk.bf16.mxu1 %vm659_vm0, %v11429_v37  ;;  %9252 = vmatprep.mubr.msk.bf16.mxu0 %vm659_vm0, %v11429_v37 }
 0x57a   : > { %v6453_v12 = vpop.f32.mrb[148].mxu1  ;;  %v6823_v8 = vpop.f32.mrb[244].mxu0 }
 0x57b   : > { %v12696_v13 = vadd.f32 %v6453_v12, %v14405_v10  ;;  %v12701_v16 = vmax.f32 %v6823_v8, %v14406_v35  ;;  %v6455_v2 = vpop.f32.mrb[149].mxu1  ;;  %v12703_v50 = vpop.f32.mrb[245].mxu0  ;;  %v14408_v10 = vld [vmem:[#allocation50_spill] sm:$0xff] }
 0x57c   : > { %v12706_v28 = vadd.f32 %v6455_v2, %v14407_v32  ;;  %v6457_v37 = vpop.f32.mrb[150].mxu1  ;;  %v6827_v36 = vpop.f32.mrb[246].mxu0  ;;  %v14410_v2 = vld [vmem:[#allocation51_spill] sm:$0xff] }
 0x57d   : > { %v12713_v39 = vadd.f32 %v6457_v37, %v14408_v10  ;;  %v12718_v7 = vmax.f32 %v6827_v36, %v14409_v41  ;;  %v6459_v8 = vpop.f32.mrb[151].mxu1  ;;  %v12720_v35 = vpop.f32.mrb[247].mxu0  ;;  %v14411_v10 = vld [vmem:[#allocation52_spill] sm:$0xff]  ;;  %v14413_v37 = vld [vmem:[#allocation53_spill] sm:$0xff] }
 0x57e   : > { %v7929_v32 = vmax.f32 %v12706_v28, %v12701_v16  ;;  %v12725_v46 = vadd.f32 %v6459_v8, %v14410_v2  ;;  %v14435_v28 = vld [vmem:[#allocation64_spill] sm:$0xff] }
 0x57f   : > { %6959 = vmatmul.mubr.bf16.vlgmr.msra.gmra.mrb[0].mxu1 %v11427_v34  ;;  %7329 = vmatmul.mubr.bf16.vlgmr.msra.gmra.mrb[96].mxu0 %v11427_v34  ;;  %v14412_v34 = vmax.f32 %v12606_v6, %v12614_v54  ;;  %v14415_v6 = vmax.f32 %v12616_v22, %v12626_v57 }
 0x580   : > { %9312 = vmatpush1.bf16.msra.mxu1 %v12398_v49  ;;  %9221 = vmatprep.mubr.msk.bf16.mxu1 %vm659_vm0, %v11439_v53 }
 0x581   : > { %9253 = vmatprep.mubr.msk.bf16.mxu0 %vm659_vm0, %v11439_v53  ;;  %9299 = vmatprep.subr.bf16.mxu1 %v12402_v30 }
 0x582   : > { %v6463_v19 = vpop.f32.mrb[152].mxu1  ;;  %v6833_v36 = vpop.f32.mrb[248].mxu0 }
 0x583   : > { %v12742_v41 = vadd.f32 %v6463_v19, %v14411_v10  ;;  %v12747_v8 = vmax.f32 %v6833_v36, %v14412_v34  ;;  %v6465_v2 = vpop.f32.mrb[153].mxu1  ;;  %v12749_v49 = vpop.f32.mrb[249].mxu0  ;;  %v14414_v10 = vld [vmem:[#allocation54_spill] sm:$0xff] }
 0x584   : > { %v12752_v12 = vadd.f32 %v6465_v2, %v14413_v37  ;;  %v6467_v30 = vpop.f32.mrb[154].mxu1  ;;  %v6837_v31 = vpop.f32.mrb[250].mxu0  ;;  %9313 = vmatpush1.bf16.msra.mxu1 %v12409_v60  ;;  %v14416_v60 = vld [vmem:[#allocation55_spill] sm:$0xff] }
 0x585   : > { %v12760_v54 = vadd.f32 %v6467_v30, %v14414_v10  ;;  %v12765_v36 = vmax.f32 %v6837_v31, %v14415_v6  ;;  %v6469_v37 = vpop.f32.mrb[155].mxu1  ;;  %v12767_v34 = vpop.f32.mrb[251].mxu0  ;;  %9300 = vmatprep.subr.bf16.mxu1 %v12412_v47  ;;  %v14417_v31 = vld [vmem:[#allocation56_spill] sm:$0xff]  ;;  %v14419_v30 = vld [vmem:[#allocation57_spill] sm:$0xff] }
 0x586   : > { %v7953_v2 = vmax.f32 %v12752_v12, %v12747_v8  ;;  %v12773_v53 = vadd.f32 %v6469_v37, %v14416_v60  ;;  %v14450_v12 = vld [vmem:[#allocation68_spill] sm:$0xff] }
 0x587   : > { %6969 = vmatmul.mubr.bf16.gmra.mrb[4].mxu1 %v11437_v51  ;;  %7339 = vmatmul.mubr.bf16.gmra.mrb[100].mxu0 %v11437_v51  ;;  %v14418_v51 = vmax.f32 %v12636_v27, %v12644_v20 }
 0x588   : > { %9222 = vmatprep.mubr.msk.bf16.mxu1 %vm659_vm0, %v11449_v5  ;;  %9254 = vmatprep.mubr.msk.bf16.mxu0 %vm659_vm0, %v11449_v5 }
 0x589   : > { %9314 = vmatpush1.bf16.msra.mxu1 %v12415_v63 }
 0x58a   : > { %v6473_v47 = vpop.f32.mrb[156].mxu1  ;;  %v6843_v57 = vpop.f32.mrb[252].mxu0  ;;  %9301 = vmatprep.subr.bf16.mxu1 %v12419_v48  ;;  %v14424_v48 = vmax.f32 %v12681_v0, %v12674_v55  ;;  %v14428_v0 = vmax.f32 %v12559_v59, %v12669_v23 }
 0x58b   : > { %v12790_v6 = vadd.f32 %v6473_v47, %v14417_v31  ;;  %v12795_v37 = vmax.f32 %v6843_v57, %v14418_v51  ;;  %v6475_v60 = vpop.f32.mrb[157].mxu1  ;;  %v12797_v10 = vpop.f32.mrb[253].mxu0  ;;  %v14421_v51 = vld [vmem:[#allocation59_spill] sm:$0xff] }
 0x58c   : > { %v12800_v22 = vadd.f32 %v6475_v60, %v14419_v30  ;;  %v7894_v5 = vmax.f32 %v12641_v62, %v12797_v10  ;;  %v6477_v63 = vpop.f32.mrb[158].mxu1  ;;  %v6847_v19 = vpop.f32.mrb[254].mxu0  ;;  %v14422_v60 = vmax.f32 %v12551_v14, %v12659_v43  ;;  %v14426_v14 = vld [vmem:[#allocation61_spill] sm:$0xff]  ;;  %v14467_v62 = vld [vmem:[#allocation14_spill] sm:$0xff]  ;;  %v14468_v10 = vld [vmem:[#allocation168_spill] sm:$0xff] }
 0x58d   : > { %v6478_v47 = vpop.f32.mrb[159].mxu1  ;;  %v6848_v31 = vpop.f32.mrb[255].mxu0  ;;  %9315 = vmatpush1.bf16.msra.mxu1 %v12427_v33  ;;  %v14420_v33 = vld [vmem:[#allocation58_spill] sm:$0xff] }
 0x58e   : > { %v7977_v20 = vmax.f32 %v12800_v22, %v12795_v37  ;;  %9302 = vmatprep.subr.bf16.mxu1 %v12430_v18 }
 0x58f   : > { %6979 = vmatmul.mubr.bf16.gmra.mrb[8].mxu1 %v11447_v3  ;;  %7349 = vmatmul.mubr.bf16.gmra.mrb[104].mxu0 %v11447_v3 }
 0x590   : > { %9223 = vmatprep.mubr.msk.bf16.mxu1 %vm659_vm0, %v11459_v26  ;;  %9255 = vmatprep.mubr.msk.bf16.mxu0 %vm659_vm0, %v11459_v26 }
 0x591   : > { %9316 = vmatpush1.bf16.msra.mxu1 %v12433_v11  ;;  %v14423_v11 = vld [vmem:[#allocation60_spill] sm:$0xff] }
 0x592   : > { %v6481_v27 = vpop.f32.mrb[160].mxu1  ;;  %v12817_v19 = vpop.f32.mrb[0].mxu0  ;;  %9303 = vmatprep.subr.bf16.mxu1 %v12437_v21 }
 0x593   : > { %v12821_v30 = vadd.f32 %v6481_v27, %v14420_v33  ;;  %v6483_v18 = vpop.f32.mrb[161].mxu1  ;;  %v6853_v57 = vpop.f32.mrb[1].mxu0 }
 0x594   : > { %v9355_v3 = vadd.f32 %v6483_v18, %v14421_v51  ;;  %v12827_v63 = vmax.f32 %v6853_v57, %v14422_v60  ;;  %v6485_v26 = vpop.f32.mrb[162].mxu1  ;;  %v6855_v47 = vpop.f32.mrb[2].mxu0  ;;  %v14425_v18 = vmax.f32 %v12662_v17, %v12657_v44  ;;  %v14427_v57 = vmax.f32 %v12561_v45, %v12676_v1  ;;  %v14429_v45 = vld [vmem:[#allocation156_spill] sm:$0xff]  ;;  %v14431_v1 = vld [vmem:[#allocation62_spill] sm:$0xff] }
 0x595   : > { %v9356_v31 = vadd.f32 %v6485_v26, %v14423_v11  ;;  %v12833_v21 = vmax.f32 %v6855_v47, %v14424_v48  ;;  %v6487_v27 = vpop.f32.mrb[163].mxu1  ;;  %v6857_v33 = vpop.f32.mrb[3].mxu0  ;;  %9317 = vmatpush1.bf16.msra.mxu1 %v12445_v56  ;;  %v14433_v47 = vmax.f32 %v12581_v15, %v12703_v50  ;;  %v14438_v15 = vld [vmem:[#allocation65_spill] sm:$0xff] }
 0x596   : > { %v12839_v51 = vmax.f32 %v9355_v3, %v14425_v18  ;;  %v12842_v43 = vadd.f32 %v6487_v27, %v14426_v14  ;;  %v12847_v60 = vmax.f32 %v6857_v33, %v14427_v57  ;;  %9304 = vmatprep.subr.bf16.mxu1 %v12448_v40  ;;  %v14430_v40 = vld [vmem:[#allocation157_spill] sm:$0xff]  ;;  %v14432_v3 = vld [vmem:[#allocation63_spill] sm:$0xff]  ;;  %v14434_v33 = vmax.f32 %v12579_v29, %v12696_v13 }
 0x597   : > { %v12853_v55 = vmax.f32 %v9356_v31, %v14428_v0  ;;  %6989 = vmatmul.mubr.bf16.gmra.mrb[12].mxu1 %v11457_v24  ;;  %7359 = vmatmul.mubr.bf16.gmra.mrb[108].mxu0 %v11457_v24  ;;  %v14439_v29 = vmax.f32 %v12591_v58, %v12720_v35 }
 0x598   : > { %v7914_v17 = vmax.f32 %v12842_v43, %v12833_v21  ;;  %9224 = vmatprep.mubr.msk.bf16.mxu1 %vm659_vm0, %v11469_v38 }
 0x599   : > { %9318 = vmatpush1.bf16.msra.mxu1 %v14429_v45  ;;  %v14437_v45 = vld [vmem:[#allocation158_spill] sm:$0xff] }
 0x59a   : > { %v6491_v56 = vpop.f32.mrb[164].mxu1  ;;  %v6861_v44 = vpop.f32.mrb[4].mxu0  ;;  %9305 = vmatprep.subr.bf16.mxu1 %v14430_v40  ;;  %v14442_v40 = vld [vmem:[#allocation8_spill] sm:$0xff] }
 0x59b   : > { %v9358_v59 = vadd.f32 %v6491_v56, %v14431_v1  ;;  %v12867_v23 = vmax.f32 %v6861_v44, %v7929_v32  ;;  %v6493_v24 = vpop.f32.mrb[165].mxu1  ;;  %v6863_v48 = vpop.f32.mrb[5].mxu0  ;;  %v14436_v32 = vmax.f32 %v12725_v46, %v12718_v7  ;;  %v14440_v44 = vld [vmem:[#allocation159_spill] sm:$0xff]  ;;  %v14441_v46 = vmax.f32 %v12589_v52, %v12713_v39 }
 0x59c   : > { %v12870_v26 = vadd.f32 %v6493_v24, %v14432_v3  ;;  %v12875_v11 = vmax.f32 %v6863_v48, %v14433_v47  ;;  %v6495_v31 = vpop.f32.mrb[166].mxu1  ;;  %v6865_v27 = vpop.f32.mrb[6].mxu0  ;;  %v14444_v24 = vld [vmem:[#allocation160_spill] sm:$0xff]  ;;  %v14445_v48 = vld [vmem:[#allocation161_spill] sm:$0xff]  ;;  %v14446_v3 = vld [vmem:[#allocation66_spill] sm:$0xff] }
 0x59d   : > { %v12880_v18 = vmax.f32 %v9358_v59, %v14434_v33  ;;  %v9360_v16 = vadd.f32 %v6495_v31, %v14435_v28  ;;  %v12886_v14 = vmax.f32 %v6865_v27, %v14436_v32  ;;  %v6497_v57 = vpop.f32.mrb[167].mxu1  ;;  %v6867_v0 = vpop.f32.mrb[7].mxu0  ;;  %9319 = vmatpush1.bf16.msra.mxu1 %v14437_v45  ;;  %v14443_v59 = vld [vmem:[#allocation10_spill] sm:$0xff]  ;;  %v14447_v27 = vld [vmem:[#allocation67_spill] sm:$0xff]  ;;  %v14448_v28 = vmax.f32 %v12611_v4, %v12749_v49  ;;  %v14453_v49 = vld [vmem:[#allocation69_spill] sm:$0xff] }
 0x59e   : > { %v7926_v50 = vmax.f32 %v12870_v26, %v12867_v23  ;;  %v12892_v56 = vadd.f32 %v6497_v57, %v14438_v15  ;;  %v12897_v13 = vmax.f32 %v6867_v0, %v14439_v29  ;;  %9306 = vmatprep.subr.bf16.mxu1 %v14440_v44  ;;  %v14449_v0 = vmax.f32 %v12609_v61, %v12742_v41 }
 0x59f   : > { %v12903_v7 = vmax.f32 %v9360_v16, %v14441_v46  ;;  %6997 = vmatmul.mubr.bf16.gmra.mrb[16].mxu1 %v14442_v40  ;;  %v14452_v46 = vld [vmem:[#allocation162_spill] sm:$0xff]  ;;  %v14454_v61 = vmax.f32 %v12621_v25, %v12767_v34 }
 0x5a0   : > { %v7938_v1 = vmax.f32 %v12892_v56, %v12886_v14  ;;  %9225 = vmatprep.mubr.msk.bf16.mxu1 %vm659_vm0, %v14443_v59  ;;  %v14494_v56 = vld [vmem:[#allocation18_spill] sm:$0xff] }
 0x5a1   : > { %9320 = vmatpush1.bf16.msra.mxu1 %v14444_v24 }
 0x5a2   : > { %v6501_v58 = vpop.f32.mrb[168].mxu1  ;;  %v6871_v35 = vpop.f32.mrb[8].mxu0  ;;  %9307 = vmatprep.subr.bf16.mxu1 %v14445_v48 }
 0x5a3   : > { %v9362_v47 = vadd.f32 %v6501_v58, %v14446_v3  ;;  %v12916_v52 = vmax.f32 %v6871_v35, %v7953_v2  ;;  %v6503_v39 = vpop.f32.mrb[169].mxu1  ;;  %v6873_v31 = vpop.f32.mrb[9].mxu0  ;;  %v14451_v2 = vmax.f32 %v12773_v53, %v12765_v36  ;;  %v14455_v58 = vld [vmem:[#allocation163_spill] sm:$0xff]  ;;  %v14456_v53 = vmax.f32 %v12619_v42, %v12760_v54  ;;  %v14457_v35 = vld [vmem:[#allocation9_spill] sm:$0xff]  ;;  %v14458_v3 = vld [vmem:[#allocation12_spill] sm:$0xff] }
 0x5a4   : > { %v12919_v33 = vadd.f32 %v6503_v39, %v14447_v27  ;;  %v12924_v16 = vmax.f32 %v6873_v31, %v14448_v28  ;;  %v6505_v32 = vpop.f32.mrb[170].mxu1  ;;  %v6875_v57 = vpop.f32.mrb[10].mxu0  ;;  %v14460_v39 = vld [vmem:[#allocation165_spill] sm:$0xff]  ;;  %v14461_v31 = vld [vmem:[#allocation70_spill] sm:$0xff] }
 0x5a5   : > { %v12929_v45 = vmax.f32 %v9362_v47, %v14449_v0  ;;  %v9364_v8 = vadd.f32 %v6505_v32, %v14450_v12  ;;  %v12935_v15 = vmax.f32 %v6875_v57, %v14451_v2  ;;  %v6507_v29 = vpop.f32.mrb[171].mxu1  ;;  %v6877_v44 = vpop.f32.mrb[11].mxu0  ;;  %9321 = vmatpush1.bf16.msra.mxu1 %v14452_v46  ;;  %v14459_v47 = vld [vmem:[#allocation164_spill] sm:$0xff]  ;;  %v14462_v32 = vld [vmem:[#allocation71_spill] sm:$0xff]  ;;  %v14463_v2 = vmax.f32 %v12639_v9, %v12790_v6  ;;  %v14469_v6 = vld [vmem:[#allocation169_spill] sm:$0xff] }
 0x5a6   : > { %v7950_v4 = vmax.f32 %v12919_v33, %v12916_v52  ;;  %v12941_v24 = vadd.f32 %v6507_v29, %v14453_v49  ;;  %v12946_v41 = vmax.f32 %v6877_v44, %v14454_v61  ;;  %9308 = vmatprep.subr.bf16.mxu1 %v14455_v58  ;;  %v14465_v46 = vld [vmem:[#allocation167_spill] sm:$0xff]  ;;  %v14470_v61 = vld [vmem:[#allocation72_spill] sm:$0xff] }
 0x5a7   : > { %v12952_v36 = vmax.f32 %v9364_v8, %v14456_v53  ;;  %7007 = vmatmul.mubr.bf16.gmra.mrb[20].mxu1 %v14457_v35  ;;  %v14466_v49 = vld [vmem:[#allocation11_spill] sm:$0xff] }
 0x5a8   : > { %v7962_v48 = vmax.f32 %v12941_v24, %v12935_v15  ;;  %9226 = vmatprep.mubr.msk.bf16.mxu1 %vm659_vm0, %v14458_v3  ;;  %v14504_v24 = vld [vmem:[#allocation20_spill] sm:$0xff] }
 0x5a9   : > { %9322 = vmatpush1.bf16.msra.mxu1 %v14459_v47 }
 0x5aa   : > { %v6511_v25 = vpop.f32.mrb[172].mxu1  ;;  %v6881_v34 = vpop.f32.mrb[12].mxu0  ;;  %9309 = vmatprep.subr.bf16.mxu1 %v14460_v39 }
 0x5ab   : > { %v9366_v27 = vadd.f32 %v6511_v25, %v14461_v31  ;;  %v12965_v42 = vmax.f32 %v6881_v34, %v7977_v20  ;;  %v6513_v54 = vpop.f32.mrb[173].mxu1  ;;  %v6883_v28 = vpop.f32.mrb[13].mxu0  ;;  %v14464_v20 = vld [vmem:[#allocation166_spill] sm:$0xff]  ;;  %v14471_v34 = vld [vmem:[#allocation73_spill] sm:$0xff] }
 0x5ac   : > { %v12968_v57 = vadd.f32 %v6513_v54, %v14462_v32  ;;  %v12973_v0 = vmax.f32 %v6883_v28, %v7894_v5  ;;  %v6515_v12 = vpop.f32.mrb[174].mxu1  ;;  %v6885_v8 = vpop.f32.mrb[14].mxu0  ;;  %v14497_v31 = vld [vmem:[#allocation81_spill] sm:$0xff] }
 0x5ad   : > { %v12978_v29 = vmax.f32 %v9366_v27, %v14463_v2  ;;  %v6516_v22 = vpop.f32.mrb[175].mxu1  ;;  %v6886_v37 = vpop.f32.mrb[15].mxu0  ;;  %9323 = vmatpush1.bf16.msra.mxu1 %v14464_v20  ;;  %v14474_v12 = vld [vmem:[#allocation74_spill] sm:$0xff]  ;;  %v14477_v20 = vld [vmem:[#allocation75_spill] sm:$0xff] }
 0x5ae   : > { %v7974_v44 = vmax.f32 %v12968_v57, %v12965_v42  ;;  %9310 = vmatprep.subr.bf16.mxu1 %v14465_v46  ;;  %v14476_v37 = vld [vmem:[#allocation170_spill] sm:$0xff]  ;;  %v14509_v57 = vld [vmem:[#allocation19_spill] sm:$0xff]  ;;  %v14513_v42 = vld [vmem:[#allocation88_spill] sm:$0xff] }
 0x5af   : > { %7017 = vmatmul.mubr.bf16.gmra.mrb[24].mxu1 %v14466_v49 }
 0x5b0   : > { %9227 = vmatprep.mubr.msk.bf16.mxu1 %vm659_vm0, %v14467_v62 }
 0x5b1   : > { %9324 = vmatpush1.bf16.msra.mxu1 %v14468_v10  ;;  %v14480_v10 = vld [vmem:[#allocation31_spill] sm:$0xff] }
 0x5b2   : > { %v6519_v5 = vpop.f32.mrb[176].mxu1  ;;  %v6889_v9 = vpop.f32.mrb[16].mxu0  ;;  %9311 = vmatprep.subr.bf16.mxu1 %v14469_v6 }
 0x5b3   : > { %v9368_v58 = vadd.f32 %v6519_v5, %v14470_v61  ;;  %v7905_v53 = vmax.f32 %v12817_v19, %v6889_v9  ;;  %v6521_v47 = vpop.f32.mrb[177].mxu1  ;;  %v12991_v25 = vpop.f32.mrb[17].mxu0  ;;  %v14484_v61 = vld [vmem:[#allocation16_spill] sm:$0xff] }
 0x5b4   : > { %v12994_v39 = vadd.f32 %v6521_v47, %v14471_v34  ;;  %v6523_v27 = vpop.f32.mrb[178].mxu1  ;;  %v6893_v54 = vpop.f32.mrb[18].mxu0  ;;  %v14485_v47 = vld [vmem:[#allocation76_spill] sm:$0xff] }
 0x5b5   : > { %v7901_v28 = vmax.f32 %v12821_v30, %v9368_v58  ;;  %v13000_v32 = vmax.f32 %v7905_v53, %v12839_v51  ;;  %v13003_v8 = vadd.f32 %v6523_v27, %v14474_v12  ;;  %v13008_v19 = vmax.f32 %v6893_v54, %v7914_v17  ;;  %v6525_v2 = vpop.f32.mrb[179].mxu1  ;;  %v13010_v22 = vpop.f32.mrb[19].mxu0  ;;  %9325 = vmatpush1.bf16.msra.mxu1 %v14476_v37  ;;  %v14479_v51 = vld [vmem:[#allocation171_spill] sm:$0xff]  ;;  %v14483_v17 = vld [vmem:[#allocation13_spill] sm:$0xff] }
 0x5b6   : > { %14472 = vst [vmem:[#allocation32_spill] sm:$0xff] %v12994_v39  ;;  %v13014_v46 = vadd.f32 %v6525_v2, %v14477_v20  ;;  %v14481_v5 = vmax.f32 %v14479_v51, %v14480_v10  ;;  %v14487_v12 = vld [vmem:[#allocation77_spill] sm:$0xff] }
 0x5b7   : > { %14473 = vst [vmem:[#allocation33_spill] sm:$0xff] %v13000_v32  ;;  %14475 = vst [vmem:[#allocation34_spill] sm:$0xff] %v13008_v19  ;;  %7027 = vmatmul.mubr.bf16.gmra.mrb[28].mxu1 %v14483_v17 }
 0x5b8   : > { %14478 = vst [vmem:[#allocation35_spill] sm:$0xff] %v13014_v46  ;;  %v13021_v9 = vmax.f32 %v14481_v5, %v7901_v28  ;;  %9228 = vmatprep.mubr.msk.bf16.mxu1 %vm659_vm0, %v14484_v61  ;;  %v14489_v5 = vld [vmem:[#allocation78_spill] sm:$0xff] }
 0x5ba   : > { %14482 = vst [vmem:[#allocation36_spill] sm:$0xff] %v13021_v9  ;;  %v6529_v58 = vpop.f32.mrb[180].mxu1  ;;  %v6899_v53 = vpop.f32.mrb[20].mxu0  ;;  %v14524_v9 = vld [vmem:[#allocation93_spill] sm:$0xff] }
 0x5bb   : > { %v13033_v34 = vadd.f32 %v6529_v58, %v14485_v47  ;;  %v13038_v27 = vmax.f32 %v6899_v53, %v7926_v50  ;;  %v6531_v54 = vpop.f32.mrb[181].mxu1  ;;  %v13040_v28 = vpop.f32.mrb[21].mxu0  ;;  %v14491_v47 = vld [vmem:[#allocation79_spill] sm:$0xff]  ;;  %v14495_v53 = vld [vmem:[#allocation80_spill] sm:$0xff] }
 0x5bc   : > { %v13043_v2 = vadd.f32 %v6531_v54, %v14487_v12  ;;  %v6533_v20 = vpop.f32.mrb[182].mxu1  ;;  %v6903_v51 = vpop.f32.mrb[22].mxu0 }
 0x5bd   : > { %14486 = vst [vmem:[#allocation37_spill] sm:$0xff] %v13038_v27  ;;  %v13050_v58 = vadd.f32 %v6533_v20, %v14489_v5  ;;  %v13055_v23 = vmax.f32 %v6903_v51, %v7938_v1  ;;  %v6535_v26 = vpop.f32.mrb[183].mxu1  ;;  %v13057_v50 = vpop.f32.mrb[23].mxu0  ;;  %v14493_v5 = vld [vmem:[#allocation15_spill] sm:$0xff]  ;;  %v14518_v27 = vld [vmem:[#allocation24_spill] sm:$0xff] }
 0x5be   : > { %14488 = vst [vmem:[#allocation38_spill] sm:$0xff] %v13043_v2  ;;  %v13062_v54 = vadd.f32 %v6535_v26, %v14491_v47  ;;  %v14516_v2 = vld [vmem:[#allocation21_spill] sm:$0xff] }
 0x5bf   : > { %14490 = vst [vmem:[#allocation39_spill] sm:$0xff] %v13055_v23  ;;  %7035 = vmatmul.mubr.bf16.gmra.mrb[32].mxu1 %v14493_v5 }
 0x5c0   : > { %14492 = vst [vmem:[#allocation40_spill] sm:$0xff] %v13062_v54  ;;  %9229 = vmatprep.mubr.msk.bf16.mxu1 %vm659_vm0, %v14494_v56 }
 0x5c2   : > { %v6539_v1 = vpop.f32.mrb[184].mxu1  ;;  %v6909_v51 = vpop.f32.mrb[24].mxu0 }
 0x5c3   : > { %v13074_v6 = vadd.f32 %v6539_v1, %v14495_v53  ;;  %v13079_v26 = vmax.f32 %v6909_v51, %v7950_v4  ;;  %v6541_v47 = vpop.f32.mrb[185].mxu1  ;;  %v13081_v21 = vpop.f32.mrb[25].mxu0  ;;  %v14499_v1 = vld [vmem:[#allocation82_spill] sm:$0xff]  ;;  %v14501_v51 = vld [vmem:[#allocation83_spill] sm:$0xff]  ;;  %v14507_v53 = vld [vmem:[#allocation85_spill] sm:$0xff] }
 0x5c4   : > { %v13084_v20 = vadd.f32 %v6541_v47, %v14497_v31  ;;  %v6543_v12 = vpop.f32.mrb[186].mxu1  ;;  %v6913_v10 = vpop.f32.mrb[26].mxu0  ;;  %v14505_v31 = vld [vmem:[#allocation84_spill] sm:$0xff] }
 0x5c5   : > { %14496 = vst [vmem:[#allocation41_spill] sm:$0xff] %v13079_v26  ;;  %v13091_v37 = vadd.f32 %v6543_v12, %v14499_v1  ;;  %v13096_v52 = vmax.f32 %v6913_v10, %v7962_v48  ;;  %v6545_v33 = vpop.f32.mrb[187].mxu1  ;;  %v13098_v4 = vpop.f32.mrb[27].mxu0  ;;  %v14503_v1 = vld [vmem:[#allocation17_spill] sm:$0xff] }
 0x5c6   : > { %14498 = vst [vmem:[#allocation42_spill] sm:$0xff] %v13084_v20  ;;  %v13103_v47 = vadd.f32 %v6545_v33, %v14501_v51 }
 0x5c7   : > { %14500 = vst [vmem:[#allocation43_spill] sm:$0xff] %v13096_v52  ;;  %7045 = vmatmul.mubr.bf16.gmra.mrb[36].mxu1 %v14503_v1 }
 0x5c8   : > { %14502 = vst [vmem:[#allocation44_spill] sm:$0xff] %v13103_v47  ;;  %9230 = vmatprep.mubr.msk.bf16.mxu1 %vm659_vm0, %v14504_v24 }
 0x5ca   : > { %v6549_v48 = vpop.f32.mrb[188].mxu1  ;;  %v6919_v10 = vpop.f32.mrb[28].mxu0 }
 0x5cb   : > { %v13115_v14 = vadd.f32 %v6549_v48, %v14505_v31  ;;  %v13120_v33 = vmax.f32 %v6919_v10, %v7974_v44  ;;  %v6551_v51 = vpop.f32.mrb[189].mxu1  ;;  %v13122_v12 = vpop.f32.mrb[29].mxu0  ;;  %v14510_v44 = vld [vmem:[#allocation22_spill] sm:$0xff]  ;;  %v14512_v31 = vld [vmem:[#allocation87_spill] sm:$0xff] }
 0x5cc   : > { %v13125_v43 = vadd.f32 %v6551_v51, %v14507_v53  ;;  %v6553_v30 = vpop.f32.mrb[190].mxu1  ;;  %v6923_v47 = vpop.f32.mrb[30].mxu0  ;;  %v14511_v51 = vld [vmem:[#allocation86_spill] sm:$0xff] }
 0x5cd   : > { %14506 = vst [vmem:[#allocation45_spill] sm:$0xff] %v13120_v33  ;;  %v6554_v48 = vpop.f32.mrb[191].mxu1  ;;  %v6924_v52 = vpop.f32.mrb[31].mxu0  ;;  %v14514_v33 = vmax.f32 %v13010_v22, %v12847_v60 }
 0x5ce   : > { %14508 = vst [vmem:[#allocation46_spill] sm:$0xff] %v13125_v43 }
 0x5cf   : > { %7055 = vmatmul.mubr.bf16.gmra.mrb[40].mxu1 %v14509_v57 }
 0x5d0   : > { %9231 = vmatprep.mubr.msk.bf16.mxu1 %vm659_vm0, %v14510_v44 }
 0x5d2   : > { %v6590_v53 = vpop.f32.mrb[192].mxu1  ;;  %v13136_v10 = vpop.f32.mrb[32].mxu0 }
 0x5d3   : > { %v13139_v15 = vadd.f32 %v6590_v53, %v14511_v51  ;;  %v6592_v30 = vpop.f32.mrb[193].mxu1  ;;  %v13141_v47 = vpop.f32.mrb[33].mxu0  ;;  %v14515_v53 = vld [vmem:[#allocation89_spill] sm:$0xff] }
 0x5d4   : > { %v13144_v48 = vadd.f32 %v6592_v30, %v14512_v31  ;;  %v6594_v52 = vpop.f32.mrb[194].mxu1  ;;  %v7149_v20 = vpop.f32.mrb[34].mxu0  ;;  %v14517_v31 = vmax.f32 %v13003_v8, %v12853_v55  ;;  %v14521_v8 = vmax.f32 %v13040_v28, %v12875_v11  ;;  %v14525_v11 = vmax.f32 %v13057_v50, %v12897_v13 }
 0x5d5   : > { %v13147_v43 = vadd.f32 %v6594_v52, %v14513_v42  ;;  %v13152_v26 = vmax.f32 %v7149_v20, %v14514_v33  ;;  %v6596_v54 = vpop.f32.mrb[195].mxu1  ;;  %v13154_v23 = vpop.f32.mrb[35].mxu0  ;;  %v14519_v33 = vld [vmem:[#allocation90_spill] sm:$0xff] }
 0x5d6   : > { %v9385_v51 = vadd.f32 %v6596_v54, %v14515_v53  ;;  %v14520_v53 = vld [vmem:[#allocation91_spill] sm:$0xff] }
 0x5d7   : > { %7065 = vmatmul.mubr.bf16.gmra.mrb[44].mxu1 %v14516_v2 }
 0x5d8   : > { %v13161_v30 = vmax.f32 %v9385_v51, %v14517_v31  ;;  %9232 = vmatprep.mubr.msk.bf16.mxu1 %vm659_vm0, %v14518_v27  ;;  %v14522_v31 = vld [vmem:[#allocation92_spill] sm:$0xff] }
 0x5da   : > { %v6600_v22 = vpop.f32.mrb[196].mxu1  ;;  %v13167_v20 = vpop.f32.mrb[36].mxu0 }
 0x5db   : > { %v9386_v42 = vadd.f32 %v6600_v22, %v14519_v33  ;;  %v6602_v52 = vpop.f32.mrb[197].mxu1  ;;  %v13170_v54 = vpop.f32.mrb[37].mxu0  ;;  %v14523_v22 = vmax.f32 %v13033_v34, %v12880_v18  ;;  %v14527_v18 = vmax.f32 %v13050_v58, %v12903_v7  ;;  %v14528_v34 = vld [vmem:[#allocation26_spill] sm:$0xff]  ;;  %v14530_v7 = vld [vmem:[#allocation95_spill] sm:$0xff] }
 0x5dc   : > { %v9387_v46 = vadd.f32 %v6602_v52, %v14520_v53  ;;  %v6604_v19 = vpop.f32.mrb[198].mxu1  ;;  %v13173_v55 = vpop.f32.mrb[38].mxu0 }
 0x5dd   : > { %v13178_v51 = vmax.f32 %v9386_v42, %v14521_v8  ;;  %v9388_v60 = vadd.f32 %v6604_v19, %v14522_v31  ;;  %v6606_v39 = vpop.f32.mrb[199].mxu1  ;;  %v13181_v32 = vpop.f32.mrb[39].mxu0  ;;  %v14526_v42 = vld [vmem:[#allocation23_spill] sm:$0xff]  ;;  %v14532_v19 = vld [vmem:[#allocation96_spill] sm:$0xff] }
 0x5de   : > { %v13186_v33 = vmax.f32 %v9387_v46, %v14523_v22  ;;  %v9389_v52 = vadd.f32 %v6606_v39, %v14524_v9 }
 0x5df   : > { %v13194_v28 = vmax.f32 %v9388_v60, %v14525_v11  ;;  %7073 = vmatmul.mubr.bf16.gmra.mrb[48].mxu1 %v14526_v42  ;;  %v14529_v60 = vld [vmem:[#allocation94_spill] sm:$0xff]  ;;  %v14534_v42 = vld [vmem:[#allocation97_spill] sm:$0xff] }
 0x5e0   : > { %v13202_v46 = vmax.f32 %v9389_v52, %v14527_v18  ;;  %9233 = vmatprep.mubr.msk.bf16.mxu1 %vm659_vm0, %v14528_v34  ;;  %v14531_v18 = vmax.f32 %v13081_v21, %v12924_v16  ;;  %v14535_v16 = vmax.f32 %v13098_v4, %v12946_v41  ;;  %v14542_v41 = vmax.f32 %v13115_v14, %v12978_v29 }
 0x5e2   : > { %v6610_v9 = vpop.f32.mrb[200].mxu1  ;;  %v13210_v50 = vpop.f32.mrb[40].mxu0 }
 0x5e3   : > { %v9390_v8 = vadd.f32 %v6610_v9, %v14529_v60  ;;  %v6612_v31 = vpop.f32.mrb[201].mxu1  ;;  %v13213_v22 = vpop.f32.mrb[41].mxu0  ;;  %v14533_v9 = vmax.f32 %v13074_v6, %v12929_v45  ;;  %v14537_v45 = vmax.f32 %v13091_v37, %v12952_v36  ;;  %v14540_v36 = vld [vmem:[#allocation99_spill] sm:$0xff] }
 0x5e4   : > { %v9391_v58 = vadd.f32 %v6612_v31, %v14530_v7  ;;  %v6614_v52 = vpop.f32.mrb[202].mxu1  ;;  %v13216_v11 = vpop.f32.mrb[42].mxu0 }
 0x5e5   : > { %v13221_v39 = vmax.f32 %v9390_v8, %v14531_v18  ;;  %v9392_v13 = vadd.f32 %v6614_v52, %v14532_v19  ;;  %v6616_v53 = vpop.f32.mrb[203].mxu1  ;;  %v13224_v34 = vpop.f32.mrb[43].mxu0  ;;  %v14536_v8 = vld [vmem:[#allocation25_spill] sm:$0xff] }
 0x5e6   : > { %v13229_v60 = vmax.f32 %v9391_v58, %v14533_v9  ;;  %v9393_v31 = vadd.f32 %v6616_v53, %v14534_v42  ;;  %v14538_v58 = vld [vmem:[#allocation28_spill] sm:$0xff] }
 0x5e7   : > { %v13237_v21 = vmax.f32 %v9392_v13, %v14535_v16  ;;  %7083 = vmatmul.mubr.bf16.gmra.mrb[52].mxu1 %v14536_v8  ;;  %v14539_v13 = vld [vmem:[#allocation98_spill] sm:$0xff]  ;;  %v14550_v8 = vld [vmem:[#allocation29_spill] sm:$0xff] }
 0x5e8   : > { %v13245_v6 = vmax.f32 %v9393_v31, %v14537_v45  ;;  %9234 = vmatprep.mubr.msk.bf16.mxu1 %vm659_vm0, %v14538_v58  ;;  %v14541_v45 = vmax.f32 %v13122_v12, %v12973_v0 }
 0x5ea   : > { %v6620_v4 = vpop.f32.mrb[204].mxu1  ;;  %v13253_v42 = vpop.f32.mrb[44].mxu0 }
 0x5eb   : > { %v9394_v52 = vadd.f32 %v6620_v4, %v14539_v13  ;;  %v6622_v18 = vpop.f32.mrb[205].mxu1  ;;  %v13256_v9 = vpop.f32.mrb[45].mxu0  ;;  %v14543_v13 = vld [vmem:[#allocation27_spill] sm:$0xff]  ;;  %v14547_v4 = vld [vmem:[#allocation102_spill] sm:$0xff] }
 0x5ec   : > { %v9395_v37 = vadd.f32 %v6622_v18, %v14540_v36  ;;  %v6624_v31 = vpop.f32.mrb[206].mxu1  ;;  %v7179_v16 = vpop.f32.mrb[46].mxu0  ;;  %v14544_v36 = vld [vmem:[#allocation30_spill] sm:$0xff] }
 0x5ed   : > { %v13262_v19 = vmax.f32 %v9394_v52, %v14541_v45  ;;  %v6625_v53 = vpop.f32.mrb[207].mxu1  ;;  %v7180_v7 = vpop.f32.mrb[47].mxu0 }
 0x5ee   : > { %v13267_v58 = vmax.f32 %v9395_v37, %v14542_v41  ;;  %v14545_v53 = vld [vmem:[#allocation100_spill] sm:$0xff]  ;;  %v14546_v41 = vld [vmem:[#allocation101_spill] sm:$0xff] }
 0x5ef   : > { %7093 = vmatmul.mubr.bf16.gmra.mrb[56].mxu1 %v14543_v13 }
 0x5f0   : > { %9235 = vmatprep.mubr.msk.bf16.mxu1 %vm659_vm0, %v14544_v36 }
 0x5f2   : > { %v6628_v0 = vpop.f32.mrb[208].mxu1  ;;  %v7183_v12 = vpop.f32.mrb[48].mxu0 }
 0x5f3   : > { %v9396_v7 = vadd.f32 %v6628_v0, %v14545_v53  ;;  %v7825_v52 = vmax.f32 %v13136_v10, %v7183_v12  ;;  %v6630_v29 = vpop.f32.mrb[209].mxu1  ;;  %v13278_v14 = vpop.f32.mrb[49].mxu0  ;;  %v14548_v12 = vld [vmem:[#allocation103_spill] sm:$0xff] }
 0x5f4   : > { %v13281_v37 = vadd.f32 %v6630_v29, %v14546_v41  ;;  %v6632_v16 = vpop.f32.mrb[210].mxu1  ;;  %v13285_v45 = vpop.f32.mrb[50].mxu0  ;;  %v14549_v29 = vmax.f32 %v12991_v25, %v12827_v63  ;;  %v14557_v63 = vld [vmem:[#allocation107_spill] sm:$0xff] }
 0x5f5   : > { %v7819_v18 = vmax.f32 %v13139_v15, %v9396_v7  ;;  %v9398_v36 = vadd.f32 %v6632_v16, %v14547_v4  ;;  %v6634_v13 = vpop.f32.mrb[211].mxu1  ;;  %v13289_v0 = vpop.f32.mrb[51].mxu0  ;;  %v14551_v15 = vmax.f32 %v13154_v23, %v13161_v30  ;;  %v14552_v23 = vld [vmem:[#allocation104_spill] sm:$0xff] }
 0x5f6   : > { %v9399_v53 = vadd.f32 %v6634_v13, %v14548_v12 }
 0x5f7   : > { %v7987_v41 = vmax.f32 %v7819_v18, %v14549_v29  ;;  %v7831_v31 = vmax.f32 %v13147_v43, %v9398_v36  ;;  %7103 = vmatmul.mubr.bf16.gmra.mrb[60].mxu1 %v14550_v8  ;;  %v14555_v29 = vld [vmem:[#allocation106_spill] sm:$0xff] }
 0x5f8   : > { %v13302_v4 = vmax.f32 %v9399_v53, %v14551_v15  ;;  %9256 = vmatprep.mubr.msk.bf16.mxu1 %vm659_vm0, %v11469_v38  ;;  %v14553_v38 = vld [vmem:[#allocation105_spill] sm:$0xff] }
 0x5f9   : > { %v13306_v7 = vmax.f32 %v7987_v41, %v7825_v52  ;;  %v13309_v13 = vmax.f32 %v7831_v31, %v13152_v26  ;;  %v14554_v26 = vmax.f32 %v13167_v20, %v13178_v51  ;;  %v14558_v20 = vmax.f32 %v13173_v55, %v13194_v28 }
 0x5fa   : > { %v6638_v25 = vpop.f32.mrb[212].mxu1  ;;  %v13313_v43 = vpop.f32.mrb[52].mxu0 }
 0x5fb   : > { %v8074_v18 = vmax.f32 %v13309_v13, %v13285_v45  ;;  %v9400_v30 = vadd.f32 %v6638_v25, %v14552_v23  ;;  %v6640_v36 = vpop.f32.mrb[213].mxu1  ;;  %v13318_v16 = vpop.f32.mrb[53].mxu0  ;;  %v14556_v25 = vmax.f32 %v13170_v54, %v13186_v33  ;;  %v14559_v54 = vmax.f32 %v13181_v32, %v13202_v46  ;;  %v14561_v32 = vld [vmem:[#allocation109_spill] sm:$0xff] }
 0x5fc   : > { %v9401_v52 = vadd.f32 %v6640_v36, %v14553_v38  ;;  %v6642_v12 = vpop.f32.mrb[214].mxu1  ;;  %v13321_v53 = vpop.f32.mrb[54].mxu0 }
 0x5fd   : > { %v13326_v31 = vmax.f32 %v9400_v30, %v14554_v26  ;;  %v9402_v41 = vadd.f32 %v6642_v12, %v14555_v29  ;;  %v6644_v15 = vpop.f32.mrb[215].mxu1  ;;  %v13329_v10 = vpop.f32.mrb[55].mxu0 }
 0x5fe   : > { %v13334_v23 = vmax.f32 %v9401_v52, %v14556_v25  ;;  %v9403_v36 = vadd.f32 %v6644_v15, %v14557_v63  ;;  %v14565_v63 = vld [vmem:[#allocation111_spill] sm:$0xff] }
 0x5ff   : > { %v8011_v38 = vmax.f32 %v13313_v43, %v13326_v31  ;;  %v13342_v51 = vmax.f32 %v9402_v41, %v14558_v20  ;;  %7367 = vmatmul.mubr.bf16.vlgmr.msra.gmra.mrb[80].mxu1 %v14442_v40  ;;  %v14560_v40 = vld [vmem:[#allocation108_spill] sm:$0xff] }
 0x600   : > { %v8012_v30 = vmax.f32 %v13318_v16, %v13334_v23  ;;  %v13350_v33 = vmax.f32 %v9403_v36, %v14559_v54  ;;  %9257 = vmatprep.mubr.msk.bf16.mxu1 %vm659_vm0, %v14443_v59  ;;  %v14562_v59 = vmax.f32 %v13210_v50, %v13221_v39  ;;  %v14563_v36 = vld [vmem:[#allocation110_spill] sm:$0xff]  ;;  %v14566_v39 = vmax.f32 %v13216_v11, %v13237_v21 }
 0x601   : > { %v14581_v43 = vmax.f32 %v13321_v53, %v13342_v51 }
 0x602   : > { %v6648_v28 = vpop.f32.mrb[216].mxu1  ;;  %v13358_v52 = vpop.f32.mrb[56].mxu0  ;;  %v14582_v16 = vmax.f32 %v13329_v10, %v13350_v33  ;;  %v14584_v10 = vld [vmem:[#allocation123_spill] sm:$0xff] }
 0x603   : > { %v9404_v12 = vadd.f32 %v6648_v28, %v14560_v40  ;;  %v6650_v26 = vpop.f32.mrb[217].mxu1  ;;  %v13361_v29 = vpop.f32.mrb[57].mxu0  ;;  %v14564_v28 = vmax.f32 %v13213_v22, %v13229_v60  ;;  %v14567_v22 = vmax.f32 %v13224_v34, %v13245_v6  ;;  %v14569_v34 = vld [vmem:[#allocation113_spill] sm:$0xff] }
 0x604   : > { %v9405_v46 = vadd.f32 %v6650_v26, %v14561_v32  ;;  %v6652_v41 = vpop.f32.mrb[218].mxu1  ;;  %v13364_v15 = vpop.f32.mrb[58].mxu0 }
 0x605   : > { %v13369_v25 = vmax.f32 %v9404_v12, %v14562_v59  ;;  %v9406_v20 = vadd.f32 %v6652_v41, %v14563_v36  ;;  %v6654_v54 = vpop.f32.mrb[219].mxu1  ;;  %v13372_v55 = vpop.f32.mrb[59].mxu0 }
 0x606   : > { %v13377_v40 = vmax.f32 %v9405_v46, %v14564_v28  ;;  %v9407_v26 = vadd.f32 %v6654_v54, %v14565_v63 }
 0x607   : > { %v8035_v32 = vmax.f32 %v13358_v52, %v13369_v25  ;;  %v13385_v50 = vmax.f32 %v9406_v20, %v14566_v39  ;;  %7377 = vmatmul.mubr.bf16.gmra.mrb[84].mxu1 %v14457_v35  ;;  %v14568_v35 = vld [vmem:[#allocation112_spill] sm:$0xff] }
 0x608   : > { %v8036_v12 = vmax.f32 %v13361_v29, %v13377_v40  ;;  %v13393_v60 = vmax.f32 %v9407_v26, %v14567_v22  ;;  %9258 = vmatprep.mubr.msk.bf16.mxu1 %vm659_vm0, %v14458_v3  ;;  %v14570_v3 = vmax.f32 %v13253_v42, %v13262_v19  ;;  %v14571_v22 = vmax.f32 %v13256_v9, %v13267_v58 }
 0x609   : > { %v8047_v63 = vmax.f32 %v13364_v15, %v13385_v50 }
 0x60a   : > { %v6658_v21 = vpop.f32.mrb[220].mxu1  ;;  %v13401_v46 = vpop.f32.mrb[60].mxu0  ;;  %v14587_v29 = vmax.f32 %v13372_v55, %v13393_v60  ;;  %v14589_v55 = vld [vmem:[#allocation127_spill] sm:$0xff] }
 0x60b   : > { %v9408_v41 = vadd.f32 %v6658_v21, %v14568_v35  ;;  %v6660_v59 = vpop.f32.mrb[221].mxu1  ;;  %v13404_v36 = vpop.f32.mrb[61].mxu0 }
 0x60c   : > { %v9409_v6 = vadd.f32 %v6660_v59, %v14569_v34  ;;  %v6662_v20 = vpop.f32.mrb[222].mxu1  ;;  %v7217_v54 = vpop.f32.mrb[62].mxu0  ;;  %v14573_v34 = vld [vmem:[#allocation115_spill] sm:$0xff] }
 0x60d   : > { %v13410_v28 = vmax.f32 %v9408_v41, %v14570_v3  ;;  %v6663_v26 = vpop.f32.mrb[223].mxu1  ;;  %v7218_v39 = vpop.f32.mrb[63].mxu0  ;;  %v14572_v41 = vld [vmem:[#allocation114_spill] sm:$0xff]  ;;  %v14574_v54 = vld [vmem:[#allocation116_spill] sm:$0xff] }
 0x60e   : > { %v13415_v11 = vmax.f32 %v9409_v6, %v14571_v22  ;;  %v14575_v22 = vld [vmem:[#allocation117_spill] sm:$0xff] }
 0x60f   : > { %v8059_v21 = vmax.f32 %v13401_v46, %v13410_v28  ;;  %7387 = vmatmul.mubr.bf16.gmra.mrb[88].mxu1 %v14466_v49 }
 0x610   : > { %v8060_v35 = vmax.f32 %v13404_v36, %v13415_v11  ;;  %9259 = vmatprep.mubr.msk.bf16.mxu1 %vm659_vm0, %v14467_v62 }
 0x612   : > { %v6666_v19 = vpop.f32.mrb[224].mxu1  ;;  %v13424_v42 = vpop.f32.mrb[64].mxu0 }
 0x613   : > { %v13427_v59 = vadd.f32 %v6666_v19, %v14572_v41  ;;  %v6668_v58 = vpop.f32.mrb[225].mxu1  ;;  %v13429_v9 = vpop.f32.mrb[65].mxu0  ;;  %v14576_v41 = vmax.f32 %v13289_v0, %v13302_v4  ;;  %v14579_v4 = vld [vmem:[#allocation120_spill] sm:$0xff] }
 0x614   : > { %v13432_v6 = vadd.f32 %v6668_v58, %v14573_v34  ;;  %v6670_v20 = vpop.f32.mrb[226].mxu1  ;;  %v7225_v49 = vpop.f32.mrb[66].mxu0  ;;  %v14577_v34 = vld [vmem:[#allocation118_spill] sm:$0xff] }
 0x615   : > { %v13435_v3 = vadd.f32 %v6670_v20, %v14574_v54  ;;  %v13440_v62 = vmax.f32 %v7225_v49, %v8074_v18  ;;  %v6672_v26 = vpop.f32.mrb[227].mxu1  ;;  %v13442_v39 = vpop.f32.mrb[67].mxu0 }
 0x616   : > { %v9413_v19 = vadd.f32 %v6672_v26, %v14575_v22 }
 0x617   : > { %7397 = vmatmul.mubr.bf16.gmra.mrb[92].mxu1 %v14483_v17  ;;  %v14578_v17 = vld [vmem:[#allocation119_spill] sm:$0xff] }
 0x618   : > { %v13449_v58 = vmax.f32 %v9413_v19, %v14576_v41  ;;  %9260 = vmatprep.mubr.msk.bf16.mxu1 %vm659_vm0, %v14484_v61 }
 0x61a   : > { %v6676_v13 = vpop.f32.mrb[228].mxu1  ;;  %v13455_v18 = vpop.f32.mrb[68].mxu0 }
 0x61b   : > { %v9414_v20 = vadd.f32 %v6676_v13, %v14577_v34  ;;  %v6678_v49 = vpop.f32.mrb[229].mxu1  ;;  %v13458_v54 = vpop.f32.mrb[69].mxu0  ;;  %v14580_v34 = vld [vmem:[#allocation121_spill] sm:$0xff] }
 0x61c   : > { %v9415_v26 = vadd.f32 %v6678_v49, %v14578_v17  ;;  %v6680_v22 = vpop.f32.mrb[230].mxu1  ;;  %v13461_v0 = vpop.f32.mrb[70].mxu0 }
 0x61d   : > { %v13466_v61 = vmax.f32 %v8011_v38, %v9414_v20  ;;  %v9416_v19 = vadd.f32 %v6680_v22, %v14579_v4  ;;  %v6682_v41 = vpop.f32.mrb[231].mxu1  ;;  %v13469_v45 = vpop.f32.mrb[71].mxu0 }
 0x61e   : > { %v13474_v13 = vmax.f32 %v9415_v26, %v8012_v30  ;;  %v9417_v49 = vadd.f32 %v6682_v41, %v14580_v34  ;;  %v14585_v34 = vld [vmem:[#allocation124_spill] sm:$0xff] }
 0x61f   : > { %v7933_v17 = vmax.f32 %v13455_v18, %v13466_v61  ;;  %v13482_v31 = vmax.f32 %v14581_v43, %v9416_v19  ;;  %7405 = vmatmul.mubr.bf16.gmra.mrb[96].mxu1 %v14493_v5  ;;  %v14583_v5 = vld [vmem:[#allocation122_spill] sm:$0xff]  ;;  %v14602_v61 = vld [vmem:[#allocation23_spill] sm:$0xff] }
 0x620   : > { %v8018_v38 = vmax.f32 %v13458_v54, %v13474_v13  ;;  %v13490_v23 = vmax.f32 %v9417_v49, %v14582_v16  ;;  %9261 = vmatprep.mubr.msk.bf16.mxu1 %vm659_vm0, %v14494_v56  ;;  %v14603_v13 = vld [vmem:[#allocation26_spill] sm:$0xff] }
 0x621   : > { %v7945_v30 = vmax.f32 %v13461_v0, %v13482_v31  ;;  %v14635_v0 = vld [vmem:[#allocation40_spill] sm:$0xff] }
 0x622   : > { %v7946_v53 = vmax.f32 %v13469_v45, %v13490_v23  ;;  %v6686_v51 = vpop.f32.mrb[232].mxu1  ;;  %v13498_v20 = vpop.f32.mrb[72].mxu0  ;;  %v14605_v45 = vld [vmem:[#allocation137_spill] sm:$0xff] }
 0x623   : > { %v9418_v26 = vadd.f32 %v6686_v51, %v14583_v5  ;;  %v6688_v22 = vpop.f32.mrb[233].mxu1  ;;  %v13501_v4 = vpop.f32.mrb[73].mxu0  ;;  %v14586_v5 = vld [vmem:[#allocation125_spill] sm:$0xff] }
 0x624   : > { %v9419_v33 = vadd.f32 %v6688_v22, %v14584_v10  ;;  %v6690_v19 = vpop.f32.mrb[234].mxu1  ;;  %v13504_v41 = vpop.f32.mrb[74].mxu0 }
 0x625   : > { %v13509_v56 = vmax.f32 %v8035_v32, %v9418_v26  ;;  %v9420_v49 = vadd.f32 %v6690_v19, %v14585_v34  ;;  %v6692_v43 = vpop.f32.mrb[235].mxu1  ;;  %v13512_v16 = vpop.f32.mrb[75].mxu0 }
 0x626   : > { %v13517_v51 = vmax.f32 %v9419_v33, %v8036_v12  ;;  %v9421_v22 = vadd.f32 %v6692_v43, %v14586_v5 }
 0x627   : > { %v7957_v10 = vmax.f32 %v13498_v20, %v13509_v56  ;;  %v13525_v52 = vmax.f32 %v8047_v63, %v9420_v49  ;;  %7415 = vmatmul.mubr.bf16.gmra.mrb[100].mxu1 %v14503_v1  ;;  %v14588_v1 = vld [vmem:[#allocation126_spill] sm:$0xff]  ;;  %v14608_v56 = vld [vmem:[#allocation25_spill] sm:$0xff] }
 0x628   : > { %v7958_v25 = vmax.f32 %v13501_v4, %v13517_v51  ;;  %v13533_v40 = vmax.f32 %v9421_v22, %v14587_v29  ;;  %9262 = vmatprep.mubr.msk.bf16.mxu1 %vm659_vm0, %v14504_v24  ;;  %v14609_v51 = vld [vmem:[#allocation28_spill] sm:$0xff] }
 0x629   : > { %v7969_v32 = vmax.f32 %v13504_v41, %v13525_v52 }
 0x62a   : > { %v7970_v15 = vmax.f32 %v13512_v16, %v13533_v40  ;;  %v6696_v50 = vpop.f32.mrb[236].mxu1  ;;  %v13541_v12 = vpop.f32.mrb[76].mxu0  ;;  %v14611_v16 = vld [vmem:[#allocation141_spill] sm:$0xff] }
 0x62b   : > { %v9422_v63 = vadd.f32 %v6696_v50, %v14588_v1  ;;  %v6698_v26 = vpop.f32.mrb[237].mxu1  ;;  %v13544_v33 = vpop.f32.mrb[77].mxu0 }
 0x62c   : > { %v9423_v60 = vadd.f32 %v6698_v26, %v14589_v55  ;;  %v6700_v19 = vpop.f32.mrb[238].mxu1  ;;  %v7255_v34 = vpop.f32.mrb[78].mxu0 }
 0x62d   : > { %v13550_v24 = vmax.f32 %v8059_v21, %v9422_v63  ;;  %v6701_v49 = vpop.f32.mrb[239].mxu1  ;;  %v7256_v43 = vpop.f32.mrb[79].mxu0  ;;  %v14590_v21 = vld [vmem:[#allocation128_spill] sm:$0xff]  ;;  %v14592_v19 = vld [vmem:[#allocation130_spill] sm:$0xff] }
 0x62e   : > { %v13555_v5 = vmax.f32 %v9423_v60, %v8060_v35  ;;  %v14591_v35 = vld [vmem:[#allocation129_spill] sm:$0xff] }
 0x62f   : > { %v7981_v22 = vmax.f32 %v13541_v12, %v13550_v24  ;;  %7425 = vmatmul.mubr.bf16.gmra.mrb[104].mxu1 %v14509_v57 }
 0x630   : > { %v7982_v29 = vmax.f32 %v13544_v33, %v13555_v5  ;;  %9263 = vmatprep.mubr.msk.bf16.mxu1 %vm659_vm0, %v14510_v44  ;;  %v14615_v5 = vld [vmem:[#allocation143_spill] sm:$0xff] }
 0x632   : > { %v6704_v46 = vpop.f32.mrb[240].mxu1  ;;  %v7259_v28 = vpop.f32.mrb[80].mxu0 }
 0x633   : > { %v9424_v50 = vadd.f32 %v6704_v46, %v14590_v21  ;;  %v7909_v1 = vmax.f32 %v13424_v42, %v7259_v28  ;;  %v6706_v11 = vpop.f32.mrb[241].mxu1  ;;  %v7261_v36 = vpop.f32.mrb[81].mxu0  ;;  %v14593_v42 = vmax.f32 %v13141_v47, %v13278_v14  ;;  %v14594_v28 = vld [vmem:[#allocation131_spill] sm:$0xff] }
 0x634   : > { %v9425_v63 = vadd.f32 %v6706_v11, %v14591_v35  ;;  %v7910_v26 = vmax.f32 %v13429_v9, %v7261_v36  ;;  %v6708_v55 = vpop.f32.mrb[242].mxu1  ;;  %v13568_v57 = vpop.f32.mrb[82].mxu0 }
 0x635   : > { %v7903_v60 = vmax.f32 %v13427_v59, %v9424_v50  ;;  %v9426_v34 = vadd.f32 %v6708_v55, %v14592_v19  ;;  %v6710_v44 = vpop.f32.mrb[243].mxu1  ;;  %v13572_v49 = vpop.f32.mrb[83].mxu0  ;;  %v14595_v59 = vmax.f32 %v13144_v48, %v13281_v37  ;;  %v14597_v37 = vld [vmem:[#allocation36_spill] sm:$0xff]  ;;  %v14600_v19 = vld [vmem:[#allocation134_spill] sm:$0xff] }
 0x636   : > { %v7904_v43 = vmax.f32 %v13432_v6, %v9425_v63  ;;  %v13578_v46 = vmax.f32 %v14593_v42, %v7910_v26  ;;  %v9427_v21 = vadd.f32 %v6710_v44, %v14594_v28  ;;  %v14596_v6 = vmax.f32 %v13442_v39, %v13449_v58  ;;  %v14598_v58 = vld [vmem:[#allocation132_spill] sm:$0xff]  ;;  %v14599_v63 = vld [vmem:[#allocation133_spill] sm:$0xff]  ;;  %v14601_v28 = vld [vmem:[#allocation135_spill] sm:$0xff] }
 0x637   : > { %v7993_v9 = vmax.f32 %v7903_v60, %v13306_v7  ;;  %v7915_v11 = vmax.f32 %v13435_v3, %v9426_v34  ;;  %7435 = vmatmul.mubr.bf16.gmra.mrb[108].mxu1 %v14516_v2  ;;  %v14641_v2 = vld [vmem:[#allocation42_spill] sm:$0xff] }
 0x638   : > { %v13587_v50 = vmax.f32 %v14595_v59, %v7904_v43  ;;  %v13592_v36 = vmax.f32 %v9427_v21, %v14596_v6  ;;  %9264 = vmatprep.mubr.msk.bf16.mxu1 %vm659_vm0, %v14518_v27 }
 0x639   : > { %v13596_v47 = vmax.f32 %v7909_v1, %v7993_v9  ;;  %v13599_v14 = vmax.f32 %v7915_v11, %v13440_v62  ;;  %v14604_v11 = vld [vmem:[#allocation136_spill] sm:$0xff] }
 0x63a   : > { %v6714_v7 = vpop.f32.mrb[244].mxu1  ;;  %v13603_v48 = vpop.f32.mrb[84].mxu0 }
 0x63b   : > { %v7840_v39 = vmax.f32 %v13568_v57, %v13599_v14  ;;  %v9428_v35 = vadd.f32 %v6714_v7, %v14598_v58  ;;  %v6716_v27 = vpop.f32.mrb[245].mxu1  ;;  %v13610_v1 = vpop.f32.mrb[85].mxu0  ;;  %v14631_v57 = vld [vmem:[#allocation148_spill] sm:$0xff] }
 0x63c   : > { %v9429_v62 = vadd.f32 %v6716_v27, %v14599_v63  ;;  %v6718_v26 = vpop.f32.mrb[246].mxu1  ;;  %v13613_v55 = vpop.f32.mrb[86].mxu0  ;;  %v14606_v27 = vld [vmem:[#allocation138_spill] sm:$0xff] }
 0x63d   : > { %v13618_v60 = vmax.f32 %v9428_v35, %v7933_v17  ;;  %v9430_v34 = vadd.f32 %v6718_v26, %v14600_v19  ;;  %v6720_v44 = vpop.f32.mrb[247].mxu1  ;;  %v13621_v43 = vpop.f32.mrb[87].mxu0 }
 0x63e   : > { %v13626_v42 = vmax.f32 %v9429_v62, %v8018_v38  ;;  %v9431_v21 = vadd.f32 %v6720_v44, %v14601_v28 }
 0x63f   : > { %v7852_v9 = vmax.f32 %v13603_v48, %v13618_v60  ;;  %v13634_v18 = vmax.f32 %v9430_v34, %v7945_v30  ;;  %7443 = vmatmul.mubr.bf16.gmra.mrb[112].mxu1 %v14602_v61  ;;  %v14607_v34 = vld [vmem:[#allocation139_spill] sm:$0xff] }
 0x640   : > { %v13642_v54 = vmax.f32 %v9431_v21, %v7946_v53  ;;  %9265 = vmatprep.mubr.msk.bf16.mxu1 %vm659_vm0, %v14603_v13  ;;  %v14610_v21 = vld [vmem:[#allocation140_spill] sm:$0xff]  ;;  %v14639_v60 = vld [vmem:[#allocation151_spill] sm:$0xff] }
 0x641   : > { %v7864_v38 = vmax.f32 %v13613_v55, %v13634_v18 }
 0x642   : > { %v6724_v31 = vpop.f32.mrb[248].mxu1  ;;  %v13650_v30 = vpop.f32.mrb[88].mxu0 }
 0x643   : > { %v9432_v59 = vadd.f32 %v6724_v31, %v14604_v11  ;;  %v6726_v6 = vpop.f32.mrb[249].mxu1  ;;  %v13653_v7 = vpop.f32.mrb[89].mxu0 }
 0x644   : > { %v9433_v23 = vadd.f32 %v6726_v6, %v14605_v45  ;;  %v6728_v53 = vpop.f32.mrb[250].mxu1  ;;  %v13656_v58 = vpop.f32.mrb[90].mxu0 }
 0x645   : > { %v13661_v35 = vmax.f32 %v9432_v59, %v7957_v10  ;;  %v9434_v63 = vadd.f32 %v6728_v53, %v14606_v27  ;;  %v6730_v62 = vpop.f32.mrb[251].mxu1  ;;  %v13664_v26 = vpop.f32.mrb[91].mxu0  ;;  %v14612_v27 = vld [vmem:[#allocation27_spill] sm:$0xff] }
 0x646   : > { %v13669_v19 = vmax.f32 %v9433_v23, %v7958_v25  ;;  %v9435_v44 = vadd.f32 %v6730_v62, %v14607_v34  ;;  %v14613_v62 = vld [vmem:[#allocation30_spill] sm:$0xff] }
 0x647   : > { %v7876_v28 = vmax.f32 %v13650_v30, %v13661_v35  ;;  %v13677_v20 = vmax.f32 %v9434_v63, %v7969_v32  ;;  %7453 = vmatmul.mubr.bf16.gmra.mrb[116].mxu1 %v14608_v56  ;;  %v14651_v30 = vld [vmem:[#allocation155_spill] sm:$0xff] }
 0x648   : > { %v13685_v4 = vmax.f32 %v9435_v44, %v7970_v15  ;;  %9266 = vmatprep.mubr.msk.bf16.mxu1 %vm659_vm0, %v14609_v51 }
 0x649   : > { %v7888_v25 = vmax.f32 %v13656_v58, %v13677_v20 }
 0x64a   : > { %v6734_v52 = vpop.f32.mrb[252].mxu1  ;;  %v13693_v32 = vpop.f32.mrb[92].mxu0 }
 0x64b   : > { %v9436_v61 = vadd.f32 %v6734_v52, %v14610_v21  ;;  %v6736_v13 = vpop.f32.mrb[253].mxu1  ;;  %v13696_v31 = vpop.f32.mrb[93].mxu0  ;;  %v14617_v52 = vld [vmem:[#allocation33_spill] sm:$0xff]  ;;  %v14618_v21 = vld [vmem:[#allocation32_spill] sm:$0xff] }
 0x64c   : > { %v9437_v40 = vadd.f32 %v6736_v13, %v14611_v16  ;;  %v6738_v15 = vpop.f32.mrb[254].mxu1  ;;  %v7293_v11 = vpop.f32.mrb[94].mxu0  ;;  %v14620_v16 = vld [vmem:[#allocation144_spill] sm:$0xff] }
 0x64d   : > { %v13702_v59 = vmax.f32 %v9436_v61, %v7981_v22  ;;  %v6739_v6 = vpop.f32.mrb[255].mxu1  ;;  %v7294_v45 = vpop.f32.mrb[95].mxu0  ;;  %v14614_v22 = vld [vmem:[#allocation142_spill] sm:$0xff]  ;;  %v14619_v61 = vmax.f32 %v14617_v52, %v14618_v21 }
 0x64e   : > { %v13707_v23 = vmax.f32 %v9437_v40, %v7982_v29  ;;  %v14621_v45 = vld [vmem:[#allocation145_spill] sm:$0xff]  ;;  %v14626_v52 = vld [vmem:[#allocation146_spill] sm:$0xff] }
 0x64f   : > { %v7900_v53 = vmax.f32 %v13693_v32, %v13702_v59  ;;  %7463 = vmatmul.mubr.bf16.gmra.mrb[120].mxu1 %v14612_v27 }
 0x650   : > { %9267 = vmatprep.mubr.msk.bf16.mxu1 %vm659_vm0, %v14613_v62  ;;  %v14622_v62 = vld [vmem:[#allocation34_spill] sm:$0xff] }
 0x652   : > { %v13716_v12 = vpop.f32.mrb[0].mxu1  ;;  %v7330_v24 = vpop.f32.mrb[96].mxu0 }
 0x653   : > { %v9438_v34 = vadd.f32 %v7330_v24, %v14614_v22  ;;  %v13719_v44 = vpop.f32.mrb[1].mxu1  ;;  %v7332_v33 = vpop.f32.mrb[97].mxu0  ;;  %v14623_v24 = vld [vmem:[#allocation35_spill] sm:$0xff] }
 0x654   : > { %v13722_v29 = vadd.f32 %v7332_v33, %v14615_v5  ;;  %v13724_v56 = vpop.f32.mrb[2].mxu1  ;;  %v7334_v51 = vpop.f32.mrb[98].mxu0  ;;  %v14624_v22 = vmax.f32 %v14622_v62, %v14623_v24  ;;  %v14628_v24 = vld [vmem:[#allocation37_spill] sm:$0xff] }
 0x655   : > { %v13729_v13 = vmax.f32 %v9438_v34, %v14619_v61  ;;  %v9440_v40 = vadd.f32 %v7334_v51, %v14620_v16  ;;  %v13732_v15 = vpop.f32.mrb[3].mxu1  ;;  %v7336_v11 = vpop.f32.mrb[99].mxu0 }
 0x656   : > { %14616 = vst [vmem:[#allocation47_spill] sm:$0xff] %v13722_v29  ;;  %v9441_v27 = vadd.f32 %v7336_v11, %v14621_v45  ;;  %v14627_v11 = vld [vmem:[#allocation147_spill] sm:$0xff] }
 0x657   : > { %v13740_v33 = vmax.f32 %v9440_v40, %v14624_v22  ;;  %7473 = vmatmul.mubr.bf16.gmra.mrb[124].mxu1 %v14550_v8  ;;  %v14629_v8 = vld [vmem:[#allocation38_spill] sm:$0xff] }
 0x658   : > { %v13746_v34 = vmax.f32 %v7840_v39, %v9441_v27  ;;  %v14630_v22 = vmax.f32 %v14628_v24, %v14629_v8  ;;  %v14638_v8 = vld [vmem:[#allocation150_spill] sm:$0xff] }
 0x65a   : > { %14625 = vst [vmem:[#allocation48_spill] sm:$0xff] %v13746_v34  ;;  %v13748_v5 = vpop.f32.mrb[4].mxu1  ;;  %v7340_v51 = vpop.f32.mrb[100].mxu0 }
 0x65b   : > { %v9442_v21 = vadd.f32 %v7340_v51, %v14626_v52  ;;  %v13751_v61 = vpop.f32.mrb[5].mxu1  ;;  %v7342_v16 = vpop.f32.mrb[101].mxu0  ;;  %v14633_v52 = vld [vmem:[#allocation149_spill] sm:$0xff] }
 0x65c   : > { %v9443_v45 = vadd.f32 %v7342_v16, %v14627_v11  ;;  %v13754_v62 = vpop.f32.mrb[6].mxu1  ;;  %v7344_v40 = vpop.f32.mrb[102].mxu0  ;;  %v14634_v11 = vld [vmem:[#allocation39_spill] sm:$0xff] }
 0x65d   : > { %v13759_v6 = vmax.f32 %v9442_v21, %v14630_v22  ;;  %v9444_v14 = vadd.f32 %v7344_v40, %v14631_v57  ;;  %v13762_v39 = vpop.f32.mrb[7].mxu1  ;;  %v7346_v27 = vpop.f32.mrb[103].mxu0  ;;  %v14636_v17 = vmax.f32 %v14634_v11, %v14635_v0 }
 0x65e   : > { %v13767_v51 = vmax.f32 %v7852_v9, %v9443_v45  ;;  %v9445_v16 = vadd.f32 %v7346_v27, %v14633_v52  ;;  %v14640_v52 = vld [vmem:[#allocation41_spill] sm:$0xff] }
 0x65f   : > { %v13773_v3 = vmax.f32 %v9444_v14, %v14636_v17  ;;  %v14642_v0 = vmax.f32 %v14640_v52, %v14641_v2  ;;  %v14643_v14 = vld [vmem:[#allocation152_spill] sm:$0xff]  ;;  %v14650_v52 = vld [vmem:[#allocation154_spill] sm:$0xff] }
 0x660   : > { %14632 = vst [vmem:[#allocation49_spill] sm:$0xff] %v13767_v51  ;;  %v13778_v21 = vmax.f32 %v7864_v38, %v9445_v16  ;;  %v14645_v38 = vld [vmem:[#allocation153_spill] sm:$0xff]  ;;  %v13882_v51 = vld [vmem:[#allocation4] sm:$0x7] }
 0x662   : > { %14637 = vst [vmem:[#allocation50_spill] sm:$0xff] %v13778_v21  ;;  %v6980_v40 = vpop.f32.mrb[8].mxu1  ;;  %v7350_v24 = vpop.f32.mrb[104].mxu0 }
 0x663   : > { %v9446_v22 = vadd.f32 %v7350_v24, %v14638_v8  ;;  %v6982_v57 = vpop.f32.mrb[9].mxu1  ;;  %v7352_v48 = vpop.f32.mrb[105].mxu0  ;;  %v14646_v24 = vld [vmem:[#allocation43_spill] sm:$0xff]  ;;  %v14647_v8 = vld [vmem:[#allocation44_spill] sm:$0xff] }
 0x664   : > { %v9447_v9 = vadd.f32 %v7352_v48, %v14639_v60  ;;  %v6984_v45 = vpop.f32.mrb[10].mxu1  ;;  %v7354_v27 = vpop.f32.mrb[106].mxu0  ;;  %v14648_v48 = vmax.f32 %v14646_v24, %v14647_v8 }
 0x665   : > { %v8040_v17 = vmax.f32 %v9446_v22, %v14642_v0  ;;  %v9448_v11 = vadd.f32 %v7354_v27, %v14643_v14  ;;  %v6986_v63 = vpop.f32.mrb[11].mxu1  ;;  %v7356_v55 = vpop.f32.mrb[107].mxu0 }
 0x666   : > { %v13789_v18 = vmax.f32 %v9447_v9, %v7876_v28  ;;  %v9449_v16 = vadd.f32 %v7356_v55, %v14645_v38  ;;  %v14652_v55 = vld [vmem:[#allocation45_spill] sm:$0xff]  ;;  %v14653_v38 = vld [vmem:[#allocation46_spill] sm:$0xff] }
 0x667   : > { %v8052_v60 = vmax.f32 %v9448_v11, %v14648_v48  ;;  %v14654_v10 = vmax.f32 %v14652_v55, %v14653_v38 }
 0x668   : > { %14644 = vst [vmem:[#allocation51_spill] sm:$0xff] %v13789_v18  ;;  %v13798_v2 = vmax.f32 %v9449_v16, %v7888_v25 }
 0x66a   : > { %14649 = vst [vmem:[#allocation52_spill] sm:$0xff] %v13798_v2  ;;  %v6990_v22 = vpop.f32.mrb[12].mxu1  ;;  %v7360_v27 = vpop.f32.mrb[108].mxu0 }
 0x66b   : > { %v9450_v0 = vadd.f32 %v7360_v27, %v14650_v52  ;;  %v6992_v14 = vpop.f32.mrb[13].mxu1  ;;  %v7362_v41 = vpop.f32.mrb[109].mxu0 }
 0x66c   : > { %v9451_v35 = vadd.f32 %v7362_v41, %v14651_v30  ;;  %v6994_v28 = vpop.f32.mrb[14].mxu1  ;;  %v7364_v9 = vpop.f32.mrb[110].mxu0  ;;  %v14657_v41 = vmax.f32 %v13664_v26, %v13685_v4 }
 0x66d   : > { %v7980_v24 = vmax.f32 %v9450_v0, %v14654_v10  ;;  %v6995_v11 = vpop.f32.mrb[15].mxu1  ;;  %v7365_v8 = vpop.f32.mrb[111].mxu0 }
 0x66e   : > { %v13808_v58 = vmax.f32 %v9451_v35, %v7900_v53 }
 0x670   : > { %14655 = vst [vmem:[#allocation53_spill] sm:$0xff] %v13808_v58 }
 0x672   : > { %v13810_v20 = vpop.f32.mrb[16].mxu1 }
 0x673   : > { %v7823_v25 = vmax.f32 %v13716_v12, %v13810_v20  ;;  %v13814_v16 = vpop.f32.mrb[17].mxu1  ;;  %v14656_v20 = vmax.f32 %v13653_v7, %v13669_v19  ;;  %v14658_v7 = vmax.f32 %v13696_v31, %v13707_v23 }
 0x674   : > { %v13818_v48 = vpop.f32.mrb[18].mxu1 }
 0x675   : > { %v13822_v27 = vpop.f32.mrb[19].mxu1 }
 0x67a   : > { %v13826_v59 = vpop.f32.mrb[20].mxu1 }
 0x67b   : > { %v13830_v12 = vpop.f32.mrb[21].mxu1 }
 0x67c   : > { %v13834_v0 = vpop.f32.mrb[22].mxu1 }
 0x67d   : > { %v13838_v35 = vpop.f32.mrb[23].mxu1 }
 0x682   : > { %v7018_v9 = vpop.f32.mrb[24].mxu1 }
 0x683   : > { %v7871_v55 = vmax.f32 %v6980_v40, %v7018_v9  ;;  %v7020_v38 = vpop.f32.mrb[25].mxu1 }
 0x684   : > { %v7872_v11 = vmax.f32 %v6982_v57, %v7020_v38  ;;  %v7022_v8 = vpop.f32.mrb[26].mxu1 }
 0x685   : > { %v13845_v53 = vmax.f32 %v14656_v20, %v7871_v55  ;;  %v7883_v52 = vmax.f32 %v6984_v45, %v7022_v8  ;;  %v7024_v32 = vpop.f32.mrb[27].mxu1  ;;  %v14659_v8 = vmax.f32 %v13719_v44, %v13814_v16 }
 0x686   : > { %v13847_v10 = vmax.f32 %v7872_v11, %v8040_v17  ;;  %v7884_v30 = vmax.f32 %v6986_v63, %v7024_v32  ;;  %v8134_v11 = vlaneseq }
 0x687   : > { %v13852_v58 = vmax.f32 %v14657_v41, %v7883_v52 }
 0x688   : > { %v13854_v28 = vmax.f32 %v7884_v30, %v8052_v60 }
 0x68a   : > { %v7028_v40 = vpop.f32.mrb[28].mxu1 }
 0x68b   : > { %v7895_v57 = vmax.f32 %v6990_v22, %v7028_v40  ;;  %v7030_v9 = vpop.f32.mrb[29].mxu1 }
 0x68c   : > { %v7896_v38 = vmax.f32 %v6992_v14, %v7030_v9  ;;  %v7032_v2 = vpop.f32.mrb[30].mxu1 }
 0x68d   : > { %v13859_v19 = vmax.f32 %v7895_v57, %v14658_v7  ;;  %v7033_v45 = vpop.f32.mrb[31].mxu1  ;;  %v13879_v57 = vshrl.u32 %v8134_v11, 7 }
 0x68e   : > { %v13861_v17 = vmax.f32 %v7896_v38, %v7980_v24 }
 0x68f   : > { %v8136_v45 = vsub.s32 0, %v13879_v57 }
 0x692   : > { %v7036_v63 = vpop.f32.mrb[32].mxu1 }
 0x693   : > { %v7038_v32 = vpop.f32.mrb[33].mxu1 }
 0x694   : > { %v7040_v26 = vpop.f32.mrb[34].mxu1 }
 0x695   : > { %v7042_v4 = vpop.f32.mrb[35].mxu1 }
 0x69a   : > { %v7046_v41 = vpop.f32.mrb[36].mxu1 }
 0x69b   : > { %v7048_v60 = vpop.f32.mrb[37].mxu1 }
 0x69c   : > { %v7050_v52 = vpop.f32.mrb[38].mxu1 }
 0x69d   : > { %v7052_v30 = vpop.f32.mrb[39].mxu1 }
 0x6a2   : > { %v13863_v22 = vpop.f32.mrb[40].mxu1 }
 0x6a3   : > { %v13865_v14 = vpop.f32.mrb[41].mxu1 }
 0x6a4   : > { %v13867_v2 = vpop.f32.mrb[42].mxu1 }
 0x6a5   : > { %v13869_v31 = vpop.f32.mrb[43].mxu1 }
 0x6aa   : > { %v13871_v23 = vpop.f32.mrb[44].mxu1 }
 0x6ab   : > { %v13875_v55 = vpop.f32.mrb[45].mxu1 }
 0x6ac   : > { %v7070_v20 = vpop.f32.mrb[46].mxu1 }
 0x6ad   : > { %v7071_v40 = vpop.f32.mrb[47].mxu1 }
 0x6b2   : > { %v7074_v9 = vpop.f32.mrb[48].mxu1 }
 0x6b3   : > { %v7907_v38 = vmax.f32 %v7036_v63, %v7074_v9  ;;  %v7076_v7 = vpop.f32.mrb[49].mxu1  ;;  %v14660_v63 = vmax.f32 %v13724_v56, %v13818_v48  ;;  %v14663_v56 = vmax.f32 %v14597_v37, %v13587_v50 }
 0x6b4   : > { %v7908_v18 = vmax.f32 %v7038_v32, %v7076_v7  ;;  %v7078_v21 = vpop.f32.mrb[50].mxu1  ;;  %v13894_v32 = vrot.slane %v13882_v51, %v8136_v45 }
 0x6b5   : > { %v7991_v24 = vmax.f32 %v7823_v25, %v7907_v38  ;;  %v7919_v34 = vmax.f32 %v7040_v26, %v7078_v21  ;;  %v7080_v29 = vpop.f32.mrb[51].mxu1  ;;  %v14661_v25 = vmax.f32 %v13732_v15, %v13822_v27  ;;  %v14665_v38 = vmax.f32 %v13751_v61, %v13830_v12 }
 0x6b6   : > { %v13887_v20 = vmax.f32 %v14659_v8, %v7908_v18  ;;  %v7920_v11 = vmax.f32 %v7042_v4, %v7080_v29  ;;  %v14662_v29 = vmax.f32 %v13572_v49, %v13592_v36  ;;  %v14664_v36 = vmax.f32 %v13748_v5, %v13826_v59 }
 0x6b7   : > { %v8090_v40 = vmax.f32 %v7991_v24, %v13578_v46  ;;  %v8003_v9 = vmax.f32 %v14660_v63, %v7919_v34  ;;  %v14668_v61 = vmax.f32 %v13762_v39, %v13838_v35 }
 0x6b8   : > { %v7995_v21 = vmax.f32 %v13729_v13, %v13887_v20  ;;  %v13902_v44 = vmax.f32 %v14661_v25, %v7920_v11  ;;  %v14666_v11 = vmax.f32 %v13610_v1, %v13626_v42  ;;  %v14669_v1 = vmax.f32 %v13621_v43, %v13642_v54  ;;  %v14675_v20 = vld [vmem:[#allocation49_spill] sm:$0xff] }
 0x6b9   : > { %v8114_v46 = vmax.f32 %v8003_v9, %v14662_v29  ;;  %v8111_v34 = vmax.f32 %v14663_v56, %v8090_v40 }
 0x6ba   : > { %v8007_v18 = vmax.f32 %v13740_v33, %v13902_v44  ;;  %v7084_v16 = vpop.f32.mrb[52].mxu1  ;;  %v14676_v33 = vld [vmem:[#allocation50_spill] sm:$0xff] }
 0x6bb   : > { %v7931_v48 = vmax.f32 %v7046_v41, %v7084_v16  ;;  %v7086_v26 = vpop.f32.mrb[53].mxu1  ;;  %v8149_v4 = vadd.f32 %v13894_v32, %v8111_v34  ;;  %v8152_v15 = vadd.f32 %v13894_v32, %v8114_v46 }
 0x6bc   : > { %v7932_v49 = vmax.f32 %v7048_v60, %v7086_v26  ;;  %v7088_v50 = vpop.f32.mrb[54].mxu1  ;;  %v14667_v60 = vmax.f32 %v13754_v62, %v13834_v0 }
 0x6bd   : > { %v8015_v37 = vmax.f32 %v14664_v36, %v7931_v48  ;;  %v7943_v27 = vmax.f32 %v7050_v52, %v7088_v50  ;;  %v7090_v41 = vpop.f32.mrb[55].mxu1  ;;  %v8170_v24 = vmax.f32 %v8149_v4, 0.0  ;;  %v8173_v8 = vmax.f32 %v8152_v15, 0.0 }
 0x6be   : > { %v8016_v7 = vmax.f32 %v14665_v38, %v7932_v49  ;;  %v7944_v45 = vmax.f32 %v7052_v30, %v7090_v41  ;;  %v14672_v49 = vld [vmem:[#allocation47_spill] sm:$0xff]  ;;  %v14674_v41 = vld [vmem:[#allocation48_spill] sm:$0xff] }
 0x6bf   : > { %v8117_v40 = vmax.f32 %v14666_v11, %v8015_v37  ;;  %v8027_v63 = vmax.f32 %v14667_v60, %v7943_v27  ;;  %8207 = vrot.lane.b32.xlu0 %v8170_v24, %s11056_s29  ;;  %8192 = vst.msk [vmem:[%s13917_s28] sm:$0xff] %vm8191_vm1, %v8170_v24  ;;  %8193 = vst.msk [vmem:[%s13917_s28 + $0x8] sm:$0xff] %vm8191_vm1, %v8173_v8  ;;  %v14673_v50 = vmax.f32 %v13596_v47, %v14672_v49  ;;  %v14677_v60 = vld [vmem:[#allocation51_spill] sm:$0xff] }
 0x6c0   : > { %v8019_v5 = vmax.f32 %v13759_v6, %v8016_v7  ;;  %v8028_v59 = vmax.f32 %v14668_v61, %v7944_v45 }
 0x6c1   : > { %v8120_v42 = vmax.f32 %v8027_v63, %v14669_v1  ;;  %v8155_v62 = vadd.f32 %v13894_v32, %v8117_v40  ;;  %v14678_v1 = vld [vmem:[#allocation52_spill] sm:$0xff] }
 0x6c2   : > { %v8031_v12 = vmax.f32 %v13773_v3, %v8028_v59  ;;  %v7094_v0 = vpop.f32.mrb[56].mxu1 }
 0x6c3   : > { %v7955_v52 = vmax.f32 %v13863_v22, %v7094_v0  ;;  %8209 = vrot.lane.b32.xlu0 %v8173_v8, %s11056_s29  ;;  %v7096_v6 = vpop.f32.mrb[57].mxu1  ;;  %v8176_v30 = vmax.f32 %v8155_v62, 0.0  ;;  %v8158_v39 = vadd.f32 %v13894_v32, %v8120_v42 }
 0x6c4   : > { %v7956_v35 = vmax.f32 %v13865_v14, %v7096_v6  ;;  %v7098_v9 = vpop.f32.mrb[58].mxu1 }
 0x6c5   : > { %v8123_v43 = vmax.f32 %v7955_v52, %v13845_v53  ;;  %v7967_v54 = vmax.f32 %v13867_v2, %v7098_v9  ;;  %v7100_v25 = vpop.f32.mrb[59].mxu1  ;;  %8211 = vrot.lane.b32.xlu1 %v8176_v30, %s11056_s29  ;;  %8194 = vst.msk [vmem:[%s13917_s28 + $0x10] sm:$0xff] %vm8191_vm1, %v8176_v30  ;;  %v8179_v3 = vmax.f32 %v8158_v39, 0.0  ;;  %v14679_v52 = vld [vmem:[#allocation53_spill] sm:$0xff] }
 0x6c6   : > { %v13955_v22 = vmax.f32 %v7956_v35, %v13847_v10  ;;  %v7968_v29 = vmax.f32 %v13869_v31, %v7100_v25  ;;  %v14670_v31 = vmax.f32 %v13859_v19, %v13871_v23 }
 0x6c7   : > { %v8126_v46 = vmax.f32 %v7967_v54, %v13852_v58  ;;  %8195 = vst.msk [vmem:[%s13917_s28 + $0x18] sm:$0xff] %vm8191_vm1, %v8179_v3  ;;  %v8161_v53 = vadd.f32 %v13894_v32, %v8123_v43 }
 0x6c8   : > { %v13963_v14 = vmax.f32 %v7968_v29, %v13854_v28  ;;  %v14671_v28 = vmax.f32 %v13875_v55, %v13861_v17 }
 0x6c9   : > { %8213 = vrot.lane.b32.xlu1 %v8179_v3, %s11056_s29  ;;  %v8182_v2 = vmax.f32 %v8161_v53, 0.0  ;;  %v8164_v56 = vadd.f32 %v13894_v32, %v8126_v46 }
 0x6ca   : > { %v7104_v10 = vpop.f32.mrb[60].mxu1 }
 0x6cb   : > { %v8129_v34 = vmax.f32 %v7104_v10, %v14670_v31  ;;  %v7106_v58 = vpop.f32.mrb[61].mxu1  ;;  %8215 = vrot.lane.b32.xlu0 %v8182_v2, %s11056_s29  ;;  %8196 = vst.msk [vmem:[%s13917_s28 + $0x20] sm:$0xff] %vm8191_vm1, %v8182_v2  ;;  %v8185_v16 = vmax.f32 %v8164_v56, 0.0 }
 0x6cc   : > { %v7983_v48 = vmax.f32 %v7106_v58, %v14671_v28  ;;  %v7108_v26 = vpop.f32.mrb[62].mxu1 }
 0x6cd   : > { %v7109_v4 = vpop.f32.mrb[63].mxu1  ;;  %8217 = vrot.lane.b32.xlu1 %v8185_v16, %s11056_s29  ;;  %8197 = vst.msk [vmem:[%s13917_s28 + $0x28] sm:$0xff] %vm8191_vm1, %v8185_v16  ;;  %v8167_v15 = vadd.f32 %v13894_v32, %v8129_v34 }
 0x6cf   : > { %v8188_v19 = vmax.f32 %v8167_v15, 0.0  ;;  %v8140_v15 = vsub.s32 1, %v13879_v57 }
 0x6d1   : > { %8219 = vrot.lane.b32.xlu0 %v8188_v19, %s11056_s29  ;;  %8199 = vst.msk [vmem:[%s13917_s28 + $0x30] sm:$0x7f] %vm8198_vm2, %v8188_v19  ;;  %v8144_v19 = vsub.s32 2, %v13879_v57 }
 0x6d2   : > { %v7368_v23 = vpop.f32.mrb[80].mxu1 }
 0x6d3   : > { %v8091_v17 = vmax.f32 %v7368_v23, %v7995_v21  ;;  %v7370_v55 = vpop.f32.mrb[81].mxu1 }
 0x6d4   : > { %v8092_v36 = vmax.f32 %v7370_v55, %v14673_v50  ;;  %v7372_v37 = vpop.f32.mrb[82].mxu1  ;;  %v14028_v50 = vrot.slane %v13882_v51, %v8140_v15 }
 0x6d5   : > { %v8094_v32 = vmax.f32 %v7372_v37, %v8007_v18  ;;  %v13992_v27 = vpop.f32.mrb[83].mxu1  ;;  %v14031_v37 = vrot.slane %v13882_v51, %v8144_v19 }
 0x6d6   : > { %v8095_v24 = vmax.f32 %v13992_v27, %v14674_v41 }
 0x6da   : > { %v7378_v8 = vpop.f32.mrb[84].mxu1 }
 0x6db   : > { %v13996_v38 = vmax.f32 %v7378_v8, %v8019_v5  ;;  %v13998_v13 = vpop.f32.mrb[85].mxu1 }
 0x6dc   : > { %v8098_v21 = vmax.f32 %v13998_v13, %v14675_v20  ;;  %v7382_v47 = vpop.f32.mrb[86].mxu1 }
 0x6dd   : > { %v14002_v7 = vmax.f32 %v7382_v47, %v8031_v12  ;;  %v14004_v45 = vpop.f32.mrb[87].mxu1 }
 0x6de   : > { %v8101_v44 = vmax.f32 %v14004_v45, %v14676_v33 }
 0x6e2   : > { %v7388_v18 = vpop.f32.mrb[88].mxu1 }
 0x6e3   : > { %v8043_v11 = vmax.f32 %v7388_v18, %v13955_v22  ;;  %v7390_v40 = vpop.f32.mrb[89].mxu1 }
 0x6e4   : > { %v8044_v63 = vmax.f32 %v7390_v40, %v14677_v60  ;;  %v7392_v5 = vpop.f32.mrb[90].mxu1 }
 0x6e5   : > { %v8055_v61 = vmax.f32 %v7392_v5, %v13963_v14  ;;  %v7394_v59 = vpop.f32.mrb[91].mxu1 }
 0x6e6   : > { %v8056_v42 = vmax.f32 %v7394_v59, %v14678_v1 }
 0x6ea   : > { %v7398_v62 = vpop.f32.mrb[92].mxu1 }
 0x6eb   : > { %v8067_v12 = vmax.f32 %v7398_v62, %v7983_v48  ;;  %v7400_v0 = vpop.f32.mrb[93].mxu1 }
 0x6ec   : > { %v8068_v6 = vmax.f32 %v7400_v0, %v14679_v52  ;;  %v7402_v30 = vpop.f32.mrb[94].mxu1 }
 0x6ed   : > { %v7403_v39 = vpop.f32.mrb[95].mxu1 }
 0x6f2   : > { %v7406_v35 = vpop.f32.mrb[96].mxu1 }
 0x6f3   : > { %v7408_v9 = vpop.f32.mrb[97].mxu1 }
 0x6f4   : > { %v7410_v43 = vpop.f32.mrb[98].mxu1 }
 0x6f5   : > { %v7412_v54 = vpop.f32.mrb[99].mxu1 }
 0x6fa   : > { %v7416_v25 = vpop.f32.mrb[100].mxu1 }
 0x6fb   : > { %v7418_v3 = vpop.f32.mrb[101].mxu1 }
 0x6fc   : > { %v7420_v22 = vpop.f32.mrb[102].mxu1 }
 0x6fd   : > { %v7422_v29 = vpop.f32.mrb[103].mxu1 }
 0x702   : > { %v7426_v46 = vpop.f32.mrb[104].mxu1 }
 0x703   : > { %v14013_v53 = vmax.f32 %v7426_v46, %v8043_v11  ;;  %v7428_v14 = vpop.f32.mrb[105].mxu1 }
 0x704   : > { %v14015_v2 = vmax.f32 %v7428_v14, %v8044_v63  ;;  %v7430_v56 = vpop.f32.mrb[106].mxu1 }
 0x705   : > { %v14017_v10 = vmax.f32 %v7430_v56, %v8055_v61  ;;  %v7432_v31 = vpop.f32.mrb[107].mxu1 }
 0x706   : > { %v14019_v34 = vmax.f32 %v7432_v31, %v8056_v42 }
 0x70a   : > { %v7436_v58 = vpop.f32.mrb[108].mxu1 }
 0x70b   : > { %v14021_v16 = vmax.f32 %v7436_v58, %v8067_v12  ;;  %v7438_v28 = vpop.f32.mrb[109].mxu1 }
 0x70c   : > { %v14023_v48 = vmax.f32 %v7438_v28, %v8068_v6  ;;  %v7440_v26 = vpop.f32.mrb[110].mxu1 }
 0x70d   : > { %v7441_v4 = vpop.f32.mrb[111].mxu1 }
 0x712   : > { %v7444_v23 = vpop.f32.mrb[112].mxu1 }
 0x713   : > { %v7911_v55 = vmax.f32 %v7406_v35, %v7444_v23  ;;  %v7446_v49 = vpop.f32.mrb[113].mxu1 }
 0x714   : > { %v7912_v27 = vmax.f32 %v7408_v9, %v7446_v49  ;;  %v7448_v41 = vpop.f32.mrb[114].mxu1 }
 0x715   : > { %v8112_v8 = vmax.f32 %v7911_v55, %v8091_v17  ;;  %v7923_v47 = vmax.f32 %v7410_v43, %v7448_v41  ;;  %v7450_v18 = vpop.f32.mrb[115].mxu1 }
 0x716   : > { %v8113_v11 = vmax.f32 %v7912_v27, %v8092_v36  ;;  %v7924_v40 = vmax.f32 %v7412_v54, %v7450_v18 }
 0x717   : > { %v8115_v60 = vmax.f32 %v7923_v47, %v8094_v32  ;;  %v8150_v57 = vadd.f32 %v14028_v50, %v8112_v8 }
 0x718   : > { %v8151_v63 = vadd.f32 %v14031_v37, %v8113_v11  ;;  %v8116_v5 = vmax.f32 %v7924_v40, %v8095_v24 }
 0x719   : > { %v8171_v61 = vmax.f32 %v8150_v57, 0.0  ;;  %v8153_v59 = vadd.f32 %v14028_v50, %v8115_v60 }
 0x71a   : > { %v8172_v51 = vmax.f32 %v8151_v63, 0.0  ;;  %v8154_v1 = vadd.f32 %v14031_v37, %v8116_v5  ;;  %v7454_v17 = vpop.f32.mrb[116].mxu1 }
 0x71b   : > { %v7935_v42 = vmax.f32 %v7416_v25, %v7454_v17  ;;  %v7456_v62 = vpop.f32.mrb[117].mxu1  ;;  %8251 = vrot.lane.b32.xlu1 %v8171_v61, %s11056_s29  ;;  %9275 = vst.msk [vmem:[%s13917_s28 + $0x70] sm:$0xff] %vm8191_vm1, %v8171_v61  ;;  %v8174_v36 = vmax.f32 %v8153_v59, 0.0 }
 0x71c   : > { %9289 = vst.msk [vmem:[%s13917_s28 + $0xe0] sm:$0xff] %vm8191_vm1, %v8172_v51  ;;  %v8175_v32 = vmax.f32 %v8154_v1, 0.0  ;;  %v7936_v24 = vmax.f32 %v7418_v3, %v7456_v62  ;;  %v7458_v12 = vpop.f32.mrb[118].mxu1 }
 0x71d   : > { %v8118_v0 = vmax.f32 %v7935_v42, %v13996_v38  ;;  %v7947_v52 = vmax.f32 %v7420_v22, %v7458_v12  ;;  %v7460_v6 = vpop.f32.mrb[119].mxu1  ;;  %8253 = vrot.lane.b32.xlu0 %v8174_v36, %s11056_s29  ;;  %9276 = vst.msk [vmem:[%s13917_s28 + $0x78] sm:$0xff] %vm8191_vm1, %v8174_v36 }
 0x71e   : > { %9290 = vst.msk [vmem:[%s13917_s28 + $0xe8] sm:$0xff] %vm8191_vm1, %v8175_v32  ;;  %v8119_v30 = vmax.f32 %v7936_v24, %v8098_v21  ;;  %v7948_v39 = vmax.f32 %v7422_v29, %v7460_v6 }
 0x71f   : > { %v8121_v35 = vmax.f32 %v7947_v52, %v14002_v7  ;;  %v8156_v9 = vadd.f32 %v14028_v50, %v8118_v0 }
 0x720   : > { %v8157_v38 = vadd.f32 %v14031_v37, %v8119_v30  ;;  %v8122_v43 = vmax.f32 %v7948_v39, %v8101_v44 }
 0x721   : > { %v8177_v54 = vmax.f32 %v8156_v9, 0.0  ;;  %v8159_v25 = vadd.f32 %v14028_v50, %v8121_v35 }
 0x722   : > { %v8178_v3 = vmax.f32 %v8157_v38, 0.0  ;;  %v8160_v13 = vadd.f32 %v14031_v37, %v8122_v43  ;;  %v7464_v20 = vpop.f32.mrb[120].mxu1 }
 0x723   : > { %v8124_v21 = vmax.f32 %v7464_v20, %v14013_v53  ;;  %v7466_v7 = vpop.f32.mrb[121].mxu1  ;;  %8255 = vrot.lane.b32.xlu1 %v8177_v54, %s11056_s29  ;;  %9277 = vst.msk [vmem:[%s13917_s28 + $0x80] sm:$0xff] %vm8191_vm1, %v8177_v54  ;;  %v8180_v22 = vmax.f32 %v8159_v25, 0.0 }
 0x724   : > { %9291 = vst.msk [vmem:[%s13917_s28 + $0xf0] sm:$0xff] %vm8191_vm1, %v8178_v3  ;;  %v8181_v45 = vmax.f32 %v8160_v13, 0.0  ;;  %v8125_v33 = vmax.f32 %v7466_v7, %v14015_v2  ;;  %v7468_v44 = vpop.f32.mrb[122].mxu1 }
 0x725   : > { %v8127_v29 = vmax.f32 %v7468_v44, %v14017_v10  ;;  %v7470_v46 = vpop.f32.mrb[123].mxu1  ;;  %8257 = vrot.lane.b32.xlu0 %v8180_v22, %s11056_s29  ;;  %9278 = vst.msk [vmem:[%s13917_s28 + $0x88] sm:$0xff] %vm8191_vm1, %v8180_v22  ;;  %v8162_v53 = vadd.f32 %v14028_v50, %v8124_v21 }
 0x726   : > { %9292 = vst.msk [vmem:[%s13917_s28 + $0xf8] sm:$0xff] %vm8191_vm1, %v8181_v45  ;;  %v8163_v14 = vadd.f32 %v14031_v37, %v8125_v33  ;;  %v8128_v56 = vmax.f32 %v7470_v46, %v14019_v34 }
 0x727   : > { %v8183_v2 = vmax.f32 %v8162_v53, 0.0  ;;  %v8165_v31 = vadd.f32 %v14028_v50, %v8127_v29 }
 0x728   : > { %v8184_v58 = vmax.f32 %v8163_v14, 0.0  ;;  %v8166_v10 = vadd.f32 %v14031_v37, %v8128_v56 }
 0x729   : > { %8259 = vrot.lane.b32.xlu1 %v8183_v2, %s11056_s29  ;;  %9279 = vst.msk [vmem:[%s13917_s28 + $0x90] sm:$0xff] %vm8191_vm1, %v8183_v2  ;;  %v8186_v28 = vmax.f32 %v8165_v31, 0.0 }
 0x72a   : > { %9293 = vst.msk [vmem:[%s13917_s28 + $0x100] sm:$0xff] %vm8191_vm1, %v8184_v58  ;;  %v8187_v26 = vmax.f32 %v8166_v10, 0.0  ;;  %v7474_v4 = vpop.f32.mrb[124].mxu1 }
 0x72b   : > { %v8130_v15 = vmax.f32 %v7474_v4, %v14021_v16  ;;  %v7476_v34 = vpop.f32.mrb[125].mxu1  ;;  %8261 = vrot.lane.b32.xlu0 %v8186_v28, %s11056_s29  ;;  %9280 = vst.msk [vmem:[%s13917_s28 + $0x98] sm:$0xff] %vm8191_vm1, %v8186_v28 }
 0x72c   : > { %9294 = vst.msk [vmem:[%s13917_s28 + $0x108] sm:$0xff] %vm8191_vm1, %v8187_v26  ;;  %v8131_v19 = vmax.f32 %v7476_v34, %v14023_v48  ;;  %v7478_v23 = vpop.f32.mrb[126].mxu1 }
 0x72d   : > { %v7479_v55 = vpop.f32.mrb[127].mxu1  ;;  %v8168_v49 = vadd.f32 %v14028_v50, %v8130_v15 }
 0x72e   : > { %v8169_v16 = vadd.f32 %v14031_v37, %v8131_v19 }
 0x72f   : > { %v8189_v27 = vmax.f32 %v8168_v49, 0.0 }
 0x730   : > { %v8190_v41 = vmax.f32 %v8169_v16, 0.0 }
 0x731   : > { %v8208_v8 = vpop.permute.xlu0 %8207  ;;  %8263 = vrot.lane.b32.xlu1 %v8189_v27, %s11056_s29  ;;  %9281 = vst.msk [vmem:[%s13917_s28 + $0xa0] sm:$0x7f] %vm8198_vm2, %v8189_v27 }
 0x732   : > { %9268 = vst.msk [vmem:[%s13917_s28 + $0x38] sm:$0xff] %vm8191_vm1, %v8208_v8 }
 0x733   : > { %9295 = vst.msk [vmem:[%s13917_s28 + $0x110] sm:$0x7f] %vm8198_vm2, %v8190_v41 }
 0x735   : > { %v8210_v48 = vpop.permute.xlu0 %8209 }
 0x736   : > { %9269 = vst.msk [vmem:[%s13917_s28 + $0x40] sm:$0xff] %vm8191_vm1, %v8210_v48 }
 0x737   : > { %v8212_v50 = vpop.permute.xlu1 %8211 }
 0x738   : > { %9270 = vst.msk [vmem:[%s13917_s28 + $0x48] sm:$0xff] %vm8191_vm1, %v8212_v50 }
 0x73b   : > { %v8214_v37 = vpop.permute.xlu1 %8213 }
 0x73c   : > { %9271 = vst.msk [vmem:[%s13917_s28 + $0x50] sm:$0xff] %vm8191_vm1, %v8214_v37 }
 0x73d   : > { %v8216_v47 = vpop.permute.xlu0 %8215 }
 0x73e   : > { %9272 = vst.msk [vmem:[%s13917_s28 + $0x58] sm:$0xff] %vm8191_vm1, %v8216_v47 }
 0x73f   : > { %v8218_v18 = vpop.permute.xlu1 %8217 }
 0x740   : > { %9273 = vst.msk [vmem:[%s13917_s28 + $0x60] sm:$0xff] %vm8191_vm1, %v8218_v18 }
 0x743   : > { %v8220_v11 = vpop.permute.xlu0 %8219 }
 0x744   : > { %9274 = vst.msk [vmem:[%s13917_s28 + $0x68] sm:$0x7f] %vm8198_vm2, %v8220_v11 }
 0x78d   : > { %v8252_v40 = vpop.permute.xlu1 %8251 }
 0x78e   : > { %9282 = vst.msk [vmem:[%s13917_s28 + $0xa8] sm:$0xff] %vm8191_vm1, %v8252_v40 }
 0x78f   : > { %v8254_v60 = vpop.permute.xlu0 %8253 }
 0x790   : > { %9283 = vst.msk [vmem:[%s13917_s28 + $0xb0] sm:$0xff] %vm8191_vm1, %v8254_v60 }
 0x795   : > { %v8256_v57 = vpop.permute.xlu1 %8255 }
 0x796   : > { %9284 = vst.msk [vmem:[%s13917_s28 + $0xb8] sm:$0xff] %vm8191_vm1, %v8256_v57 }
 0x797   : > { %v8258_v63 = vpop.permute.xlu0 %8257 }
 0x798   : > { %9285 = vst.msk [vmem:[%s13917_s28 + $0xc0] sm:$0xff] %vm8191_vm1, %v8258_v63 }
 0x79b   : > { %v8260_v5 = vpop.permute.xlu1 %8259 }
 0x79c   : > { %9286 = vst.msk [vmem:[%s13917_s28 + $0xc8] sm:$0xff] %vm8191_vm1, %v8260_v5 }
 0x79d   : > { %v8262_v61 = vpop.permute.xlu0 %8261 }
 0x79e   : > { %9287 = vst.msk [vmem:[%s13917_s28 + $0xd0] sm:$0xff] %vm8191_vm1, %v8262_v61 }
 0x7a3   : > { %v8264_v59 = vpop.permute.xlu1 %8263 }
 0x7a4   : > { %9288 = vst.msk [vmem:[%s13917_s28 + $0xd8] sm:$0x7f] %vm8198_vm2, %v8264_v59 }
 0x7a5 PF: > { %s16_s15 = sadd.s32 1, %s11050_s15  }
 0x7a6   : > { %p13_p5 = scmp.ge.s32.totalorder %s16_s15, 4  }
 0x7a8   :  { %15 = sbr.rel (!%p13_p5) target bundleno = 2 (0x2), region = 81 }
 0x7af   :  { %8309 = vsyncpa [#allocation3], 1 }
 0x7b0   :  { %8311 = vsyncpa [#allocation3 + $0x1], 1 }
 0x7b1   :  { %8312 = vsyncpa [#allocation5], 1 }

// kernel: convnet_forward.3
= control target key start
LH: loop header
LB: loop body
LE: loop exit
PB: predicated region body
PF: predicated region fallthrough
CT: control target
= control target key end

     0   :  { %10 = vsyncpa [#allocation4], 0  ;;  %s12413_s0 = inlined_call_operand.vmem [shape: bf16[2,15360], index: 0, kind: input, shape index: {}]   ;;  %s12414_s1 = inlined_call_operand.hbm [shape: bf16[15360,256], index: 1, kind: input, shape index: {}]   ;;  %s12415_s2 = inlined_call_operand.hbm [shape: f32[1,256], index: 2, kind: input, shape index: {}]   ;;  %s12416_s3 = inlined_call_operand.vmem [shape: f32[256,10], index: 3, kind: input, shape index: {}]   ;;  %s12417_s4 = inlined_call_operand.hbm [shape: f32[1,10], index: 4, kind: input, shape index: {}]   ;;  %s12418_s5 = inlined_call_operand.hbm [shape: f32[2,10], index: 5, kind: output, shape index: {}]  }
   0x1   :  { %12 = vsyncpa [#allocation4 + $0x1], 0 }
   0x2   :  { %13 = vsyncpa [#allocation7], 0 }
   0x3   :  { %14 = vsyncpa [#allocation5], 0  ;;  %s10846_s18 = smov 0   ;;  %s10848_s19 = smov 0  }
   0x4   :  { %s10850_s20 = smov 0   ;;  %s10852_s21 = smov 0  }
   0x5 LB: > { %s10865_s22 = sadd.s32 4294967295, %s10805_s21   ;;  %s10868_s23 = sadd.s32 1, %s10805_s21   ;;  %s10805_s21 = sphi %s10852_s21, %s12437_s21   ;;  %s10801_s20 = sphi %s10850_s20, %s12436_s20   ;;  %s10797_s19 = sphi %s10848_s19, %s12435_s19   ;;  %s10793_s18 = sphi %s10846_s18, %s12434_s18  }
   0x6   : > { %s50_s24 = ssub.s32 %s10805_s21, %s10868_s23  ;;  %s53_s25 = sadd.s32 1, %s10801_s20 }
   0x7   : > { %p51_p0 = scmp.eq.s32.totalorder %s50_s24, 0  ;;  %p60_p1 = scmp.ne.s32.totalorder %s10801_s20, %s10797_s19 }
   0x8   : > { %p61_p2 = scmp.eq.s32.totalorder %s10805_s21, 0  ;;  %p66_p3 = scmp.ne.s32.totalorder %s10797_s19, %s10793_s18 }
   0x9   : > { %s10878_s26 = scalar_select %p51_p0, %s10801_s20, %s53_s25  }
   0xa   : > { %p10880_p4 = por %p61_p2, %p60_p1  ;;  %p12419_p5 = scmp.eq.s32.totalorder %s10865_s22, 0 }
   0xb   : > { %p7963_p6 = scmp.ge.s32.totalorder %s10805_s21, 1  ;;  %p161_p7 = scmp.lt.s32.totalorder %s10805_s21, 3 }
   0xc   : > { %p10889_p8 = por %p12419_p5, %p66_p3  ;;  %s10807_s30 = smov [#allocation6]  }
   0xd   : > { %p10894_p10 = pnand %p7963_p6, %p161_p7  ;;  %s174_s6 = sshll.u32 %s10807_s30, 4  ;;  %s175_s6 = int_to_ptr.vmem [resolvable:$true] %s174_s6 }
   0xe   : > { %s12424_s28 = scalar_select %p10889_p8, 1, 0 }
   0xf   : > { %s12425_s29 = scalar_select %p10894_p10, 1, 0 }
  0x10   : > { %p9140_p11 = pneg %p10894_p10  ;;  %p9153_p12 = scmp.lt.s32.totalorder %s10805_s21, 2 }
  0x11   : > { %s10808_s8 = smov [#allocation8]   ;;  %s207_s11 = sand.u32 1, %s10801_s20  }
  0x12   : > { %p10903_p13 = pnand %p9140_p11, %p12419_p5  ;;  %s188_s9 = sshll.u32 %s10808_s8, 4  ;;  %s10913_s9 = int_to_ptr.vmem [resolvable:$true] %s188_s9 }
  0x13   : > { %p10909_p0 = pnand %p9153_p12, %p10880_p4  ;;  %s10651_s14 = scalar_lea.hbm %s12415_s2, 32 }
  0x14   : > { %p10652_p1 = scmp.ne.s32.totalorder %s12415_s2, %s10651_s14  ;;  %p10653_p2 = pneg %p10903_p13 }
  0x15   : > { %s12427_s10 = scalar_select %p10909_p0, 1, 0 }
  0x16   : > { %p10654_p3 = pnand %p10653_p2, %p10652_p1  ;;  %p10658_p6 = scmp.lt.u32.totalorder %s10651_s14, %s12415_s2 }
  0x18   : > { %p10655_p4 = pneg %p10654_p3 }
  0x1a   : > { %p10660_p7 = pnand %p10658_p6, %p10655_p4 }
  0x1c   : > { %10663 = shalt.err (!%p10660_p7)
}
  0x1d   : > { %s10664_s24 = scalar_lea.vmem %s175_s6, 32  ;;  %p10672_p5 = scmp.lt.s32.totalorder %s175_s6, %s175_s6 }
  0x1e   : > { %p10665_p11 = scmp.ne.s32.totalorder %s175_s6, %s10664_s24  ;;  %p10673_p8 = scmp.lt.s32.totalorder %s10664_s24, %s10664_s24 }
  0x20   : > { %p10667_p12 = pnand %p10665_p11, %p10653_p2  ;;  %p10674_p10 = por %p10673_p8, %p10672_p5 }
  0x22   : > { %p10668_p9 = pneg %p10667_p12 }
  0x24   : > { %p10675_p0 = pnand %p10674_p10, %p10668_p9 }
  0x26   : > { %10678 = shalt.err (!%p10675_p0)
}
  0x27   : > { %9143 = dma.hbm_to_vmem [thread:$0]  (!%p10903_p13), %s12415_s2, 32, %s175_s6, [#allocation7]  }
  0x28   : > { %s10679_s12 = scalar_lea.hbm %s12417_s4, 16 }
  0x29   : > { %p10680_p1 = scmp.ne.s32.totalorder %s12417_s4, %s10679_s12  ;;  %p10686_p9 = scmp.lt.u32.totalorder %s10679_s12, %s12417_s4 }
  0x2b   : > { %p10682_p5 = pnand %p10680_p1, %p10653_p2 }
  0x2d   : > { %p10683_p8 = pneg %p10682_p5 }
  0x2f   : > { %p10688_p10 = pnand %p10686_p9, %p10683_p8 }
  0x31   : > { %10691 = shalt.err (!%p10688_p10)
}
  0x32   : > { %s10692_s6 = scalar_lea.vmem %s10913_s9, 16  ;;  %s10699_s17 = scalar_lea.vmem %s10913_s9, 32 }
  0x33   : > { %p10693_p0 = scmp.ne.s32.totalorder %s10913_s9, %s10692_s6  ;;  %p10700_p6 = scmp.lt.s32.totalorder %s10913_s9, %s10913_s9 }
  0x34   : > { %p10701_p7 = scmp.lt.s32.totalorder %s10699_s17, %s10692_s6 }
  0x35   : > { %p10695_p3 = pnand %p10693_p0, %p10653_p2 }
  0x36   : > { %p10702_p11 = por %p10701_p7, %p10700_p6 }
  0x37   : > { %p10696_p4 = pneg %p10695_p3 }
  0x39   : > { %p10703_p12 = pnand %p10702_p11, %p10696_p4 }
  0x3b   : > { %10706 = shalt.err (!%p10703_p12)
}
  0x3c   : > { %9146 = dma.hbm_to_vmem [thread:$0]  (!%p10903_p13), %s12417_s4, 16, %s10913_s9, [#allocation7]  }
  0x3d   : > { %s9124_s25 = smul.u32 7680, %s207_s11  ;;  %s10976_s14 = scalar_lea.sflag [#allocation4], %s207_s11 }
  0x3e   : > { %s8942_s27 = smul.u32 122880, %s10805_s21  ;;  %p12428_p2 = scmp.ne.s32.totalorder %s12427_s10, 0 }
  0x3f   : > { %s211_s7 = scalar_lea.vmem [#allocation3], %s9124_s25  ;;  %s10712_s16 = scalar_lea.hbm %s12414_s1, 245760 }
  0x40   : > { %s10970_s12 = scalar_lea.hbm %s12414_s1, %s8942_s27  ;;  %s219_s13 = sshll.u32 %s211_s7, 4  ;;  %s10972_s13 = int_to_ptr.vmem [resolvable:$true] %s219_s13 }
  0x41   : > { %s10707_s9 = scalar_lea.hbm %s10970_s12, 122880  ;;  %p10709_p1 = pneg %p12428_p2 }
  0x42   : > { %p10708_p13 = scmp.ne.s32.totalorder %s10970_s12, %s10707_s9  ;;  %p10713_p9 = scmp.lt.u32.totalorder %s10970_s12, %s12414_s1 }
  0x43   : > { %p10714_p10 = scmp.lt.u32.totalorder %s10712_s16, %s10707_s9  ;;  %p10716_p3 = scmp.lt.u32.totalorder %s10707_s9, %s10970_s12 }
  0x44   : > { %p10710_p5 = pnand %p10709_p1, %p10708_p13 }
  0x45   : > { %p10715_p0 = por %p10714_p10, %p10713_p9 }
  0x46   : > { %p10711_p8 = pneg %p10710_p5 }
  0x47   : > { %p10717_p4 = por %p10716_p3, %p10715_p0 }
  0x49   : > { %p10718_p6 = pnand %p10717_p4, %p10711_p8 }
  0x4b   : > { %10721 = shalt.err (!%p10718_p6)
}
  0x4c   : > { %s10722_s11 = scalar_lea.vmem %s10972_s13, 122880  ;;  %s10809_s18 = smov [#allocation3]  }
  0x4d   : > { %p10723_p7 = scmp.ne.s32.totalorder %s10972_s13, %s10722_s11  ;;  %s10727_s24 = sshll.u32 %s10809_s18, 4  ;;  %s10728_s24 = int_to_ptr.vmem [resolvable:$false] %s10727_s24 }
  0x4e   : > { %s10729_s25 = scalar_lea.vmem %s10728_s24, 245760  ;;  %p10730_p13 = scmp.lt.s32.totalorder %s10972_s13, %s10728_s24 }
  0x4f   : > { %p10725_p11 = pnand %p10723_p7, %p10709_p1  ;;  %p10731_p5 = scmp.lt.s32.totalorder %s10729_s25, %s10722_s11 }
  0x51   : > { %p10726_p12 = pneg %p10725_p11  ;;  %p10732_p9 = por %p10731_p5, %p10730_p13 }
  0x53   : > { %p10733_p10 = pnand %p10732_p9, %p10726_p12 }
  0x55   : > { %10736 = shalt.err (!%p10733_p10)
}
  0x56   : > { %s10810_s27 = smov 128   ;;  %s10811_s30 = smov 8  }
  0x57   : > { %9150 = dma.hbm_to_vmem [thread:$0]  (!%p12428_p2), %s10970_s12, 122880, %s10972_s13, %s10976_s14, %s10810_s27, %s10810_s27, %s10811_s30  }
  0x58   : > { %p12429_p1 = scmp.ne.s32.totalorder %s12425_s29, 0 }
  0x59   : > { %s233_s8 = sand.u32 (!%p12429_p1), 1, %s10797_s19   ;;  %p12430_p8 = scmp.ne.s32.totalorder (!%p12429_p1), %s12424_s28, 0 }
  0x5a   : > { %231 = sbr.rel (%p12429_p1) target bundleno = 1553 (0x611), region = 40  ;;  %s234_s9 = scalar_lea.sflag (!%p12429_p1), [#allocation4], %s233_s8 }
  0x5b   : > { %s9125_s7 = smul.u32 (!%p12429_p1), 7680, %s233_s8 }
  0x5d   : > { %s11007_s21 = scalar_lea.vmem (!%p12429_p1), [#allocation3], %s9125_s7 }
  0x61   : > { %10780 = dma.done.wait (%p12430_p8), %s234_s9, 122880  }
  0x62   : > { %10782 = vsyncadd (%p12430_p8), %s234_s9, 4294844416  ;;  %p12431_p0 = scmp.eq.s32.totalorder %s10865_s22, 0 }
  0x64   : > { %10784 = dma.done.wait (%p12431_p0), [#allocation7], 48   ;;  %p12432_p2 = pmov %p12431_p0 }
  0x65   : > { %s271_s29 = smul.u32 60, %s10865_s22  ;;  %p12433_p4 = scmp.ne.s32.totalorder %s10865_s22, 0 }
  0x66   : > { %10786 = vsyncadd (%p12432_p2), [#allocation7], 4294967248  ;;  %v10812_v0 = vmov (!%p12433_p4), 0.0  }
  0x67   : > { %p272_p3 = scmp.lt.s32.totalorder %s271_s29, 119  ;;  %280 = sbr.rel (%p12433_p4) target bundleno = 110 (0x6e), region = 56  ;;  %281 = vst [vmem:[#allocation2] sm:$0xf] (!%p12433_p4), %v10812_v0 }
  0x69   : > { %s12439_s29 = smov (!%p272_p3, %s271_s29), 119 }
  0x6a   : > { %s11021_s13 = scalar_lea.vmem %s12413_s0, %s12439_s29 }
  0x6e PF: > { %v9198_v1 = vld [vmem:[%s11007_s21 + $0x4] ss:$8 sps:$4 sm:$0xff]   ;;  %v9202_v3 = vld [vmem:[%s11007_s21] ss:$8 sps:$4 sm:$0xff]   ;;  %v9204_v5 = vld [vmem:[%s11007_s21 + $0x14] ss:$8 sps:$4 sm:$0xff]   ;;  %v1263_v41 = vlaneseq }
  0x6f   : > { %v9200_v2 = vld [vmem:[%s11007_s21 + $0xf04] ss:$8 sps:$4 sm:$0xff]   ;;  %6486 = vmatprep.subr.bf16.mxu1 %v9198_v1  ;;  %v9203_v4 = vld [vmem:[%s11007_s21 + $0xf00] ss:$8 sps:$4 sm:$0xff]   ;;  %v9206_v6 = vld [vmem:[%s11007_s21 + $0xf14] ss:$8 sps:$4 sm:$0xff]  }
  0x70   : > { %7101 = vmatprep.subr.bf16.mxu0 %v9200_v2  ;;  %6487 = vmatpush1.bf16.msra.mxu1 %v9202_v3  ;;  %v9208_v7 = vld [vmem:[%s11007_s21 + $0x10] ss:$8 sps:$4 sm:$0xff]   ;;  %v9210_v9 = vld [vmem:[%s11007_s21 + $0x24] ss:$8 sps:$4 sm:$0xff]   ;;  %v9214_v11 = vld [vmem:[%s11007_s21 + $0x20] ss:$8 sps:$4 sm:$0xff]  }
  0x71   : > { %7102 = vmatpush1.bf16.msra.mxu0 %v9203_v4  ;;  %6488 = vmatprep.subr.bf16.mxu1 %v9204_v5  ;;  %v9209_v8 = vld [vmem:[%s11007_s21 + $0xf10] ss:$8 sps:$4 sm:$0xff]   ;;  %v9212_v10 = vld [vmem:[%s11007_s21 + $0xf24] ss:$8 sps:$4 sm:$0xff]   ;;  %v9215_v12 = vld [vmem:[%s11007_s21 + $0xf20] ss:$8 sps:$4 sm:$0xff]  }
  0x72   : > { %7103 = vmatprep.subr.bf16.mxu0 %v9206_v6  ;;  %v9216_v13 = vld [vmem:[%s11007_s21 + $0x34] ss:$8 sps:$4 sm:$0xff]   ;;  %v9220_v15 = vld [vmem:[%s11007_s21 + $0x30] ss:$8 sps:$4 sm:$0xff]   ;;  %v9222_v17 = vld [vmem:[%s11007_s21 + $0x44] ss:$8 sps:$4 sm:$0xff]  }
  0x73   : > { %v9218_v14 = vld [vmem:[%s11007_s21 + $0xf34] ss:$8 sps:$4 sm:$0xff]   ;;  %v9221_v16 = vld [vmem:[%s11007_s21 + $0xf30] ss:$8 sps:$4 sm:$0xff]   ;;  %v9224_v18 = vld [vmem:[%s11007_s21 + $0xf44] ss:$8 sps:$4 sm:$0xff]  }
  0x74   : > { %6489 = vmatpush1.bf16.msra.mxu1 %v9208_v7  ;;  %v9226_v19 = vld [vmem:[%s11007_s21 + $0x40] ss:$8 sps:$4 sm:$0xff]   ;;  %v9228_v21 = vld [vmem:[%s11007_s21 + $0x54] ss:$8 sps:$4 sm:$0xff]   ;;  %v9232_v23 = vld [vmem:[%s11007_s21 + $0x50] ss:$8 sps:$4 sm:$0xff]  }
  0x75   : > { %7104 = vmatpush1.bf16.msra.mxu0 %v9209_v8  ;;  %6490 = vmatprep.subr.bf16.mxu1 %v9210_v9  ;;  %v9227_v20 = vld [vmem:[%s11007_s21 + $0xf40] ss:$8 sps:$4 sm:$0xff]   ;;  %v9230_v22 = vld [vmem:[%s11007_s21 + $0xf54] ss:$8 sps:$4 sm:$0xff]   ;;  %v9233_v24 = vld [vmem:[%s11007_s21 + $0xf50] ss:$8 sps:$4 sm:$0xff]  }
  0x76   : > { %7105 = vmatprep.subr.bf16.mxu0 %v9212_v10  ;;  %v9234_v25 = vld [vmem:[%s11007_s21 + $0x64] ss:$8 sps:$4 sm:$0xff]   ;;  %v9238_v27 = vld [vmem:[%s11007_s21 + $0x60] ss:$8 sps:$4 sm:$0xff]   ;;  %v9240_v29 = vld [vmem:[%s11007_s21 + $0x74] ss:$8 sps:$4 sm:$0xff]  }
  0x77   : > { %v9236_v26 = vld [vmem:[%s11007_s21 + $0xf64] ss:$8 sps:$4 sm:$0xff]   ;;  %v9239_v28 = vld [vmem:[%s11007_s21 + $0xf60] ss:$8 sps:$4 sm:$0xff]   ;;  %v9242_v30 = vld [vmem:[%s11007_s21 + $0xf74] ss:$8 sps:$4 sm:$0xff]  }
  0x78   : > { %6491 = vmatpush1.bf16.msra.mxu1 %v9214_v11  ;;  %v9244_v31 = vld [vmem:[%s11007_s21 + $0x70] ss:$8 sps:$4 sm:$0xff]   ;;  %v9246_v33 = vld [vmem:[%s11007_s21 + $0x84] ss:$8 sps:$4 sm:$0xff]   ;;  %v9250_v35 = vld [vmem:[%s11007_s21 + $0x80] ss:$8 sps:$4 sm:$0xff]  }
  0x79   : > { %7106 = vmatpush1.bf16.msra.mxu0 %v9215_v12  ;;  %6492 = vmatprep.subr.bf16.mxu1 %v9216_v13  ;;  %v9245_v32 = vld [vmem:[%s11007_s21 + $0xf70] ss:$8 sps:$4 sm:$0xff]   ;;  %v9248_v34 = vld [vmem:[%s11007_s21 + $0xf84] ss:$8 sps:$4 sm:$0xff]   ;;  %v9251_v36 = vld [vmem:[%s11007_s21 + $0xf80] ss:$8 sps:$4 sm:$0xff]  }
  0x7a   : > { %7107 = vmatprep.subr.bf16.mxu0 %v9218_v14  ;;  %v9252_v37 = vld [vmem:[%s11007_s21 + $0x94] ss:$8 sps:$4 sm:$0xff]   ;;  %v10813_v39 = vmov 1966171168   ;;  %v9256_v42 = vld [vmem:[%s11007_s21 + $0x90] ss:$8 sps:$4 sm:$0xff]  }
  0x7b   : > { %v9254_v38 = vld [vmem:[%s11007_s21 + $0xf94] ss:$8 sps:$4 sm:$0xff]   ;;  %v1261_v40 = vunpack.c.l.s4 %v10813_v39  ;;  %v9257_v43 = vld [vmem:[%s11007_s21 + $0xf90] ss:$8 sps:$4 sm:$0xff]   ;;  %v9258_v44 = vld [vmem:[%s11007_s21 + $0xa4] ss:$8 sps:$4 sm:$0xff]  }
  0x7c   : > { %6493 = vmatpush1.bf16.msra.mxu1 %v9220_v15  ;;  %v9260_v45 = vld [vmem:[%s11007_s21 + $0xfa4] ss:$8 sps:$4 sm:$0xff]   ;;  %v11067_v47 = vshrl.u32 %v1263_v41, 7  ;;  %v9262_v48 = vld [vmem:[%s11007_s21 + $0xa0] ss:$8 sps:$4 sm:$0xff]   ;;  %v286_v57 = vld [vmem:[%s11021_s13 + $0x18] sm:$0xff] }
  0x7d   : > { %7108 = vmatpush1.bf16.msra.mxu0 %v9221_v16  ;;  %6494 = vmatprep.subr.bf16.mxu1 %v9222_v17  ;;  %v1262_v46 = vunpack.c.0.s8 %v1261_v40  ;;  %v9263_v49 = vld [vmem:[%s11007_s21 + $0xfa0] ss:$8 sps:$4 sm:$0xff]   ;;  %v9264_v50 = vld [vmem:[%s11007_s21 + $0xb4] ss:$8 sps:$4 sm:$0xff]   ;;  %v9268_v54 = vld [vmem:[%s11007_s21 + $0xb0] ss:$8 sps:$4 sm:$0xff]   ;;  %v1406_v61 = vcombine.high %v286_v57, %v286_v57 }
  0x7e   : > { %7109 = vmatprep.subr.bf16.mxu0 %v9224_v18  ;;  %v9266_v51 = vld [vmem:[%s11007_s21 + $0xfb4] ss:$8 sps:$4 sm:$0xff]   ;;  %v9269_v56 = vld [vmem:[%s11007_s21 + $0xfb0] ss:$8 sps:$4 sm:$0xff]   ;;  %v9270_v58 = vld [vmem:[%s11007_s21 + $0xc4] ss:$8 sps:$4 sm:$0xff]  }
  0x7f   : > { %v11074_v52 = vsub.s32 %v1262_v46, %v11067_v47  ;;  %v11077_v53 = vld [vmem:[%s11021_s13] sm:$0xff]  ;;  %v9272_v59 = vld [vmem:[%s11007_s21 + $0xfc4] ss:$8 sps:$4 sm:$0xff]   ;;  %v9280_v6 = vld [vmem:[%s11007_s21 + $0xd0] ss:$8 sps:$4 sm:$0xff]   ;;  %p8934_p6 = scmp.ne.s32.totalorder %s10865_s22, 1 }
  0x80   : > { %6495 = vmatpush1.bf16.msra.mxu1 %v9226_v19  ;;  %v9274_v0 = vld [vmem:[%s11007_s21 + $0xc0] ss:$8 sps:$4 sm:$0xff]   ;;  %v9276_v2 = vld [vmem:[%s11007_s21 + $0xd4] ss:$8 sps:$4 sm:$0xff]   ;;  %v9281_v7 = vld [vmem:[%s11007_s21 + $0xfd0] ss:$8 sps:$4 sm:$0xff]  }
  0x81   : > { %7110 = vmatpush1.bf16.msra.mxu0 %v9227_v20  ;;  %6496 = vmatprep.subr.bf16.mxu1 %v9228_v21  ;;  %v1266_v55 = vrot.slane %v11077_v53, %v11074_v52  ;;  %v1420_v63 = vrot.slane %v1406_v61, %v11074_v52  ;;  %v9275_v1 = vld [vmem:[%s11007_s21 + $0xfc0] ss:$8 sps:$4 sm:$0xff]   ;;  %v9278_v3 = vld [vmem:[%s11007_s21 + $0xfd4] ss:$8 sps:$4 sm:$0xff]   ;;  %v9282_v8 = vld [vmem:[%s11007_s21 + $0xe4] ss:$8 sps:$4 sm:$0xff]  }
  0x82   : > { %7111 = vmatprep.subr.bf16.mxu0 %v9230_v22  ;;  %v9284_v9 = vld [vmem:[%s11007_s21 + $0xfe4] ss:$8 sps:$4 sm:$0xff]   ;;  %v9286_v11 = vld [vmem:[%s11007_s21 + $0xe0] ss:$8 sps:$4 sm:$0xff]   ;;  %v9288_v13 = vld [vmem:[%s11007_s21 + $0xf4] ss:$8 sps:$4 sm:$0xff]  }
  0x83   : > { %v1274_v60 = vcombine.high %v1266_v55, %v1266_v55  ;;  %v1422_v4 = vcombine.high %v1420_v63, %v1420_v63  ;;  %v9287_v12 = vld [vmem:[%s11007_s21 + $0xfe0] ss:$8 sps:$4 sm:$0xff]   ;;  %v9290_v14 = vld [vmem:[%s11007_s21 + $0xff4] ss:$8 sps:$4 sm:$0xff]   ;;  %v11106_v15 = vrot.slane %v1420_v63, %v11074_v52  ;;  %v9292_v16 = vld [vmem:[%s11007_s21 + $0xf0] ss:$8 sps:$4 sm:$0xff]   ;;  %v11113_v20 = vrot.slane %v1266_v55, %v11074_v52 }
  0x84   : > { %6497 = vmatpush1.bf16.msra.mxu1 %v9232_v23  ;;  %v9293_v17 = vld [vmem:[%s11007_s21 + $0xff0] ss:$8 sps:$4 sm:$0xff]   ;;  %v9297_v18 = vld [vmem:[%s11007_s21 + $0x104] ss:$8 sps:$4 sm:$0xff]   ;;  %v9295_v22 = vld [vmem:[%s11007_s21 + $0x100] ss:$8 sps:$4 sm:$0xff]  }
  0x85   : > { %7112 = vmatpush1.bf16.msra.mxu0 %v9233_v24  ;;  %6498 = vmatprep.subr.bf16.mxu1 %v9234_v25  ;;  %v1296_v62 = vrot.slane %v1274_v60, %v11074_v52  ;;  %v11093_v5 = vrot.slane %v1422_v4, %v11074_v52  ;;  %v9301_v19 = vld [vmem:[%s11007_s21 + $0x1004] ss:$8 sps:$4 sm:$0xff]   ;;  %v1452_v21 = vcombine.high %v11106_v15, %v11106_v15  ;;  %v9299_v23 = vld [vmem:[%s11007_s21 + $0x1000] ss:$8 sps:$4 sm:$0xff]   ;;  %v9304_v24 = vld [vmem:[%s11007_s21 + $0x114] ss:$8 sps:$4 sm:$0xff]  }
  0x86   : > { %7113 = vmatprep.subr.bf16.mxu0 %v9236_v26  ;;  %v9307_v25 = vld [vmem:[%s11007_s21 + $0x1014] ss:$8 sps:$4 sm:$0xff]   ;;  %v9320_v39 = vld [vmem:[%s11007_s21 + $0x140] ss:$8 sps:$4 sm:$0xff]   ;;  %v9337_v46 = vld [vmem:[%s11007_s21 + $0x1064] ss:$8 sps:$4 sm:$0xff]  }
  0x87   : > { %6518 = vmatprep.mubr.bf16.mxu1 %v1296_v62  ;;  %v1454_v10 = vcombine.high %v11093_v5, %v11093_v5  ;;  %v1306_v26 = vcombine.high %v1296_v62, %v1296_v62  ;;  %v9323_v40 = vld [vmem:[%s11007_s21 + $0x1040] ss:$8 sps:$4 sm:$0xff]   ;;  %v9328_v41 = vld [vmem:[%s11007_s21 + $0x154] ss:$8 sps:$4 sm:$0xff]   ;;  %v9338_v57 = vld [vmem:[%s11007_s21 + $0x170] ss:$8 sps:$4 sm:$0xff]  }
  0x88   : > { %6499 = vmatpush1.bf16.msra.mxu1 %v9238_v27  ;;  %v9302_v27 = vld [vmem:[%s11007_s21 + $0x110] ss:$8 sps:$4 sm:$0xff]   ;;  %v9343_v55 = vld [vmem:[%s11007_s21 + $0x1074] ss:$8 sps:$4 sm:$0xff]   ;;  %v9349_v61 = vld [vmem:[%s11007_s21 + $0x1084] ss:$8 sps:$4 sm:$0xff]  }
  0x89   : > { %7114 = vmatpush1.bf16.msra.mxu0 %v9239_v28  ;;  %6500 = vmatprep.subr.bf16.mxu1 %v9240_v29  ;;  %v9305_v28 = vld [vmem:[%s11007_s21 + $0x1010] ss:$8 sps:$4 sm:$0xff]   ;;  %v9310_v29 = vld [vmem:[%s11007_s21 + $0x124] ss:$8 sps:$4 sm:$0xff]   ;;  %v9344_v62 = vld [vmem:[%s11007_s21 + $0x180] ss:$8 sps:$4 sm:$0xff]  }
  0x8a   : > { %7115 = vmatprep.subr.bf16.mxu0 %v9242_v30  ;;  %7133 = vmatprep.mubr.bf16.mxu0 %v1454_v10  ;;  %v9313_v30 = vld [vmem:[%s11007_s21 + $0x1024] ss:$8 sps:$4 sm:$0xff]   ;;  %v9347_v63 = vld [vmem:[%s11007_s21 + $0x1080] ss:$8 sps:$4 sm:$0xff]   ;;  %v9367_v10 = vld [vmem:[%s11007_s21 + $0x10b4] ss:$8 sps:$4 sm:$0xff]  }
  0x8b   : > { %v9358_v4 = vld [vmem:[%s11007_s21 + $0x1a4] ss:$8 sps:$4 sm:$0xff]   ;;  %vm7875_vm0 = vcmask (!%p8934_p6), 74752  }
  0x8c   : > { %6501 = vmatpush1.bf16.msra.mxu1 %v9244_v31  ;;  %v9308_v31 = vld [vmem:[%s11007_s21 + $0x120] ss:$8 sps:$4 sm:$0xff]  }
  0x8d   : > { %7116 = vmatpush1.bf16.msra.mxu0 %v9245_v32  ;;  %6502 = vmatprep.subr.bf16.mxu1 %v9246_v33  ;;  %v9311_v32 = vld [vmem:[%s11007_s21 + $0x1020] ss:$8 sps:$4 sm:$0xff]   ;;  %v9316_v33 = vld [vmem:[%s11007_s21 + $0x134] ss:$8 sps:$4 sm:$0xff]  }
  0x8e   : > { %7117 = vmatprep.subr.bf16.mxu0 %v9248_v34  ;;  %v9319_v34 = vld [vmem:[%s11007_s21 + $0x1034] ss:$8 sps:$4 sm:$0xff]  }
  0x90   : > { %6503 = vmatpush1.bf16.msra.mxu1 %v9250_v35  ;;  %v9314_v35 = vld [vmem:[%s11007_s21 + $0x130] ss:$8 sps:$4 sm:$0xff]  }
  0x91   : > { %7118 = vmatpush1.bf16.msra.mxu0 %v9251_v36  ;;  %6504 = vmatprep.subr.bf16.mxu1 %v9252_v37  ;;  %v9317_v36 = vld [vmem:[%s11007_s21 + $0x1030] ss:$8 sps:$4 sm:$0xff]   ;;  %v9322_v37 = vld [vmem:[%s11007_s21 + $0x144] ss:$8 sps:$4 sm:$0xff]  }
  0x92   : > { %7119 = vmatprep.subr.bf16.mxu0 %v9254_v38  ;;  %v9325_v38 = vld [vmem:[%s11007_s21 + $0x1044] ss:$8 sps:$4 sm:$0xff]  }
  0x94   : > { %6505 = vmatpush1.bf16.msra.mxu1 %v9256_v42  ;;  %v9331_v42 = vld [vmem:[%s11007_s21 + $0x1054] ss:$8 sps:$4 sm:$0xff]  }
  0x95   : > { %7120 = vmatpush1.bf16.msra.mxu0 %v9257_v43  ;;  %6506 = vmatprep.subr.bf16.mxu1 %v9258_v44  ;;  %v9326_v43 = vld [vmem:[%s11007_s21 + $0x150] ss:$8 sps:$4 sm:$0xff]  }
  0x96   : > { %7121 = vmatprep.subr.bf16.mxu0 %v9260_v45  ;;  %v9329_v44 = vld [vmem:[%s11007_s21 + $0x1050] ss:$8 sps:$4 sm:$0xff]   ;;  %v9334_v45 = vld [vmem:[%s11007_s21 + $0x164] ss:$8 sps:$4 sm:$0xff]  }
  0x98   : > { %6507 = vmatpush1.bf16.msra.mxu1 %v9262_v48  ;;  %v9332_v48 = vld [vmem:[%s11007_s21 + $0x160] ss:$8 sps:$4 sm:$0xff]  }
  0x99   : > { %7122 = vmatpush1.bf16.msra.mxu0 %v9263_v49  ;;  %6508 = vmatprep.subr.bf16.mxu1 %v9264_v50  ;;  %v11144_v49 = vld [vmem:[%s11021_s13 + $0x20] sm:$0xff] }
  0x9a   : > { %7123 = vmatprep.subr.bf16.mxu0 %v9266_v51  ;;  %v9335_v50 = vld [vmem:[%s11007_s21 + $0x1060] ss:$8 sps:$4 sm:$0xff]   ;;  %v9340_v51 = vld [vmem:[%s11007_s21 + $0x174] ss:$8 sps:$4 sm:$0xff]  }
  0x9c   : > { %6509 = vmatpush1.bf16.msra.mxu1 %v9268_v54  ;;  %v11150_v54 = vrot.slane %v11144_v49, %v11074_v52 }
  0x9d   : > { %7124 = vmatpush1.bf16.msra.mxu0 %v9269_v56  ;;  %6510 = vmatprep.subr.bf16.mxu1 %v9270_v58  ;;  %v9341_v58 = vld [vmem:[%s11007_s21 + $0x1070] ss:$8 sps:$4 sm:$0xff]  }
  0x9e   : > { %7125 = vmatprep.subr.bf16.mxu0 %v9272_v59  ;;  %v1470_v56 = vcombine.high %v11150_v54, %v11150_v54  ;;  %v9346_v59 = vld [vmem:[%s11007_s21 + $0x184] ss:$8 sps:$4 sm:$0xff]  }
  0xa0   : > { %6511 = vmatpush1.bf16.msra.mxu1 %v9274_v0  ;;  %v11159_v60 = vrot.slane %v1470_v56, %v11074_v52  ;;  %v9352_v0 = vld [vmem:[%s11007_s21 + $0x194] ss:$8 sps:$4 sm:$0xff]   ;;  %v9418_v56 = vld [vmem:[%s11007_s21 + $0x244] ss:$8 sps:$4 sm:$0xff]  }
  0xa1   : > { %7126 = vmatpush1.bf16.msra.mxu0 %v9275_v1  ;;  %6512 = vmatprep.subr.bf16.mxu1 %v9276_v2  ;;  %v9355_v1 = vld [vmem:[%s11007_s21 + $0x1094] ss:$8 sps:$4 sm:$0xff]   ;;  %v9350_v2 = vld [vmem:[%s11007_s21 + $0x190] ss:$8 sps:$4 sm:$0xff]  }
  0xa2   : > { %7127 = vmatprep.subr.bf16.mxu0 %v9278_v3  ;;  %v9353_v3 = vld [vmem:[%s11007_s21 + $0x1090] ss:$8 sps:$4 sm:$0xff]  }
  0xa4   : > { %6513 = vmatpush1.bf16.msra.mxu1 %v9280_v6  ;;  %v9361_v6 = vld [vmem:[%s11007_s21 + $0x10a4] ss:$8 sps:$4 sm:$0xff]  }
  0xa5   : > { %7128 = vmatpush1.bf16.msra.mxu0 %v9281_v7  ;;  %6514 = vmatprep.subr.bf16.mxu1 %v9282_v8  ;;  %v9356_v7 = vld [vmem:[%s11007_s21 + $0x1a0] ss:$8 sps:$4 sm:$0xff]  }
  0xa6   : > { %7129 = vmatprep.subr.bf16.mxu0 %v9284_v9  ;;  %v9359_v8 = vld [vmem:[%s11007_s21 + $0x10a0] ss:$8 sps:$4 sm:$0xff]   ;;  %v9364_v9 = vld [vmem:[%s11007_s21 + $0x1b4] ss:$8 sps:$4 sm:$0xff]  }
  0xa8   : > { %6515 = vmatpush1.bf16.msra.mxu1 %v9286_v11  ;;  %v9362_v11 = vld [vmem:[%s11007_s21 + $0x1b0] ss:$8 sps:$4 sm:$0xff]  }
  0xa9   : > { %7130 = vmatpush1.bf16.msra.mxu0 %v9287_v12  ;;  %6516 = vmatprep.subr.bf16.mxu1 %v9288_v13  ;;  %v9365_v12 = vld [vmem:[%s11007_s21 + $0x10b0] ss:$8 sps:$4 sm:$0xff]   ;;  %v9370_v13 = vld [vmem:[%s11007_s21 + $0x1c4] ss:$8 sps:$4 sm:$0xff]  }
  0xaa   : > { %7131 = vmatprep.subr.bf16.mxu0 %v9290_v14  ;;  %v9373_v14 = vld [vmem:[%s11007_s21 + $0x10c4] ss:$8 sps:$4 sm:$0xff]  }
  0xac   : > { %6517 = vmatpush1.bf16.msra.mxu1 %v9292_v16  ;;  %v9368_v16 = vld [vmem:[%s11007_s21 + $0x1c0] ss:$8 sps:$4 sm:$0xff]  }
  0xad   : > { %7132 = vmatpush1.bf16.msra.mxu0 %v9293_v17  ;;  %6527 = vmatprep.subr.bf16.mxu1 %v9297_v18  ;;  %v9371_v17 = vld [vmem:[%s11007_s21 + $0x10c0] ss:$8 sps:$4 sm:$0xff]   ;;  %v9376_v18 = vld [vmem:[%s11007_s21 + $0x1d4] ss:$8 sps:$4 sm:$0xff]  }
  0xae   : > { %7142 = vmatprep.subr.bf16.mxu0 %v9301_v19  ;;  %v9379_v19 = vld [vmem:[%s11007_s21 + $0x10d4] ss:$8 sps:$4 sm:$0xff]  }
  0xaf   : > { %6519 = vmatmul.mubr.bf16.vlgmr.msra.gmra.mrb[0].mxu1 %v11113_v20 }
  0xb0   : > { %7134 = vmatmul.mubr.bf16.vlgmr.msra.gmra.mrb[0].mxu0 %v1452_v21  ;;  %6528 = vmatpush1.bf16.msra.mxu1 %v9295_v22  ;;  %v9374_v21 = vld [vmem:[%s11007_s21 + $0x1d0] ss:$8 sps:$4 sm:$0xff]  }
  0xb1   : > { %7143 = vmatpush1.bf16.msra.mxu0 %v9299_v23  ;;  %6529 = vmatprep.subr.bf16.mxu1 %v9304_v24  ;;  %v9377_v22 = vld [vmem:[%s11007_s21 + $0x10d0] ss:$8 sps:$4 sm:$0xff]   ;;  %v9382_v23 = vld [vmem:[%s11007_s21 + $0x1e4] ss:$8 sps:$4 sm:$0xff]  }
  0xb2   : > { %7144 = vmatprep.subr.bf16.mxu0 %v9307_v25  ;;  %6559 = vmatprep.mubr.bf16.mxu1 %v1306_v26  ;;  %v9385_v24 = vld [vmem:[%s11007_s21 + $0x10e4] ss:$8 sps:$4 sm:$0xff]   ;;  %v1259_v25 = vcombine.high %v11077_v53, %v11077_v53  ;;  %v9380_v26 = vld [vmem:[%s11007_s21 + $0x1e0] ss:$8 sps:$4 sm:$0xff]   ;;  %v9389_v53 = vld [vmem:[%s11007_s21 + $0x10f0] ss:$8 sps:$4 sm:$0xff]  }
  0xb3   : > { %7174 = vmatprep.mubr.bf16.mxu0 %v11159_v60 }
  0xb4   : > { %6530 = vmatpush1.bf16.msra.mxu1 %v9302_v27  ;;  %v9383_v27 = vld [vmem:[%s11007_s21 + $0x10e0] ss:$8 sps:$4 sm:$0xff]  }
  0xb5   : > { %7145 = vmatpush1.bf16.msra.mxu0 %v9305_v28  ;;  %6531 = vmatprep.subr.bf16.mxu1 %v9310_v29  ;;  %v9388_v28 = vld [vmem:[%s11007_s21 + $0x1f4] ss:$8 sps:$4 sm:$0xff]  }
  0xb6   : > { %7146 = vmatprep.subr.bf16.mxu0 %v9313_v30  ;;  %v9391_v29 = vld [vmem:[%s11007_s21 + $0x10f4] ss:$8 sps:$4 sm:$0xff]   ;;  %v11194_v30 = vrot.slane %v1259_v25, %v11074_v52  ;;  %v9458_v25 = vld [vmem:[%s11007_s21 + $0x2b0] ss:$8 sps:$4 sm:$0xff]  }
  0xb8   : > { %6532 = vmatpush1.bf16.msra.mxu1 %v9308_v31  ;;  %v9386_v31 = vld [vmem:[%s11007_s21 + $0x1f0] ss:$8 sps:$4 sm:$0xff]  }
  0xb9   : > { %7147 = vmatpush1.bf16.msra.mxu0 %v9311_v32  ;;  %6533 = vmatprep.subr.bf16.mxu1 %v9316_v33  ;;  %v9394_v32 = vld [vmem:[%s11007_s21 + $0x204] ss:$8 sps:$4 sm:$0xff]  }
  0xba   : > { %7148 = vmatprep.subr.bf16.mxu0 %v9319_v34  ;;  %v9397_v33 = vld [vmem:[%s11007_s21 + $0x1104] ss:$8 sps:$4 sm:$0xff]   ;;  %v1275_v34 = vcombine.high %v11194_v30, %v11194_v30 }
  0xbc   : > { %6534 = vmatpush1.bf16.msra.mxu1 %v9314_v35  ;;  %v1304_v35 = vcombine.high %v11113_v20, %v11113_v20  ;;  %v1502_v20 = vcombine.high %v11159_v60, %v11159_v60  ;;  %v9424_v60 = vld [vmem:[%s11007_s21 + $0x254] ss:$8 sps:$4 sm:$0xff]  }
  0xbd   : > { %7149 = vmatpush1.bf16.msra.mxu0 %v9317_v36  ;;  %6535 = vmatprep.subr.bf16.mxu1 %v9322_v37  ;;  %v9392_v36 = vld [vmem:[%s11007_s21 + $0x200] ss:$8 sps:$4 sm:$0xff]   ;;  %v11207_v37 = vrot.slane %v11150_v54, %v11074_v52  ;;  %v9410_v54 = vld [vmem:[%s11007_s21 + $0x230] ss:$8 sps:$4 sm:$0xff]  }
  0xbe   : > { %7150 = vmatprep.subr.bf16.mxu0 %v9325_v38  ;;  %v9395_v38 = vld [vmem:[%s11007_s21 + $0x1100] ss:$8 sps:$4 sm:$0xff]  }
  0xc0   : > { %6536 = vmatpush1.bf16.msra.mxu1 %v9320_v39  ;;  %v9400_v39 = vld [vmem:[%s11007_s21 + $0x214] ss:$8 sps:$4 sm:$0xff]  }
  0xc1   : > { %7151 = vmatpush1.bf16.msra.mxu0 %v9323_v40  ;;  %6537 = vmatprep.subr.bf16.mxu1 %v9328_v41  ;;  %v9403_v40 = vld [vmem:[%s11007_s21 + $0x1114] ss:$8 sps:$4 sm:$0xff]   ;;  %v11213_v41 = vrot.slane %v1275_v34, %v11074_v52  ;;  %v9473_v34 = vld [vmem:[%s11007_s21 + $0x11d0] ss:$8 sps:$4 sm:$0xff]  }
  0xc2   : > { %7152 = vmatprep.subr.bf16.mxu0 %v9331_v42  ;;  %v9398_v42 = vld [vmem:[%s11007_s21 + $0x210] ss:$8 sps:$4 sm:$0xff]  }
  0xc4   : > { %6538 = vmatpush1.bf16.msra.mxu1 %v9326_v43  ;;  %v9401_v43 = vld [vmem:[%s11007_s21 + $0x1110] ss:$8 sps:$4 sm:$0xff]  }
  0xc5   : > { %7153 = vmatpush1.bf16.msra.mxu0 %v9329_v44  ;;  %6539 = vmatprep.subr.bf16.mxu1 %v9334_v45  ;;  %v9406_v44 = vld [vmem:[%s11007_s21 + $0x224] ss:$8 sps:$4 sm:$0xff]  }
  0xc6   : > { %7154 = vmatprep.subr.bf16.mxu0 %v9337_v46  ;;  %v9409_v45 = vld [vmem:[%s11007_s21 + $0x1124] ss:$8 sps:$4 sm:$0xff]   ;;  %v9404_v46 = vld [vmem:[%s11007_s21 + $0x220] ss:$8 sps:$4 sm:$0xff]  }
  0xc8   : > { %6540 = vmatpush1.bf16.msra.mxu1 %v9332_v48  ;;  %v9407_v48 = vld [vmem:[%s11007_s21 + $0x1120] ss:$8 sps:$4 sm:$0xff]  }
  0xc9   : > { %7155 = vmatpush1.bf16.msra.mxu0 %v9335_v50  ;;  %6541 = vmatprep.subr.bf16.mxu1 %v9340_v51  ;;  %v9412_v50 = vld [vmem:[%s11007_s21 + $0x234] ss:$8 sps:$4 sm:$0xff]  }
  0xca   : > { %7156 = vmatprep.subr.bf16.mxu0 %v9343_v55  ;;  %v9415_v51 = vld [vmem:[%s11007_s21 + $0x1134] ss:$8 sps:$4 sm:$0xff]   ;;  %v9413_v55 = vld [vmem:[%s11007_s21 + $0x1130] ss:$8 sps:$4 sm:$0xff]  }
  0xcc   : > { %6542 = vmatpush1.bf16.msra.mxu1 %v9338_v57  ;;  %v9421_v57 = vld [vmem:[%s11007_s21 + $0x1144] ss:$8 sps:$4 sm:$0xff]  }
  0xcd   : > { %7157 = vmatpush1.bf16.msra.mxu0 %v9341_v58  ;;  %6543 = vmatprep.subr.bf16.mxu1 %v9346_v59  ;;  %v9416_v58 = vld [vmem:[%s11007_s21 + $0x240] ss:$8 sps:$4 sm:$0xff]  }
  0xce   : > { %7158 = vmatprep.subr.bf16.mxu0 %v9349_v61  ;;  %v9419_v59 = vld [vmem:[%s11007_s21 + $0x1140] ss:$8 sps:$4 sm:$0xff]   ;;  %v9427_v61 = vld [vmem:[%s11007_s21 + $0x1154] ss:$8 sps:$4 sm:$0xff]  }
  0xd0   : > { %6544 = vmatpush1.bf16.msra.mxu1 %v9344_v62  ;;  %v9422_v62 = vld [vmem:[%s11007_s21 + $0x250] ss:$8 sps:$4 sm:$0xff]  }
  0xd1   : > { %7159 = vmatpush1.bf16.msra.mxu0 %v9347_v63  ;;  %6545 = vmatprep.subr.bf16.mxu1 %v9352_v0  ;;  %v9425_v63 = vld [vmem:[%s11007_s21 + $0x1150] ss:$8 sps:$4 sm:$0xff]   ;;  %v9430_v0 = vld [vmem:[%s11007_s21 + $0x264] ss:$8 sps:$4 sm:$0xff]  }
  0xd2   : > { %7160 = vmatprep.subr.bf16.mxu0 %v9355_v1  ;;  %v9433_v1 = vld [vmem:[%s11007_s21 + $0x1164] ss:$8 sps:$4 sm:$0xff]  }
  0xd4   : > { %6546 = vmatpush1.bf16.msra.mxu1 %v9350_v2  ;;  %v9428_v2 = vld [vmem:[%s11007_s21 + $0x260] ss:$8 sps:$4 sm:$0xff]  }
  0xd5   : > { %7161 = vmatpush1.bf16.msra.mxu0 %v9353_v3  ;;  %6547 = vmatprep.subr.bf16.mxu1 %v9358_v4  ;;  %v9431_v3 = vld [vmem:[%s11007_s21 + $0x1160] ss:$8 sps:$4 sm:$0xff]   ;;  %v9436_v4 = vld [vmem:[%s11007_s21 + $0x274] ss:$8 sps:$4 sm:$0xff]  }
  0xd6   : > { %7162 = vmatprep.subr.bf16.mxu0 %v9361_v6  ;;  %v9439_v6 = vld [vmem:[%s11007_s21 + $0x1174] ss:$8 sps:$4 sm:$0xff]  }
  0xd8   : > { %6548 = vmatpush1.bf16.msra.mxu1 %v9356_v7  ;;  %v9434_v7 = vld [vmem:[%s11007_s21 + $0x270] ss:$8 sps:$4 sm:$0xff]  }
  0xd9   : > { %7163 = vmatpush1.bf16.msra.mxu0 %v9359_v8  ;;  %6549 = vmatprep.subr.bf16.mxu1 %v9364_v9  ;;  %v9437_v8 = vld [vmem:[%s11007_s21 + $0x1170] ss:$8 sps:$4 sm:$0xff]   ;;  %v9442_v9 = vld [vmem:[%s11007_s21 + $0x284] ss:$8 sps:$4 sm:$0xff]  }
  0xda   : > { %7164 = vmatprep.subr.bf16.mxu0 %v9367_v10  ;;  %v9445_v10 = vld [vmem:[%s11007_s21 + $0x1184] ss:$8 sps:$4 sm:$0xff]  }
  0xdc   : > { %6550 = vmatpush1.bf16.msra.mxu1 %v9362_v11  ;;  %v9440_v11 = vld [vmem:[%s11007_s21 + $0x280] ss:$8 sps:$4 sm:$0xff]  }
  0xdd   : > { %7165 = vmatpush1.bf16.msra.mxu0 %v9365_v12  ;;  %6551 = vmatprep.subr.bf16.mxu1 %v9370_v13  ;;  %v9443_v12 = vld [vmem:[%s11007_s21 + $0x1180] ss:$8 sps:$4 sm:$0xff]   ;;  %v9448_v13 = vld [vmem:[%s11007_s21 + $0x294] ss:$8 sps:$4 sm:$0xff]  }
  0xde   : > { %7166 = vmatprep.subr.bf16.mxu0 %v9373_v14  ;;  %v9451_v14 = vld [vmem:[%s11007_s21 + $0x1194] ss:$8 sps:$4 sm:$0xff]  }
  0xe0   : > { %6552 = vmatpush1.bf16.msra.mxu1 %v9368_v16  ;;  %v9446_v16 = vld [vmem:[%s11007_s21 + $0x290] ss:$8 sps:$4 sm:$0xff]  }
  0xe1   : > { %7167 = vmatpush1.bf16.msra.mxu0 %v9371_v17  ;;  %6553 = vmatprep.subr.bf16.mxu1 %v9376_v18  ;;  %v9449_v17 = vld [vmem:[%s11007_s21 + $0x1190] ss:$8 sps:$4 sm:$0xff]   ;;  %v9454_v18 = vld [vmem:[%s11007_s21 + $0x2a4] ss:$8 sps:$4 sm:$0xff]  }
  0xe2   : > { %7168 = vmatprep.subr.bf16.mxu0 %v9379_v19  ;;  %v9457_v19 = vld [vmem:[%s11007_s21 + $0x11a4] ss:$8 sps:$4 sm:$0xff]  }
  0xe4   : > { %6554 = vmatpush1.bf16.msra.mxu1 %v9374_v21  ;;  %v9452_v21 = vld [vmem:[%s11007_s21 + $0x2a0] ss:$8 sps:$4 sm:$0xff]  }
  0xe5   : > { %7169 = vmatpush1.bf16.msra.mxu0 %v9377_v22  ;;  %6555 = vmatprep.subr.bf16.mxu1 %v9382_v23  ;;  %v9455_v22 = vld [vmem:[%s11007_s21 + $0x11a0] ss:$8 sps:$4 sm:$0xff]   ;;  %v9460_v23 = vld [vmem:[%s11007_s21 + $0x2b4] ss:$8 sps:$4 sm:$0xff]  }
  0xe6   : > { %7170 = vmatprep.subr.bf16.mxu0 %v9385_v24  ;;  %v9463_v24 = vld [vmem:[%s11007_s21 + $0x11b4] ss:$8 sps:$4 sm:$0xff]  }
  0xe8   : > { %6556 = vmatpush1.bf16.msra.mxu1 %v9380_v26  ;;  %v9461_v26 = vld [vmem:[%s11007_s21 + $0x11b0] ss:$8 sps:$4 sm:$0xff]  }
  0xe9   : > { %7171 = vmatpush1.bf16.msra.mxu0 %v9383_v27  ;;  %6557 = vmatprep.subr.bf16.mxu1 %v9388_v28  ;;  %v9466_v27 = vld [vmem:[%s11007_s21 + $0x2c4] ss:$8 sps:$4 sm:$0xff]  }
  0xea   : > { %7172 = vmatprep.subr.bf16.mxu0 %v9391_v29  ;;  %v9469_v28 = vld [vmem:[%s11007_s21 + $0x11c4] ss:$8 sps:$4 sm:$0xff]   ;;  %v9464_v29 = vld [vmem:[%s11007_s21 + $0x2c0] ss:$8 sps:$4 sm:$0xff]  }
  0xec   : > { %6558 = vmatpush1.bf16.msra.mxu1 %v9386_v31  ;;  %v9467_v31 = vld [vmem:[%s11007_s21 + $0x11c0] ss:$8 sps:$4 sm:$0xff]  }
  0xed   : > { %7173 = vmatpush1.bf16.msra.mxu0 %v9389_v53  ;;  %6568 = vmatprep.subr.bf16.mxu1 %v9394_v32  ;;  %v9472_v53 = vld [vmem:[%s11007_s21 + $0x2d4] ss:$8 sps:$4 sm:$0xff]  }
  0xee   : > { %7183 = vmatprep.subr.bf16.mxu0 %v9397_v33  ;;  %v9475_v32 = vld [vmem:[%s11007_s21 + $0x11d4] ss:$8 sps:$4 sm:$0xff]   ;;  %v9470_v33 = vld [vmem:[%s11007_s21 + $0x2d0] ss:$8 sps:$4 sm:$0xff]  }
  0xef   : > { %6560 = vmatmul.mubr.bf16.vlgmr.msra.gmra.mrb[0].mxu1 %v1304_v35  ;;  %v9478_v35 = vld [vmem:[%s11007_s21 + $0x2e4] ss:$8 sps:$4 sm:$0xff]  }
  0xf0   : > { %7175 = vmatmul.mubr.bf16.vlgmr.msra.gmra.mrb[0].mxu0 %v11207_v37  ;;  %6569 = vmatpush1.bf16.msra.mxu1 %v9392_v36  ;;  %v9481_v36 = vld [vmem:[%s11007_s21 + $0x11e4] ss:$8 sps:$4 sm:$0xff]  }
  0xf1   : > { %7184 = vmatpush1.bf16.msra.mxu0 %v9395_v38  ;;  %6570 = vmatprep.subr.bf16.mxu1 %v9400_v39  ;;  %v1455_v38 = vcombine.high %v11144_v49, %v11144_v49  ;;  %v9476_v39 = vld [vmem:[%s11007_s21 + $0x2e0] ss:$8 sps:$4 sm:$0xff]   ;;  %v9485_v49 = vld [vmem:[%s11007_s21 + $0x11f0] ss:$8 sps:$4 sm:$0xff]  }
  0xf2   : > { %7185 = vmatprep.subr.bf16.mxu0 %v9403_v40  ;;  %6600 = vmatprep.mubr.bf16.mxu1 %v11213_v41  ;;  %v9479_v40 = vld [vmem:[%s11007_s21 + $0x11e0] ss:$8 sps:$4 sm:$0xff]  }
  0xf3   : > { %7215 = vmatprep.mubr.bf16.mxu0 %v1502_v20  ;;  %v9484_v20 = vld [vmem:[%s11007_s21 + $0x2f4] ss:$8 sps:$4 sm:$0xff]  }
  0xf4   : > { %6571 = vmatpush1.bf16.msra.mxu1 %v9398_v42  ;;  %v9487_v42 = vld [vmem:[%s11007_s21 + $0x11f4] ss:$8 sps:$4 sm:$0xff]  }
  0xf5   : > { %7186 = vmatpush1.bf16.msra.mxu0 %v9401_v43  ;;  %6572 = vmatprep.subr.bf16.mxu1 %v9406_v44  ;;  %v11278_v43 = vrot.slane %v1455_v38, %v11074_v52  ;;  %v9482_v44 = vld [vmem:[%s11007_s21 + $0x2f0] ss:$8 sps:$4 sm:$0xff]  }
  0xf6   : > { %7187 = vmatprep.subr.bf16.mxu0 %v9409_v45  ;;  %v9490_v45 = vld [vmem:[%s11007_s21 + $0x304] ss:$8 sps:$4 sm:$0xff]   ;;  %v9557_v38 = vld [vmem:[%s11007_s21 + $0x12b0] ss:$8 sps:$4 sm:$0xff]  }
  0xf8   : > { %6573 = vmatpush1.bf16.msra.mxu1 %v9404_v46  ;;  %v9493_v46 = vld [vmem:[%s11007_s21 + $0x1204] ss:$8 sps:$4 sm:$0xff]  }
  0xf9   : > { %7188 = vmatpush1.bf16.msra.mxu0 %v9407_v48  ;;  %6574 = vmatprep.subr.bf16.mxu1 %v9412_v50  ;;  %v1471_v48 = vcombine.high %v11278_v43, %v11278_v43  ;;  %v9488_v50 = vld [vmem:[%s11007_s21 + $0x300] ss:$8 sps:$4 sm:$0xff]  }
  0xfa   : > { %7189 = vmatprep.subr.bf16.mxu0 %v9415_v51  ;;  %v11289_v51 = vrot.slane %v11194_v30, %v11074_v52 }
  0xfb   : > { %v11299_v30 = vrot.slane %v1471_v48, %v11074_v52  ;;  %v9574_v48 = vld [vmem:[%s11007_s21 + $0x3e4] ss:$8 sps:$4 sm:$0xff]  }
  0xfc   : > { %6575 = vmatpush1.bf16.msra.mxu1 %v9410_v54  ;;  %v1500_v54 = vcombine.high %v11207_v37, %v11207_v37  ;;  %v9494_v37 = vld [vmem:[%s11007_s21 + $0x310] ss:$8 sps:$4 sm:$0xff]  }
  0xfd   : > { %7190 = vmatpush1.bf16.msra.mxu0 %v9413_v55  ;;  %6576 = vmatprep.subr.bf16.mxu1 %v9418_v56  ;;  %v9491_v55 = vld [vmem:[%s11007_s21 + $0x1200] ss:$8 sps:$4 sm:$0xff]   ;;  %v9496_v56 = vld [vmem:[%s11007_s21 + $0x314] ss:$8 sps:$4 sm:$0xff]  }
  0xfe   : > { %7191 = vmatprep.subr.bf16.mxu0 %v9421_v57  ;;  %v9499_v57 = vld [vmem:[%s11007_s21 + $0x1214] ss:$8 sps:$4 sm:$0xff]  }
 0x100   : > { %6577 = vmatpush1.bf16.msra.mxu1 %v9416_v58  ;;  %v1307_v58 = vcombine.high %v11213_v41, %v11213_v41  ;;  %v9505_v41 = vld [vmem:[%s11007_s21 + $0x1224] ss:$8 sps:$4 sm:$0xff]  }
 0x101   : > { %7192 = vmatpush1.bf16.msra.mxu0 %v9419_v59  ;;  %6578 = vmatprep.subr.bf16.mxu1 %v9424_v60  ;;  %v9497_v59 = vld [vmem:[%s11007_s21 + $0x1210] ss:$8 sps:$4 sm:$0xff]   ;;  %v9502_v60 = vld [vmem:[%s11007_s21 + $0x324] ss:$8 sps:$4 sm:$0xff]  }
 0x102   : > { %7193 = vmatprep.subr.bf16.mxu0 %v9427_v61  ;;  %v9500_v61 = vld [vmem:[%s11007_s21 + $0x320] ss:$8 sps:$4 sm:$0xff]  }
 0x104   : > { %6579 = vmatpush1.bf16.msra.mxu1 %v9422_v62  ;;  %v9503_v62 = vld [vmem:[%s11007_s21 + $0x1220] ss:$8 sps:$4 sm:$0xff]  }
 0x105   : > { %7194 = vmatpush1.bf16.msra.mxu0 %v9425_v63  ;;  %6580 = vmatprep.subr.bf16.mxu1 %v9430_v0  ;;  %v9508_v63 = vld [vmem:[%s11007_s21 + $0x334] ss:$8 sps:$4 sm:$0xff]  }
 0x106   : > { %7195 = vmatprep.subr.bf16.mxu0 %v9433_v1  ;;  %v9511_v0 = vld [vmem:[%s11007_s21 + $0x1234] ss:$8 sps:$4 sm:$0xff]   ;;  %v9506_v1 = vld [vmem:[%s11007_s21 + $0x330] ss:$8 sps:$4 sm:$0xff]  }
 0x108   : > { %6581 = vmatpush1.bf16.msra.mxu1 %v9428_v2  ;;  %v9509_v2 = vld [vmem:[%s11007_s21 + $0x1230] ss:$8 sps:$4 sm:$0xff]  }
 0x109   : > { %7196 = vmatpush1.bf16.msra.mxu0 %v9431_v3  ;;  %6582 = vmatprep.subr.bf16.mxu1 %v9436_v4  ;;  %v9514_v3 = vld [vmem:[%s11007_s21 + $0x344] ss:$8 sps:$4 sm:$0xff]  }
 0x10a   : > { %7197 = vmatprep.subr.bf16.mxu0 %v9439_v6  ;;  %v9517_v4 = vld [vmem:[%s11007_s21 + $0x1244] ss:$8 sps:$4 sm:$0xff]   ;;  %v9512_v6 = vld [vmem:[%s11007_s21 + $0x340] ss:$8 sps:$4 sm:$0xff]  }
 0x10c   : > { %6583 = vmatpush1.bf16.msra.mxu1 %v9434_v7  ;;  %v9515_v7 = vld [vmem:[%s11007_s21 + $0x1240] ss:$8 sps:$4 sm:$0xff]  }
 0x10d   : > { %7198 = vmatpush1.bf16.msra.mxu0 %v9437_v8  ;;  %6584 = vmatprep.subr.bf16.mxu1 %v9442_v9  ;;  %v9520_v8 = vld [vmem:[%s11007_s21 + $0x354] ss:$8 sps:$4 sm:$0xff]  }
 0x10e   : > { %7199 = vmatprep.subr.bf16.mxu0 %v9445_v10  ;;  %v9523_v9 = vld [vmem:[%s11007_s21 + $0x1254] ss:$8 sps:$4 sm:$0xff]   ;;  %v9518_v10 = vld [vmem:[%s11007_s21 + $0x350] ss:$8 sps:$4 sm:$0xff]  }
 0x110   : > { %6585 = vmatpush1.bf16.msra.mxu1 %v9440_v11  ;;  %v9521_v11 = vld [vmem:[%s11007_s21 + $0x1250] ss:$8 sps:$4 sm:$0xff]  }
 0x111   : > { %7200 = vmatpush1.bf16.msra.mxu0 %v9443_v12  ;;  %6586 = vmatprep.subr.bf16.mxu1 %v9448_v13  ;;  %v9526_v12 = vld [vmem:[%s11007_s21 + $0x364] ss:$8 sps:$4 sm:$0xff]  }
 0x112   : > { %7201 = vmatprep.subr.bf16.mxu0 %v9451_v14  ;;  %v9529_v13 = vld [vmem:[%s11007_s21 + $0x1264] ss:$8 sps:$4 sm:$0xff]   ;;  %v9524_v14 = vld [vmem:[%s11007_s21 + $0x360] ss:$8 sps:$4 sm:$0xff]  }
 0x114   : > { %6587 = vmatpush1.bf16.msra.mxu1 %v9446_v16  ;;  %v9527_v16 = vld [vmem:[%s11007_s21 + $0x1260] ss:$8 sps:$4 sm:$0xff]  }
 0x115   : > { %7202 = vmatpush1.bf16.msra.mxu0 %v9449_v17  ;;  %6588 = vmatprep.subr.bf16.mxu1 %v9454_v18  ;;  %v9532_v17 = vld [vmem:[%s11007_s21 + $0x374] ss:$8 sps:$4 sm:$0xff]  }
 0x116   : > { %7203 = vmatprep.subr.bf16.mxu0 %v9457_v19  ;;  %v9535_v18 = vld [vmem:[%s11007_s21 + $0x1274] ss:$8 sps:$4 sm:$0xff]   ;;  %v9530_v19 = vld [vmem:[%s11007_s21 + $0x370] ss:$8 sps:$4 sm:$0xff]  }
 0x118   : > { %6589 = vmatpush1.bf16.msra.mxu1 %v9452_v21  ;;  %v9533_v21 = vld [vmem:[%s11007_s21 + $0x1270] ss:$8 sps:$4 sm:$0xff]  }
 0x119   : > { %7204 = vmatpush1.bf16.msra.mxu0 %v9455_v22  ;;  %6590 = vmatprep.subr.bf16.mxu1 %v9460_v23  ;;  %v9538_v22 = vld [vmem:[%s11007_s21 + $0x384] ss:$8 sps:$4 sm:$0xff]  }
 0x11a   : > { %7205 = vmatprep.subr.bf16.mxu0 %v9463_v24  ;;  %v9541_v23 = vld [vmem:[%s11007_s21 + $0x1284] ss:$8 sps:$4 sm:$0xff]   ;;  %v9536_v24 = vld [vmem:[%s11007_s21 + $0x380] ss:$8 sps:$4 sm:$0xff]  }
 0x11c   : > { %6591 = vmatpush1.bf16.msra.mxu1 %v9458_v25  ;;  %v9539_v25 = vld [vmem:[%s11007_s21 + $0x1280] ss:$8 sps:$4 sm:$0xff]  }
 0x11d   : > { %7206 = vmatpush1.bf16.msra.mxu0 %v9461_v26  ;;  %6592 = vmatprep.subr.bf16.mxu1 %v9466_v27  ;;  %v9544_v26 = vld [vmem:[%s11007_s21 + $0x394] ss:$8 sps:$4 sm:$0xff]  }
 0x11e   : > { %7207 = vmatprep.subr.bf16.mxu0 %v9469_v28  ;;  %v9547_v27 = vld [vmem:[%s11007_s21 + $0x1294] ss:$8 sps:$4 sm:$0xff]   ;;  %v9542_v28 = vld [vmem:[%s11007_s21 + $0x390] ss:$8 sps:$4 sm:$0xff]  }
 0x120   : > { %6593 = vmatpush1.bf16.msra.mxu1 %v9464_v29  ;;  %v9545_v29 = vld [vmem:[%s11007_s21 + $0x1290] ss:$8 sps:$4 sm:$0xff]  }
 0x121   : > { %7208 = vmatpush1.bf16.msra.mxu0 %v9467_v31  ;;  %6594 = vmatprep.subr.bf16.mxu1 %v9472_v53  ;;  %v9550_v31 = vld [vmem:[%s11007_s21 + $0x3a4] ss:$8 sps:$4 sm:$0xff]  }
 0x122   : > { %7209 = vmatprep.subr.bf16.mxu0 %v9475_v32  ;;  %v9553_v53 = vld [vmem:[%s11007_s21 + $0x12a4] ss:$8 sps:$4 sm:$0xff]   ;;  %v9548_v32 = vld [vmem:[%s11007_s21 + $0x3a0] ss:$8 sps:$4 sm:$0xff]  }
 0x124   : > { %6595 = vmatpush1.bf16.msra.mxu1 %v9470_v33  ;;  %v9551_v33 = vld [vmem:[%s11007_s21 + $0x12a0] ss:$8 sps:$4 sm:$0xff]  }
 0x125   : > { %7210 = vmatpush1.bf16.msra.mxu0 %v9473_v34  ;;  %6596 = vmatprep.subr.bf16.mxu1 %v9478_v35  ;;  %v9556_v34 = vld [vmem:[%s11007_s21 + $0x3b4] ss:$8 sps:$4 sm:$0xff]  }
 0x126   : > { %7211 = vmatprep.subr.bf16.mxu0 %v9481_v36  ;;  %v9559_v35 = vld [vmem:[%s11007_s21 + $0x12b4] ss:$8 sps:$4 sm:$0xff]   ;;  %v9554_v36 = vld [vmem:[%s11007_s21 + $0x3b0] ss:$8 sps:$4 sm:$0xff]  }
 0x128   : > { %6597 = vmatpush1.bf16.msra.mxu1 %v9476_v39  ;;  %v9562_v39 = vld [vmem:[%s11007_s21 + $0x3c4] ss:$8 sps:$4 sm:$0xff]  }
 0x129   : > { %7212 = vmatpush1.bf16.msra.mxu0 %v9479_v40  ;;  %6598 = vmatprep.subr.bf16.mxu1 %v9484_v20  ;;  %v9565_v40 = vld [vmem:[%s11007_s21 + $0x12c4] ss:$8 sps:$4 sm:$0xff]   ;;  %v9560_v20 = vld [vmem:[%s11007_s21 + $0x3c0] ss:$8 sps:$4 sm:$0xff]  }
 0x12a   : > { %7213 = vmatprep.subr.bf16.mxu0 %v9487_v42  ;;  %v9563_v42 = vld [vmem:[%s11007_s21 + $0x12c0] ss:$8 sps:$4 sm:$0xff]  }
 0x12c   : > { %6599 = vmatpush1.bf16.msra.mxu1 %v9482_v44  ;;  %v9568_v44 = vld [vmem:[%s11007_s21 + $0x3d4] ss:$8 sps:$4 sm:$0xff]  }
 0x12d   : > { %7214 = vmatpush1.bf16.msra.mxu0 %v9485_v49  ;;  %6609 = vmatprep.subr.bf16.mxu1 %v9490_v45  ;;  %v9571_v49 = vld [vmem:[%s11007_s21 + $0x12d4] ss:$8 sps:$4 sm:$0xff]   ;;  %v9566_v45 = vld [vmem:[%s11007_s21 + $0x3d0] ss:$8 sps:$4 sm:$0xff]  }
 0x12e   : > { %7224 = vmatprep.subr.bf16.mxu0 %v9493_v46  ;;  %v9569_v46 = vld [vmem:[%s11007_s21 + $0x12d0] ss:$8 sps:$4 sm:$0xff]  }
 0x12f   : > { %6601 = vmatmul.mubr.bf16.vlgmr.msra.gmra.mrb[0].mxu1 %v11289_v51 }
 0x130   : > { %7216 = vmatmul.mubr.bf16.vlgmr.msra.gmra.mrb[0].mxu0 %v1500_v54  ;;  %6610 = vmatpush1.bf16.msra.mxu1 %v9488_v50  ;;  %v9577_v50 = vld [vmem:[%s11007_s21 + $0x12e4] ss:$8 sps:$4 sm:$0xff]   ;;  %v9572_v54 = vld [vmem:[%s11007_s21 + $0x3e0] ss:$8 sps:$4 sm:$0xff]  }
 0x131   : > { %7225 = vmatpush1.bf16.msra.mxu0 %v9491_v55  ;;  %6611 = vmatprep.subr.bf16.mxu1 %v9496_v56  ;;  %v9575_v55 = vld [vmem:[%s11007_s21 + $0x12e0] ss:$8 sps:$4 sm:$0xff]  }
 0x132   : > { %7226 = vmatprep.subr.bf16.mxu0 %v9499_v57  ;;  %6641 = vmatprep.mubr.bf16.mxu1 %v1307_v58  ;;  %v11358_v56 = vld.sshfl [vmem:[%s11021_s13 + $0x8] sm:$0xff pattern:$0x75316420]  ;;  %v9580_v57 = vld [vmem:[%s11007_s21 + $0x3f4] ss:$8 sps:$4 sm:$0xff]  }
 0x133   : > { %7256 = vmatprep.mubr.bf16.mxu0 %v11299_v30  ;;  %v9583_v58 = vld [vmem:[%s11007_s21 + $0x12f4] ss:$8 sps:$4 sm:$0xff]  }
 0x134   : > { %6612 = vmatpush1.bf16.msra.mxu1 %v9494_v37  ;;  %v9578_v37 = vld [vmem:[%s11007_s21 + $0x3f0] ss:$8 sps:$4 sm:$0xff]  }
 0x135   : > { %7227 = vmatpush1.bf16.msra.mxu0 %v9497_v59  ;;  %6613 = vmatprep.subr.bf16.mxu1 %v9502_v60  ;;  %v9581_v59 = vld [vmem:[%s11007_s21 + $0x12f0] ss:$8 sps:$4 sm:$0xff]   ;;  %v9586_v60 = vld [vmem:[%s11007_s21 + $0x404] ss:$8 sps:$4 sm:$0xff]  }
 0x136   : > { %7228 = vmatprep.subr.bf16.mxu0 %v9505_v41  ;;  %v9590_v41 = vld [vmem:[%s11007_s21 + $0x1304] ss:$8 sps:$4 sm:$0xff]  }
 0x138   : > { %6614 = vmatpush1.bf16.msra.mxu1 %v9500_v61  ;;  %v1323_v61 = vcombine.high %v11358_v56, %v11358_v56 }
 0x139   : > { %7229 = vmatpush1.bf16.msra.mxu0 %v9503_v62  ;;  %6615 = vmatprep.subr.bf16.mxu1 %v9508_v63  ;;  %v9584_v62 = vld [vmem:[%s11007_s21 + $0x400] ss:$8 sps:$4 sm:$0xff]  }
 0x13a   : > { %7230 = vmatprep.subr.bf16.mxu0 %v9511_v0  ;;  %v9588_v63 = vld [vmem:[%s11007_s21 + $0x1300] ss:$8 sps:$4 sm:$0xff]   ;;  %v1305_v0 = vcombine.high %v11289_v51, %v11289_v51  ;;  %v9594_v51 = vld [vmem:[%s11007_s21 + $0x1310] ss:$8 sps:$4 sm:$0xff]  }
 0x13c   : > { %6616 = vmatpush1.bf16.msra.mxu1 %v9506_v1  ;;  %v11374_v1 = vrot.slane %v11278_v43, %v11074_v52  ;;  %v9591_v43 = vld [vmem:[%s11007_s21 + $0x410] ss:$8 sps:$4 sm:$0xff]  }
 0x13d   : > { %7231 = vmatpush1.bf16.msra.mxu0 %v9509_v2  ;;  %6617 = vmatprep.subr.bf16.mxu1 %v9514_v3  ;;  %v9593_v2 = vld [vmem:[%s11007_s21 + $0x414] ss:$8 sps:$4 sm:$0xff]  }
 0x13e   : > { %7232 = vmatprep.subr.bf16.mxu0 %v9517_v4  ;;  %v9596_v3 = vld [vmem:[%s11007_s21 + $0x1314] ss:$8 sps:$4 sm:$0xff]   ;;  %v11379_v4 = vrot.slane %v1323_v61, %v11074_v52  ;;  %v9671_v61 = vld [vmem:[%s11007_s21 + $0x4e4] ss:$8 sps:$4 sm:$0xff]  }
 0x140   : > { %6618 = vmatpush1.bf16.msra.mxu1 %v9512_v6  ;;  %v1503_v6 = vcombine.high %v11299_v30, %v11299_v30  ;;  %v9597_v30 = vld [vmem:[%s11007_s21 + $0x420] ss:$8 sps:$4 sm:$0xff]  }
 0x141   : > { %7233 = vmatpush1.bf16.msra.mxu0 %v9515_v7  ;;  %6619 = vmatprep.subr.bf16.mxu1 %v9520_v8  ;;  %v9599_v7 = vld [vmem:[%s11007_s21 + $0x424] ss:$8 sps:$4 sm:$0xff]  }
 0x142   : > { %7234 = vmatprep.subr.bf16.mxu0 %v9523_v9  ;;  %v9602_v8 = vld [vmem:[%s11007_s21 + $0x1324] ss:$8 sps:$4 sm:$0xff]   ;;  %v9600_v9 = vld [vmem:[%s11007_s21 + $0x1320] ss:$8 sps:$4 sm:$0xff]  }
 0x144   : > { %6620 = vmatpush1.bf16.msra.mxu1 %v9518_v10  ;;  %v9605_v10 = vld [vmem:[%s11007_s21 + $0x434] ss:$8 sps:$4 sm:$0xff]  }
 0x145   : > { %7235 = vmatpush1.bf16.msra.mxu0 %v9521_v11  ;;  %6621 = vmatprep.subr.bf16.mxu1 %v9526_v12  ;;  %v9608_v11 = vld [vmem:[%s11007_s21 + $0x1334] ss:$8 sps:$4 sm:$0xff]   ;;  %v9603_v12 = vld [vmem:[%s11007_s21 + $0x430] ss:$8 sps:$4 sm:$0xff]  }
 0x146   : > { %7236 = vmatprep.subr.bf16.mxu0 %v9529_v13  ;;  %v9606_v13 = vld [vmem:[%s11007_s21 + $0x1330] ss:$8 sps:$4 sm:$0xff]  }
 0x148   : > { %6622 = vmatpush1.bf16.msra.mxu1 %v9524_v14  ;;  %v9611_v14 = vld [vmem:[%s11007_s21 + $0x444] ss:$8 sps:$4 sm:$0xff]  }
 0x149   : > { %7237 = vmatpush1.bf16.msra.mxu0 %v9527_v16  ;;  %6623 = vmatprep.subr.bf16.mxu1 %v9532_v17  ;;  %v9614_v16 = vld [vmem:[%s11007_s21 + $0x1344] ss:$8 sps:$4 sm:$0xff]   ;;  %v9609_v17 = vld [vmem:[%s11007_s21 + $0x440] ss:$8 sps:$4 sm:$0xff]  }
 0x14a   : > { %7238 = vmatprep.subr.bf16.mxu0 %v9535_v18  ;;  %v9612_v18 = vld [vmem:[%s11007_s21 + $0x1340] ss:$8 sps:$4 sm:$0xff]  }
 0x14c   : > { %6624 = vmatpush1.bf16.msra.mxu1 %v9530_v19  ;;  %v9617_v19 = vld [vmem:[%s11007_s21 + $0x454] ss:$8 sps:$4 sm:$0xff]  }
 0x14d   : > { %7239 = vmatpush1.bf16.msra.mxu0 %v9533_v21  ;;  %6625 = vmatprep.subr.bf16.mxu1 %v9538_v22  ;;  %v9620_v21 = vld [vmem:[%s11007_s21 + $0x1354] ss:$8 sps:$4 sm:$0xff]   ;;  %v9615_v22 = vld [vmem:[%s11007_s21 + $0x450] ss:$8 sps:$4 sm:$0xff]  }
 0x14e   : > { %7240 = vmatprep.subr.bf16.mxu0 %v9541_v23  ;;  %v9618_v23 = vld [vmem:[%s11007_s21 + $0x1350] ss:$8 sps:$4 sm:$0xff]  }
 0x150   : > { %6626 = vmatpush1.bf16.msra.mxu1 %v9536_v24  ;;  %v9623_v24 = vld [vmem:[%s11007_s21 + $0x464] ss:$8 sps:$4 sm:$0xff]  }
 0x151   : > { %7241 = vmatpush1.bf16.msra.mxu0 %v9539_v25  ;;  %6627 = vmatprep.subr.bf16.mxu1 %v9544_v26  ;;  %v9626_v25 = vld [vmem:[%s11007_s21 + $0x1364] ss:$8 sps:$4 sm:$0xff]   ;;  %v9621_v26 = vld [vmem:[%s11007_s21 + $0x460] ss:$8 sps:$4 sm:$0xff]  }
 0x152   : > { %7242 = vmatprep.subr.bf16.mxu0 %v9547_v27  ;;  %v9624_v27 = vld [vmem:[%s11007_s21 + $0x1360] ss:$8 sps:$4 sm:$0xff]  }
 0x154   : > { %6628 = vmatpush1.bf16.msra.mxu1 %v9542_v28  ;;  %v9629_v28 = vld [vmem:[%s11007_s21 + $0x474] ss:$8 sps:$4 sm:$0xff]  }
 0x155   : > { %7243 = vmatpush1.bf16.msra.mxu0 %v9545_v29  ;;  %6629 = vmatprep.subr.bf16.mxu1 %v9550_v31  ;;  %v9632_v29 = vld [vmem:[%s11007_s21 + $0x1374] ss:$8 sps:$4 sm:$0xff]   ;;  %v9627_v31 = vld [vmem:[%s11007_s21 + $0x470] ss:$8 sps:$4 sm:$0xff]  }
 0x156   : > { %7244 = vmatprep.subr.bf16.mxu0 %v9553_v53  ;;  %v9630_v53 = vld [vmem:[%s11007_s21 + $0x1370] ss:$8 sps:$4 sm:$0xff]  }
 0x158   : > { %6630 = vmatpush1.bf16.msra.mxu1 %v9548_v32  ;;  %v9635_v32 = vld [vmem:[%s11007_s21 + $0x484] ss:$8 sps:$4 sm:$0xff]  }
 0x159   : > { %7245 = vmatpush1.bf16.msra.mxu0 %v9551_v33  ;;  %6631 = vmatprep.subr.bf16.mxu1 %v9556_v34  ;;  %v9638_v33 = vld [vmem:[%s11007_s21 + $0x1384] ss:$8 sps:$4 sm:$0xff]   ;;  %v9633_v34 = vld [vmem:[%s11007_s21 + $0x480] ss:$8 sps:$4 sm:$0xff]  }
 0x15a   : > { %7246 = vmatprep.subr.bf16.mxu0 %v9559_v35  ;;  %v9636_v35 = vld [vmem:[%s11007_s21 + $0x1380] ss:$8 sps:$4 sm:$0xff]  }
 0x15c   : > { %6632 = vmatpush1.bf16.msra.mxu1 %v9554_v36  ;;  %v9641_v36 = vld [vmem:[%s11007_s21 + $0x494] ss:$8 sps:$4 sm:$0xff]  }
 0x15d   : > { %7247 = vmatpush1.bf16.msra.mxu0 %v9557_v38  ;;  %6633 = vmatprep.subr.bf16.mxu1 %v9562_v39  ;;  %v9644_v38 = vld [vmem:[%s11007_s21 + $0x1394] ss:$8 sps:$4 sm:$0xff]   ;;  %v9639_v39 = vld [vmem:[%s11007_s21 + $0x490] ss:$8 sps:$4 sm:$0xff]  }
 0x15e   : > { %7248 = vmatprep.subr.bf16.mxu0 %v9565_v40  ;;  %v9642_v40 = vld [vmem:[%s11007_s21 + $0x1390] ss:$8 sps:$4 sm:$0xff]  }
 0x160   : > { %6634 = vmatpush1.bf16.msra.mxu1 %v9560_v20  ;;  %v9647_v20 = vld [vmem:[%s11007_s21 + $0x4a4] ss:$8 sps:$4 sm:$0xff]  }
 0x161   : > { %7249 = vmatpush1.bf16.msra.mxu0 %v9563_v42  ;;  %6635 = vmatprep.subr.bf16.mxu1 %v9568_v44  ;;  %v9650_v42 = vld [vmem:[%s11007_s21 + $0x13a4] ss:$8 sps:$4 sm:$0xff]   ;;  %v9645_v44 = vld [vmem:[%s11007_s21 + $0x4a0] ss:$8 sps:$4 sm:$0xff]  }
 0x162   : > { %7250 = vmatprep.subr.bf16.mxu0 %v9571_v49  ;;  %v9648_v49 = vld [vmem:[%s11007_s21 + $0x13a0] ss:$8 sps:$4 sm:$0xff]  }
 0x164   : > { %6636 = vmatpush1.bf16.msra.mxu1 %v9566_v45  ;;  %v9653_v45 = vld [vmem:[%s11007_s21 + $0x4b4] ss:$8 sps:$4 sm:$0xff]  }
 0x165   : > { %7251 = vmatpush1.bf16.msra.mxu0 %v9569_v46  ;;  %6637 = vmatprep.subr.bf16.mxu1 %v9574_v48  ;;  %v9656_v46 = vld [vmem:[%s11007_s21 + $0x13b4] ss:$8 sps:$4 sm:$0xff]   ;;  %v9651_v48 = vld [vmem:[%s11007_s21 + $0x4b0] ss:$8 sps:$4 sm:$0xff]  }
 0x166   : > { %7252 = vmatprep.subr.bf16.mxu0 %v9577_v50  ;;  %v9654_v50 = vld [vmem:[%s11007_s21 + $0x13b0] ss:$8 sps:$4 sm:$0xff]  }
 0x168   : > { %6638 = vmatpush1.bf16.msra.mxu1 %v9572_v54  ;;  %v9659_v54 = vld [vmem:[%s11007_s21 + $0x4c4] ss:$8 sps:$4 sm:$0xff]  }
 0x169   : > { %7253 = vmatpush1.bf16.msra.mxu0 %v9575_v55  ;;  %6639 = vmatprep.subr.bf16.mxu1 %v9580_v57  ;;  %v9662_v55 = vld [vmem:[%s11007_s21 + $0x13c4] ss:$8 sps:$4 sm:$0xff]   ;;  %v9657_v57 = vld [vmem:[%s11007_s21 + $0x4c0] ss:$8 sps:$4 sm:$0xff]  }
 0x16a   : > { %7254 = vmatprep.subr.bf16.mxu0 %v9583_v58  ;;  %v9660_v58 = vld [vmem:[%s11007_s21 + $0x13c0] ss:$8 sps:$4 sm:$0xff]  }
 0x16c   : > { %6640 = vmatpush1.bf16.msra.mxu1 %v9578_v37  ;;  %v9665_v37 = vld [vmem:[%s11007_s21 + $0x4d4] ss:$8 sps:$4 sm:$0xff]  }
 0x16d   : > { %7255 = vmatpush1.bf16.msra.mxu0 %v9581_v59  ;;  %6650 = vmatprep.subr.bf16.mxu1 %v9586_v60  ;;  %v9668_v59 = vld [vmem:[%s11007_s21 + $0x13d4] ss:$8 sps:$4 sm:$0xff]   ;;  %v9663_v60 = vld [vmem:[%s11007_s21 + $0x4d0] ss:$8 sps:$4 sm:$0xff]  }
 0x16e   : > { %7265 = vmatprep.subr.bf16.mxu0 %v9590_v41  ;;  %v9666_v41 = vld [vmem:[%s11007_s21 + $0x13d0] ss:$8 sps:$4 sm:$0xff]  }
 0x16f   : > { %6642 = vmatmul.mubr.bf16.vlgmr.msra.gmra.mrb[0].mxu1 %v1305_v0  ;;  %v9669_v0 = vld [vmem:[%s11007_s21 + $0x4e0] ss:$8 sps:$4 sm:$0xff]  }
 0x170   : > { %7257 = vmatmul.mubr.bf16.vlgmr.msra.gmra.mrb[0].mxu0 %v11374_v1  ;;  %6651 = vmatpush1.bf16.msra.mxu1 %v9584_v62  ;;  %v9674_v62 = vld [vmem:[%s11007_s21 + $0x13e4] ss:$8 sps:$4 sm:$0xff]  }
 0x171   : > { %7266 = vmatpush1.bf16.msra.mxu0 %v9588_v63  ;;  %6652 = vmatprep.subr.bf16.mxu1 %v9593_v2  ;;  %v11438_v63 = vld.sshfl [vmem:[%s11021_s13 + $0x28] sm:$0xff pattern:$0x75316420] }
 0x172   : > { %7267 = vmatprep.subr.bf16.mxu0 %v9596_v3  ;;  %6682 = vmatprep.mubr.bf16.mxu1 %v11379_v4  ;;  %v9672_v2 = vld [vmem:[%s11007_s21 + $0x13e0] ss:$8 sps:$4 sm:$0xff]   ;;  %v9677_v3 = vld [vmem:[%s11007_s21 + $0x4f4] ss:$8 sps:$4 sm:$0xff]  }
 0x173   : > { %7297 = vmatprep.mubr.bf16.mxu0 %v1503_v6  ;;  %v9680_v6 = vld [vmem:[%s11007_s21 + $0x13f4] ss:$8 sps:$4 sm:$0xff]  }
 0x174   : > { %6653 = vmatpush1.bf16.msra.mxu1 %v9591_v43  ;;  %v9675_v43 = vld [vmem:[%s11007_s21 + $0x4f0] ss:$8 sps:$4 sm:$0xff]  }
 0x175   : > { %7268 = vmatpush1.bf16.msra.mxu0 %v9594_v51  ;;  %6654 = vmatprep.subr.bf16.mxu1 %v9599_v7  ;;  %v9678_v51 = vld [vmem:[%s11007_s21 + $0x13f0] ss:$8 sps:$4 sm:$0xff]   ;;  %v9683_v7 = vld [vmem:[%s11007_s21 + $0x504] ss:$8 sps:$4 sm:$0xff]  }
 0x176   : > { %7269 = vmatprep.subr.bf16.mxu0 %v9602_v8  ;;  %v9686_v8 = vld [vmem:[%s11007_s21 + $0x1404] ss:$8 sps:$4 sm:$0xff]  }
 0x178   : > { %6655 = vmatpush1.bf16.msra.mxu1 %v9597_v30  ;;  %v1519_v30 = vcombine.high %v11438_v63, %v11438_v63 }
 0x179   : > { %7270 = vmatpush1.bf16.msra.mxu0 %v9600_v9  ;;  %6656 = vmatprep.subr.bf16.mxu1 %v9605_v10  ;;  %v11452_v9 = vrot.slane %v11358_v56, %v11074_v52  ;;  %v1501_v10 = vcombine.high %v11374_v1, %v11374_v1  ;;  %v9687_v1 = vld [vmem:[%s11007_s21 + $0x510] ss:$8 sps:$4 sm:$0xff]  }
 0x17a   : > { %7271 = vmatprep.subr.bf16.mxu0 %v9608_v11  ;;  %v9681_v11 = vld [vmem:[%s11007_s21 + $0x500] ss:$8 sps:$4 sm:$0xff]   ;;  %v11463_v56 = vrot.slane %v1519_v30, %v11074_v52  ;;  %v9767_v30 = vld [vmem:[%s11007_s21 + $0x5e4] ss:$8 sps:$4 sm:$0xff]  }
 0x17c   : > { %6657 = vmatpush1.bf16.msra.mxu1 %v9603_v12  ;;  %v9684_v12 = vld [vmem:[%s11007_s21 + $0x1400] ss:$8 sps:$4 sm:$0xff]  }
 0x17d   : > { %7272 = vmatpush1.bf16.msra.mxu0 %v9606_v13  ;;  %6658 = vmatprep.subr.bf16.mxu1 %v9611_v14  ;;  %v9689_v13 = vld [vmem:[%s11007_s21 + $0x514] ss:$8 sps:$4 sm:$0xff]  }
 0x17e   : > { %7273 = vmatprep.subr.bf16.mxu0 %v9614_v16  ;;  %v9692_v14 = vld [vmem:[%s11007_s21 + $0x1414] ss:$8 sps:$4 sm:$0xff]   ;;  %v1355_v16 = vcombine.high %v11379_v4, %v11379_v4  ;;  %v9698_v4 = vld [vmem:[%s11007_s21 + $0x1424] ss:$8 sps:$4 sm:$0xff]  }
 0x180   : > { %6659 = vmatpush1.bf16.msra.mxu1 %v9609_v17  ;;  %v9690_v17 = vld [vmem:[%s11007_s21 + $0x1410] ss:$8 sps:$4 sm:$0xff]  }
 0x181   : > { %7274 = vmatpush1.bf16.msra.mxu0 %v9612_v18  ;;  %6660 = vmatprep.subr.bf16.mxu1 %v9617_v19  ;;  %v9695_v18 = vld [vmem:[%s11007_s21 + $0x524] ss:$8 sps:$4 sm:$0xff]   ;;  %v9693_v19 = vld [vmem:[%s11007_s21 + $0x520] ss:$8 sps:$4 sm:$0xff]  }
 0x182   : > { %7275 = vmatprep.subr.bf16.mxu0 %v9620_v21  ;;  %v9696_v21 = vld [vmem:[%s11007_s21 + $0x1420] ss:$8 sps:$4 sm:$0xff]  }
 0x184   : > { %6661 = vmatpush1.bf16.msra.mxu1 %v9615_v22  ;;  %v9701_v22 = vld [vmem:[%s11007_s21 + $0x534] ss:$8 sps:$4 sm:$0xff]  }
 0x185   : > { %7276 = vmatpush1.bf16.msra.mxu0 %v9618_v23  ;;  %6662 = vmatprep.subr.bf16.mxu1 %v9623_v24  ;;  %v9704_v23 = vld [vmem:[%s11007_s21 + $0x1434] ss:$8 sps:$4 sm:$0xff]   ;;  %v9699_v24 = vld [vmem:[%s11007_s21 + $0x530] ss:$8 sps:$4 sm:$0xff]  }
 0x186   : > { %7277 = vmatprep.subr.bf16.mxu0 %v9626_v25  ;;  %v9702_v25 = vld [vmem:[%s11007_s21 + $0x1430] ss:$8 sps:$4 sm:$0xff]  }
 0x188   : > { %6663 = vmatpush1.bf16.msra.mxu1 %v9621_v26  ;;  %v9707_v26 = vld [vmem:[%s11007_s21 + $0x544] ss:$8 sps:$4 sm:$0xff]  }
 0x189   : > { %7278 = vmatpush1.bf16.msra.mxu0 %v9624_v27  ;;  %6664 = vmatprep.subr.bf16.mxu1 %v9629_v28  ;;  %v9710_v27 = vld [vmem:[%s11007_s21 + $0x1444] ss:$8 sps:$4 sm:$0xff]   ;;  %v9705_v28 = vld [vmem:[%s11007_s21 + $0x540] ss:$8 sps:$4 sm:$0xff]  }
 0x18a   : > { %7279 = vmatprep.subr.bf16.mxu0 %v9632_v29  ;;  %v9708_v29 = vld [vmem:[%s11007_s21 + $0x1440] ss:$8 sps:$4 sm:$0xff]  }
 0x18c   : > { %6665 = vmatpush1.bf16.msra.mxu1 %v9627_v31  ;;  %v9713_v31 = vld [vmem:[%s11007_s21 + $0x554] ss:$8 sps:$4 sm:$0xff]  }
 0x18d   : > { %7280 = vmatpush1.bf16.msra.mxu0 %v9630_v53  ;;  %6666 = vmatprep.subr.bf16.mxu1 %v9635_v32  ;;  %v9716_v53 = vld [vmem:[%s11007_s21 + $0x1454] ss:$8 sps:$4 sm:$0xff]   ;;  %v9711_v32 = vld [vmem:[%s11007_s21 + $0x550] ss:$8 sps:$4 sm:$0xff]  }
 0x18e   : > { %7281 = vmatprep.subr.bf16.mxu0 %v9638_v33  ;;  %v9714_v33 = vld [vmem:[%s11007_s21 + $0x1450] ss:$8 sps:$4 sm:$0xff]  }
 0x190   : > { %6667 = vmatpush1.bf16.msra.mxu1 %v9633_v34  ;;  %v9719_v34 = vld [vmem:[%s11007_s21 + $0x564] ss:$8 sps:$4 sm:$0xff]  }
 0x191   : > { %7282 = vmatpush1.bf16.msra.mxu0 %v9636_v35  ;;  %6668 = vmatprep.subr.bf16.mxu1 %v9641_v36  ;;  %v9722_v35 = vld [vmem:[%s11007_s21 + $0x1464] ss:$8 sps:$4 sm:$0xff]   ;;  %v9717_v36 = vld [vmem:[%s11007_s21 + $0x560] ss:$8 sps:$4 sm:$0xff]  }
 0x192   : > { %7283 = vmatprep.subr.bf16.mxu0 %v9644_v38  ;;  %v9720_v38 = vld [vmem:[%s11007_s21 + $0x1460] ss:$8 sps:$4 sm:$0xff]  }
 0x194   : > { %6669 = vmatpush1.bf16.msra.mxu1 %v9639_v39  ;;  %v9725_v39 = vld [vmem:[%s11007_s21 + $0x574] ss:$8 sps:$4 sm:$0xff]  }
 0x195   : > { %7284 = vmatpush1.bf16.msra.mxu0 %v9642_v40  ;;  %6670 = vmatprep.subr.bf16.mxu1 %v9647_v20  ;;  %v9728_v40 = vld [vmem:[%s11007_s21 + $0x1474] ss:$8 sps:$4 sm:$0xff]   ;;  %v9723_v20 = vld [vmem:[%s11007_s21 + $0x570] ss:$8 sps:$4 sm:$0xff]  }
 0x196   : > { %7285 = vmatprep.subr.bf16.mxu0 %v9650_v42  ;;  %v9726_v42 = vld [vmem:[%s11007_s21 + $0x1470] ss:$8 sps:$4 sm:$0xff]  }
 0x198   : > { %6671 = vmatpush1.bf16.msra.mxu1 %v9645_v44  ;;  %v9731_v44 = vld [vmem:[%s11007_s21 + $0x584] ss:$8 sps:$4 sm:$0xff]  }
 0x199   : > { %7286 = vmatpush1.bf16.msra.mxu0 %v9648_v49  ;;  %6672 = vmatprep.subr.bf16.mxu1 %v9653_v45  ;;  %v9734_v49 = vld [vmem:[%s11007_s21 + $0x1484] ss:$8 sps:$4 sm:$0xff]   ;;  %v9729_v45 = vld [vmem:[%s11007_s21 + $0x580] ss:$8 sps:$4 sm:$0xff]  }
 0x19a   : > { %7287 = vmatprep.subr.bf16.mxu0 %v9656_v46  ;;  %v9732_v46 = vld [vmem:[%s11007_s21 + $0x1480] ss:$8 sps:$4 sm:$0xff]  }
 0x19c   : > { %6673 = vmatpush1.bf16.msra.mxu1 %v9651_v48  ;;  %v9737_v48 = vld [vmem:[%s11007_s21 + $0x594] ss:$8 sps:$4 sm:$0xff]  }
 0x19d   : > { %7288 = vmatpush1.bf16.msra.mxu0 %v9654_v50  ;;  %6674 = vmatprep.subr.bf16.mxu1 %v9659_v54  ;;  %v9740_v50 = vld [vmem:[%s11007_s21 + $0x1494] ss:$8 sps:$4 sm:$0xff]   ;;  %v9735_v54 = vld [vmem:[%s11007_s21 + $0x590] ss:$8 sps:$4 sm:$0xff]  }
 0x19e   : > { %7289 = vmatprep.subr.bf16.mxu0 %v9662_v55  ;;  %v9738_v55 = vld [vmem:[%s11007_s21 + $0x1490] ss:$8 sps:$4 sm:$0xff]  }
 0x1a0   : > { %6675 = vmatpush1.bf16.msra.mxu1 %v9657_v57  ;;  %v9743_v57 = vld [vmem:[%s11007_s21 + $0x5a4] ss:$8 sps:$4 sm:$0xff]  }
 0x1a1   : > { %7290 = vmatpush1.bf16.msra.mxu0 %v9660_v58  ;;  %6676 = vmatprep.subr.bf16.mxu1 %v9665_v37  ;;  %v9746_v58 = vld [vmem:[%s11007_s21 + $0x14a4] ss:$8 sps:$4 sm:$0xff]   ;;  %v9741_v37 = vld [vmem:[%s11007_s21 + $0x5a0] ss:$8 sps:$4 sm:$0xff]  }
 0x1a2   : > { %7291 = vmatprep.subr.bf16.mxu0 %v9668_v59  ;;  %v9744_v59 = vld [vmem:[%s11007_s21 + $0x14a0] ss:$8 sps:$4 sm:$0xff]  }
 0x1a4   : > { %6677 = vmatpush1.bf16.msra.mxu1 %v9663_v60  ;;  %v9749_v60 = vld [vmem:[%s11007_s21 + $0x5b4] ss:$8 sps:$4 sm:$0xff]  }
 0x1a5   : > { %7292 = vmatpush1.bf16.msra.mxu0 %v9666_v41  ;;  %6678 = vmatprep.subr.bf16.mxu1 %v9671_v61  ;;  %v9752_v41 = vld [vmem:[%s11007_s21 + $0x14b4] ss:$8 sps:$4 sm:$0xff]   ;;  %v9747_v61 = vld [vmem:[%s11007_s21 + $0x5b0] ss:$8 sps:$4 sm:$0xff]  }
 0x1a6   : > { %7293 = vmatprep.subr.bf16.mxu0 %v9674_v62  ;;  %v9750_v62 = vld [vmem:[%s11007_s21 + $0x14b0] ss:$8 sps:$4 sm:$0xff]  }
 0x1a8   : > { %6679 = vmatpush1.bf16.msra.mxu1 %v9669_v0  ;;  %v9755_v0 = vld [vmem:[%s11007_s21 + $0x5c4] ss:$8 sps:$4 sm:$0xff]  }
 0x1a9   : > { %7294 = vmatpush1.bf16.msra.mxu0 %v9672_v2  ;;  %6680 = vmatprep.subr.bf16.mxu1 %v9677_v3  ;;  %v9758_v2 = vld [vmem:[%s11007_s21 + $0x14c4] ss:$8 sps:$4 sm:$0xff]   ;;  %v9753_v3 = vld [vmem:[%s11007_s21 + $0x5c0] ss:$8 sps:$4 sm:$0xff]  }
 0x1aa   : > { %7295 = vmatprep.subr.bf16.mxu0 %v9680_v6  ;;  %v9756_v6 = vld [vmem:[%s11007_s21 + $0x14c0] ss:$8 sps:$4 sm:$0xff]  }
 0x1ac   : > { %6681 = vmatpush1.bf16.msra.mxu1 %v9675_v43  ;;  %v9761_v43 = vld [vmem:[%s11007_s21 + $0x5d4] ss:$8 sps:$4 sm:$0xff]  }
 0x1ad   : > { %7296 = vmatpush1.bf16.msra.mxu0 %v9678_v51  ;;  %6691 = vmatprep.subr.bf16.mxu1 %v9683_v7  ;;  %v9764_v51 = vld [vmem:[%s11007_s21 + $0x14d4] ss:$8 sps:$4 sm:$0xff]   ;;  %v9759_v7 = vld [vmem:[%s11007_s21 + $0x5d0] ss:$8 sps:$4 sm:$0xff]  }
 0x1ae   : > { %7306 = vmatprep.subr.bf16.mxu0 %v9686_v8  ;;  %v9762_v8 = vld [vmem:[%s11007_s21 + $0x14d0] ss:$8 sps:$4 sm:$0xff]  }
 0x1af   : > { %6683 = vmatmul.mubr.bf16.vlgmr.msra.gmra.mrb[0].mxu1 %v11452_v9 }
 0x1b0   : > { %7298 = vmatmul.mubr.bf16.vlgmr.msra.gmra.mrb[0].mxu0 %v1501_v10  ;;  %6692 = vmatpush1.bf16.msra.mxu1 %v9681_v11  ;;  %v9770_v10 = vld [vmem:[%s11007_s21 + $0x14e4] ss:$8 sps:$4 sm:$0xff]  }
 0x1b1   : > { %7307 = vmatpush1.bf16.msra.mxu0 %v9684_v12  ;;  %6693 = vmatprep.subr.bf16.mxu1 %v9689_v13  ;;  %v10645_v11 = vld [vmem:[%s11021_s13 + $0x8] sm:$0xff] }
 0x1b2   : > { %7308 = vmatprep.subr.bf16.mxu0 %v9692_v14  ;;  %6723 = vmatprep.mubr.bf16.mxu1 %v1355_v16  ;;  %v1308_v12 = vcombine.high %v10645_v11, %v10645_v11  ;;  %v9765_v13 = vld [vmem:[%s11007_s21 + $0x5e0] ss:$8 sps:$4 sm:$0xff]   ;;  %v9773_v16 = vld [vmem:[%s11007_s21 + $0x5f4] ss:$8 sps:$4 sm:$0xff]   ;;  %v9843_v11 = vld [vmem:[%s11007_s21 + $0x6b0] ss:$8 sps:$4 sm:$0xff]  }
 0x1b3   : > { %7338 = vmatprep.mubr.bf16.mxu0 %v11463_v56  ;;  %v9768_v14 = vld [vmem:[%s11007_s21 + $0x14e0] ss:$8 sps:$4 sm:$0xff]  }
 0x1b4   : > { %6694 = vmatpush1.bf16.msra.mxu1 %v9687_v1  ;;  %v9776_v1 = vld [vmem:[%s11007_s21 + $0x14f4] ss:$8 sps:$4 sm:$0xff]  }
 0x1b5   : > { %7309 = vmatpush1.bf16.msra.mxu0 %v9690_v17  ;;  %6695 = vmatprep.subr.bf16.mxu1 %v9695_v18  ;;  %v11525_v17 = vrot.slane %v1308_v12, %v11074_v52  ;;  %v9771_v18 = vld [vmem:[%s11007_s21 + $0x5f0] ss:$8 sps:$4 sm:$0xff]  }
 0x1b6   : > { %7310 = vmatprep.subr.bf16.mxu0 %v9698_v4  ;;  %v9774_v4 = vld [vmem:[%s11007_s21 + $0x14f0] ss:$8 sps:$4 sm:$0xff]  }
 0x1b7   : > { %v9846_v12 = vld [vmem:[%s11007_s21 + $0x15b0] ss:$8 sps:$4 sm:$0xff]  }
 0x1b8   : > { %6696 = vmatpush1.bf16.msra.mxu1 %v9693_v19  ;;  %v9779_v19 = vld [vmem:[%s11007_s21 + $0x604] ss:$8 sps:$4 sm:$0xff]  }
 0x1b9   : > { %7311 = vmatpush1.bf16.msra.mxu0 %v9696_v21  ;;  %6697 = vmatprep.subr.bf16.mxu1 %v9701_v22  ;;  %v9782_v21 = vld [vmem:[%s11007_s21 + $0x1504] ss:$8 sps:$4 sm:$0xff]   ;;  %v1324_v22 = vcombine.high %v11525_v17, %v11525_v17 }
 0x1ba   : > { %7312 = vmatprep.subr.bf16.mxu0 %v9704_v23  ;;  %v1353_v23 = vcombine.high %v11452_v9, %v11452_v9  ;;  %v1551_v9 = vcombine.high %v11463_v56, %v11463_v56  ;;  %v9789_v56 = vld [vmem:[%s11007_s21 + $0x620] ss:$8 sps:$4 sm:$0xff]  }
 0x1bc   : > { %6698 = vmatpush1.bf16.msra.mxu1 %v9699_v24  ;;  %v11537_v24 = vrot.slane %v11438_v63, %v11074_v52  ;;  %v9783_v63 = vld [vmem:[%s11007_s21 + $0x610] ss:$8 sps:$4 sm:$0xff]  }
 0x1bd   : > { %7313 = vmatpush1.bf16.msra.mxu0 %v9702_v25  ;;  %6699 = vmatprep.subr.bf16.mxu1 %v9707_v26  ;;  %v9777_v25 = vld [vmem:[%s11007_s21 + $0x600] ss:$8 sps:$4 sm:$0xff]  }
 0x1be   : > { %7314 = vmatprep.subr.bf16.mxu0 %v9710_v27  ;;  %v9780_v26 = vld [vmem:[%s11007_s21 + $0x1500] ss:$8 sps:$4 sm:$0xff]   ;;  %v9785_v27 = vld [vmem:[%s11007_s21 + $0x614] ss:$8 sps:$4 sm:$0xff]  }
 0x1c0   : > { %6700 = vmatpush1.bf16.msra.mxu1 %v9705_v28  ;;  %v9788_v28 = vld [vmem:[%s11007_s21 + $0x1514] ss:$8 sps:$4 sm:$0xff]  }
 0x1c1   : > { %7315 = vmatpush1.bf16.msra.mxu0 %v9708_v29  ;;  %6701 = vmatprep.subr.bf16.mxu1 %v9713_v31  ;;  %v11544_v29 = vrot.slane %v1324_v22, %v11074_v52  ;;  %v9786_v31 = vld [vmem:[%s11007_s21 + $0x1510] ss:$8 sps:$4 sm:$0xff]   ;;  %v9863_v22 = vld [vmem:[%s11007_s21 + $0x6e4] ss:$8 sps:$4 sm:$0xff]  }
 0x1c2   : > { %7316 = vmatprep.subr.bf16.mxu0 %v9716_v53  ;;  %v9791_v53 = vld [vmem:[%s11007_s21 + $0x624] ss:$8 sps:$4 sm:$0xff]  }
 0x1c4   : > { %6702 = vmatpush1.bf16.msra.mxu1 %v9711_v32  ;;  %v9794_v32 = vld [vmem:[%s11007_s21 + $0x1524] ss:$8 sps:$4 sm:$0xff]  }
 0x1c5   : > { %7317 = vmatpush1.bf16.msra.mxu0 %v9714_v33  ;;  %6703 = vmatprep.subr.bf16.mxu1 %v9719_v34  ;;  %v9792_v33 = vld [vmem:[%s11007_s21 + $0x1520] ss:$8 sps:$4 sm:$0xff]   ;;  %v9797_v34 = vld [vmem:[%s11007_s21 + $0x634] ss:$8 sps:$4 sm:$0xff]  }
 0x1c6   : > { %7318 = vmatprep.subr.bf16.mxu0 %v9722_v35  ;;  %v9800_v35 = vld [vmem:[%s11007_s21 + $0x1534] ss:$8 sps:$4 sm:$0xff]  }
 0x1c8   : > { %6704 = vmatpush1.bf16.msra.mxu1 %v9717_v36  ;;  %v9795_v36 = vld [vmem:[%s11007_s21 + $0x630] ss:$8 sps:$4 sm:$0xff]  }
 0x1c9   : > { %7319 = vmatpush1.bf16.msra.mxu0 %v9720_v38  ;;  %6705 = vmatprep.subr.bf16.mxu1 %v9725_v39  ;;  %v9798_v38 = vld [vmem:[%s11007_s21 + $0x1530] ss:$8 sps:$4 sm:$0xff]   ;;  %v9803_v39 = vld [vmem:[%s11007_s21 + $0x644] ss:$8 sps:$4 sm:$0xff]  }
 0x1ca   : > { %7320 = vmatprep.subr.bf16.mxu0 %v9728_v40  ;;  %v9806_v40 = vld [vmem:[%s11007_s21 + $0x1544] ss:$8 sps:$4 sm:$0xff]  }
 0x1cc   : > { %6706 = vmatpush1.bf16.msra.mxu1 %v9723_v20  ;;  %v9801_v20 = vld [vmem:[%s11007_s21 + $0x640] ss:$8 sps:$4 sm:$0xff]  }
 0x1cd   : > { %7321 = vmatpush1.bf16.msra.mxu0 %v9726_v42  ;;  %6707 = vmatprep.subr.bf16.mxu1 %v9731_v44  ;;  %v9804_v42 = vld [vmem:[%s11007_s21 + $0x1540] ss:$8 sps:$4 sm:$0xff]   ;;  %v9809_v44 = vld [vmem:[%s11007_s21 + $0x654] ss:$8 sps:$4 sm:$0xff]  }
 0x1ce   : > { %7322 = vmatprep.subr.bf16.mxu0 %v9734_v49  ;;  %v9812_v49 = vld [vmem:[%s11007_s21 + $0x1554] ss:$8 sps:$4 sm:$0xff]  }
 0x1d0   : > { %6708 = vmatpush1.bf16.msra.mxu1 %v9729_v45  ;;  %v9807_v45 = vld [vmem:[%s11007_s21 + $0x650] ss:$8 sps:$4 sm:$0xff]  }
 0x1d1   : > { %7323 = vmatpush1.bf16.msra.mxu0 %v9732_v46  ;;  %6709 = vmatprep.subr.bf16.mxu1 %v9737_v48  ;;  %v9810_v46 = vld [vmem:[%s11007_s21 + $0x1550] ss:$8 sps:$4 sm:$0xff]   ;;  %v9815_v48 = vld [vmem:[%s11007_s21 + $0x664] ss:$8 sps:$4 sm:$0xff]  }
 0x1d2   : > { %7324 = vmatprep.subr.bf16.mxu0 %v9740_v50  ;;  %v9818_v50 = vld [vmem:[%s11007_s21 + $0x1564] ss:$8 sps:$4 sm:$0xff]  }
 0x1d4   : > { %6710 = vmatpush1.bf16.msra.mxu1 %v9735_v54  ;;  %v9813_v54 = vld [vmem:[%s11007_s21 + $0x660] ss:$8 sps:$4 sm:$0xff]  }
 0x1d5   : > { %7325 = vmatpush1.bf16.msra.mxu0 %v9738_v55  ;;  %6711 = vmatprep.subr.bf16.mxu1 %v9743_v57  ;;  %v9816_v55 = vld [vmem:[%s11007_s21 + $0x1560] ss:$8 sps:$4 sm:$0xff]   ;;  %v9821_v57 = vld [vmem:[%s11007_s21 + $0x674] ss:$8 sps:$4 sm:$0xff]  }
 0x1d6   : > { %7326 = vmatprep.subr.bf16.mxu0 %v9746_v58  ;;  %v9824_v58 = vld [vmem:[%s11007_s21 + $0x1574] ss:$8 sps:$4 sm:$0xff]  }
 0x1d8   : > { %6712 = vmatpush1.bf16.msra.mxu1 %v9741_v37  ;;  %v9819_v37 = vld [vmem:[%s11007_s21 + $0x670] ss:$8 sps:$4 sm:$0xff]  }
 0x1d9   : > { %7327 = vmatpush1.bf16.msra.mxu0 %v9744_v59  ;;  %6713 = vmatprep.subr.bf16.mxu1 %v9749_v60  ;;  %v9822_v59 = vld [vmem:[%s11007_s21 + $0x1570] ss:$8 sps:$4 sm:$0xff]   ;;  %v9827_v60 = vld [vmem:[%s11007_s21 + $0x684] ss:$8 sps:$4 sm:$0xff]  }
 0x1da   : > { %7328 = vmatprep.subr.bf16.mxu0 %v9752_v41  ;;  %v9830_v41 = vld [vmem:[%s11007_s21 + $0x1584] ss:$8 sps:$4 sm:$0xff]  }
 0x1dc   : > { %6714 = vmatpush1.bf16.msra.mxu1 %v9747_v61  ;;  %v9825_v61 = vld [vmem:[%s11007_s21 + $0x680] ss:$8 sps:$4 sm:$0xff]  }
 0x1dd   : > { %7329 = vmatpush1.bf16.msra.mxu0 %v9750_v62  ;;  %6715 = vmatprep.subr.bf16.mxu1 %v9755_v0  ;;  %v9828_v62 = vld [vmem:[%s11007_s21 + $0x1580] ss:$8 sps:$4 sm:$0xff]   ;;  %v9833_v0 = vld [vmem:[%s11007_s21 + $0x694] ss:$8 sps:$4 sm:$0xff]  }
 0x1de   : > { %7330 = vmatprep.subr.bf16.mxu0 %v9758_v2  ;;  %v9836_v2 = vld [vmem:[%s11007_s21 + $0x1594] ss:$8 sps:$4 sm:$0xff]  }
 0x1e0   : > { %6716 = vmatpush1.bf16.msra.mxu1 %v9753_v3  ;;  %v9831_v3 = vld [vmem:[%s11007_s21 + $0x690] ss:$8 sps:$4 sm:$0xff]  }
 0x1e1   : > { %7331 = vmatpush1.bf16.msra.mxu0 %v9756_v6  ;;  %6717 = vmatprep.subr.bf16.mxu1 %v9761_v43  ;;  %v9834_v6 = vld [vmem:[%s11007_s21 + $0x1590] ss:$8 sps:$4 sm:$0xff]   ;;  %v9839_v43 = vld [vmem:[%s11007_s21 + $0x6a4] ss:$8 sps:$4 sm:$0xff]  }
 0x1e2   : > { %7332 = vmatprep.subr.bf16.mxu0 %v9764_v51  ;;  %v9842_v51 = vld [vmem:[%s11007_s21 + $0x15a4] ss:$8 sps:$4 sm:$0xff]  }
 0x1e4   : > { %6718 = vmatpush1.bf16.msra.mxu1 %v9759_v7  ;;  %v9837_v7 = vld [vmem:[%s11007_s21 + $0x6a0] ss:$8 sps:$4 sm:$0xff]  }
 0x1e5   : > { %7333 = vmatpush1.bf16.msra.mxu0 %v9762_v8  ;;  %6719 = vmatprep.subr.bf16.mxu1 %v9767_v30  ;;  %v9840_v8 = vld [vmem:[%s11007_s21 + $0x15a0] ss:$8 sps:$4 sm:$0xff]   ;;  %v9845_v30 = vld [vmem:[%s11007_s21 + $0x6b4] ss:$8 sps:$4 sm:$0xff]  }
 0x1e6   : > { %7334 = vmatprep.subr.bf16.mxu0 %v9770_v10  ;;  %v9848_v10 = vld [vmem:[%s11007_s21 + $0x15b4] ss:$8 sps:$4 sm:$0xff]  }
 0x1e8   : > { %6720 = vmatpush1.bf16.msra.mxu1 %v9765_v13  ;;  %v9851_v13 = vld [vmem:[%s11007_s21 + $0x6c4] ss:$8 sps:$4 sm:$0xff]  }
 0x1e9   : > { %7335 = vmatpush1.bf16.msra.mxu0 %v9768_v14  ;;  %6721 = vmatprep.subr.bf16.mxu1 %v9773_v16  ;;  %v9854_v14 = vld [vmem:[%s11007_s21 + $0x15c4] ss:$8 sps:$4 sm:$0xff]   ;;  %v9849_v16 = vld [vmem:[%s11007_s21 + $0x6c0] ss:$8 sps:$4 sm:$0xff]  }
 0x1ea   : > { %7336 = vmatprep.subr.bf16.mxu0 %v9776_v1  ;;  %v9852_v1 = vld [vmem:[%s11007_s21 + $0x15c0] ss:$8 sps:$4 sm:$0xff]  }
 0x1ec   : > { %6722 = vmatpush1.bf16.msra.mxu1 %v9771_v18  ;;  %v9857_v18 = vld [vmem:[%s11007_s21 + $0x6d4] ss:$8 sps:$4 sm:$0xff]  }
 0x1ed   : > { %7337 = vmatpush1.bf16.msra.mxu0 %v9774_v4  ;;  %6732 = vmatprep.subr.bf16.mxu1 %v9779_v19  ;;  %v9860_v4 = vld [vmem:[%s11007_s21 + $0x15d4] ss:$8 sps:$4 sm:$0xff]   ;;  %v9855_v19 = vld [vmem:[%s11007_s21 + $0x6d0] ss:$8 sps:$4 sm:$0xff]  }
 0x1ee   : > { %7347 = vmatprep.subr.bf16.mxu0 %v9782_v21  ;;  %v9858_v21 = vld [vmem:[%s11007_s21 + $0x15d0] ss:$8 sps:$4 sm:$0xff]  }
 0x1ef   : > { %6724 = vmatmul.mubr.bf16.vlgmr.msra.gmra.mrb[0].mxu1 %v1353_v23  ;;  %v9866_v23 = vld [vmem:[%s11007_s21 + $0x15e4] ss:$8 sps:$4 sm:$0xff]  }
 0x1f0   : > { %7339 = vmatmul.mubr.bf16.vlgmr.msra.gmra.mrb[0].mxu0 %v11537_v24  ;;  %6733 = vmatpush1.bf16.msra.mxu1 %v9777_v25  ;;  %v10646_v25 = vld [vmem:[%s11021_s13 + $0x28] sm:$0xff] }
 0x1f1   : > { %7348 = vmatpush1.bf16.msra.mxu0 %v9780_v26  ;;  %6734 = vmatprep.subr.bf16.mxu1 %v9785_v27  ;;  %v1504_v26 = vcombine.high %v10646_v25, %v10646_v25  ;;  %v9861_v27 = vld [vmem:[%s11007_s21 + $0x6e0] ss:$8 sps:$4 sm:$0xff]   ;;  %v9940_v25 = vld [vmem:[%s11007_s21 + $0x7b0] ss:$8 sps:$4 sm:$0xff]  }
 0x1f2   : > { %7349 = vmatprep.subr.bf16.mxu0 %v9788_v28  ;;  %6764 = vmatprep.mubr.bf16.mxu1 %v11544_v29  ;;  %v9864_v28 = vld [vmem:[%s11007_s21 + $0x15e0] ss:$8 sps:$4 sm:$0xff]  }
 0x1f3   : > { %7379 = vmatprep.mubr.bf16.mxu0 %v1551_v9  ;;  %v9869_v9 = vld [vmem:[%s11007_s21 + $0x6f4] ss:$8 sps:$4 sm:$0xff]  }
 0x1f4   : > { %6735 = vmatpush1.bf16.msra.mxu1 %v9783_v63  ;;  %v9872_v63 = vld [vmem:[%s11007_s21 + $0x15f4] ss:$8 sps:$4 sm:$0xff]  }
 0x1f5   : > { %7350 = vmatpush1.bf16.msra.mxu0 %v9786_v31  ;;  %6736 = vmatprep.subr.bf16.mxu1 %v9791_v53  ;;  %v11608_v31 = vrot.slane %v1504_v26, %v11074_v52  ;;  %v9867_v53 = vld [vmem:[%s11007_s21 + $0x6f0] ss:$8 sps:$4 sm:$0xff]  }
 0x1f6   : > { %7351 = vmatprep.subr.bf16.mxu0 %v9794_v32  ;;  %v9870_v32 = vld [vmem:[%s11007_s21 + $0x15f0] ss:$8 sps:$4 sm:$0xff]  }
 0x1f7   : > { %v9943_v26 = vld [vmem:[%s11007_s21 + $0x16b0] ss:$8 sps:$4 sm:$0xff]  }
 0x1f8   : > { %6737 = vmatpush1.bf16.msra.mxu1 %v9789_v56  ;;  %v9876_v56 = vld [vmem:[%s11007_s21 + $0x704] ss:$8 sps:$4 sm:$0xff]  }
 0x1f9   : > { %7352 = vmatpush1.bf16.msra.mxu0 %v9792_v33  ;;  %6738 = vmatprep.subr.bf16.mxu1 %v9797_v34  ;;  %v9879_v33 = vld [vmem:[%s11007_s21 + $0x1604] ss:$8 sps:$4 sm:$0xff]   ;;  %v1520_v34 = vcombine.high %v11608_v31, %v11608_v31 }
 0x1fa   : > { %7353 = vmatprep.subr.bf16.mxu0 %v9800_v35  ;;  %v11618_v35 = vrot.slane %v11525_v17, %v11074_v52 }
 0x1fb   : > { %v11629_v17 = vrot.slane %v1520_v34, %v11074_v52  ;;  %v9960_v34 = vld [vmem:[%s11007_s21 + $0x7e4] ss:$8 sps:$4 sm:$0xff]  }
 0x1fc   : > { %6739 = vmatpush1.bf16.msra.mxu1 %v9795_v36  ;;  %v1549_v36 = vcombine.high %v11537_v24, %v11537_v24  ;;  %v9880_v24 = vld [vmem:[%s11007_s21 + $0x710] ss:$8 sps:$4 sm:$0xff]  }
 0x1fd   : > { %7354 = vmatpush1.bf16.msra.mxu0 %v9798_v38  ;;  %6740 = vmatprep.subr.bf16.mxu1 %v9803_v39  ;;  %v9874_v38 = vld [vmem:[%s11007_s21 + $0x700] ss:$8 sps:$4 sm:$0xff]  }
 0x1fe   : > { %7355 = vmatprep.subr.bf16.mxu0 %v9806_v40  ;;  %v9877_v39 = vld [vmem:[%s11007_s21 + $0x1600] ss:$8 sps:$4 sm:$0xff]   ;;  %v9882_v40 = vld [vmem:[%s11007_s21 + $0x714] ss:$8 sps:$4 sm:$0xff]  }
 0x200   : > { %6741 = vmatpush1.bf16.msra.mxu1 %v9801_v20  ;;  %v9885_v20 = vld [vmem:[%s11007_s21 + $0x1614] ss:$8 sps:$4 sm:$0xff]  }
 0x201   : > { %7356 = vmatpush1.bf16.msra.mxu0 %v9804_v42  ;;  %6742 = vmatprep.subr.bf16.mxu1 %v9809_v44  ;;  %v1356_v42 = vcombine.high %v11544_v29, %v11544_v29  ;;  %v9883_v44 = vld [vmem:[%s11007_s21 + $0x1610] ss:$8 sps:$4 sm:$0xff]   ;;  %v9891_v29 = vld [vmem:[%s11007_s21 + $0x1624] ss:$8 sps:$4 sm:$0xff]  }
 0x202   : > { %7357 = vmatprep.subr.bf16.mxu0 %v9812_v49  ;;  %v9888_v49 = vld [vmem:[%s11007_s21 + $0x724] ss:$8 sps:$4 sm:$0xff]  }
 0x204   : > { %6743 = vmatpush1.bf16.msra.mxu1 %v9807_v45  ;;  %v9886_v45 = vld [vmem:[%s11007_s21 + $0x720] ss:$8 sps:$4 sm:$0xff]  }
 0x205   : > { %7358 = vmatpush1.bf16.msra.mxu0 %v9810_v46  ;;  %6744 = vmatprep.subr.bf16.mxu1 %v9815_v48  ;;  %v9889_v46 = vld [vmem:[%s11007_s21 + $0x1620] ss:$8 sps:$4 sm:$0xff]   ;;  %v9894_v48 = vld [vmem:[%s11007_s21 + $0x734] ss:$8 sps:$4 sm:$0xff]  }
 0x206   : > { %7359 = vmatprep.subr.bf16.mxu0 %v9818_v50  ;;  %v9897_v50 = vld [vmem:[%s11007_s21 + $0x1634] ss:$8 sps:$4 sm:$0xff]  }
 0x208   : > { %6745 = vmatpush1.bf16.msra.mxu1 %v9813_v54  ;;  %v9892_v54 = vld [vmem:[%s11007_s21 + $0x730] ss:$8 sps:$4 sm:$0xff]  }
 0x209   : > { %7360 = vmatpush1.bf16.msra.mxu0 %v9816_v55  ;;  %6746 = vmatprep.subr.bf16.mxu1 %v9821_v57  ;;  %v9895_v55 = vld [vmem:[%s11007_s21 + $0x1630] ss:$8 sps:$4 sm:$0xff]   ;;  %v9900_v57 = vld [vmem:[%s11007_s21 + $0x744] ss:$8 sps:$4 sm:$0xff]  }
 0x20a   : > { %7361 = vmatprep.subr.bf16.mxu0 %v9824_v58  ;;  %v9903_v58 = vld [vmem:[%s11007_s21 + $0x1644] ss:$8 sps:$4 sm:$0xff]  }
 0x20c   : > { %6747 = vmatpush1.bf16.msra.mxu1 %v9819_v37  ;;  %v9898_v37 = vld [vmem:[%s11007_s21 + $0x740] ss:$8 sps:$4 sm:$0xff]  }
 0x20d   : > { %7362 = vmatpush1.bf16.msra.mxu0 %v9822_v59  ;;  %6748 = vmatprep.subr.bf16.mxu1 %v9827_v60  ;;  %v9901_v59 = vld [vmem:[%s11007_s21 + $0x1640] ss:$8 sps:$4 sm:$0xff]   ;;  %v9906_v60 = vld [vmem:[%s11007_s21 + $0x754] ss:$8 sps:$4 sm:$0xff]  }
 0x20e   : > { %7363 = vmatprep.subr.bf16.mxu0 %v9830_v41  ;;  %v9909_v41 = vld [vmem:[%s11007_s21 + $0x1654] ss:$8 sps:$4 sm:$0xff]  }
 0x210   : > { %6749 = vmatpush1.bf16.msra.mxu1 %v9825_v61  ;;  %v9904_v61 = vld [vmem:[%s11007_s21 + $0x750] ss:$8 sps:$4 sm:$0xff]  }
 0x211   : > { %7364 = vmatpush1.bf16.msra.mxu0 %v9828_v62  ;;  %6750 = vmatprep.subr.bf16.mxu1 %v9833_v0  ;;  %v9907_v62 = vld [vmem:[%s11007_s21 + $0x1650] ss:$8 sps:$4 sm:$0xff]   ;;  %v9912_v0 = vld [vmem:[%s11007_s21 + $0x764] ss:$8 sps:$4 sm:$0xff]  }
 0x212   : > { %7365 = vmatprep.subr.bf16.mxu0 %v9836_v2  ;;  %v9915_v2 = vld [vmem:[%s11007_s21 + $0x1664] ss:$8 sps:$4 sm:$0xff]  }
 0x214   : > { %6751 = vmatpush1.bf16.msra.mxu1 %v9831_v3  ;;  %v9910_v3 = vld [vmem:[%s11007_s21 + $0x760] ss:$8 sps:$4 sm:$0xff]  }
 0x215   : > { %7366 = vmatpush1.bf16.msra.mxu0 %v9834_v6  ;;  %6752 = vmatprep.subr.bf16.mxu1 %v9839_v43  ;;  %v9913_v6 = vld [vmem:[%s11007_s21 + $0x1660] ss:$8 sps:$4 sm:$0xff]   ;;  %v9918_v43 = vld [vmem:[%s11007_s21 + $0x774] ss:$8 sps:$4 sm:$0xff]  }
 0x216   : > { %7367 = vmatprep.subr.bf16.mxu0 %v9842_v51  ;;  %v9921_v51 = vld [vmem:[%s11007_s21 + $0x1674] ss:$8 sps:$4 sm:$0xff]  }
 0x218   : > { %6753 = vmatpush1.bf16.msra.mxu1 %v9837_v7  ;;  %v9916_v7 = vld [vmem:[%s11007_s21 + $0x770] ss:$8 sps:$4 sm:$0xff]  }
 0x219   : > { %7368 = vmatpush1.bf16.msra.mxu0 %v9840_v8  ;;  %6754 = vmatprep.subr.bf16.mxu1 %v9845_v30  ;;  %v9919_v8 = vld [vmem:[%s11007_s21 + $0x1670] ss:$8 sps:$4 sm:$0xff]   ;;  %v9924_v30 = vld [vmem:[%s11007_s21 + $0x784] ss:$8 sps:$4 sm:$0xff]  }
 0x21a   : > { %7369 = vmatprep.subr.bf16.mxu0 %v9848_v10  ;;  %v9927_v10 = vld [vmem:[%s11007_s21 + $0x1684] ss:$8 sps:$4 sm:$0xff]  }
 0x21c   : > { %6755 = vmatpush1.bf16.msra.mxu1 %v9843_v11  ;;  %v9922_v11 = vld [vmem:[%s11007_s21 + $0x780] ss:$8 sps:$4 sm:$0xff]  }
 0x21d   : > { %7370 = vmatpush1.bf16.msra.mxu0 %v9846_v12  ;;  %6756 = vmatprep.subr.bf16.mxu1 %v9851_v13  ;;  %v9925_v12 = vld [vmem:[%s11007_s21 + $0x1680] ss:$8 sps:$4 sm:$0xff]   ;;  %v9930_v13 = vld [vmem:[%s11007_s21 + $0x794] ss:$8 sps:$4 sm:$0xff]  }
 0x21e   : > { %7371 = vmatprep.subr.bf16.mxu0 %v9854_v14  ;;  %v9933_v14 = vld [vmem:[%s11007_s21 + $0x1694] ss:$8 sps:$4 sm:$0xff]  }
 0x220   : > { %6757 = vmatpush1.bf16.msra.mxu1 %v9849_v16  ;;  %v9928_v16 = vld [vmem:[%s11007_s21 + $0x790] ss:$8 sps:$4 sm:$0xff]  }
 0x221   : > { %7372 = vmatpush1.bf16.msra.mxu0 %v9852_v1  ;;  %6758 = vmatprep.subr.bf16.mxu1 %v9857_v18  ;;  %v9931_v1 = vld [vmem:[%s11007_s21 + $0x1690] ss:$8 sps:$4 sm:$0xff]   ;;  %v9936_v18 = vld [vmem:[%s11007_s21 + $0x7a4] ss:$8 sps:$4 sm:$0xff]  }
 0x222   : > { %7373 = vmatprep.subr.bf16.mxu0 %v9860_v4  ;;  %v9939_v4 = vld [vmem:[%s11007_s21 + $0x16a4] ss:$8 sps:$4 sm:$0xff]  }
 0x224   : > { %6759 = vmatpush1.bf16.msra.mxu1 %v9855_v19  ;;  %v9934_v19 = vld [vmem:[%s11007_s21 + $0x7a0] ss:$8 sps:$4 sm:$0xff]  }
 0x225   : > { %7374 = vmatpush1.bf16.msra.mxu0 %v9858_v21  ;;  %6760 = vmatprep.subr.bf16.mxu1 %v9863_v22  ;;  %v9937_v21 = vld [vmem:[%s11007_s21 + $0x16a0] ss:$8 sps:$4 sm:$0xff]   ;;  %v9942_v22 = vld [vmem:[%s11007_s21 + $0x7b4] ss:$8 sps:$4 sm:$0xff]  }
 0x226   : > { %7375 = vmatprep.subr.bf16.mxu0 %v9866_v23  ;;  %v9945_v23 = vld [vmem:[%s11007_s21 + $0x16b4] ss:$8 sps:$4 sm:$0xff]  }
 0x228   : > { %6761 = vmatpush1.bf16.msra.mxu1 %v9861_v27  ;;  %v9948_v27 = vld [vmem:[%s11007_s21 + $0x7c4] ss:$8 sps:$4 sm:$0xff]  }
 0x229   : > { %7376 = vmatpush1.bf16.msra.mxu0 %v9864_v28  ;;  %6762 = vmatprep.subr.bf16.mxu1 %v9869_v9  ;;  %v9951_v28 = vld [vmem:[%s11007_s21 + $0x16c4] ss:$8 sps:$4 sm:$0xff]   ;;  %v9946_v9 = vld [vmem:[%s11007_s21 + $0x7c0] ss:$8 sps:$4 sm:$0xff]  }
 0x22a   : > { %7377 = vmatprep.subr.bf16.mxu0 %v9872_v63  ;;  %v9949_v63 = vld [vmem:[%s11007_s21 + $0x16c0] ss:$8 sps:$4 sm:$0xff]  }
 0x22c   : > { %6763 = vmatpush1.bf16.msra.mxu1 %v9867_v53  ;;  %v9954_v53 = vld [vmem:[%s11007_s21 + $0x7d4] ss:$8 sps:$4 sm:$0xff]  }
 0x22d   : > { %7378 = vmatpush1.bf16.msra.mxu0 %v9870_v32  ;;  %6773 = vmatprep.subr.bf16.mxu1 %v9876_v56  ;;  %v9957_v32 = vld [vmem:[%s11007_s21 + $0x16d4] ss:$8 sps:$4 sm:$0xff]   ;;  %v9952_v56 = vld [vmem:[%s11007_s21 + $0x7d0] ss:$8 sps:$4 sm:$0xff]  }
 0x22e   : > { %7388 = vmatprep.subr.bf16.mxu0 %v9879_v33  ;;  %v9955_v33 = vld [vmem:[%s11007_s21 + $0x16d0] ss:$8 sps:$4 sm:$0xff]  }
 0x22f   : > { %6765 = vmatmul.mubr.bf16.vlgmr.msra.gmra.mrb[0].mxu1 %v11618_v35 }
 0x230   : > { %7380 = vmatmul.mubr.bf16.vlgmr.msra.gmra.mrb[0].mxu0 %v1549_v36  ;;  %6774 = vmatpush1.bf16.msra.mxu1 %v9874_v38  ;;  %v9963_v36 = vld [vmem:[%s11007_s21 + $0x16e4] ss:$8 sps:$4 sm:$0xff]  }
 0x231   : > { %7389 = vmatpush1.bf16.msra.mxu0 %v9877_v39  ;;  %6775 = vmatprep.subr.bf16.mxu1 %v9882_v40  ;;  %v11686_v38 = vld [vmem:[%s11021_s13 + $0x10] sm:$0xff]  ;;  %v9958_v39 = vld [vmem:[%s11007_s21 + $0x7e0] ss:$8 sps:$4 sm:$0xff]  }
 0x232   : > { %7390 = vmatprep.subr.bf16.mxu0 %v9885_v20  ;;  %6805 = vmatprep.mubr.bf16.mxu1 %v1356_v42  ;;  %v9961_v40 = vld [vmem:[%s11007_s21 + $0x16e0] ss:$8 sps:$4 sm:$0xff]   ;;  %v9966_v20 = vld [vmem:[%s11007_s21 + $0x7f4] ss:$8 sps:$4 sm:$0xff]  }
 0x233   : > { %7420 = vmatprep.mubr.bf16.mxu0 %v11629_v17  ;;  %v9969_v42 = vld [vmem:[%s11007_s21 + $0x16f4] ss:$8 sps:$4 sm:$0xff]  }
 0x234   : > { %6776 = vmatpush1.bf16.msra.mxu1 %v9880_v24  ;;  %v11694_v24 = vrot.slane %v11686_v38, %v11074_v52 }
 0x235   : > { %7391 = vmatpush1.bf16.msra.mxu0 %v9883_v44  ;;  %6777 = vmatprep.subr.bf16.mxu1 %v9888_v49  ;;  %v9964_v44 = vld [vmem:[%s11007_s21 + $0x7f0] ss:$8 sps:$4 sm:$0xff]  }
 0x236   : > { %7392 = vmatprep.subr.bf16.mxu0 %v9891_v29  ;;  %v9967_v49 = vld [vmem:[%s11007_s21 + $0x16f0] ss:$8 sps:$4 sm:$0xff]   ;;  %v9972_v29 = vld [vmem:[%s11007_s21 + $0x804] ss:$8 sps:$4 sm:$0xff]  }
 0x238   : > { %6778 = vmatpush1.bf16.msra.mxu1 %v9886_v45  ;;  %v9976_v45 = vld [vmem:[%s11007_s21 + $0x1704] ss:$8 sps:$4 sm:$0xff]  }
 0x239   : > { %7393 = vmatpush1.bf16.msra.mxu0 %v9889_v46  ;;  %6779 = vmatprep.subr.bf16.mxu1 %v9894_v48  ;;  %v1372_v46 = vcombine.high %v11694_v24, %v11694_v24  ;;  %v1354_v48 = vcombine.high %v11618_v35, %v11618_v35  ;;  %v1552_v35 = vcombine.high %v11629_v17, %v11629_v17  ;;  %v9983_v17 = vld [vmem:[%s11007_s21 + $0x820] ss:$8 sps:$4 sm:$0xff]  }
 0x23a   : > { %7394 = vmatprep.subr.bf16.mxu0 %v9897_v50  ;;  %v11706_v50 = vrot.slane %v11608_v31, %v11074_v52  ;;  %v9977_v31 = vld [vmem:[%s11007_s21 + $0x810] ss:$8 sps:$4 sm:$0xff]  }
 0x23c   : > { %6780 = vmatpush1.bf16.msra.mxu1 %v9892_v54  ;;  %v9970_v54 = vld [vmem:[%s11007_s21 + $0x800] ss:$8 sps:$4 sm:$0xff]  }
 0x23d   : > { %7395 = vmatpush1.bf16.msra.mxu0 %v9895_v55  ;;  %6781 = vmatprep.subr.bf16.mxu1 %v9900_v57  ;;  %v9974_v55 = vld [vmem:[%s11007_s21 + $0x1700] ss:$8 sps:$4 sm:$0xff]   ;;  %v9979_v57 = vld [vmem:[%s11007_s21 + $0x814] ss:$8 sps:$4 sm:$0xff]  }
 0x23e   : > { %7396 = vmatprep.subr.bf16.mxu0 %v9903_v58  ;;  %v9982_v58 = vld [vmem:[%s11007_s21 + $0x1714] ss:$8 sps:$4 sm:$0xff]  }
 0x240   : > { %6782 = vmatpush1.bf16.msra.mxu1 %v9898_v37  ;;  %v11713_v37 = vrot.slane %v1372_v46, %v11074_v52  ;;  %v10052_v46 = vld [vmem:[%s11007_s21 + $0x17d0] ss:$8 sps:$4 sm:$0xff]  }
 0x241   : > { %7397 = vmatpush1.bf16.msra.mxu0 %v9901_v59  ;;  %6783 = vmatprep.subr.bf16.mxu1 %v9906_v60  ;;  %v9980_v59 = vld [vmem:[%s11007_s21 + $0x1710] ss:$8 sps:$4 sm:$0xff]   ;;  %v9985_v60 = vld [vmem:[%s11007_s21 + $0x824] ss:$8 sps:$4 sm:$0xff]  }
 0x242   : > { %7398 = vmatprep.subr.bf16.mxu0 %v9909_v41  ;;  %v9988_v41 = vld [vmem:[%s11007_s21 + $0x1724] ss:$8 sps:$4 sm:$0xff]  }
 0x244   : > { %6784 = vmatpush1.bf16.msra.mxu1 %v9904_v61  ;;  %v9986_v61 = vld [vmem:[%s11007_s21 + $0x1720] ss:$8 sps:$4 sm:$0xff]  }
 0x245   : > { %7399 = vmatpush1.bf16.msra.mxu0 %v9907_v62  ;;  %6785 = vmatprep.subr.bf16.mxu1 %v9912_v0  ;;  %v9991_v62 = vld [vmem:[%s11007_s21 + $0x834] ss:$8 sps:$4 sm:$0xff]  }
 0x246   : > { %7400 = vmatprep.subr.bf16.mxu0 %v9915_v2  ;;  %v9994_v0 = vld [vmem:[%s11007_s21 + $0x1734] ss:$8 sps:$4 sm:$0xff]   ;;  %v9989_v2 = vld [vmem:[%s11007_s21 + $0x830] ss:$8 sps:$4 sm:$0xff]  }
 0x248   : > { %6786 = vmatpush1.bf16.msra.mxu1 %v9910_v3  ;;  %v9992_v3 = vld [vmem:[%s11007_s21 + $0x1730] ss:$8 sps:$4 sm:$0xff]  }
 0x249   : > { %7401 = vmatpush1.bf16.msra.mxu0 %v9913_v6  ;;  %6787 = vmatprep.subr.bf16.mxu1 %v9918_v43  ;;  %v9997_v6 = vld [vmem:[%s11007_s21 + $0x844] ss:$8 sps:$4 sm:$0xff]  }
 0x24a   : > { %7402 = vmatprep.subr.bf16.mxu0 %v9921_v51  ;;  %v10000_v43 = vld [vmem:[%s11007_s21 + $0x1744] ss:$8 sps:$4 sm:$0xff]   ;;  %v9995_v51 = vld [vmem:[%s11007_s21 + $0x840] ss:$8 sps:$4 sm:$0xff]  }
 0x24c   : > { %6788 = vmatpush1.bf16.msra.mxu1 %v9916_v7  ;;  %v9998_v7 = vld [vmem:[%s11007_s21 + $0x1740] ss:$8 sps:$4 sm:$0xff]  }
 0x24d   : > { %7403 = vmatpush1.bf16.msra.mxu0 %v9919_v8  ;;  %6789 = vmatprep.subr.bf16.mxu1 %v9924_v30  ;;  %v10003_v8 = vld [vmem:[%s11007_s21 + $0x854] ss:$8 sps:$4 sm:$0xff]  }
 0x24e   : > { %7404 = vmatprep.subr.bf16.mxu0 %v9927_v10  ;;  %v10006_v30 = vld [vmem:[%s11007_s21 + $0x1754] ss:$8 sps:$4 sm:$0xff]   ;;  %v10001_v10 = vld [vmem:[%s11007_s21 + $0x850] ss:$8 sps:$4 sm:$0xff]  }
 0x250   : > { %6790 = vmatpush1.bf16.msra.mxu1 %v9922_v11  ;;  %v10004_v11 = vld [vmem:[%s11007_s21 + $0x1750] ss:$8 sps:$4 sm:$0xff]  }
 0x251   : > { %7405 = vmatpush1.bf16.msra.mxu0 %v9925_v12  ;;  %6791 = vmatprep.subr.bf16.mxu1 %v9930_v13  ;;  %v10009_v12 = vld [vmem:[%s11007_s21 + $0x864] ss:$8 sps:$4 sm:$0xff]  }
 0x252   : > { %7406 = vmatprep.subr.bf16.mxu0 %v9933_v14  ;;  %v10012_v13 = vld [vmem:[%s11007_s21 + $0x1764] ss:$8 sps:$4 sm:$0xff]   ;;  %v10007_v14 = vld [vmem:[%s11007_s21 + $0x860] ss:$8 sps:$4 sm:$0xff]  }
 0x254   : > { %6792 = vmatpush1.bf16.msra.mxu1 %v9928_v16  ;;  %v10010_v16 = vld [vmem:[%s11007_s21 + $0x1760] ss:$8 sps:$4 sm:$0xff]  }
 0x255   : > { %7407 = vmatpush1.bf16.msra.mxu0 %v9931_v1  ;;  %6793 = vmatprep.subr.bf16.mxu1 %v9936_v18  ;;  %v10015_v1 = vld [vmem:[%s11007_s21 + $0x874] ss:$8 sps:$4 sm:$0xff]  }
 0x256   : > { %7408 = vmatprep.subr.bf16.mxu0 %v9939_v4  ;;  %v10018_v18 = vld [vmem:[%s11007_s21 + $0x1774] ss:$8 sps:$4 sm:$0xff]   ;;  %v10013_v4 = vld [vmem:[%s11007_s21 + $0x870] ss:$8 sps:$4 sm:$0xff]  }
 0x258   : > { %6794 = vmatpush1.bf16.msra.mxu1 %v9934_v19  ;;  %v10016_v19 = vld [vmem:[%s11007_s21 + $0x1770] ss:$8 sps:$4 sm:$0xff]  }
 0x259   : > { %7409 = vmatpush1.bf16.msra.mxu0 %v9937_v21  ;;  %6795 = vmatprep.subr.bf16.mxu1 %v9942_v22  ;;  %v10021_v21 = vld [vmem:[%s11007_s21 + $0x884] ss:$8 sps:$4 sm:$0xff]  }
 0x25a   : > { %7410 = vmatprep.subr.bf16.mxu0 %v9945_v23  ;;  %v10024_v22 = vld [vmem:[%s11007_s21 + $0x1784] ss:$8 sps:$4 sm:$0xff]   ;;  %v10019_v23 = vld [vmem:[%s11007_s21 + $0x880] ss:$8 sps:$4 sm:$0xff]  }
 0x25c   : > { %6796 = vmatpush1.bf16.msra.mxu1 %v9940_v25  ;;  %v10022_v25 = vld [vmem:[%s11007_s21 + $0x1780] ss:$8 sps:$4 sm:$0xff]  }
 0x25d   : > { %7411 = vmatpush1.bf16.msra.mxu0 %v9943_v26  ;;  %6797 = vmatprep.subr.bf16.mxu1 %v9948_v27  ;;  %v10027_v26 = vld [vmem:[%s11007_s21 + $0x894] ss:$8 sps:$4 sm:$0xff]  }
 0x25e   : > { %7412 = vmatprep.subr.bf16.mxu0 %v9951_v28  ;;  %v10030_v27 = vld [vmem:[%s11007_s21 + $0x1794] ss:$8 sps:$4 sm:$0xff]   ;;  %v10025_v28 = vld [vmem:[%s11007_s21 + $0x890] ss:$8 sps:$4 sm:$0xff]  }
 0x260   : > { %6798 = vmatpush1.bf16.msra.mxu1 %v9946_v9  ;;  %v10028_v9 = vld [vmem:[%s11007_s21 + $0x1790] ss:$8 sps:$4 sm:$0xff]  }
 0x261   : > { %7413 = vmatpush1.bf16.msra.mxu0 %v9949_v63  ;;  %6799 = vmatprep.subr.bf16.mxu1 %v9954_v53  ;;  %v10033_v63 = vld [vmem:[%s11007_s21 + $0x8a4] ss:$8 sps:$4 sm:$0xff]  }
 0x262   : > { %7414 = vmatprep.subr.bf16.mxu0 %v9957_v32  ;;  %v10036_v53 = vld [vmem:[%s11007_s21 + $0x17a4] ss:$8 sps:$4 sm:$0xff]   ;;  %v10031_v32 = vld [vmem:[%s11007_s21 + $0x8a0] ss:$8 sps:$4 sm:$0xff]  }
 0x264   : > { %6800 = vmatpush1.bf16.msra.mxu1 %v9952_v56  ;;  %v10034_v56 = vld [vmem:[%s11007_s21 + $0x17a0] ss:$8 sps:$4 sm:$0xff]  }
 0x265   : > { %7415 = vmatpush1.bf16.msra.mxu0 %v9955_v33  ;;  %6801 = vmatprep.subr.bf16.mxu1 %v9960_v34  ;;  %v10039_v33 = vld [vmem:[%s11007_s21 + $0x8b4] ss:$8 sps:$4 sm:$0xff]  }
 0x266   : > { %7416 = vmatprep.subr.bf16.mxu0 %v9963_v36  ;;  %v10042_v34 = vld [vmem:[%s11007_s21 + $0x17b4] ss:$8 sps:$4 sm:$0xff]   ;;  %v10037_v36 = vld [vmem:[%s11007_s21 + $0x8b0] ss:$8 sps:$4 sm:$0xff]  }
 0x268   : > { %6802 = vmatpush1.bf16.msra.mxu1 %v9958_v39  ;;  %v10040_v39 = vld [vmem:[%s11007_s21 + $0x17b0] ss:$8 sps:$4 sm:$0xff]  }
 0x269   : > { %7417 = vmatpush1.bf16.msra.mxu0 %v9961_v40  ;;  %6803 = vmatprep.subr.bf16.mxu1 %v9966_v20  ;;  %v10045_v40 = vld [vmem:[%s11007_s21 + $0x8c4] ss:$8 sps:$4 sm:$0xff]  }
 0x26a   : > { %7418 = vmatprep.subr.bf16.mxu0 %v9969_v42  ;;  %v10048_v20 = vld [vmem:[%s11007_s21 + $0x17c4] ss:$8 sps:$4 sm:$0xff]   ;;  %v10043_v42 = vld [vmem:[%s11007_s21 + $0x8c0] ss:$8 sps:$4 sm:$0xff]  }
 0x26c   : > { %6804 = vmatpush1.bf16.msra.mxu1 %v9964_v44  ;;  %v10046_v44 = vld [vmem:[%s11007_s21 + $0x17c0] ss:$8 sps:$4 sm:$0xff]  }
 0x26d   : > { %7419 = vmatpush1.bf16.msra.mxu0 %v9967_v49  ;;  %6814 = vmatprep.subr.bf16.mxu1 %v9972_v29  ;;  %v10051_v49 = vld [vmem:[%s11007_s21 + $0x8d4] ss:$8 sps:$4 sm:$0xff]  }
 0x26e   : > { %7429 = vmatprep.subr.bf16.mxu0 %v9976_v45  ;;  %v10054_v29 = vld [vmem:[%s11007_s21 + $0x17d4] ss:$8 sps:$4 sm:$0xff]   ;;  %v10049_v45 = vld [vmem:[%s11007_s21 + $0x8d0] ss:$8 sps:$4 sm:$0xff]  }
 0x26f   : > { %6806 = vmatmul.mubr.bf16.vlgmr.msra.gmra.mrb[0].mxu1 %v1354_v48  ;;  %v10057_v48 = vld [vmem:[%s11007_s21 + $0x8e4] ss:$8 sps:$4 sm:$0xff]  }
 0x270   : > { %7421 = vmatmul.mubr.bf16.vlgmr.msra.gmra.mrb[0].mxu0 %v11706_v50  ;;  %6815 = vmatpush1.bf16.msra.mxu1 %v9970_v54  ;;  %v10060_v54 = vld [vmem:[%s11007_s21 + $0x17e4] ss:$8 sps:$4 sm:$0xff]  }
 0x271   : > { %7430 = vmatpush1.bf16.msra.mxu0 %v9974_v55  ;;  %6816 = vmatprep.subr.bf16.mxu1 %v9979_v57  ;;  %v11772_v55 = vld [vmem:[%s11021_s13 + $0x30] sm:$0xff]  ;;  %v10055_v57 = vld [vmem:[%s11007_s21 + $0x8e0] ss:$8 sps:$4 sm:$0xff]  }
 0x272   : > { %7431 = vmatprep.subr.bf16.mxu0 %v9982_v58  ;;  %6846 = vmatprep.mubr.bf16.mxu1 %v11713_v37  ;;  %v10058_v58 = vld [vmem:[%s11007_s21 + $0x17e0] ss:$8 sps:$4 sm:$0xff]  }
 0x273   : > { %7461 = vmatprep.mubr.bf16.mxu0 %v1552_v35  ;;  %v10063_v35 = vld [vmem:[%s11007_s21 + $0x8f4] ss:$8 sps:$4 sm:$0xff]  }
 0x274   : > { %6817 = vmatpush1.bf16.msra.mxu1 %v9977_v31  ;;  %v10066_v31 = vld [vmem:[%s11007_s21 + $0x17f4] ss:$8 sps:$4 sm:$0xff]  }
 0x275   : > { %7432 = vmatpush1.bf16.msra.mxu0 %v9980_v59  ;;  %6818 = vmatprep.subr.bf16.mxu1 %v9985_v60  ;;  %v11780_v59 = vrot.slane %v11772_v55, %v11074_v52  ;;  %v10061_v60 = vld [vmem:[%s11007_s21 + $0x8f0] ss:$8 sps:$4 sm:$0xff]  }
 0x276   : > { %7433 = vmatprep.subr.bf16.mxu0 %v9988_v41  ;;  %v10064_v41 = vld [vmem:[%s11007_s21 + $0x17f0] ss:$8 sps:$4 sm:$0xff]  }
 0x278   : > { %6819 = vmatpush1.bf16.msra.mxu1 %v9983_v17  ;;  %v10069_v17 = vld [vmem:[%s11007_s21 + $0x904] ss:$8 sps:$4 sm:$0xff]  }
 0x279   : > { %7434 = vmatpush1.bf16.msra.mxu0 %v9986_v61  ;;  %6820 = vmatprep.subr.bf16.mxu1 %v9991_v62  ;;  %v10072_v61 = vld [vmem:[%s11007_s21 + $0x1804] ss:$8 sps:$4 sm:$0xff]   ;;  %v1568_v62 = vcombine.high %v11780_v59, %v11780_v59 }
 0x27a   : > { %7435 = vmatprep.subr.bf16.mxu0 %v9994_v0  ;;  %v11790_v0 = vrot.slane %v11694_v24, %v11074_v52 }
 0x27b   : > { %v11801_v24 = vrot.slane %v1568_v62, %v11074_v52  ;;  %v10145_v62 = vld [vmem:[%s11007_s21 + $0x9d0] ss:$8 sps:$4 sm:$0xff]  }
 0x27c   : > { %6821 = vmatpush1.bf16.msra.mxu1 %v9989_v2  ;;  %v1550_v2 = vcombine.high %v11706_v50, %v11706_v50  ;;  %v10073_v50 = vld [vmem:[%s11007_s21 + $0x910] ss:$8 sps:$4 sm:$0xff]  }
 0x27d   : > { %7436 = vmatpush1.bf16.msra.mxu0 %v9992_v3  ;;  %6822 = vmatprep.subr.bf16.mxu1 %v9997_v6  ;;  %v10067_v3 = vld [vmem:[%s11007_s21 + $0x900] ss:$8 sps:$4 sm:$0xff]  }
 0x27e   : > { %7437 = vmatprep.subr.bf16.mxu0 %v10000_v43  ;;  %v10070_v6 = vld [vmem:[%s11007_s21 + $0x1800] ss:$8 sps:$4 sm:$0xff]   ;;  %v10075_v43 = vld [vmem:[%s11007_s21 + $0x914] ss:$8 sps:$4 sm:$0xff]  }
 0x280   : > { %6823 = vmatpush1.bf16.msra.mxu1 %v9995_v51  ;;  %v10078_v51 = vld [vmem:[%s11007_s21 + $0x1814] ss:$8 sps:$4 sm:$0xff]  }
 0x281   : > { %7438 = vmatpush1.bf16.msra.mxu0 %v9998_v7  ;;  %6824 = vmatprep.subr.bf16.mxu1 %v10003_v8  ;;  %v1404_v7 = vcombine.high %v11713_v37, %v11713_v37  ;;  %v10076_v8 = vld [vmem:[%s11007_s21 + $0x1810] ss:$8 sps:$4 sm:$0xff]   ;;  %v10084_v37 = vld [vmem:[%s11007_s21 + $0x1824] ss:$8 sps:$4 sm:$0xff]  }
 0x282   : > { %7439 = vmatprep.subr.bf16.mxu0 %v10006_v30  ;;  %v10081_v30 = vld [vmem:[%s11007_s21 + $0x924] ss:$8 sps:$4 sm:$0xff]  }
 0x284   : > { %6825 = vmatpush1.bf16.msra.mxu1 %v10001_v10  ;;  %v10079_v10 = vld [vmem:[%s11007_s21 + $0x920] ss:$8 sps:$4 sm:$0xff]  }
 0x285   : > { %7440 = vmatpush1.bf16.msra.mxu0 %v10004_v11  ;;  %6826 = vmatprep.subr.bf16.mxu1 %v10009_v12  ;;  %v10082_v11 = vld [vmem:[%s11007_s21 + $0x1820] ss:$8 sps:$4 sm:$0xff]   ;;  %v10087_v12 = vld [vmem:[%s11007_s21 + $0x934] ss:$8 sps:$4 sm:$0xff]  }
 0x286   : > { %7441 = vmatprep.subr.bf16.mxu0 %v10012_v13  ;;  %v10090_v13 = vld [vmem:[%s11007_s21 + $0x1834] ss:$8 sps:$4 sm:$0xff]  }
 0x288   : > { %6827 = vmatpush1.bf16.msra.mxu1 %v10007_v14  ;;  %v10085_v14 = vld [vmem:[%s11007_s21 + $0x930] ss:$8 sps:$4 sm:$0xff]  }
 0x289   : > { %7442 = vmatpush1.bf16.msra.mxu0 %v10010_v16  ;;  %6828 = vmatprep.subr.bf16.mxu1 %v10015_v1  ;;  %v10088_v16 = vld [vmem:[%s11007_s21 + $0x1830] ss:$8 sps:$4 sm:$0xff]   ;;  %v10093_v1 = vld [vmem:[%s11007_s21 + $0x944] ss:$8 sps:$4 sm:$0xff]  }
 0x28a   : > { %7443 = vmatprep.subr.bf16.mxu0 %v10018_v18  ;;  %v10096_v18 = vld [vmem:[%s11007_s21 + $0x1844] ss:$8 sps:$4 sm:$0xff]  }
 0x28c   : > { %6829 = vmatpush1.bf16.msra.mxu1 %v10013_v4  ;;  %v10091_v4 = vld [vmem:[%s11007_s21 + $0x940] ss:$8 sps:$4 sm:$0xff]  }
 0x28d   : > { %7444 = vmatpush1.bf16.msra.mxu0 %v10016_v19  ;;  %6830 = vmatprep.subr.bf16.mxu1 %v10021_v21  ;;  %v10094_v19 = vld [vmem:[%s11007_s21 + $0x1840] ss:$8 sps:$4 sm:$0xff]   ;;  %v10099_v21 = vld [vmem:[%s11007_s21 + $0x954] ss:$8 sps:$4 sm:$0xff]  }
 0x28e   : > { %7445 = vmatprep.subr.bf16.mxu0 %v10024_v22  ;;  %v10102_v22 = vld [vmem:[%s11007_s21 + $0x1854] ss:$8 sps:$4 sm:$0xff]  }
 0x290   : > { %6831 = vmatpush1.bf16.msra.mxu1 %v10019_v23  ;;  %v10097_v23 = vld [vmem:[%s11007_s21 + $0x950] ss:$8 sps:$4 sm:$0xff]  }
 0x291   : > { %7446 = vmatpush1.bf16.msra.mxu0 %v10022_v25  ;;  %6832 = vmatprep.subr.bf16.mxu1 %v10027_v26  ;;  %v10100_v25 = vld [vmem:[%s11007_s21 + $0x1850] ss:$8 sps:$4 sm:$0xff]   ;;  %v10105_v26 = vld [vmem:[%s11007_s21 + $0x964] ss:$8 sps:$4 sm:$0xff]  }
 0x292   : > { %7447 = vmatprep.subr.bf16.mxu0 %v10030_v27  ;;  %v10108_v27 = vld [vmem:[%s11007_s21 + $0x1864] ss:$8 sps:$4 sm:$0xff]  }
 0x294   : > { %6833 = vmatpush1.bf16.msra.mxu1 %v10025_v28  ;;  %v10103_v28 = vld [vmem:[%s11007_s21 + $0x960] ss:$8 sps:$4 sm:$0xff]  }
 0x295   : > { %7448 = vmatpush1.bf16.msra.mxu0 %v10028_v9  ;;  %6834 = vmatprep.subr.bf16.mxu1 %v10033_v63  ;;  %v10106_v9 = vld [vmem:[%s11007_s21 + $0x1860] ss:$8 sps:$4 sm:$0xff]   ;;  %v10111_v63 = vld [vmem:[%s11007_s21 + $0x974] ss:$8 sps:$4 sm:$0xff]  }
 0x296   : > { %7449 = vmatprep.subr.bf16.mxu0 %v10036_v53  ;;  %v10114_v53 = vld [vmem:[%s11007_s21 + $0x1874] ss:$8 sps:$4 sm:$0xff]  }
 0x298   : > { %6835 = vmatpush1.bf16.msra.mxu1 %v10031_v32  ;;  %v10109_v32 = vld [vmem:[%s11007_s21 + $0x970] ss:$8 sps:$4 sm:$0xff]  }
 0x299   : > { %7450 = vmatpush1.bf16.msra.mxu0 %v10034_v56  ;;  %6836 = vmatprep.subr.bf16.mxu1 %v10039_v33  ;;  %v10112_v56 = vld [vmem:[%s11007_s21 + $0x1870] ss:$8 sps:$4 sm:$0xff]   ;;  %v10117_v33 = vld [vmem:[%s11007_s21 + $0x984] ss:$8 sps:$4 sm:$0xff]  }
 0x29a   : > { %7451 = vmatprep.subr.bf16.mxu0 %v10042_v34  ;;  %v10120_v34 = vld [vmem:[%s11007_s21 + $0x1884] ss:$8 sps:$4 sm:$0xff]  }
 0x29c   : > { %6837 = vmatpush1.bf16.msra.mxu1 %v10037_v36  ;;  %v10115_v36 = vld [vmem:[%s11007_s21 + $0x980] ss:$8 sps:$4 sm:$0xff]  }
 0x29d   : > { %7452 = vmatpush1.bf16.msra.mxu0 %v10040_v39  ;;  %6838 = vmatprep.subr.bf16.mxu1 %v10045_v40  ;;  %v10118_v39 = vld [vmem:[%s11007_s21 + $0x1880] ss:$8 sps:$4 sm:$0xff]   ;;  %v10123_v40 = vld [vmem:[%s11007_s21 + $0x994] ss:$8 sps:$4 sm:$0xff]  }
 0x29e   : > { %7453 = vmatprep.subr.bf16.mxu0 %v10048_v20  ;;  %v10126_v20 = vld [vmem:[%s11007_s21 + $0x1894] ss:$8 sps:$4 sm:$0xff]  }
 0x2a0   : > { %6839 = vmatpush1.bf16.msra.mxu1 %v10043_v42  ;;  %v10121_v42 = vld [vmem:[%s11007_s21 + $0x990] ss:$8 sps:$4 sm:$0xff]  }
 0x2a1   : > { %7454 = vmatpush1.bf16.msra.mxu0 %v10046_v44  ;;  %6840 = vmatprep.subr.bf16.mxu1 %v10051_v49  ;;  %v10124_v44 = vld [vmem:[%s11007_s21 + $0x1890] ss:$8 sps:$4 sm:$0xff]   ;;  %v10129_v49 = vld [vmem:[%s11007_s21 + $0x9a4] ss:$8 sps:$4 sm:$0xff]  }
 0x2a2   : > { %7455 = vmatprep.subr.bf16.mxu0 %v10054_v29  ;;  %v10132_v29 = vld [vmem:[%s11007_s21 + $0x18a4] ss:$8 sps:$4 sm:$0xff]  }
 0x2a4   : > { %6841 = vmatpush1.bf16.msra.mxu1 %v10049_v45  ;;  %v10127_v45 = vld [vmem:[%s11007_s21 + $0x9a0] ss:$8 sps:$4 sm:$0xff]  }
 0x2a5   : > { %7456 = vmatpush1.bf16.msra.mxu0 %v10052_v46  ;;  %6842 = vmatprep.subr.bf16.mxu1 %v10057_v48  ;;  %v10130_v46 = vld [vmem:[%s11007_s21 + $0x18a0] ss:$8 sps:$4 sm:$0xff]   ;;  %v10135_v48 = vld [vmem:[%s11007_s21 + $0x9b4] ss:$8 sps:$4 sm:$0xff]  }
 0x2a6   : > { %7457 = vmatprep.subr.bf16.mxu0 %v10060_v54  ;;  %v10138_v54 = vld [vmem:[%s11007_s21 + $0x18b4] ss:$8 sps:$4 sm:$0xff]  }
 0x2a8   : > { %6843 = vmatpush1.bf16.msra.mxu1 %v10055_v57  ;;  %v10133_v57 = vld [vmem:[%s11007_s21 + $0x9b0] ss:$8 sps:$4 sm:$0xff]  }
 0x2a9   : > { %7458 = vmatpush1.bf16.msra.mxu0 %v10058_v58  ;;  %6844 = vmatprep.subr.bf16.mxu1 %v10063_v35  ;;  %v10136_v58 = vld [vmem:[%s11007_s21 + $0x18b0] ss:$8 sps:$4 sm:$0xff]   ;;  %v10141_v35 = vld [vmem:[%s11007_s21 + $0x9c4] ss:$8 sps:$4 sm:$0xff]  }
 0x2aa   : > { %7459 = vmatprep.subr.bf16.mxu0 %v10066_v31  ;;  %v10144_v31 = vld [vmem:[%s11007_s21 + $0x18c4] ss:$8 sps:$4 sm:$0xff]  }
 0x2ac   : > { %6845 = vmatpush1.bf16.msra.mxu1 %v10061_v60  ;;  %v10139_v60 = vld [vmem:[%s11007_s21 + $0x9c0] ss:$8 sps:$4 sm:$0xff]  }
 0x2ad   : > { %7460 = vmatpush1.bf16.msra.mxu0 %v10064_v41  ;;  %6855 = vmatprep.subr.bf16.mxu1 %v10069_v17  ;;  %v10142_v41 = vld [vmem:[%s11007_s21 + $0x18c0] ss:$8 sps:$4 sm:$0xff]   ;;  %v10147_v17 = vld [vmem:[%s11007_s21 + $0x9d4] ss:$8 sps:$4 sm:$0xff]  }
 0x2ae   : > { %7470 = vmatprep.subr.bf16.mxu0 %v10072_v61  ;;  %v10150_v61 = vld [vmem:[%s11007_s21 + $0x18d4] ss:$8 sps:$4 sm:$0xff]  }
 0x2af   : > { %6847 = vmatmul.mubr.bf16.vlgmr.msra.gmra.mrb[0].mxu1 %v11790_v0 }
 0x2b0   : > { %7462 = vmatmul.mubr.bf16.vlgmr.msra.gmra.mrb[0].mxu0 %v1550_v2  ;;  %6856 = vmatpush1.bf16.msra.mxu1 %v10067_v3  ;;  %v10148_v2 = vld [vmem:[%s11007_s21 + $0x18d0] ss:$8 sps:$4 sm:$0xff]   ;;  %v10153_v3 = vld [vmem:[%s11007_s21 + $0x9e4] ss:$8 sps:$4 sm:$0xff]  }
 0x2b1   : > { %7471 = vmatpush1.bf16.msra.mxu0 %v10070_v6  ;;  %6857 = vmatprep.subr.bf16.mxu1 %v10075_v43  ;;  %v10156_v6 = vld [vmem:[%s11007_s21 + $0x18e4] ss:$8 sps:$4 sm:$0xff]   ;;  %v1357_v43 = vcombine.high %v11686_v38, %v11686_v38  ;;  %v10160_v38 = vld [vmem:[%s11007_s21 + $0x18f0] ss:$8 sps:$4 sm:$0xff]  }
 0x2b2   : > { %7472 = vmatprep.subr.bf16.mxu0 %v10078_v51  ;;  %6887 = vmatprep.mubr.bf16.mxu1 %v1404_v7  ;;  %v10151_v51 = vld [vmem:[%s11007_s21 + $0x9e0] ss:$8 sps:$4 sm:$0xff]  }
 0x2b3   : > { %7502 = vmatprep.mubr.bf16.mxu0 %v11801_v24  ;;  %v10154_v7 = vld [vmem:[%s11007_s21 + $0x18e0] ss:$8 sps:$4 sm:$0xff]  }
 0x2b4   : > { %6858 = vmatpush1.bf16.msra.mxu1 %v10073_v50  ;;  %v10159_v50 = vld [vmem:[%s11007_s21 + $0x9f4] ss:$8 sps:$4 sm:$0xff]  }
 0x2b5   : > { %7473 = vmatpush1.bf16.msra.mxu0 %v10076_v8  ;;  %6859 = vmatprep.subr.bf16.mxu1 %v10081_v30  ;;  %v10162_v8 = vld [vmem:[%s11007_s21 + $0x18f4] ss:$8 sps:$4 sm:$0xff]   ;;  %v11864_v30 = vrot.slane %v1357_v43, %v11074_v52  ;;  %v10229_v43 = vld [vmem:[%s11007_s21 + $0xab0] ss:$8 sps:$4 sm:$0xff]  }
 0x2b6   : > { %7474 = vmatprep.subr.bf16.mxu0 %v10084_v37  ;;  %v10157_v37 = vld [vmem:[%s11007_s21 + $0x9f0] ss:$8 sps:$4 sm:$0xff]  }
 0x2b8   : > { %6860 = vmatpush1.bf16.msra.mxu1 %v10079_v10  ;;  %v10165_v10 = vld [vmem:[%s11007_s21 + $0xa04] ss:$8 sps:$4 sm:$0xff]  }
 0x2b9   : > { %7475 = vmatpush1.bf16.msra.mxu0 %v10082_v11  ;;  %6861 = vmatprep.subr.bf16.mxu1 %v10087_v12  ;;  %v10168_v11 = vld [vmem:[%s11007_s21 + $0x1904] ss:$8 sps:$4 sm:$0xff]   ;;  %v1373_v12 = vcombine.high %v11864_v30, %v11864_v30 }
 0x2ba   : > { %7476 = vmatprep.subr.bf16.mxu0 %v10090_v13  ;;  %v1402_v13 = vcombine.high %v11790_v0, %v11790_v0  ;;  %v1600_v0 = vcombine.high %v11801_v24, %v11801_v24  ;;  %v10175_v24 = vld [vmem:[%s11007_s21 + $0xa20] ss:$8 sps:$4 sm:$0xff]  }
 0x2bc   : > { %6862 = vmatpush1.bf16.msra.mxu1 %v10085_v14  ;;  %v11876_v14 = vrot.slane %v11780_v59, %v11074_v52  ;;  %v10169_v59 = vld [vmem:[%s11007_s21 + $0xa10] ss:$8 sps:$4 sm:$0xff]  }
 0x2bd   : > { %7477 = vmatpush1.bf16.msra.mxu0 %v10088_v16  ;;  %6863 = vmatprep.subr.bf16.mxu1 %v10093_v1  ;;  %v10163_v16 = vld [vmem:[%s11007_s21 + $0xa00] ss:$8 sps:$4 sm:$0xff]  }
 0x2be   : > { %7478 = vmatprep.subr.bf16.mxu0 %v10096_v18  ;;  %v10166_v1 = vld [vmem:[%s11007_s21 + $0x1900] ss:$8 sps:$4 sm:$0xff]   ;;  %v10171_v18 = vld [vmem:[%s11007_s21 + $0xa14] ss:$8 sps:$4 sm:$0xff]  }
 0x2c0   : > { %6864 = vmatpush1.bf16.msra.mxu1 %v10091_v4  ;;  %v10174_v4 = vld [vmem:[%s11007_s21 + $0x1914] ss:$8 sps:$4 sm:$0xff]  }
 0x2c1   : > { %7479 = vmatpush1.bf16.msra.mxu0 %v10094_v19  ;;  %6865 = vmatprep.subr.bf16.mxu1 %v10099_v21  ;;  %v11883_v19 = vrot.slane %v1373_v12, %v11074_v52  ;;  %v10172_v21 = vld [vmem:[%s11007_s21 + $0x1910] ss:$8 sps:$4 sm:$0xff]  }
 0x2c2   : > { %7480 = vmatprep.subr.bf16.mxu0 %v10102_v22  ;;  %v10177_v22 = vld [vmem:[%s11007_s21 + $0xa24] ss:$8 sps:$4 sm:$0xff]   ;;  %v10244_v12 = vld [vmem:[%s11007_s21 + $0x19d0] ss:$8 sps:$4 sm:$0xff]  }
 0x2c4   : > { %6866 = vmatpush1.bf16.msra.mxu1 %v10097_v23  ;;  %v10180_v23 = vld [vmem:[%s11007_s21 + $0x1924] ss:$8 sps:$4 sm:$0xff]  }
 0x2c5   : > { %7481 = vmatpush1.bf16.msra.mxu0 %v10100_v25  ;;  %6867 = vmatprep.subr.bf16.mxu1 %v10105_v26  ;;  %v10178_v25 = vld [vmem:[%s11007_s21 + $0x1920] ss:$8 sps:$4 sm:$0xff]   ;;  %v10183_v26 = vld [vmem:[%s11007_s21 + $0xa34] ss:$8 sps:$4 sm:$0xff]  }
 0x2c6   : > { %7482 = vmatprep.subr.bf16.mxu0 %v10108_v27  ;;  %v10186_v27 = vld [vmem:[%s11007_s21 + $0x1934] ss:$8 sps:$4 sm:$0xff]  }
 0x2c8   : > { %6868 = vmatpush1.bf16.msra.mxu1 %v10103_v28  ;;  %v10181_v28 = vld [vmem:[%s11007_s21 + $0xa30] ss:$8 sps:$4 sm:$0xff]  }
 0x2c9   : > { %7483 = vmatpush1.bf16.msra.mxu0 %v10106_v9  ;;  %6869 = vmatprep.subr.bf16.mxu1 %v10111_v63  ;;  %v10184_v9 = vld [vmem:[%s11007_s21 + $0x1930] ss:$8 sps:$4 sm:$0xff]   ;;  %v10189_v63 = vld [vmem:[%s11007_s21 + $0xa44] ss:$8 sps:$4 sm:$0xff]  }
 0x2ca   : > { %7484 = vmatprep.subr.bf16.mxu0 %v10114_v53  ;;  %v10192_v53 = vld [vmem:[%s11007_s21 + $0x1944] ss:$8 sps:$4 sm:$0xff]  }
 0x2cc   : > { %6870 = vmatpush1.bf16.msra.mxu1 %v10109_v32  ;;  %v10187_v32 = vld [vmem:[%s11007_s21 + $0xa40] ss:$8 sps:$4 sm:$0xff]  }
 0x2cd   : > { %7485 = vmatpush1.bf16.msra.mxu0 %v10112_v56  ;;  %6871 = vmatprep.subr.bf16.mxu1 %v10117_v33  ;;  %v10190_v56 = vld [vmem:[%s11007_s21 + $0x1940] ss:$8 sps:$4 sm:$0xff]   ;;  %v10195_v33 = vld [vmem:[%s11007_s21 + $0xa54] ss:$8 sps:$4 sm:$0xff]  }
 0x2ce   : > { %7486 = vmatprep.subr.bf16.mxu0 %v10120_v34  ;;  %v10198_v34 = vld [vmem:[%s11007_s21 + $0x1954] ss:$8 sps:$4 sm:$0xff]  }
 0x2d0   : > { %6872 = vmatpush1.bf16.msra.mxu1 %v10115_v36  ;;  %v10193_v36 = vld [vmem:[%s11007_s21 + $0xa50] ss:$8 sps:$4 sm:$0xff]  }
 0x2d1   : > { %7487 = vmatpush1.bf16.msra.mxu0 %v10118_v39  ;;  %6873 = vmatprep.subr.bf16.mxu1 %v10123_v40  ;;  %v10196_v39 = vld [vmem:[%s11007_s21 + $0x1950] ss:$8 sps:$4 sm:$0xff]   ;;  %v10201_v40 = vld [vmem:[%s11007_s21 + $0xa64] ss:$8 sps:$4 sm:$0xff]  }
 0x2d2   : > { %7488 = vmatprep.subr.bf16.mxu0 %v10126_v20  ;;  %v10204_v20 = vld [vmem:[%s11007_s21 + $0x1964] ss:$8 sps:$4 sm:$0xff]  }
 0x2d4   : > { %6874 = vmatpush1.bf16.msra.mxu1 %v10121_v42  ;;  %v10199_v42 = vld [vmem:[%s11007_s21 + $0xa60] ss:$8 sps:$4 sm:$0xff]  }
 0x2d5   : > { %7489 = vmatpush1.bf16.msra.mxu0 %v10124_v44  ;;  %6875 = vmatprep.subr.bf16.mxu1 %v10129_v49  ;;  %v10202_v44 = vld [vmem:[%s11007_s21 + $0x1960] ss:$8 sps:$4 sm:$0xff]   ;;  %v10207_v49 = vld [vmem:[%s11007_s21 + $0xa74] ss:$8 sps:$4 sm:$0xff]  }
 0x2d6   : > { %7490 = vmatprep.subr.bf16.mxu0 %v10132_v29  ;;  %v10210_v29 = vld [vmem:[%s11007_s21 + $0x1974] ss:$8 sps:$4 sm:$0xff]  }
 0x2d8   : > { %6876 = vmatpush1.bf16.msra.mxu1 %v10127_v45  ;;  %v10205_v45 = vld [vmem:[%s11007_s21 + $0xa70] ss:$8 sps:$4 sm:$0xff]  }
 0x2d9   : > { %7491 = vmatpush1.bf16.msra.mxu0 %v10130_v46  ;;  %6877 = vmatprep.subr.bf16.mxu1 %v10135_v48  ;;  %v10208_v46 = vld [vmem:[%s11007_s21 + $0x1970] ss:$8 sps:$4 sm:$0xff]   ;;  %v10213_v48 = vld [vmem:[%s11007_s21 + $0xa84] ss:$8 sps:$4 sm:$0xff]  }
 0x2da   : > { %7492 = vmatprep.subr.bf16.mxu0 %v10138_v54  ;;  %v10216_v54 = vld [vmem:[%s11007_s21 + $0x1984] ss:$8 sps:$4 sm:$0xff]  }
 0x2dc   : > { %6878 = vmatpush1.bf16.msra.mxu1 %v10133_v57  ;;  %v10211_v57 = vld [vmem:[%s11007_s21 + $0xa80] ss:$8 sps:$4 sm:$0xff]  }
 0x2dd   : > { %7493 = vmatpush1.bf16.msra.mxu0 %v10136_v58  ;;  %6879 = vmatprep.subr.bf16.mxu1 %v10141_v35  ;;  %v10214_v58 = vld [vmem:[%s11007_s21 + $0x1980] ss:$8 sps:$4 sm:$0xff]   ;;  %v10219_v35 = vld [vmem:[%s11007_s21 + $0xa94] ss:$8 sps:$4 sm:$0xff]  }
 0x2de   : > { %7494 = vmatprep.subr.bf16.mxu0 %v10144_v31  ;;  %v10222_v31 = vld [vmem:[%s11007_s21 + $0x1994] ss:$8 sps:$4 sm:$0xff]  }
 0x2e0   : > { %6880 = vmatpush1.bf16.msra.mxu1 %v10139_v60  ;;  %v10217_v60 = vld [vmem:[%s11007_s21 + $0xa90] ss:$8 sps:$4 sm:$0xff]  }
 0x2e1   : > { %7495 = vmatpush1.bf16.msra.mxu0 %v10142_v41  ;;  %6881 = vmatprep.subr.bf16.mxu1 %v10147_v17  ;;  %v10220_v41 = vld [vmem:[%s11007_s21 + $0x1990] ss:$8 sps:$4 sm:$0xff]   ;;  %v10225_v17 = vld [vmem:[%s11007_s21 + $0xaa4] ss:$8 sps:$4 sm:$0xff]  }
 0x2e2   : > { %7496 = vmatprep.subr.bf16.mxu0 %v10150_v61  ;;  %v10228_v61 = vld [vmem:[%s11007_s21 + $0x19a4] ss:$8 sps:$4 sm:$0xff]  }
 0x2e4   : > { %6882 = vmatpush1.bf16.msra.mxu1 %v10145_v62  ;;  %v10223_v62 = vld [vmem:[%s11007_s21 + $0xaa0] ss:$8 sps:$4 sm:$0xff]  }
 0x2e5   : > { %7497 = vmatpush1.bf16.msra.mxu0 %v10148_v2  ;;  %6883 = vmatprep.subr.bf16.mxu1 %v10153_v3  ;;  %v10226_v2 = vld [vmem:[%s11007_s21 + $0x19a0] ss:$8 sps:$4 sm:$0xff]   ;;  %v10231_v3 = vld [vmem:[%s11007_s21 + $0xab4] ss:$8 sps:$4 sm:$0xff]  }
 0x2e6   : > { %7498 = vmatprep.subr.bf16.mxu0 %v10156_v6  ;;  %v10234_v6 = vld [vmem:[%s11007_s21 + $0x19b4] ss:$8 sps:$4 sm:$0xff]  }
 0x2e8   : > { %6884 = vmatpush1.bf16.msra.mxu1 %v10151_v51  ;;  %v10232_v51 = vld [vmem:[%s11007_s21 + $0x19b0] ss:$8 sps:$4 sm:$0xff]  }
 0x2e9   : > { %7499 = vmatpush1.bf16.msra.mxu0 %v10154_v7  ;;  %6885 = vmatprep.subr.bf16.mxu1 %v10159_v50  ;;  %v10237_v7 = vld [vmem:[%s11007_s21 + $0xac4] ss:$8 sps:$4 sm:$0xff]  }
 0x2ea   : > { %7500 = vmatprep.subr.bf16.mxu0 %v10162_v8  ;;  %v10240_v50 = vld [vmem:[%s11007_s21 + $0x19c4] ss:$8 sps:$4 sm:$0xff]   ;;  %v10235_v8 = vld [vmem:[%s11007_s21 + $0xac0] ss:$8 sps:$4 sm:$0xff]  }
 0x2ec   : > { %6886 = vmatpush1.bf16.msra.mxu1 %v10157_v37  ;;  %v10238_v37 = vld [vmem:[%s11007_s21 + $0x19c0] ss:$8 sps:$4 sm:$0xff]  }
 0x2ed   : > { %7501 = vmatpush1.bf16.msra.mxu0 %v10160_v38  ;;  %6896 = vmatprep.subr.bf16.mxu1 %v10165_v10  ;;  %v10243_v38 = vld [vmem:[%s11007_s21 + $0xad4] ss:$8 sps:$4 sm:$0xff]  }
 0x2ee   : > { %7511 = vmatprep.subr.bf16.mxu0 %v10168_v11  ;;  %v10246_v10 = vld [vmem:[%s11007_s21 + $0x19d4] ss:$8 sps:$4 sm:$0xff]   ;;  %v10241_v11 = vld [vmem:[%s11007_s21 + $0xad0] ss:$8 sps:$4 sm:$0xff]  }
 0x2ef   : > { %6888 = vmatmul.mubr.bf16.vlgmr.msra.gmra.mrb[0].mxu1 %v1402_v13  ;;  %v10249_v13 = vld [vmem:[%s11007_s21 + $0xae4] ss:$8 sps:$4 sm:$0xff]  }
 0x2f0   : > { %7503 = vmatmul.mubr.bf16.vlgmr.msra.gmra.mrb[0].mxu0 %v11876_v14  ;;  %6897 = vmatpush1.bf16.msra.mxu1 %v10163_v16  ;;  %v10252_v16 = vld [vmem:[%s11007_s21 + $0x19e4] ss:$8 sps:$4 sm:$0xff]  }
 0x2f1   : > { %7512 = vmatpush1.bf16.msra.mxu0 %v10166_v1  ;;  %6898 = vmatprep.subr.bf16.mxu1 %v10171_v18  ;;  %v1553_v1 = vcombine.high %v11772_v55, %v11772_v55  ;;  %v10247_v18 = vld [vmem:[%s11007_s21 + $0xae0] ss:$8 sps:$4 sm:$0xff]   ;;  %v10256_v55 = vld [vmem:[%s11007_s21 + $0x19f0] ss:$8 sps:$4 sm:$0xff]  }
 0x2f2   : > { %7513 = vmatprep.subr.bf16.mxu0 %v10174_v4  ;;  %6928 = vmatprep.mubr.bf16.mxu1 %v11883_v19  ;;  %v10250_v4 = vld [vmem:[%s11007_s21 + $0x19e0] ss:$8 sps:$4 sm:$0xff]  }
 0x2f3   : > { %7543 = vmatprep.mubr.bf16.mxu0 %v1600_v0  ;;  %v10255_v0 = vld [vmem:[%s11007_s21 + $0xaf4] ss:$8 sps:$4 sm:$0xff]  }
 0x2f4   : > { %6899 = vmatpush1.bf16.msra.mxu1 %v10169_v59  ;;  %v10258_v59 = vld [vmem:[%s11007_s21 + $0x19f4] ss:$8 sps:$4 sm:$0xff]  }
 0x2f5   : > { %7514 = vmatpush1.bf16.msra.mxu0 %v10172_v21  ;;  %6900 = vmatprep.subr.bf16.mxu1 %v10177_v22  ;;  %v11948_v21 = vrot.slane %v1553_v1, %v11074_v52  ;;  %v10253_v22 = vld [vmem:[%s11007_s21 + $0xaf0] ss:$8 sps:$4 sm:$0xff]  }
 0x2f6   : > { %7515 = vmatprep.subr.bf16.mxu0 %v10180_v23  ;;  %v10262_v23 = vld [vmem:[%s11007_s21 + $0xb04] ss:$8 sps:$4 sm:$0xff]   ;;  %v10329_v1 = vld [vmem:[%s11007_s21 + $0x1ab0] ss:$8 sps:$4 sm:$0xff]  }
 0x2f8   : > { %6901 = vmatpush1.bf16.msra.mxu1 %v10175_v24  ;;  %v10265_v24 = vld [vmem:[%s11007_s21 + $0x1a04] ss:$8 sps:$4 sm:$0xff]  }
 0x2f9   : > { %7516 = vmatpush1.bf16.msra.mxu0 %v10178_v25  ;;  %6902 = vmatprep.subr.bf16.mxu1 %v10183_v26  ;;  %v1569_v25 = vcombine.high %v11948_v21, %v11948_v21  ;;  %v11958_v26 = vrot.slane %v11864_v30, %v11074_v52 }
 0x2fa   : > { %7517 = vmatprep.subr.bf16.mxu0 %v10186_v27  ;;  %v1598_v27 = vcombine.high %v11876_v14, %v11876_v14  ;;  %v10266_v14 = vld [vmem:[%s11007_s21 + $0xb10] ss:$8 sps:$4 sm:$0xff]  }
 0x2fb   : > { %v11969_v30 = vrot.slane %v1569_v25, %v11074_v52  ;;  %v10346_v25 = vld [vmem:[%s11007_s21 + $0xbe4] ss:$8 sps:$4 sm:$0xff]  }
 0x2fc   : > { %6903 = vmatpush1.bf16.msra.mxu1 %v10181_v28  ;;  %v10260_v28 = vld [vmem:[%s11007_s21 + $0xb00] ss:$8 sps:$4 sm:$0xff]  }
 0x2fd   : > { %7518 = vmatpush1.bf16.msra.mxu0 %v10184_v9  ;;  %6904 = vmatprep.subr.bf16.mxu1 %v10189_v63  ;;  %v10263_v9 = vld [vmem:[%s11007_s21 + $0x1a00] ss:$8 sps:$4 sm:$0xff]   ;;  %v10268_v63 = vld [vmem:[%s11007_s21 + $0xb14] ss:$8 sps:$4 sm:$0xff]  }
 0x2fe   : > { %7519 = vmatprep.subr.bf16.mxu0 %v10192_v53  ;;  %v10271_v53 = vld [vmem:[%s11007_s21 + $0x1a14] ss:$8 sps:$4 sm:$0xff]  }
 0x300   : > { %6905 = vmatpush1.bf16.msra.mxu1 %v10187_v32  ;;  %v1405_v32 = vcombine.high %v11883_v19, %v11883_v19  ;;  %v10277_v19 = vld [vmem:[%s11007_s21 + $0x1a24] ss:$8 sps:$4 sm:$0xff]  }
 0x301   : > { %7520 = vmatpush1.bf16.msra.mxu0 %v10190_v56  ;;  %6906 = vmatprep.subr.bf16.mxu1 %v10195_v33  ;;  %v10269_v56 = vld [vmem:[%s11007_s21 + $0x1a10] ss:$8 sps:$4 sm:$0xff]   ;;  %v10274_v33 = vld [vmem:[%s11007_s21 + $0xb24] ss:$8 sps:$4 sm:$0xff]  }
 0x302   : > { %7521 = vmatprep.subr.bf16.mxu0 %v10198_v34  ;;  %v10272_v34 = vld [vmem:[%s11007_s21 + $0xb20] ss:$8 sps:$4 sm:$0xff]  }
 0x304   : > { %6907 = vmatpush1.bf16.msra.mxu1 %v10193_v36  ;;  %v10275_v36 = vld [vmem:[%s11007_s21 + $0x1a20] ss:$8 sps:$4 sm:$0xff]  }
 0x305   : > { %7522 = vmatpush1.bf16.msra.mxu0 %v10196_v39  ;;  %6908 = vmatprep.subr.bf16.mxu1 %v10201_v40  ;;  %v10280_v39 = vld [vmem:[%s11007_s21 + $0xb34] ss:$8 sps:$4 sm:$0xff]  }
 0x306   : > { %7523 = vmatprep.subr.bf16.mxu0 %v10204_v20  ;;  %v10283_v40 = vld [vmem:[%s11007_s21 + $0x1a34] ss:$8 sps:$4 sm:$0xff]   ;;  %v10278_v20 = vld [vmem:[%s11007_s21 + $0xb30] ss:$8 sps:$4 sm:$0xff]  }
 0x308   : > { %6909 = vmatpush1.bf16.msra.mxu1 %v10199_v42  ;;  %v10281_v42 = vld [vmem:[%s11007_s21 + $0x1a30] ss:$8 sps:$4 sm:$0xff]  }
 0x309   : > { %7524 = vmatpush1.bf16.msra.mxu0 %v10202_v44  ;;  %6910 = vmatprep.subr.bf16.mxu1 %v10207_v49  ;;  %v10286_v44 = vld [vmem:[%s11007_s21 + $0xb44] ss:$8 sps:$4 sm:$0xff]  }
 0x30a   : > { %7525 = vmatprep.subr.bf16.mxu0 %v10210_v29  ;;  %v10289_v49 = vld [vmem:[%s11007_s21 + $0x1a44] ss:$8 sps:$4 sm:$0xff]   ;;  %v10284_v29 = vld [vmem:[%s11007_s21 + $0xb40] ss:$8 sps:$4 sm:$0xff]  }
 0x30c   : > { %6911 = vmatpush1.bf16.msra.mxu1 %v10205_v45  ;;  %v10287_v45 = vld [vmem:[%s11007_s21 + $0x1a40] ss:$8 sps:$4 sm:$0xff]  }
 0x30d   : > { %7526 = vmatpush1.bf16.msra.mxu0 %v10208_v46  ;;  %6912 = vmatprep.subr.bf16.mxu1 %v10213_v48  ;;  %v10292_v46 = vld [vmem:[%s11007_s21 + $0xb54] ss:$8 sps:$4 sm:$0xff]  }
 0x30e   : > { %7527 = vmatprep.subr.bf16.mxu0 %v10216_v54  ;;  %v10295_v48 = vld [vmem:[%s11007_s21 + $0x1a54] ss:$8 sps:$4 sm:$0xff]   ;;  %v10290_v54 = vld [vmem:[%s11007_s21 + $0xb50] ss:$8 sps:$4 sm:$0xff]  }
 0x310   : > { %6913 = vmatpush1.bf16.msra.mxu1 %v10211_v57  ;;  %v10293_v57 = vld [vmem:[%s11007_s21 + $0x1a50] ss:$8 sps:$4 sm:$0xff]  }
 0x311   : > { %7528 = vmatpush1.bf16.msra.mxu0 %v10214_v58  ;;  %6914 = vmatprep.subr.bf16.mxu1 %v10219_v35  ;;  %v10298_v58 = vld [vmem:[%s11007_s21 + $0xb64] ss:$8 sps:$4 sm:$0xff]  }
 0x312   : > { %7529 = vmatprep.subr.bf16.mxu0 %v10222_v31  ;;  %v10301_v35 = vld [vmem:[%s11007_s21 + $0x1a64] ss:$8 sps:$4 sm:$0xff]   ;;  %v10296_v31 = vld [vmem:[%s11007_s21 + $0xb60] ss:$8 sps:$4 sm:$0xff]  }
 0x314   : > { %6915 = vmatpush1.bf16.msra.mxu1 %v10217_v60  ;;  %v10299_v60 = vld [vmem:[%s11007_s21 + $0x1a60] ss:$8 sps:$4 sm:$0xff]  }
 0x315   : > { %7530 = vmatpush1.bf16.msra.mxu0 %v10220_v41  ;;  %6916 = vmatprep.subr.bf16.mxu1 %v10225_v17  ;;  %v10304_v41 = vld [vmem:[%s11007_s21 + $0xb74] ss:$8 sps:$4 sm:$0xff]  }
 0x316   : > { %7531 = vmatprep.subr.bf16.mxu0 %v10228_v61  ;;  %v10307_v17 = vld [vmem:[%s11007_s21 + $0x1a74] ss:$8 sps:$4 sm:$0xff]   ;;  %v10302_v61 = vld [vmem:[%s11007_s21 + $0xb70] ss:$8 sps:$4 sm:$0xff]  }
 0x318   : > { %6917 = vmatpush1.bf16.msra.mxu1 %v10223_v62  ;;  %v10305_v62 = vld [vmem:[%s11007_s21 + $0x1a70] ss:$8 sps:$4 sm:$0xff]  }
 0x319   : > { %7532 = vmatpush1.bf16.msra.mxu0 %v10226_v2  ;;  %6918 = vmatprep.subr.bf16.mxu1 %v10231_v3  ;;  %v10310_v2 = vld [vmem:[%s11007_s21 + $0xb84] ss:$8 sps:$4 sm:$0xff]  }
 0x31a   : > { %7533 = vmatprep.subr.bf16.mxu0 %v10234_v6  ;;  %v10313_v3 = vld [vmem:[%s11007_s21 + $0x1a84] ss:$8 sps:$4 sm:$0xff]   ;;  %v10308_v6 = vld [vmem:[%s11007_s21 + $0xb80] ss:$8 sps:$4 sm:$0xff]  }
 0x31c   : > { %6919 = vmatpush1.bf16.msra.mxu1 %v10229_v43  ;;  %v10311_v43 = vld [vmem:[%s11007_s21 + $0x1a80] ss:$8 sps:$4 sm:$0xff]  }
 0x31d   : > { %7534 = vmatpush1.bf16.msra.mxu0 %v10232_v51  ;;  %6920 = vmatprep.subr.bf16.mxu1 %v10237_v7  ;;  %v10316_v51 = vld [vmem:[%s11007_s21 + $0xb94] ss:$8 sps:$4 sm:$0xff]  }
 0x31e   : > { %7535 = vmatprep.subr.bf16.mxu0 %v10240_v50  ;;  %v10319_v7 = vld [vmem:[%s11007_s21 + $0x1a94] ss:$8 sps:$4 sm:$0xff]   ;;  %v10314_v50 = vld [vmem:[%s11007_s21 + $0xb90] ss:$8 sps:$4 sm:$0xff]  }
 0x320   : > { %6921 = vmatpush1.bf16.msra.mxu1 %v10235_v8  ;;  %v10317_v8 = vld [vmem:[%s11007_s21 + $0x1a90] ss:$8 sps:$4 sm:$0xff]  }
 0x321   : > { %7536 = vmatpush1.bf16.msra.mxu0 %v10238_v37  ;;  %6922 = vmatprep.subr.bf16.mxu1 %v10243_v38  ;;  %v10322_v37 = vld [vmem:[%s11007_s21 + $0xba4] ss:$8 sps:$4 sm:$0xff]  }
 0x322   : > { %7537 = vmatprep.subr.bf16.mxu0 %v10246_v10  ;;  %v10325_v38 = vld [vmem:[%s11007_s21 + $0x1aa4] ss:$8 sps:$4 sm:$0xff]   ;;  %v10320_v10 = vld [vmem:[%s11007_s21 + $0xba0] ss:$8 sps:$4 sm:$0xff]  }
 0x324   : > { %6923 = vmatpush1.bf16.msra.mxu1 %v10241_v11  ;;  %v10323_v11 = vld [vmem:[%s11007_s21 + $0x1aa0] ss:$8 sps:$4 sm:$0xff]  }
 0x325   : > { %7538 = vmatpush1.bf16.msra.mxu0 %v10244_v12  ;;  %6924 = vmatprep.subr.bf16.mxu1 %v10249_v13  ;;  %v10328_v12 = vld [vmem:[%s11007_s21 + $0xbb4] ss:$8 sps:$4 sm:$0xff]  }
 0x326   : > { %7539 = vmatprep.subr.bf16.mxu0 %v10252_v16  ;;  %v10331_v13 = vld [vmem:[%s11007_s21 + $0x1ab4] ss:$8 sps:$4 sm:$0xff]   ;;  %v10326_v16 = vld [vmem:[%s11007_s21 + $0xbb0] ss:$8 sps:$4 sm:$0xff]  }
 0x328   : > { %6925 = vmatpush1.bf16.msra.mxu1 %v10247_v18  ;;  %v10334_v18 = vld [vmem:[%s11007_s21 + $0xbc4] ss:$8 sps:$4 sm:$0xff]  }
 0x329   : > { %7540 = vmatpush1.bf16.msra.mxu0 %v10250_v4  ;;  %6926 = vmatprep.subr.bf16.mxu1 %v10255_v0  ;;  %v10337_v4 = vld [vmem:[%s11007_s21 + $0x1ac4] ss:$8 sps:$4 sm:$0xff]   ;;  %v10332_v0 = vld [vmem:[%s11007_s21 + $0xbc0] ss:$8 sps:$4 sm:$0xff]  }
 0x32a   : > { %7541 = vmatprep.subr.bf16.mxu0 %v10258_v59  ;;  %v10335_v59 = vld [vmem:[%s11007_s21 + $0x1ac0] ss:$8 sps:$4 sm:$0xff]  }
 0x32c   : > { %6927 = vmatpush1.bf16.msra.mxu1 %v10253_v22  ;;  %v10340_v22 = vld [vmem:[%s11007_s21 + $0xbd4] ss:$8 sps:$4 sm:$0xff]  }
 0x32d   : > { %7542 = vmatpush1.bf16.msra.mxu0 %v10256_v55  ;;  %6937 = vmatprep.subr.bf16.mxu1 %v10262_v23  ;;  %v10343_v55 = vld [vmem:[%s11007_s21 + $0x1ad4] ss:$8 sps:$4 sm:$0xff]   ;;  %v10338_v23 = vld [vmem:[%s11007_s21 + $0xbd0] ss:$8 sps:$4 sm:$0xff]  }
 0x32e   : > { %7552 = vmatprep.subr.bf16.mxu0 %v10265_v24  ;;  %v10341_v24 = vld [vmem:[%s11007_s21 + $0x1ad0] ss:$8 sps:$4 sm:$0xff]  }
 0x32f   : > { %6929 = vmatmul.mubr.bf16.vlgmr.msra.gmra.mrb[0].mxu1 %v11958_v26 }
 0x330   : > { %7544 = vmatmul.mubr.bf16.vlgmr.msra.gmra.mrb[0].mxu0 %v1598_v27  ;;  %6938 = vmatpush1.bf16.msra.mxu1 %v10260_v28  ;;  %v10349_v27 = vld [vmem:[%s11007_s21 + $0x1ae4] ss:$8 sps:$4 sm:$0xff]   ;;  %v10344_v28 = vld [vmem:[%s11007_s21 + $0xbe0] ss:$8 sps:$4 sm:$0xff]  }
 0x331   : > { %7553 = vmatpush1.bf16.msra.mxu0 %v10263_v9  ;;  %6939 = vmatprep.subr.bf16.mxu1 %v10268_v63  ;;  %v10347_v9 = vld [vmem:[%s11007_s21 + $0x1ae0] ss:$8 sps:$4 sm:$0xff]   ;;  %v10352_v63 = vld [vmem:[%s11007_s21 + $0xbf4] ss:$8 sps:$4 sm:$0xff]  }
 0x332   : > { %7554 = vmatprep.subr.bf16.mxu0 %v10271_v53  ;;  %6969 = vmatprep.mubr.bf16.mxu1 %v1405_v32  ;;  %v10355_v53 = vld [vmem:[%s11007_s21 + $0x1af4] ss:$8 sps:$4 sm:$0xff]  }
 0x333   : > { %7584 = vmatprep.mubr.bf16.mxu0 %v11969_v30  ;;  %v12030_v32 = vld.sshfl [vmem:[%s11021_s13 + $0x18] sm:$0xff pattern:$0x75316420] }
 0x334   : > { %6940 = vmatpush1.bf16.msra.mxu1 %v10266_v14  ;;  %v10350_v14 = vld [vmem:[%s11007_s21 + $0xbf0] ss:$8 sps:$4 sm:$0xff]  }
 0x335   : > { %7555 = vmatpush1.bf16.msra.mxu0 %v10269_v56  ;;  %6941 = vmatprep.subr.bf16.mxu1 %v10274_v33  ;;  %v10353_v56 = vld [vmem:[%s11007_s21 + $0x1af0] ss:$8 sps:$4 sm:$0xff]   ;;  %v10358_v33 = vld [vmem:[%s11007_s21 + $0xc04] ss:$8 sps:$4 sm:$0xff]  }
 0x336   : > { %7556 = vmatprep.subr.bf16.mxu0 %v10277_v19  ;;  %v10362_v19 = vld [vmem:[%s11007_s21 + $0x1b04] ss:$8 sps:$4 sm:$0xff]  }
 0x338   : > { %6942 = vmatpush1.bf16.msra.mxu1 %v10272_v34  ;;  %v1421_v34 = vcombine.high %v12030_v32, %v12030_v32 }
 0x339   : > { %7557 = vmatpush1.bf16.msra.mxu0 %v10275_v36  ;;  %6943 = vmatprep.subr.bf16.mxu1 %v10280_v39  ;;  %v1403_v36 = vcombine.high %v11958_v26, %v11958_v26  ;;  %v12042_v39 = vrot.slane %v11948_v21, %v11074_v52  ;;  %v1601_v26 = vcombine.high %v11969_v30, %v11969_v30  ;;  %v10363_v21 = vld [vmem:[%s11007_s21 + $0xc10] ss:$8 sps:$4 sm:$0xff]   ;;  %v10369_v30 = vld [vmem:[%s11007_s21 + $0xc20] ss:$8 sps:$4 sm:$0xff]  }
 0x33a   : > { %7558 = vmatprep.subr.bf16.mxu0 %v10283_v40  ;;  %v10356_v40 = vld [vmem:[%s11007_s21 + $0xc00] ss:$8 sps:$4 sm:$0xff]  }
 0x33c   : > { %6944 = vmatpush1.bf16.msra.mxu1 %v10278_v20  ;;  %v10360_v20 = vld [vmem:[%s11007_s21 + $0x1b00] ss:$8 sps:$4 sm:$0xff]  }
 0x33d   : > { %7559 = vmatpush1.bf16.msra.mxu0 %v10281_v42  ;;  %6945 = vmatprep.subr.bf16.mxu1 %v10286_v44  ;;  %v10365_v42 = vld [vmem:[%s11007_s21 + $0xc14] ss:$8 sps:$4 sm:$0xff]  }
 0x33e   : > { %7560 = vmatprep.subr.bf16.mxu0 %v10289_v49  ;;  %v10368_v44 = vld [vmem:[%s11007_s21 + $0x1b14] ss:$8 sps:$4 sm:$0xff]   ;;  %v12049_v49 = vrot.slane %v1421_v34, %v11074_v52  ;;  %v10443_v34 = vld [vmem:[%s11007_s21 + $0xce4] ss:$8 sps:$4 sm:$0xff]  }
 0x340   : > { %6946 = vmatpush1.bf16.msra.mxu1 %v10284_v29  ;;  %v10366_v29 = vld [vmem:[%s11007_s21 + $0x1b10] ss:$8 sps:$4 sm:$0xff]  }
 0x341   : > { %7561 = vmatpush1.bf16.msra.mxu0 %v10287_v45  ;;  %6947 = vmatprep.subr.bf16.mxu1 %v10292_v46  ;;  %v10371_v45 = vld [vmem:[%s11007_s21 + $0xc24] ss:$8 sps:$4 sm:$0xff]  }
 0x342   : > { %7562 = vmatprep.subr.bf16.mxu0 %v10295_v48  ;;  %v10374_v46 = vld [vmem:[%s11007_s21 + $0x1b24] ss:$8 sps:$4 sm:$0xff]   ;;  %v10372_v48 = vld [vmem:[%s11007_s21 + $0x1b20] ss:$8 sps:$4 sm:$0xff]  }
 0x344   : > { %6948 = vmatpush1.bf16.msra.mxu1 %v10290_v54  ;;  %v10377_v54 = vld [vmem:[%s11007_s21 + $0xc34] ss:$8 sps:$4 sm:$0xff]  }
 0x345   : > { %7563 = vmatpush1.bf16.msra.mxu0 %v10293_v57  ;;  %6949 = vmatprep.subr.bf16.mxu1 %v10298_v58  ;;  %v10380_v57 = vld [vmem:[%s11007_s21 + $0x1b34] ss:$8 sps:$4 sm:$0xff]   ;;  %v10375_v58 = vld [vmem:[%s11007_s21 + $0xc30] ss:$8 sps:$4 sm:$0xff]  }
 0x346   : > { %7564 = vmatprep.subr.bf16.mxu0 %v10301_v35  ;;  %v10378_v35 = vld [vmem:[%s11007_s21 + $0x1b30] ss:$8 sps:$4 sm:$0xff]  }
 0x348   : > { %6950 = vmatpush1.bf16.msra.mxu1 %v10296_v31  ;;  %v10383_v31 = vld [vmem:[%s11007_s21 + $0xc44] ss:$8 sps:$4 sm:$0xff]  }
 0x349   : > { %7565 = vmatpush1.bf16.msra.mxu0 %v10299_v60  ;;  %6951 = vmatprep.subr.bf16.mxu1 %v10304_v41  ;;  %v10386_v60 = vld [vmem:[%s11007_s21 + $0x1b44] ss:$8 sps:$4 sm:$0xff]   ;;  %v10381_v41 = vld [vmem:[%s11007_s21 + $0xc40] ss:$8 sps:$4 sm:$0xff]  }
 0x34a   : > { %7566 = vmatprep.subr.bf16.mxu0 %v10307_v17  ;;  %v10384_v17 = vld [vmem:[%s11007_s21 + $0x1b40] ss:$8 sps:$4 sm:$0xff]  }
 0x34c   : > { %6952 = vmatpush1.bf16.msra.mxu1 %v10302_v61  ;;  %v10389_v61 = vld [vmem:[%s11007_s21 + $0xc54] ss:$8 sps:$4 sm:$0xff]  }
 0x34d   : > { %7567 = vmatpush1.bf16.msra.mxu0 %v10305_v62  ;;  %6953 = vmatprep.subr.bf16.mxu1 %v10310_v2  ;;  %v10392_v62 = vld [vmem:[%s11007_s21 + $0x1b54] ss:$8 sps:$4 sm:$0xff]   ;;  %v10387_v2 = vld [vmem:[%s11007_s21 + $0xc50] ss:$8 sps:$4 sm:$0xff]  }
 0x34e   : > { %7568 = vmatprep.subr.bf16.mxu0 %v10313_v3  ;;  %v10390_v3 = vld [vmem:[%s11007_s21 + $0x1b50] ss:$8 sps:$4 sm:$0xff]  }
 0x350   : > { %6954 = vmatpush1.bf16.msra.mxu1 %v10308_v6  ;;  %v10395_v6 = vld [vmem:[%s11007_s21 + $0xc64] ss:$8 sps:$4 sm:$0xff]  }
 0x351   : > { %7569 = vmatpush1.bf16.msra.mxu0 %v10311_v43  ;;  %6955 = vmatprep.subr.bf16.mxu1 %v10316_v51  ;;  %v10398_v43 = vld [vmem:[%s11007_s21 + $0x1b64] ss:$8 sps:$4 sm:$0xff]   ;;  %v10393_v51 = vld [vmem:[%s11007_s21 + $0xc60] ss:$8 sps:$4 sm:$0xff]  }
 0x352   : > { %7570 = vmatprep.subr.bf16.mxu0 %v10319_v7  ;;  %v10396_v7 = vld [vmem:[%s11007_s21 + $0x1b60] ss:$8 sps:$4 sm:$0xff]  }
 0x354   : > { %6956 = vmatpush1.bf16.msra.mxu1 %v10314_v50  ;;  %v10401_v50 = vld [vmem:[%s11007_s21 + $0xc74] ss:$8 sps:$4 sm:$0xff]  }
 0x355   : > { %7571 = vmatpush1.bf16.msra.mxu0 %v10317_v8  ;;  %6957 = vmatprep.subr.bf16.mxu1 %v10322_v37  ;;  %v10404_v8 = vld [vmem:[%s11007_s21 + $0x1b74] ss:$8 sps:$4 sm:$0xff]   ;;  %v10399_v37 = vld [vmem:[%s11007_s21 + $0xc70] ss:$8 sps:$4 sm:$0xff]  }
 0x356   : > { %7572 = vmatprep.subr.bf16.mxu0 %v10325_v38  ;;  %v10402_v38 = vld [vmem:[%s11007_s21 + $0x1b70] ss:$8 sps:$4 sm:$0xff]  }
 0x358   : > { %6958 = vmatpush1.bf16.msra.mxu1 %v10320_v10  ;;  %v10407_v10 = vld [vmem:[%s11007_s21 + $0xc84] ss:$8 sps:$4 sm:$0xff]  }
 0x359   : > { %7573 = vmatpush1.bf16.msra.mxu0 %v10323_v11  ;;  %6959 = vmatprep.subr.bf16.mxu1 %v10328_v12  ;;  %v10410_v11 = vld [vmem:[%s11007_s21 + $0x1b84] ss:$8 sps:$4 sm:$0xff]   ;;  %v10405_v12 = vld [vmem:[%s11007_s21 + $0xc80] ss:$8 sps:$4 sm:$0xff]  }
 0x35a   : > { %7574 = vmatprep.subr.bf16.mxu0 %v10331_v13  ;;  %v10408_v13 = vld [vmem:[%s11007_s21 + $0x1b80] ss:$8 sps:$4 sm:$0xff]  }
 0x35c   : > { %6960 = vmatpush1.bf16.msra.mxu1 %v10326_v16  ;;  %v10413_v16 = vld [vmem:[%s11007_s21 + $0xc94] ss:$8 sps:$4 sm:$0xff]  }
 0x35d   : > { %7575 = vmatpush1.bf16.msra.mxu0 %v10329_v1  ;;  %6961 = vmatprep.subr.bf16.mxu1 %v10334_v18  ;;  %v10416_v1 = vld [vmem:[%s11007_s21 + $0x1b94] ss:$8 sps:$4 sm:$0xff]   ;;  %v10411_v18 = vld [vmem:[%s11007_s21 + $0xc90] ss:$8 sps:$4 sm:$0xff]  }
 0x35e   : > { %7576 = vmatprep.subr.bf16.mxu0 %v10337_v4  ;;  %v10414_v4 = vld [vmem:[%s11007_s21 + $0x1b90] ss:$8 sps:$4 sm:$0xff]  }
 0x360   : > { %6962 = vmatpush1.bf16.msra.mxu1 %v10332_v0  ;;  %v10419_v0 = vld [vmem:[%s11007_s21 + $0xca4] ss:$8 sps:$4 sm:$0xff]  }
 0x361   : > { %7577 = vmatpush1.bf16.msra.mxu0 %v10335_v59  ;;  %6963 = vmatprep.subr.bf16.mxu1 %v10340_v22  ;;  %v10422_v59 = vld [vmem:[%s11007_s21 + $0x1ba4] ss:$8 sps:$4 sm:$0xff]   ;;  %v10417_v22 = vld [vmem:[%s11007_s21 + $0xca0] ss:$8 sps:$4 sm:$0xff]  }
 0x362   : > { %7578 = vmatprep.subr.bf16.mxu0 %v10343_v55  ;;  %v10420_v55 = vld [vmem:[%s11007_s21 + $0x1ba0] ss:$8 sps:$4 sm:$0xff]  }
 0x364   : > { %6964 = vmatpush1.bf16.msra.mxu1 %v10338_v23  ;;  %v10425_v23 = vld [vmem:[%s11007_s21 + $0xcb4] ss:$8 sps:$4 sm:$0xff]  }
 0x365   : > { %7579 = vmatpush1.bf16.msra.mxu0 %v10341_v24  ;;  %6965 = vmatprep.subr.bf16.mxu1 %v10346_v25  ;;  %v10428_v24 = vld [vmem:[%s11007_s21 + $0x1bb4] ss:$8 sps:$4 sm:$0xff]   ;;  %v10423_v25 = vld [vmem:[%s11007_s21 + $0xcb0] ss:$8 sps:$4 sm:$0xff]  }
 0x366   : > { %7580 = vmatprep.subr.bf16.mxu0 %v10349_v27  ;;  %v10426_v27 = vld [vmem:[%s11007_s21 + $0x1bb0] ss:$8 sps:$4 sm:$0xff]  }
 0x368   : > { %6966 = vmatpush1.bf16.msra.mxu1 %v10344_v28  ;;  %v10431_v28 = vld [vmem:[%s11007_s21 + $0xcc4] ss:$8 sps:$4 sm:$0xff]  }
 0x369   : > { %7581 = vmatpush1.bf16.msra.mxu0 %v10347_v9  ;;  %6967 = vmatprep.subr.bf16.mxu1 %v10352_v63  ;;  %v10434_v9 = vld [vmem:[%s11007_s21 + $0x1bc4] ss:$8 sps:$4 sm:$0xff]   ;;  %v10429_v63 = vld [vmem:[%s11007_s21 + $0xcc0] ss:$8 sps:$4 sm:$0xff]  }
 0x36a   : > { %7582 = vmatprep.subr.bf16.mxu0 %v10355_v53  ;;  %v10432_v53 = vld [vmem:[%s11007_s21 + $0x1bc0] ss:$8 sps:$4 sm:$0xff]  }
 0x36c   : > { %6968 = vmatpush1.bf16.msra.mxu1 %v10350_v14  ;;  %v10437_v14 = vld [vmem:[%s11007_s21 + $0xcd4] ss:$8 sps:$4 sm:$0xff]  }
 0x36d   : > { %7583 = vmatpush1.bf16.msra.mxu0 %v10353_v56  ;;  %6978 = vmatprep.subr.bf16.mxu1 %v10358_v33  ;;  %v10440_v56 = vld [vmem:[%s11007_s21 + $0x1bd4] ss:$8 sps:$4 sm:$0xff]   ;;  %v10435_v33 = vld [vmem:[%s11007_s21 + $0xcd0] ss:$8 sps:$4 sm:$0xff]  }
 0x36e   : > { %7593 = vmatprep.subr.bf16.mxu0 %v10362_v19  ;;  %v10438_v19 = vld [vmem:[%s11007_s21 + $0x1bd0] ss:$8 sps:$4 sm:$0xff]  }
 0x36f   : > { %6970 = vmatmul.mubr.bf16.vlgmr.msra.gmra.mrb[0].mxu1 %v1403_v36  ;;  %v10446_v36 = vld [vmem:[%s11007_s21 + $0x1be4] ss:$8 sps:$4 sm:$0xff]  }
 0x370   : > { %7585 = vmatmul.mubr.bf16.vlgmr.msra.gmra.mrb[0].mxu0 %v12042_v39  ;;  %6979 = vmatpush1.bf16.msra.mxu1 %v10356_v40  ;;  %v10441_v40 = vld [vmem:[%s11007_s21 + $0xce0] ss:$8 sps:$4 sm:$0xff]  }
 0x371   : > { %7594 = vmatpush1.bf16.msra.mxu0 %v10360_v20  ;;  %6980 = vmatprep.subr.bf16.mxu1 %v10365_v42  ;;  %v10444_v20 = vld [vmem:[%s11007_s21 + $0x1be0] ss:$8 sps:$4 sm:$0xff]   ;;  %v10449_v42 = vld [vmem:[%s11007_s21 + $0xcf4] ss:$8 sps:$4 sm:$0xff]  }
 0x372   : > { %7595 = vmatprep.subr.bf16.mxu0 %v10368_v44  ;;  %7010 = vmatprep.mubr.bf16.mxu1 %v12049_v49  ;;  %v10452_v44 = vld [vmem:[%s11007_s21 + $0x1bf4] ss:$8 sps:$4 sm:$0xff]  }
 0x373   : > { %7625 = vmatprep.mubr.bf16.mxu0 %v1601_v26  ;;  %v12112_v26 = vld.sshfl [vmem:[%s11021_s13 + $0x38] sm:$0x33 pattern:$0x75316420] }
 0x374   : > { %6981 = vmatpush1.bf16.msra.mxu1 %v10363_v21  ;;  %v10447_v21 = vld [vmem:[%s11007_s21 + $0xcf0] ss:$8 sps:$4 sm:$0xff]  }
 0x375   : > { %7596 = vmatpush1.bf16.msra.mxu0 %v10366_v29  ;;  %6982 = vmatprep.subr.bf16.mxu1 %v10371_v45  ;;  %v10450_v29 = vld [vmem:[%s11007_s21 + $0x1bf0] ss:$8 sps:$4 sm:$0xff]   ;;  %v10455_v45 = vld [vmem:[%s11007_s21 + $0xd04] ss:$8 sps:$4 sm:$0xff]  }
 0x376   : > { %7597 = vmatprep.subr.bf16.mxu0 %v10374_v46  ;;  %v10458_v46 = vld [vmem:[%s11007_s21 + $0x1c04] ss:$8 sps:$4 sm:$0xff]  }
 0x378   : > { %6983 = vmatpush1.bf16.msra.mxu1 %v10369_v30  ;;  %v1609_v30 = vcombine.high %v12112_v26, %v12112_v26 }
 0x379   : > { %7598 = vmatpush1.bf16.msra.mxu0 %v10372_v48  ;;  %6984 = vmatprep.subr.bf16.mxu1 %v10377_v54  ;;  %v12122_v48 = vrot.slane %v12030_v32, %v11074_v52  ;;  %v1599_v54 = vcombine.high %v12042_v39, %v12042_v39  ;;  %v10459_v39 = vld [vmem:[%s11007_s21 + $0xd10] ss:$8 sps:$4 sm:$0xff]  }
 0x37a   : > { %7599 = vmatprep.subr.bf16.mxu0 %v10380_v57  ;;  %v10453_v57 = vld [vmem:[%s11007_s21 + $0xd00] ss:$8 sps:$4 sm:$0xff]   ;;  %v12133_v32 = vrot.slane %v1609_v30, %v11074_v52  ;;  %v10539_v30 = vld [vmem:[%s11007_s21 + $0xde4] ss:$8 sps:$4 sm:$0xff]  }
 0x37c   : > { %6985 = vmatpush1.bf16.msra.mxu1 %v10375_v58  ;;  %v10456_v58 = vld [vmem:[%s11007_s21 + $0x1c00] ss:$8 sps:$4 sm:$0xff]  }
 0x37d   : > { %7600 = vmatpush1.bf16.msra.mxu0 %v10378_v35  ;;  %6986 = vmatprep.subr.bf16.mxu1 %v10383_v31  ;;  %v10461_v35 = vld [vmem:[%s11007_s21 + $0xd14] ss:$8 sps:$4 sm:$0xff]  }
 0x37e   : > { %7601 = vmatprep.subr.bf16.mxu0 %v10386_v60  ;;  %v10464_v31 = vld [vmem:[%s11007_s21 + $0x1c14] ss:$8 sps:$4 sm:$0xff]   ;;  %v1453_v60 = vcombine.high %v12049_v49, %v12049_v49  ;;  %v10470_v49 = vld [vmem:[%s11007_s21 + $0x1c24] ss:$8 sps:$4 sm:$0xff]  }
 0x380   : > { %6987 = vmatpush1.bf16.msra.mxu1 %v10381_v41  ;;  %v10462_v41 = vld [vmem:[%s11007_s21 + $0x1c10] ss:$8 sps:$4 sm:$0xff]  }
 0x381   : > { %7602 = vmatpush1.bf16.msra.mxu0 %v10384_v17  ;;  %6988 = vmatprep.subr.bf16.mxu1 %v10389_v61  ;;  %v10467_v17 = vld [vmem:[%s11007_s21 + $0xd24] ss:$8 sps:$4 sm:$0xff]   ;;  %v10465_v61 = vld [vmem:[%s11007_s21 + $0xd20] ss:$8 sps:$4 sm:$0xff]  }
 0x382   : > { %7603 = vmatprep.subr.bf16.mxu0 %v10392_v62  ;;  %v10468_v62 = vld [vmem:[%s11007_s21 + $0x1c20] ss:$8 sps:$4 sm:$0xff]  }
 0x384   : > { %6989 = vmatpush1.bf16.msra.mxu1 %v10387_v2  ;;  %v10473_v2 = vld [vmem:[%s11007_s21 + $0xd34] ss:$8 sps:$4 sm:$0xff]  }
 0x385   : > { %7604 = vmatpush1.bf16.msra.mxu0 %v10390_v3  ;;  %6990 = vmatprep.subr.bf16.mxu1 %v10395_v6  ;;  %v10476_v3 = vld [vmem:[%s11007_s21 + $0x1c34] ss:$8 sps:$4 sm:$0xff]   ;;  %v10471_v6 = vld [vmem:[%s11007_s21 + $0xd30] ss:$8 sps:$4 sm:$0xff]  }
 0x386   : > { %7605 = vmatprep.subr.bf16.mxu0 %v10398_v43  ;;  %v10474_v43 = vld [vmem:[%s11007_s21 + $0x1c30] ss:$8 sps:$4 sm:$0xff]  }
 0x388   : > { %6991 = vmatpush1.bf16.msra.mxu1 %v10393_v51  ;;  %v10479_v51 = vld [vmem:[%s11007_s21 + $0xd44] ss:$8 sps:$4 sm:$0xff]  }
 0x389   : > { %7606 = vmatpush1.bf16.msra.mxu0 %v10396_v7  ;;  %6992 = vmatprep.subr.bf16.mxu1 %v10401_v50  ;;  %v10482_v7 = vld [vmem:[%s11007_s21 + $0x1c44] ss:$8 sps:$4 sm:$0xff]   ;;  %v10477_v50 = vld [vmem:[%s11007_s21 + $0xd40] ss:$8 sps:$4 sm:$0xff]  }
 0x38a   : > { %7607 = vmatprep.subr.bf16.mxu0 %v10404_v8  ;;  %v10480_v8 = vld [vmem:[%s11007_s21 + $0x1c40] ss:$8 sps:$4 sm:$0xff]  }
 0x38c   : > { %6993 = vmatpush1.bf16.msra.mxu1 %v10399_v37  ;;  %v10485_v37 = vld [vmem:[%s11007_s21 + $0xd54] ss:$8 sps:$4 sm:$0xff]  }
 0x38d   : > { %7608 = vmatpush1.bf16.msra.mxu0 %v10402_v38  ;;  %6994 = vmatprep.subr.bf16.mxu1 %v10407_v10  ;;  %v10488_v38 = vld [vmem:[%s11007_s21 + $0x1c54] ss:$8 sps:$4 sm:$0xff]   ;;  %v10483_v10 = vld [vmem:[%s11007_s21 + $0xd50] ss:$8 sps:$4 sm:$0xff]  }
 0x38e   : > { %7609 = vmatprep.subr.bf16.mxu0 %v10410_v11  ;;  %v10486_v11 = vld [vmem:[%s11007_s21 + $0x1c50] ss:$8 sps:$4 sm:$0xff]  }
 0x390   : > { %6995 = vmatpush1.bf16.msra.mxu1 %v10405_v12  ;;  %v10491_v12 = vld [vmem:[%s11007_s21 + $0xd64] ss:$8 sps:$4 sm:$0xff]  }
 0x391   : > { %7610 = vmatpush1.bf16.msra.mxu0 %v10408_v13  ;;  %6996 = vmatprep.subr.bf16.mxu1 %v10413_v16  ;;  %v10494_v13 = vld [vmem:[%s11007_s21 + $0x1c64] ss:$8 sps:$4 sm:$0xff]   ;;  %v10489_v16 = vld [vmem:[%s11007_s21 + $0xd60] ss:$8 sps:$4 sm:$0xff]  }
 0x392   : > { %7611 = vmatprep.subr.bf16.mxu0 %v10416_v1  ;;  %v10492_v1 = vld [vmem:[%s11007_s21 + $0x1c60] ss:$8 sps:$4 sm:$0xff]  }
 0x394   : > { %6997 = vmatpush1.bf16.msra.mxu1 %v10411_v18  ;;  %v10497_v18 = vld [vmem:[%s11007_s21 + $0xd74] ss:$8 sps:$4 sm:$0xff]  }
 0x395   : > { %7612 = vmatpush1.bf16.msra.mxu0 %v10414_v4  ;;  %6998 = vmatprep.subr.bf16.mxu1 %v10419_v0  ;;  %v10500_v4 = vld [vmem:[%s11007_s21 + $0x1c74] ss:$8 sps:$4 sm:$0xff]   ;;  %v10495_v0 = vld [vmem:[%s11007_s21 + $0xd70] ss:$8 sps:$4 sm:$0xff]  }
 0x396   : > { %7613 = vmatprep.subr.bf16.mxu0 %v10422_v59  ;;  %v10498_v59 = vld [vmem:[%s11007_s21 + $0x1c70] ss:$8 sps:$4 sm:$0xff]  }
 0x398   : > { %6999 = vmatpush1.bf16.msra.mxu1 %v10417_v22  ;;  %v10503_v22 = vld [vmem:[%s11007_s21 + $0xd84] ss:$8 sps:$4 sm:$0xff]  }
 0x399   : > { %7614 = vmatpush1.bf16.msra.mxu0 %v10420_v55  ;;  %7000 = vmatprep.subr.bf16.mxu1 %v10425_v23  ;;  %v10506_v55 = vld [vmem:[%s11007_s21 + $0x1c84] ss:$8 sps:$4 sm:$0xff]   ;;  %v10501_v23 = vld [vmem:[%s11007_s21 + $0xd80] ss:$8 sps:$4 sm:$0xff]  }
 0x39a   : > { %7615 = vmatprep.subr.bf16.mxu0 %v10428_v24  ;;  %v10504_v24 = vld [vmem:[%s11007_s21 + $0x1c80] ss:$8 sps:$4 sm:$0xff]  }
 0x39c   : > { %7001 = vmatpush1.bf16.msra.mxu1 %v10423_v25  ;;  %v10509_v25 = vld [vmem:[%s11007_s21 + $0xd94] ss:$8 sps:$4 sm:$0xff]  }
 0x39d   : > { %7616 = vmatpush1.bf16.msra.mxu0 %v10426_v27  ;;  %7002 = vmatprep.subr.bf16.mxu1 %v10431_v28  ;;  %v10512_v27 = vld [vmem:[%s11007_s21 + $0x1c94] ss:$8 sps:$4 sm:$0xff]   ;;  %v10507_v28 = vld [vmem:[%s11007_s21 + $0xd90] ss:$8 sps:$4 sm:$0xff]  }
 0x39e   : > { %7617 = vmatprep.subr.bf16.mxu0 %v10434_v9  ;;  %v10510_v9 = vld [vmem:[%s11007_s21 + $0x1c90] ss:$8 sps:$4 sm:$0xff]  }
 0x3a0   : > { %7003 = vmatpush1.bf16.msra.mxu1 %v10429_v63  ;;  %v10515_v63 = vld [vmem:[%s11007_s21 + $0xda4] ss:$8 sps:$4 sm:$0xff]  }
 0x3a1   : > { %7618 = vmatpush1.bf16.msra.mxu0 %v10432_v53  ;;  %7004 = vmatprep.subr.bf16.mxu1 %v10437_v14  ;;  %v10518_v53 = vld [vmem:[%s11007_s21 + $0x1ca4] ss:$8 sps:$4 sm:$0xff]   ;;  %v10513_v14 = vld [vmem:[%s11007_s21 + $0xda0] ss:$8 sps:$4 sm:$0xff]  }
 0x3a2   : > { %7619 = vmatprep.subr.bf16.mxu0 %v10440_v56  ;;  %v10516_v56 = vld [vmem:[%s11007_s21 + $0x1ca0] ss:$8 sps:$4 sm:$0xff]  }
 0x3a4   : > { %7005 = vmatpush1.bf16.msra.mxu1 %v10435_v33  ;;  %v10521_v33 = vld [vmem:[%s11007_s21 + $0xdb4] ss:$8 sps:$4 sm:$0xff]  }
 0x3a5   : > { %7620 = vmatpush1.bf16.msra.mxu0 %v10438_v19  ;;  %7006 = vmatprep.subr.bf16.mxu1 %v10443_v34  ;;  %v10524_v19 = vld [vmem:[%s11007_s21 + $0x1cb4] ss:$8 sps:$4 sm:$0xff]   ;;  %v10519_v34 = vld [vmem:[%s11007_s21 + $0xdb0] ss:$8 sps:$4 sm:$0xff]  }
 0x3a6   : > { %7621 = vmatprep.subr.bf16.mxu0 %v10446_v36  ;;  %v10522_v36 = vld [vmem:[%s11007_s21 + $0x1cb0] ss:$8 sps:$4 sm:$0xff]  }
 0x3a8   : > { %7007 = vmatpush1.bf16.msra.mxu1 %v10441_v40  ;;  %v10527_v40 = vld [vmem:[%s11007_s21 + $0xdc4] ss:$8 sps:$4 sm:$0xff]  }
 0x3a9   : > { %7622 = vmatpush1.bf16.msra.mxu0 %v10444_v20  ;;  %7008 = vmatprep.subr.bf16.mxu1 %v10449_v42  ;;  %v10530_v20 = vld [vmem:[%s11007_s21 + $0x1cc4] ss:$8 sps:$4 sm:$0xff]   ;;  %v10525_v42 = vld [vmem:[%s11007_s21 + $0xdc0] ss:$8 sps:$4 sm:$0xff]  }
 0x3aa   : > { %7623 = vmatprep.subr.bf16.mxu0 %v10452_v44  ;;  %v10528_v44 = vld [vmem:[%s11007_s21 + $0x1cc0] ss:$8 sps:$4 sm:$0xff]  }
 0x3ac   : > { %7009 = vmatpush1.bf16.msra.mxu1 %v10447_v21  ;;  %v10533_v21 = vld [vmem:[%s11007_s21 + $0xdd4] ss:$8 sps:$4 sm:$0xff]  }
 0x3ad   : > { %7624 = vmatpush1.bf16.msra.mxu0 %v10450_v29  ;;  %7019 = vmatprep.subr.bf16.mxu1 %v10455_v45  ;;  %v10536_v29 = vld [vmem:[%s11007_s21 + $0x1cd4] ss:$8 sps:$4 sm:$0xff]   ;;  %v10531_v45 = vld [vmem:[%s11007_s21 + $0xdd0] ss:$8 sps:$4 sm:$0xff]  }
 0x3ae   : > { %7634 = vmatprep.subr.bf16.mxu0 %v10458_v46  ;;  %v10534_v46 = vld [vmem:[%s11007_s21 + $0x1cd0] ss:$8 sps:$4 sm:$0xff]  }
 0x3af   : > { %7011 = vmatmul.mubr.bf16.vlgmr.msra.gmra.mrb[0].mxu1 %v12122_v48 }
 0x3b0   : > { %7626 = vmatmul.mubr.bf16.vlgmr.msra.gmra.mrb[0].mxu0 %v1599_v54  ;;  %7020 = vmatpush1.bf16.msra.mxu1 %v10453_v57  ;;  %v10542_v54 = vld [vmem:[%s11007_s21 + $0x1ce4] ss:$8 sps:$4 sm:$0xff]   ;;  %v10537_v57 = vld [vmem:[%s11007_s21 + $0xde0] ss:$8 sps:$4 sm:$0xff]  }
 0x3b1   : > { %7635 = vmatpush1.bf16.msra.mxu0 %v10456_v58  ;;  %7021 = vmatprep.subr.bf16.mxu1 %v10461_v35  ;;  %v10540_v58 = vld [vmem:[%s11007_s21 + $0x1ce0] ss:$8 sps:$4 sm:$0xff]   ;;  %v10545_v35 = vld [vmem:[%s11007_s21 + $0xdf4] ss:$8 sps:$4 sm:$0xff]  }
 0x3b2   : > { %7636 = vmatprep.subr.bf16.mxu0 %v10464_v31  ;;  %7051 = vmatprep.mubr.bf16.mxu1 %v1453_v60  ;;  %v10548_v31 = vld [vmem:[%s11007_s21 + $0x1cf4] ss:$8 sps:$4 sm:$0xff]   ;;  %v10543_v60 = vld [vmem:[%s11007_s21 + $0xdf0] ss:$8 sps:$4 sm:$0xff]  }
 0x3b3   : > { %7666 = vmatprep.mubr.bf16.mxu0 %v12133_v32 }
 0x3b4   : > { %7022 = vmatpush1.bf16.msra.mxu1 %v10459_v39  ;;  %v10546_v39 = vld [vmem:[%s11007_s21 + $0x1cf0] ss:$8 sps:$4 sm:$0xff]  }
 0x3b5   : > { %7637 = vmatpush1.bf16.msra.mxu0 %v10462_v41  ;;  %7023 = vmatprep.subr.bf16.mxu1 %v10467_v17  ;;  %v10551_v41 = vld [vmem:[%s11007_s21 + $0xe04] ss:$8 sps:$4 sm:$0xff]  }
 0x3b6   : > { %7638 = vmatprep.subr.bf16.mxu0 %v10470_v49  ;;  %v10554_v17 = vld [vmem:[%s11007_s21 + $0x1d04] ss:$8 sps:$4 sm:$0xff]   ;;  %v1451_v49 = vcombine.high %v12122_v48, %v12122_v48 }
 0x3b7   : > { %v10563_v48 = vld [vmem:[%s11007_s21 + $0xe24] ss:$8 sps:$4 sm:$0xff]  }
 0x3b8   : > { %7024 = vmatpush1.bf16.msra.mxu1 %v10465_v61  ;;  %v12201_v61 = vrot.slane %v12112_v26, %v11074_v52  ;;  %v10555_v52 = vld [vmem:[%s11007_s21 + $0xe10] ss:$8 sps:$4 sm:$0xff]  }
 0x3b9   : > { %7639 = vmatpush1.bf16.msra.mxu0 %v10468_v62  ;;  %7025 = vmatprep.subr.bf16.mxu1 %v10473_v2  ;;  %v10549_v62 = vld [vmem:[%s11007_s21 + $0xe00] ss:$8 sps:$4 sm:$0xff]   ;;  %v10558_v26 = vld [vmem:[%s11007_s21 + $0x1d10] ss:$8 sps:$4 sm:$0xff]  }
 0x3ba   : > { %7640 = vmatprep.subr.bf16.mxu0 %v10476_v3  ;;  %v10552_v2 = vld [vmem:[%s11007_s21 + $0x1d00] ss:$8 sps:$4 sm:$0xff]   ;;  %v10557_v3 = vld [vmem:[%s11007_s21 + $0xe14] ss:$8 sps:$4 sm:$0xff]  }
 0x3bc   : > { %7026 = vmatpush1.bf16.msra.mxu1 %v10471_v6  ;;  %v10560_v6 = vld [vmem:[%s11007_s21 + $0x1d14] ss:$8 sps:$4 sm:$0xff]  }
 0x3bd   : > { %7641 = vmatpush1.bf16.msra.mxu0 %v10474_v43  ;;  %7027 = vmatprep.subr.bf16.mxu1 %v10479_v51  ;;  %v1625_v43 = vcombine.high %v12133_v32, %v12133_v32  ;;  %v10566_v51 = vld [vmem:[%s11007_s21 + $0x1d24] ss:$8 sps:$4 sm:$0xff]   ;;  %v10561_v32 = vld [vmem:[%s11007_s21 + $0xe20] ss:$8 sps:$4 sm:$0xff]  }
 0x3be   : > { %7642 = vmatprep.subr.bf16.mxu0 %v10482_v7  ;;  %v10564_v7 = vld [vmem:[%s11007_s21 + $0x1d20] ss:$8 sps:$4 sm:$0xff]  }
 0x3c0   : > { %7028 = vmatpush1.bf16.msra.mxu1 %v10477_v50  ;;  %v10569_v50 = vld [vmem:[%s11007_s21 + $0xe34] ss:$8 sps:$4 sm:$0xff]  }
 0x3c1   : > { %7643 = vmatpush1.bf16.msra.mxu0 %v10480_v8  ;;  %7029 = vmatprep.subr.bf16.mxu1 %v10485_v37  ;;  %v10572_v8 = vld [vmem:[%s11007_s21 + $0x1d34] ss:$8 sps:$4 sm:$0xff]   ;;  %v10567_v37 = vld [vmem:[%s11007_s21 + $0xe30] ss:$8 sps:$4 sm:$0xff]  }
 0x3c2   : > { %7644 = vmatprep.subr.bf16.mxu0 %v10488_v38  ;;  %v10575_v38 = vld [vmem:[%s11007_s21 + $0xe44] ss:$8 sps:$4 sm:$0xff]  }
 0x3c4   : > { %7030 = vmatpush1.bf16.msra.mxu1 %v10483_v10  ;;  %v10578_v10 = vld [vmem:[%s11007_s21 + $0x1d44] ss:$8 sps:$4 sm:$0xff]  }
 0x3c5   : > { %7645 = vmatpush1.bf16.msra.mxu0 %v10486_v11  ;;  %7031 = vmatprep.subr.bf16.mxu1 %v10491_v12  ;;  %v10573_v11 = vld [vmem:[%s11007_s21 + $0xe40] ss:$8 sps:$4 sm:$0xff]  }
 0x3c6   : > { %7646 = vmatprep.subr.bf16.mxu0 %v10494_v13  ;;  %v10576_v12 = vld [vmem:[%s11007_s21 + $0x1d40] ss:$8 sps:$4 sm:$0xff]   ;;  %v10581_v13 = vld [vmem:[%s11007_s21 + $0xe54] ss:$8 sps:$4 sm:$0xff]  }
 0x3c8   : > { %7032 = vmatpush1.bf16.msra.mxu1 %v10489_v16  ;;  %v10584_v16 = vld [vmem:[%s11007_s21 + $0x1d54] ss:$8 sps:$4 sm:$0xff]  }
 0x3c9   : > { %7647 = vmatpush1.bf16.msra.mxu0 %v10492_v1  ;;  %7033 = vmatprep.subr.bf16.mxu1 %v10497_v18  ;;  %v10579_v1 = vld [vmem:[%s11007_s21 + $0xe50] ss:$8 sps:$4 sm:$0xff]  }
 0x3ca   : > { %7648 = vmatprep.subr.bf16.mxu0 %v10500_v4  ;;  %v10582_v18 = vld [vmem:[%s11007_s21 + $0x1d50] ss:$8 sps:$4 sm:$0xff]   ;;  %v10587_v4 = vld [vmem:[%s11007_s21 + $0xe64] ss:$8 sps:$4 sm:$0xff]  }
 0x3cc   : > { %7034 = vmatpush1.bf16.msra.mxu1 %v10495_v0  ;;  %v10590_v0 = vld [vmem:[%s11007_s21 + $0x1d64] ss:$8 sps:$4 sm:$0xff]  }
 0x3cd   : > { %7649 = vmatpush1.bf16.msra.mxu0 %v10498_v59  ;;  %7035 = vmatprep.subr.bf16.mxu1 %v10503_v22  ;;  %v10585_v59 = vld [vmem:[%s11007_s21 + $0xe60] ss:$8 sps:$4 sm:$0xff]  }
 0x3ce   : > { %7650 = vmatprep.subr.bf16.mxu0 %v10506_v55  ;;  %v10588_v22 = vld [vmem:[%s11007_s21 + $0x1d60] ss:$8 sps:$4 sm:$0xff]   ;;  %v10593_v55 = vld [vmem:[%s11007_s21 + $0xe74] ss:$8 sps:$4 sm:$0xff]  }
 0x3d0   : > { %7036 = vmatpush1.bf16.msra.mxu1 %v10501_v23  ;;  %v10596_v23 = vld [vmem:[%s11007_s21 + $0x1d74] ss:$8 sps:$4 sm:$0xff]  }
 0x3d1   : > { %7651 = vmatpush1.bf16.msra.mxu0 %v10504_v24  ;;  %7037 = vmatprep.subr.bf16.mxu1 %v10509_v25  ;;  %v10591_v24 = vld [vmem:[%s11007_s21 + $0xe70] ss:$8 sps:$4 sm:$0xff]  }
 0x3d2   : > { %7652 = vmatprep.subr.bf16.mxu0 %v10512_v27  ;;  %v10594_v25 = vld [vmem:[%s11007_s21 + $0x1d70] ss:$8 sps:$4 sm:$0xff]   ;;  %v10599_v27 = vld [vmem:[%s11007_s21 + $0xe84] ss:$8 sps:$4 sm:$0xff]  }
 0x3d4   : > { %7038 = vmatpush1.bf16.msra.mxu1 %v10507_v28  ;;  %v10602_v28 = vld [vmem:[%s11007_s21 + $0x1d84] ss:$8 sps:$4 sm:$0xff]  }
 0x3d5   : > { %7653 = vmatpush1.bf16.msra.mxu0 %v10510_v9  ;;  %7039 = vmatprep.subr.bf16.mxu1 %v10515_v63  ;;  %v10597_v9 = vld [vmem:[%s11007_s21 + $0xe80] ss:$8 sps:$4 sm:$0xff]  }
 0x3d6   : > { %7654 = vmatprep.subr.bf16.mxu0 %v10518_v53  ;;  %v10600_v63 = vld [vmem:[%s11007_s21 + $0x1d80] ss:$8 sps:$4 sm:$0xff]   ;;  %v10605_v53 = vld [vmem:[%s11007_s21 + $0xe94] ss:$8 sps:$4 sm:$0xff]  }
 0x3d8   : > { %7040 = vmatpush1.bf16.msra.mxu1 %v10513_v14  ;;  %v10608_v14 = vld [vmem:[%s11007_s21 + $0x1d94] ss:$8 sps:$4 sm:$0xff]  }
 0x3d9   : > { %7655 = vmatpush1.bf16.msra.mxu0 %v10516_v56  ;;  %7041 = vmatprep.subr.bf16.mxu1 %v10521_v33  ;;  %v10603_v56 = vld [vmem:[%s11007_s21 + $0xe90] ss:$8 sps:$4 sm:$0xff]  }
 0x3da   : > { %7656 = vmatprep.subr.bf16.mxu0 %v10524_v19  ;;  %v10606_v33 = vld [vmem:[%s11007_s21 + $0x1d90] ss:$8 sps:$4 sm:$0xff]   ;;  %v10611_v19 = vld [vmem:[%s11007_s21 + $0xea4] ss:$8 sps:$4 sm:$0xff]  }
 0x3dc   : > { %7042 = vmatpush1.bf16.msra.mxu1 %v10519_v34  ;;  %v10614_v34 = vld [vmem:[%s11007_s21 + $0x1da4] ss:$8 sps:$4 sm:$0xff]  }
 0x3dd   : > { %7657 = vmatpush1.bf16.msra.mxu0 %v10522_v36  ;;  %7043 = vmatprep.subr.bf16.mxu1 %v10527_v40  ;;  %v10609_v36 = vld [vmem:[%s11007_s21 + $0xea0] ss:$8 sps:$4 sm:$0xff]  }
 0x3de   : > { %7658 = vmatprep.subr.bf16.mxu0 %v10530_v20  ;;  %v10612_v40 = vld [vmem:[%s11007_s21 + $0x1da0] ss:$8 sps:$4 sm:$0xff]   ;;  %v10617_v20 = vld [vmem:[%s11007_s21 + $0xeb4] ss:$8 sps:$4 sm:$0xff]  }
 0x3e0   : > { %7044 = vmatpush1.bf16.msra.mxu1 %v10525_v42  ;;  %v10620_v42 = vld [vmem:[%s11007_s21 + $0x1db4] ss:$8 sps:$4 sm:$0xff]  }
 0x3e1   : > { %7659 = vmatpush1.bf16.msra.mxu0 %v10528_v44  ;;  %7045 = vmatprep.subr.bf16.mxu1 %v10533_v21  ;;  %v10615_v44 = vld [vmem:[%s11007_s21 + $0xeb0] ss:$8 sps:$4 sm:$0xff]  }
 0x3e2   : > { %7660 = vmatprep.subr.bf16.mxu0 %v10536_v29  ;;  %v10618_v21 = vld [vmem:[%s11007_s21 + $0x1db0] ss:$8 sps:$4 sm:$0xff]   ;;  %v10623_v29 = vld [vmem:[%s11007_s21 + $0xec4] ss:$8 sps:$4 sm:$0xff]  }
 0x3e4   : > { %7046 = vmatpush1.bf16.msra.mxu1 %v10531_v45  ;;  %v10626_v45 = vld [vmem:[%s11007_s21 + $0x1dc4] ss:$8 sps:$4 sm:$0xff]  }
 0x3e5   : > { %7661 = vmatpush1.bf16.msra.mxu0 %v10534_v46  ;;  %7047 = vmatprep.subr.bf16.mxu1 %v10539_v30  ;;  %v10621_v46 = vld [vmem:[%s11007_s21 + $0xec0] ss:$8 sps:$4 sm:$0xff]  }
 0x3e6   : > { %7662 = vmatprep.subr.bf16.mxu0 %v10542_v54  ;;  %v10624_v30 = vld [vmem:[%s11007_s21 + $0x1dc0] ss:$8 sps:$4 sm:$0xff]   ;;  %v10629_v54 = vld [vmem:[%s11007_s21 + $0xed4] ss:$8 sps:$4 sm:$0xff]  }
 0x3e8   : > { %7048 = vmatpush1.bf16.msra.mxu1 %v10537_v57  ;;  %v10632_v57 = vld [vmem:[%s11007_s21 + $0x1dd4] ss:$8 sps:$4 sm:$0xff]  }
 0x3e9   : > { %7663 = vmatpush1.bf16.msra.mxu0 %v10540_v58  ;;  %7049 = vmatprep.subr.bf16.mxu1 %v10545_v35  ;;  %v10627_v58 = vld [vmem:[%s11007_s21 + $0xed0] ss:$8 sps:$4 sm:$0xff]  }
 0x3ea   : > { %7664 = vmatprep.subr.bf16.mxu0 %v10548_v31  ;;  %v10630_v35 = vld [vmem:[%s11007_s21 + $0x1dd0] ss:$8 sps:$4 sm:$0xff]   ;;  %v10635_v31 = vld [vmem:[%s11007_s21 + $0xee4] ss:$8 sps:$4 sm:$0xff]  }
 0x3ec   : > { %7050 = vmatpush1.bf16.msra.mxu1 %v10543_v60  ;;  %v10638_v60 = vld [vmem:[%s11007_s21 + $0x1de4] ss:$8 sps:$4 sm:$0xff]  }
 0x3ed   : > { %7665 = vmatpush1.bf16.msra.mxu0 %v10546_v39  ;;  %7060 = vmatprep.subr.bf16.mxu1 %v10551_v41  ;;  %v10633_v39 = vld [vmem:[%s11007_s21 + $0xee0] ss:$8 sps:$4 sm:$0xff]  }
 0x3ee   : > { %7675 = vmatprep.subr.bf16.mxu0 %v10554_v17  ;;  %v10636_v41 = vld [vmem:[%s11007_s21 + $0x1de0] ss:$8 sps:$4 sm:$0xff]   ;;  %v10641_v17 = vld [vmem:[%s11007_s21 + $0xef4] ss:$8 sps:$4 sm:$0xff]  }
 0x3ef   : > { %7052 = vmatmul.mubr.bf16.vlgmr.msra.gmra.mrb[0].mxu1 %v1451_v49  ;;  %v10644_v49 = vld [vmem:[%s11007_s21 + $0x1df4] ss:$8 sps:$4 sm:$0xff]  }
 0x3f0   : > { %7667 = vmatmul.mubr.bf16.vlgmr.msra.gmra.mrb[0].mxu0 %v12201_v61  ;;  %7061 = vmatpush1.bf16.msra.mxu1 %v10549_v62  ;;  %v10639_v62 = vld [vmem:[%s11007_s21 + $0xef0] ss:$8 sps:$4 sm:$0xff]  }
 0x3f1   : > { %7676 = vmatpush1.bf16.msra.mxu0 %v10552_v2  ;;  %7062 = vmatprep.subr.bf16.mxu1 %v10557_v3  ;;  %v10642_v2 = vld [vmem:[%s11007_s21 + $0x1df0] ss:$8 sps:$4 sm:$0xff]   ;;  %v1624_v3 = vcombine.high %v12201_v61, %v12201_v61 }
 0x3f2   : > { %7677 = vmatprep.subr.bf16.mxu0 %v10560_v6  ;;  %7092 = vmatprep.mubr.bf16.mxu1 %v11093_v5  ;;  %v10570_v5 = vld [vmem:[%s11007_s21 + $0x1d30] ss:$8 sps:$4 sm:$0xff]   ;;  %v10814_v6 = vmov 1983009808  }
 0x3f3   : > { %7707 = vmatprep.mubr.bf16.mxu0 %v1625_v43  ;;  %v7720_v43 = vunpack.c.l.s4 %v10814_v6 }
 0x3f4   : > { %7063 = vmatpush1.bf16.msra.mxu1 %v10555_v52 }
 0x3f5   : > { %7678 = vmatpush1.bf16.msra.mxu0 %v10558_v26  ;;  %7064 = vmatprep.subr.bf16.mxu1 %v10563_v48  ;;  %v7721_v52 = vunpack.c.0.s8 %v7720_v43 }
 0x3f6   : > { %7679 = vmatprep.subr.bf16.mxu0 %v10566_v51 }
 0x3f8   : > { %7065 = vmatpush1.bf16.msra.mxu1 %v10561_v32 }
 0x3f9   : > { %7680 = vmatpush1.bf16.msra.mxu0 %v10564_v7  ;;  %7066 = vmatprep.subr.bf16.mxu1 %v10569_v50 }
 0x3fa   : > { %7681 = vmatprep.subr.bf16.mxu0 %v10572_v8  ;;  %v12273_v8 = vsub.s32 %v7721_v52, %v11067_v47 }
 0x3fc   : > { %7067 = vmatpush1.bf16.msra.mxu1 %v10567_v37 }
 0x3fd   : > { %7682 = vmatpush1.bf16.msra.mxu0 %v10570_v5  ;;  %7068 = vmatprep.subr.bf16.mxu1 %v10575_v38 }
 0x3fe   : > { %7683 = vmatprep.subr.bf16.mxu0 %v10578_v10 }
 0x400   : > { %7069 = vmatpush1.bf16.msra.mxu1 %v10573_v11  ;;  %v282_v11 = vld [vmem:[#allocation2] sm:$0xf] }
 0x401   : > { %7684 = vmatpush1.bf16.msra.mxu0 %v10576_v12  ;;  %7070 = vmatprep.subr.bf16.mxu1 %v10581_v13  ;;  %v7771_v13 = vld [vmem:[%s12416_s3 + $0x80] sm:$0xff] (!%p8934_p6) }
 0x402   : > { %7685 = vmatprep.subr.bf16.mxu0 %v10584_v16  ;;  %v7772_v16 = vld [vmem:[%s12416_s3 + $0x88] sm:$0xff] (!%p8934_p6) }
 0x404   : > { %7071 = vmatpush1.bf16.msra.mxu1 %v10579_v1  ;;  %v7755_v1 = vld [vmem:[%s12416_s3] sm:$0xff] (!%p8934_p6) }
 0x405   : > { %7686 = vmatpush1.bf16.msra.mxu0 %v10582_v18  ;;  %7072 = vmatprep.subr.bf16.mxu1 %v10587_v4  ;;  %v8978_v18 = vpack.c.bf16 (!%p8934_p6), %v7772_v16, %v7771_v13  ;;  %v7756_v4 = vld [vmem:[%s12416_s3 + $0x8] sm:$0xff] (!%p8934_p6) }
 0x406   : > { %7687 = vmatprep.subr.bf16.mxu0 %v10590_v0  ;;  %v7773_v0 = vld [vmem:[%s12416_s3 + $0x90] sm:$0xff] (!%p8934_p6) }
 0x408   : > { %7073 = vmatpush1.bf16.msra.mxu1 %v10585_v59  ;;  %v7774_v59 = vld [vmem:[%s12416_s3 + $0x98] sm:$0xff] (!%p8934_p6) }
 0x409   : > { %7688 = vmatpush1.bf16.msra.mxu0 %v10588_v22  ;;  %7074 = vmatprep.subr.bf16.mxu1 %v10593_v55  ;;  %v8980_v22 = vpack.c.bf16 (!%p8934_p6), %v7756_v4, %v7755_v1  ;;  %v8982_v55 = vpack.c.bf16 (!%p8934_p6), %v7774_v59, %v7773_v0 }
 0x40a   : > { %7689 = vmatprep.subr.bf16.mxu0 %v10596_v23  ;;  %v7757_v23 = vld [vmem:[%s12416_s3 + $0x10] sm:$0xff] (!%p8934_p6) }
 0x40c   : > { %7075 = vmatpush1.bf16.msra.mxu1 %v10591_v24  ;;  %v7758_v24 = vld [vmem:[%s12416_s3 + $0x18] sm:$0xff] (!%p8934_p6) }
 0x40d   : > { %7690 = vmatpush1.bf16.msra.mxu0 %v10594_v25  ;;  %7076 = vmatprep.subr.bf16.mxu1 %v10599_v27  ;;  %v7775_v25 = vld [vmem:[%s12416_s3 + $0xa0] sm:$0xff] (!%p8934_p6)  ;;  %v7776_v27 = vld [vmem:[%s12416_s3 + $0xa8] sm:$0xff] (!%p8934_p6) }
 0x40e   : > { %7691 = vmatprep.subr.bf16.mxu0 %v10602_v28  ;;  %v8984_v28 = vpack.c.bf16 (!%p8934_p6), %v7758_v24, %v7757_v23 }
 0x410   : > { %7077 = vmatpush1.bf16.msra.mxu1 %v10597_v9  ;;  %v8986_v9 = vpack.c.bf16 (!%p8934_p6), %v7776_v27, %v7775_v25 }
 0x411   : > { %7692 = vmatpush1.bf16.msra.mxu0 %v10600_v63  ;;  %7078 = vmatprep.subr.bf16.mxu1 %v10605_v53  ;;  %v7759_v63 = vld [vmem:[%s12416_s3 + $0x20] sm:$0xff] (!%p8934_p6)  ;;  %v7760_v53 = vld [vmem:[%s12416_s3 + $0x28] sm:$0xff] (!%p8934_p6) }
 0x412   : > { %7693 = vmatprep.subr.bf16.mxu0 %v10608_v14  ;;  %v7777_v14 = vld [vmem:[%s12416_s3 + $0xb0] sm:$0xff] (!%p8934_p6) }
 0x414   : > { %7079 = vmatpush1.bf16.msra.mxu1 %v10603_v56  ;;  %v7778_v56 = vld [vmem:[%s12416_s3 + $0xb8] sm:$0xff] (!%p8934_p6) }
 0x415   : > { %7694 = vmatpush1.bf16.msra.mxu0 %v10606_v33  ;;  %7080 = vmatprep.subr.bf16.mxu1 %v10611_v19  ;;  %v8988_v33 = vpack.c.bf16 (!%p8934_p6), %v7760_v53, %v7759_v63  ;;  %v7738_v19 = vsub.s32 (!%p8934_p6), 0, %v11067_v47 }
 0x416   : > { %7695 = vmatprep.subr.bf16.mxu0 %v10614_v34  ;;  %v7742_v34 = vsub.s32 (!%p8934_p6), 1, %v11067_v47 }
 0x418   : > { %7081 = vmatpush1.bf16.msra.mxu1 %v10609_v36  ;;  %v8990_v36 = vpack.c.bf16 (!%p8934_p6), %v7778_v56, %v7777_v14 }
 0x419   : > { %7696 = vmatpush1.bf16.msra.mxu0 %v10612_v40  ;;  %7082 = vmatprep.subr.bf16.mxu1 %v10617_v20  ;;  %v7761_v40 = vld [vmem:[%s12416_s3 + $0x30] sm:$0xff] (!%p8934_p6)  ;;  %v7762_v20 = vld [vmem:[%s12416_s3 + $0x38] sm:$0xff] (!%p8934_p6) }
 0x41a   : > { %7697 = vmatprep.subr.bf16.mxu0 %v10620_v42  ;;  %v7779_v42 = vld [vmem:[%s12416_s3 + $0xc0] sm:$0xff] (!%p8934_p6)  ;;  %v8992_v47 = vpack.c.bf16 (!%p8934_p6), %v7762_v20, %v7761_v40 }
 0x41c   : > { %7083 = vmatpush1.bf16.msra.mxu1 %v10615_v44  ;;  %v7780_v44 = vld [vmem:[%s12416_s3 + $0xc8] sm:$0xff] (!%p8934_p6) }
 0x41d   : > { %7698 = vmatpush1.bf16.msra.mxu0 %v10618_v21  ;;  %7084 = vmatprep.subr.bf16.mxu1 %v10623_v29  ;;  %v7734_v21 = vld [vmem:[#allocation6] sm:$0x3] (!%p8934_p6) }
 0x41e   : > { %7699 = vmatprep.subr.bf16.mxu0 %v10626_v45  ;;  %v7739_v29 = vrot.slane (!%p8934_p6), %v7734_v21, %v7738_v19  ;;  %v7743_v45 = vrot.slane (!%p8934_p6), %v7734_v21, %v7742_v34 }
 0x420   : > { %7085 = vmatpush1.bf16.msra.mxu1 %v10621_v46  ;;  %v8994_v46 = vpack.c.bf16 (!%p8934_p6), %v7780_v44, %v7779_v42 }
 0x421   : > { %7700 = vmatpush1.bf16.msra.mxu0 %v10624_v30  ;;  %7086 = vmatprep.subr.bf16.mxu1 %v10629_v54  ;;  %v7763_v30 = vld [vmem:[%s12416_s3 + $0x40] sm:$0xff] (!%p8934_p6)  ;;  %v7764_v54 = vld [vmem:[%s12416_s3 + $0x48] sm:$0xff] (!%p8934_p6) }
 0x422   : > { %7701 = vmatprep.subr.bf16.mxu0 %v10632_v57  ;;  %v7781_v57 = vld [vmem:[%s12416_s3 + $0xd0] sm:$0xff] (!%p8934_p6) }
 0x424   : > { %7087 = vmatpush1.bf16.msra.mxu1 %v10627_v58  ;;  %v7782_v58 = vld [vmem:[%s12416_s3 + $0xd8] sm:$0xff] (!%p8934_p6) }
 0x425   : > { %7702 = vmatpush1.bf16.msra.mxu0 %v10630_v35  ;;  %7088 = vmatprep.subr.bf16.mxu1 %v10635_v31  ;;  %v7744_v35 = vcombine.low (!%p8934_p6), %v7739_v29, %v7743_v45 }
 0x426   : > { %7703 = vmatprep.subr.bf16.mxu0 %v10638_v60  ;;  %v8996_v60 = vpack.c.bf16 (!%p8934_p6), %v7764_v54, %v7763_v30 }
 0x428   : > { %7089 = vmatpush1.bf16.msra.mxu1 %v10633_v39  ;;  %v7751_v39 = vrot.slane (!%p8934_p6), %v7744_v35, %v12273_v8 }
 0x429   : > { %7704 = vmatpush1.bf16.msra.mxu0 %v10636_v41  ;;  %7090 = vmatprep.subr.bf16.mxu1 %v10641_v17  ;;  %v8998_v41 = vpack.c.bf16 (!%p8934_p6), %v7782_v58, %v7781_v57  ;;  %v7765_v17 = vld [vmem:[%s12416_s3 + $0x50] sm:$0xff] (!%p8934_p6) }
 0x42a   : > { %7705 = vmatprep.subr.bf16.mxu0 %v10644_v49  ;;  %v7766_v49 = vld [vmem:[%s12416_s3 + $0x58] sm:$0xff] (!%p8934_p6) }
 0x42b   : > { %v9000_v6 = vpack.c.bf16 (!%p8934_p6), %v7766_v49, %v7765_v17 }
 0x42c   : > { %7091 = vmatpush1.bf16.msra.mxu1 %v10639_v62  ;;  %v7783_v62 = vld [vmem:[%s12416_s3 + $0xe0] sm:$0xff] (!%p8934_p6) }
 0x42d   : > { %7706 = vmatpush1.bf16.msra.mxu0 %v10642_v2  ;;  %v7784_v2 = vld [vmem:[%s12416_s3 + $0xe8] sm:$0xff] (!%p8934_p6) }
 0x42e   : > { %8979 = vmatprep.subr.bf16.mxu0 (!%p8934_p6), %v8978_v18  ;;  %v9002_v52 = vpack.c.bf16 (!%p8934_p6), %v7784_v2, %v7783_v62 }
 0x42f   : > { %7093 = vmatmul.mubr.bf16.vlgmr.msra.gmra.mrb[0].mxu1 %v11106_v15 }
 0x430   : > { %7708 = vmatmul.mubr.bf16.vlgmr.msra.gmra.mrb[0].mxu0 %v1624_v3 }
 0x431   : > { %8981 = vmatpush3.bf16.msra.mxu0 (!%p8934_p6), %v8980_v22 }
 0x432   : > { %8983 = vmatprep.subr.bf16.mxu0 (!%p8934_p6), %v8982_v55 }
 0x435   : > { %8985 = vmatpush3.bf16.msra.mxu0 (!%p8934_p6), %v8984_v28 }
 0x436   : > { %8987 = vmatprep.subr.bf16.mxu0 (!%p8934_p6), %v8986_v9 }
 0x439   : > { %8989 = vmatpush3.bf16.msra.mxu0 (!%p8934_p6), %v8988_v33 }
 0x43a   : > { %8991 = vmatprep.subr.bf16.mxu0 (!%p8934_p6), %v8990_v36 }
 0x43d   : > { %8993 = vmatpush3.bf16.msra.mxu0 (!%p8934_p6), %v8992_v47 }
 0x43e   : > { %8995 = vmatprep.subr.bf16.mxu0 (!%p8934_p6), %v8994_v46 }
 0x441   : > { %8997 = vmatpush3.bf16.msra.mxu0 (!%p8934_p6), %v8996_v60 }
 0x442   : > { %8999 = vmatprep.subr.bf16.mxu0 (!%p8934_p6), %v8998_v41 }
 0x445   : > { %9001 = vmatpush3.bf16.msra.mxu0 (!%p8934_p6), %v9000_v6 }
 0x446   : > { %9003 = vmatprep.subr.bf16.mxu0 (!%p8934_p6), %v9002_v52 }
 0x502   : > { %v7094_v26 = vpop.f32.mrb[0].mxu1 }
 0x503   : > { %v7709_v48 = vpop.f32.mrb[0].mxu0  ;;  %v7096_v32 = vpop.f32.mrb[1].mxu1 }
 0x504   : > { %v9010_v51 = vadd.f32 %v7709_v48, %v7094_v26  ;;  %v7711_v7 = vpop.f32.mrb[1].mxu0  ;;  %v7098_v37 = vpop.f32.mrb[2].mxu1  ;;  %v7767_v26 = vld [vmem:[%s12416_s3 + $0x60] sm:$0xff] (!%p8934_p6)  ;;  %v7768_v48 = vld [vmem:[%s12416_s3 + $0x68] sm:$0xff] (!%p8934_p6) }
 0x505   : > { %v9011_v50 = vadd.f32 %v7711_v7, %v7096_v32  ;;  %v7713_v5 = vpop.f32.mrb[2].mxu0  ;;  %v7099_v61 = vpop.f32.mrb[3].mxu1  ;;  %v7786_v32 = vld [vmem:[%s12416_s3 + $0xf8] sm:$0xff] (!%p8934_p6) }
 0x506   : > { %v7714_v38 = vpop.f32.mrb[3].mxu0  ;;  %v7769_v61 = vld [vmem:[%s12416_s3 + $0x70] sm:$0xff] (!%p8934_p6) }
 0x507   : > { %v7718_v10 = vcombine.low %v9010_v51, %v9011_v50  ;;  %7732 = sbr.rel (%p8934_p6) target bundleno = 1528 (0x5f8), region = 60  ;;  %v7785_v51 = vld [vmem:[%s12416_s3 + $0xf0] sm:$0xff] (!%p8934_p6)  ;;  %v9004_v50 = vpack.c.bf16 (!%p8934_p6), %v7768_v48, %v7767_v26  ;;  %v7770_v38 = vld [vmem:[%s12416_s3 + $0x78] sm:$0xff] (!%p8934_p6) }
 0x508   : > { %v9006_v5 = vpack.c.bf16 (!%p8934_p6), %v7786_v32, %v7785_v51 }
 0x509   : > { %v7725_v15 = vrot.slane %v7718_v10, %v12273_v8  ;;  %9005 = vmatpush3.bf16.msra.mxu0 (!%p8934_p6), %v9004_v50  ;;  %v9008_v10 = vpack.c.bf16 (!%p8934_p6), %v7770_v38, %v7769_v61 }
 0x50a   : > { %9007 = vmatprep.subr.bf16.mxu0 (!%p8934_p6), %v9006_v5 }
 0x50b   : > { %v7727_v12 = vadd.f32 %v7725_v15, %v282_v11  ;;  %v8935_v11 = vld [vmem:[#allocation8] ss:$0 sm:$0xff] (!%p8934_p6) }
 0x50d   : > { %7728 = vst [vmem:[#allocation2] sm:$0xf] %v7727_v12  ;;  %9009 = vmatpush3.bf16.msra.mxu0 (!%p8934_p6), %v9008_v10 }
 0x514   : > { %v7733_v31 = vld [vmem:[#allocation2] sm:$0xf] }
 0x515   : > { %v7753_v3 = vadd.f32 %v7751_v39, %v7733_v31 }
 0x517   : > { %v7754_v43 = vmax.f32 %v7753_v3, 0.0 }
 0x519   : > { %v7801_v7 = vrot.slane %v7754_v43, %v12273_v8 }
 0x51b   : > { %v7802_v37 = vcombine.high %v7801_v7, %v7801_v7 }
 0x51d   : > { %7869 = vmatprep.mubr.f32.mxu0 %v7802_v37 }
 0x51e   : > { %7870 = vmatmul.mubr.f32.vlgmr.msra.gmra.mrb[0].mxu0 %v7801_v7 }
 0x5f1   : > { %v8975_v8 = vpop.f32.mrb[0].mxu0 }
 0x5f2   : > { %v8976_v15 = vpop.f32.mrb[1].mxu0 }
 0x5f3   : > { %v8977_v12 = vadd.f32 %v8976_v15, %v8975_v8 }
 0x5f5   : > { %v7872_v13 = vadd.f32 %v8977_v12, %v8935_v11 }
 0x5f7   : > { %7876 = vst.msk [vmem:[#allocation9] sm:$0x3] %vm7875_vm0, %v7872_v13 }
 0x5f8 PF: > { %p9156_p7 = scmp.eq.s32.totalorder %s10865_s22, 1  ;;  %s10815_s6 = smov [#allocation9]  }
 0x5f9   : > { %s7884_s17 = sshll.u32 %s10815_s6, 4  ;;  %s7885_s17 = int_to_ptr.vmem [resolvable:$true] %s7884_s17 }
 0x5fa   : > { %s10737_s11 = scalar_lea.vmem %s7885_s17, 32  ;;  %p10744_p5 = scmp.lt.s32.totalorder %s7885_s17, %s7885_s17 }
 0x5fb   : > { %p10738_p11 = scmp.ne.s32.totalorder %s7885_s17, %s10737_s11  ;;  %p10745_p9 = scmp.lt.s32.totalorder %s10737_s11, %s10737_s11 }
 0x5fd   : > { %p10739_p12 = pnand %p10738_p11, %p9156_p7  ;;  %p10746_p10 = por %p10745_p9, %p10744_p5 }
 0x5ff   : > { %p10740_p13 = pneg %p10739_p12 }
 0x601   : > { %p10747_p1 = pnand %p10746_p10, %p10740_p13 }
 0x603   : > { %10750 = shalt.err (!%p10747_p1)
}
 0x604   : > { %s10751_s25 = scalar_lea.hbm %s12418_s5, 32 }
 0x605   : > { %p10752_p8 = scmp.ne.s32.totalorder %s12418_s5, %s10751_s25  ;;  %p10757_p3 = scmp.lt.u32.totalorder %s10751_s25, %s12418_s5 }
 0x607   : > { %p10753_p0 = pnand %p10752_p8, %p9156_p7 }
 0x609   : > { %p10754_p2 = pneg %p10753_p0 }
 0x60b   : > { %p10759_p4 = pnand %p10757_p3, %p10754_p2 }
 0x60d   : > { %10762 = shalt.err (!%p10759_p4)
}
 0x60e   : > { %9137 = dma.vmem_to_hbm [thread:$0]  (%p9156_p7), %s7885_s17, 32, %s12418_s5, [#allocation5]  }
 0x60f   : > { %10788 = dma.done.wait (%p9156_p7), [#allocation5], 32  }
 0x610   : > { %10790 = vsyncadd (%p9156_p7), [#allocation5], 4294967264 }
 0x611 PF: > { %p17_p6 = scmp.ge.s32.totalorder %s10868_s23, 4   ;;  %s12434_s18 = smov %s10797_s19 }
 0x612   : > { %s12435_s19 = smov %s10801_s20  ;;  %s12436_s20 = smov %s10878_s26 }
 0x613   : > { %s12437_s21 = smov %s10868_s23  ;;  %19 = sbr.rel (!%p17_p6) target bundleno = 5 (0x5), region = 96 }
 0x61a   :  { %7897 = vsyncpa [#allocation4], 1 }
 0x61b   :  { %7899 = vsyncpa [#allocation4 + $0x1], 1 }
 0x61c   :  { %7900 = vsyncpa [#allocation7], 1 }
 0x61d   :  { %7901 = vsyncpa [#allocation5], 1 }
 0x61e   :  { %7903 = vsyncpa [#allocation5 + $0x1], 1 }

</bundles_post_ra>
